<compile_context>
chip_gen: v7x
topology: tpu7x:2x2x1
jax: 0.10.0
libtpu: 0.0.40
codegen_flags: <defaults>
</compile_context>

<pallas_src>
import functools
import math

import jax
import jax.numpy as jnp
from jax import lax
from jax.experimental import pallas as pl
from jax.experimental.pallas import tpu as pltpu

BN_EPS = 1e-5


def _round_up(x, m):
    return (x + m - 1) // m * m


def _choose_tile(dim, unit, max_tile):
    """Divisor-aware tile choice.

    Returns (tile, padded_dim): the largest multiple of `unit` (<= max_tile)
    whose zero-padding overhead stays within ~12.5% of the minimal
    (unit-granular) padded size.  E.g. dim=768, unit=128 -> 384 (not 512,
    which would pad to 1024 and waste 25% of MXU cycles / DMA bytes).
    """
    dim_min = _round_up(dim, unit)
    if dim_min <= max_tile:
        return dim_min, dim_min
    choice = unit
    t = unit
    while t <= max_tile:
        if _round_up(dim, t) * 8 <= dim_min * 9:    # <= 12.5% extra padding
            choice = t
        t += unit
    return choice, _round_up(dim, choice)


# ----------------------------- Pallas kernels ------------------------------

def _mm_single_k_kernel(x_ref, w_ref, s_ref, o_ref, *, relu):
    """One-shot (tm,K)@(K,tn): bf16 MXU feed, f32 accumulate, +shift[, ReLU].

    Used whenever K fits a single block (all InceptionC 1x1 convs): no K grid
    axis, no VMEM accumulator scratch, no pl.when predication.
    """
    acc = jnp.dot(x_ref[...], w_ref[...], preferred_element_type=jnp.float32)
    acc = acc + s_ref[...]
    if relu:
        acc = jnp.maximum(acc, 0.0)
    o_ref[...] = acc.astype(o_ref.dtype)


def _mm_multi_k_kernel(x_ref, w_ref, s_ref, o_ref, acc_ref, *, relu):
    """K-tiled matmul with f32 VMEM accumulator (K is the innermost axis)."""
    kk = pl.program_id(2)

    @pl.when(kk == 0)
    def _():
        acc_ref[...] = jnp.zeros_like(acc_ref)

    acc_ref[...] += jnp.dot(x_ref[...], w_ref[...],
                            preferred_element_type=jnp.float32)

    @pl.when(kk == pl.num_programs(2) - 1)
    def _():
        acc = acc_ref[...] + s_ref[...]
        if relu:
            acc = jnp.maximum(acc, 0.0)
        o_ref[...] = acc.astype(o_ref.dtype)


def _make_tap_conv_kernel(taps, h, w, *, relu=True):
    """(1,7)/(7,1) conv: activation tile resident in VMEM, taps accumulated
    with static shifted slices + per-tap MXU dots (no HBM im2col)."""
    def kernel(x_ref, w_ref, s_ref, o_ref):
        xv = x_ref[...]                               # (1, hp, wp, cin) bf16
        cin = xv.shape[-1]
        cout = o_ref.shape[-1]
        acc = jnp.zeros((h * w, cout), jnp.float32)
        for t, (dh, dw) in enumerate(taps):           # static unroll (7 taps)
            xt = lax.slice(xv, (0, dh, dw, 0), (1, dh + h, dw + w, cin))
            xt = xt.reshape(h * w, cin)
            acc = acc + jnp.dot(xt, w_ref[t],
                                preferred_element_type=jnp.float32)
        acc = acc + s_ref[...]
        if relu:
            acc = jnp.maximum(acc, 0.0)
        o_ref[...] = acc.reshape(o_ref.shape).astype(o_ref.dtype)
    return kernel


def _avgpool3_shift_relu_kernel(x_ref, s_ref, o_ref):
    """AvgPool2d(3,1,1, count_include_pad=True) + per-channel shift + ReLU.

    Separable 3-tap row sum then 3-tap column sum (6 adds instead of 9),
    bf16 load, f32 accumulate, bf16 store.  One batch image per grid step.
    """
    xv = x_ref[...].astype(jnp.float32)               # (1, h+2, w+2, c)
    _, h, w, c = o_ref.shape
    row = (lax.slice(xv, (0, 0, 0, 0), (1, h + 2, w, c))
           + lax.slice(xv, (0, 0, 1, 0), (1, h + 2, w + 1, c))
           + lax.slice(xv, (0, 0, 2, 0), (1, h + 2, w + 2, c)))
    col = (lax.slice(row, (0, 0, 0, 0), (1, h, w, c))
           + lax.slice(row, (0, 1, 0, 0), (1, h + 1, w, c))
           + lax.slice(row, (0, 2, 0, 0), (1, h + 2, w, c)))
    out = col * (1.0 / 9.0) + s_ref[...]
    o_ref[...] = jnp.maximum(out, 0.0).astype(o_ref.dtype)


# ------------------------------ glue helpers -------------------------------

def _matmul_shift_relu(x, w, shift, *, relu=True, out_dtype=jnp.bfloat16):
    """[relu](x @ w + shift) as a tiled, pipelined Pallas matmul.

    x: (M, K), w: (K, N) with BN scale folded in, shift: (N,).
    bf16 MXU feed, f32 accumulate; output dtype selectable (bf16 default).
    """
    m, k = x.shape
    k2, n = w.shape
    assert k == k2

    x = x.astype(jnp.bfloat16)
    w = w.astype(jnp.bfloat16)
    shift = shift.astype(jnp.float32)

    # --- M tiling: sublane aligned; cap at 256 so grids with M>=512 keep
    #     >=2 parallel tiles for v7x's two TensorCores.
    m_pad8 = _round_up(m, 8)
    if m_pad8 <= 256:
        tm, m_pad = m_pad8, m_pad8
    else:
        tm, m_pad = _choose_tile(m, 8, 256)

    # --- N tiling: lane-dense minimum of 128; single full-width block up to
    #     512 (no padding, partial masking only on the tail); divisor-aware
    #     128-multiples beyond that.
    if n <= 128:
        tn, n_pad = 128, 128
    elif n <= 512:
        tn, n_pad = n, n
    else:
        tn, n_pad = _choose_tile(n, 128, 512)

    # --- K tiling: single full block (no HBM zero-pad of activations) up to
    #     512; divisor-aware 128-multiples beyond (e.g. K=768 -> tk=384).
    if k <= 512:
        tk, k_pad, nk = k, k, 1
    else:
        tk, k_pad = _choose_tile(k, 128, 512)
        nk = k_pad // tk

    if (m_pad, k_pad) != (m, k):
        x = jnp.pad(x, ((0, m_pad - m), (0, k_pad - k)))
    if (k_pad, n_pad) != (k, n):
        w = jnp.pad(w, ((0, k_pad - k), (0, n_pad - n)))
    if n_pad != n:
        shift = jnp.pad(shift, (0, n_pad - n))
    shift2 = shift.reshape(1, n_pad)

    cparams = pltpu.CompilerParams(
        dimension_semantics=(("parallel", "parallel") if nk == 1
                             else ("parallel", "parallel", "arbitrary")),
        vmem_limit_bytes=32 * 1024 * 1024,
    )

    if nk == 1:
        out = pl.pallas_call(
            functools.partial(_mm_single_k_kernel, relu=relu),
            out_shape=jax.ShapeDtypeStruct((m_pad, n_pad), out_dtype),
            grid_spec=pltpu.PrefetchScalarGridSpec(
                num_scalar_prefetch=0,
                grid=(m_pad // tm, n_pad // tn),
                in_specs=[
                    pl.BlockSpec((tm, k_pad), lambda i, j: (i, 0)),
                    pl.BlockSpec((k_pad, tn), lambda i, j: (0, j)),
                    pl.BlockSpec((1, tn), lambda i, j: (0, j)),
                ],
                out_specs=pl.BlockSpec((tm, tn), lambda i, j: (i, j)),
            ),
            compiler_params=cparams,
        )(x, w, shift2)
    else:
        out = pl.pallas_call(
            functools.partial(_mm_multi_k_kernel, relu=relu),
            out_shape=jax.ShapeDtypeStruct((m_pad, n_pad), out_dtype),
            grid_spec=pltpu.PrefetchScalarGridSpec(
                num_scalar_prefetch=0,
                grid=(m_pad // tm, n_pad // tn, nk),
                in_specs=[
                    pl.BlockSpec((tm, tk), lambda i, j, kk: (i, kk)),
                    pl.BlockSpec((tk, tn), lambda i, j, kk: (kk, j)),
                    pl.BlockSpec((1, tn), lambda i, j, kk: (0, j)),
                ],
                out_specs=pl.BlockSpec((tm, tn), lambda i, j, kk: (i, j)),
                scratch_shapes=[pltpu.VMEM((tm, tn), jnp.float32)],
            ),
            compiler_params=cparams,
        )(x, w, shift2)

    if (m_pad, n_pad) != (m, n):
        out = out[:m, :n]
    return out


def _fold_bn(p):
    """Fold conv bias + BN (eval: mean=0, var=1) into weight-scale / shift."""
    inv_std = 1.0 / math.sqrt(1.0 + BN_EPS)
    scale = p["gamma"] * inv_std                      # (Cout,)
    shift = p["b"] * scale + p["beta"]                # (Cout,)
    return scale, shift


def conv_tap_bn_relu(x_nhwc, p, out_dtype=jnp.bfloat16):
    """BasicConv with a (1,7)/(7,1) kernel via in-kernel tap accumulation."""
    w_oihw = p["w"]                                   # (Cout, Cin, kh, kw)
    cout, cin, kh, kw = w_oihw.shape
    ph, pw = p["padding"]
    n, h, w, c = x_nhwc.shape
    assert c == cin

    taps = [(dh, dw) for dh in range(kh) for dw in range(kw)]
    scale, shift = _fold_bn(p)
    wtaps = (jnp.transpose(w_oihw, (2, 3, 1, 0)).reshape(kh * kw, cin, cout)
             * scale[None, None, :]).astype(jnp.bfloat16)
    shift2 = shift.astype(jnp.float32).reshape(1, cout)

    xp = jnp.pad(x_nhwc.astype(jnp.bfloat16),
                 ((0, 0), (ph, ph), (pw, pw), (0, 0)))
    hp, wp = h + 2 * ph, w + 2 * pw

    # TODO(synk): assumes one padded image + tap weights + f32 accumulator fit
    # in VMEM (true at InceptionC scale, 17x17x<=768); larger inputs would
    # need an additional spatial/M tiling axis.
    out = pl.pallas_call(
        _make_tap_conv_kernel(taps, h, w, relu=True),
        out_shape=jax.ShapeDtypeStruct((n, h * w, cout), out_dtype),
        grid_spec=pltpu.PrefetchScalarGridSpec(
            num_scalar_prefetch=0,
            grid=(n,),
            in_specs=[
                pl.BlockSpec((1, hp, wp, cin), lambda b: (b, 0, 0, 0)),
                pl.BlockSpec((kh * kw, cin, cout), lambda b: (0, 0, 0)),
                pl.BlockSpec((1, cout), lambda b: (0, 0)),
            ],
            out_specs=pl.BlockSpec((1, h * w, cout), lambda b: (b, 0, 0)),
        ),
        compiler_params=pltpu.CompilerParams(
            dimension_semantics=("parallel",),
            vmem_limit_bytes=32 * 1024 * 1024),
    )(xp, wtaps, shift2)
    return out.reshape(n, h, w, cout)


def avg_pool_shift_relu(z_nhwc, shift, out_dtype=jnp.bfloat16):
    """relu(AvgPool2d(3,1,1)(z) + shift), one batch image per grid step."""
    n, h, w, c = z_nhwc.shape
    zp = jnp.pad(z_nhwc.astype(jnp.bfloat16), ((0, 0), (1, 1), (1, 1), (0, 0)))
    return pl.pallas_call(
        _avgpool3_shift_relu_kernel,
        out_shape=jax.ShapeDtypeStruct((n, h, w, c), out_dtype),
        grid_spec=pltpu.PrefetchScalarGridSpec(
            num_scalar_prefetch=0,
            grid=(n,),
            in_specs=[
                pl.BlockSpec((1, h + 2, w + 2, c), lambda b: (b, 0, 0, 0)),
                pl.BlockSpec((1, c), lambda b: (0, 0)),
            ],
            out_specs=pl.BlockSpec((1, h, w, c), lambda b: (b, 0, 0, 0)),
        ),
        compiler_params=pltpu.CompilerParams(
            dimension_semantics=("parallel",)),
    )(zp, shift.astype(jnp.float32).reshape(1, c))


# ---------------------------- parameter set-up -----------------------------

def make_basic_conv_params(key, cin, cout, ksize, padding):
    kh, kw = ksize
    k1, k2, k3, k4 = jax.random.split(key, 4)
    fan_in = cin * kh * kw
    bound = 1.0 / math.sqrt(fan_in)
    return dict(
        w=jax.random.uniform(k1, (cout, cin, kh, kw), jnp.float32, -bound, bound),
        b=jax.random.uniform(k2, (cout,), jnp.float32, -bound, bound),
        gamma=1.0 + 0.1 * jax.random.normal(k3, (cout,), jnp.float32),
        beta=0.1 * jax.random.normal(k4, (cout,), jnp.float32),
        padding=padding,
    )


def make_inception_c_params(key, in_channels, out_channels):
    keys = jax.random.split(key, 10)
    p = {}
    p["branch1x1"] = [
        make_basic_conv_params(keys[0], in_channels, 192, (1, 1), (0, 0))]
    p["branch7x7"] = [
        make_basic_conv_params(keys[1], in_channels, out_channels, (1, 1), (0, 0)),
        make_basic_conv_params(keys[2], out_channels, out_channels, (1, 7), (0, 3)),
        make_basic_conv_params(keys[3], out_channels, 192, (7, 1), (3, 0)),
    ]
    p["branch7x7_stack"] = [
        make_basic_conv_params(keys[4], in_channels, out_channels, (1, 1), (0, 0)),
        make_basic_conv_params(keys[5], out_channels, out_channels, (1, 7), (0, 3)),
        make_basic_conv_params(keys[6], out_channels, out_channels, (7, 1), (3, 0)),
        make_basic_conv_params(keys[7], out_channels, out_channels, (1, 7), (0, 3)),
        make_basic_conv_params(keys[8], out_channels, 192, (7, 1), (3, 0)),
    ]
    p["branch_pool"] = [
        make_basic_conv_params(keys[9], in_channels, 192, (1, 1), (0, 0))]
    return p


# ------------------------------- forward -----------------------------------

def inception_c_forward(x_nchw, params):
    # layout: NCHW -> NHWC for the kernels, back to NCHW at the end.
    x = jnp.transpose(x_nchw, (0, 2, 3, 1))
    n, h, w, cin = x.shape
    x2d = x.astype(jnp.bfloat16).reshape(n * h * w, cin)

    # --- the three ReLU'd 1x1 stems share the input -> one fused wide matmul
    stem_ps = [params["branch1x1"][0],
               params["branch7x7"][0],
               params["branch7x7_stack"][0]]
    wmats, shifts, couts = [], [], []
    for p in stem_ps:
        cout = p["w"].shape[0]
        scale, shift = _fold_bn(p)
        wmats.append(p["w"].reshape(cout, cin).T * scale[None, :])
        shifts.append(shift)
        couts.append(cout)
    stem_out = _matmul_shift_relu(
        x2d, jnp.concatenate(wmats, axis=1), jnp.concatenate(shifts, axis=0),
        relu=True, out_dtype=jnp.bfloat16)
    o1 = couts[0]
    o2 = couts[0] + couts[1]
    out1x1 = stem_out[:, :o1].reshape(n, h, w, couts[0])
    y7 = stem_out[:, o1:o2].reshape(n, h, w, couts[1])
    y7s = stem_out[:, o2:].reshape(n, h, w, couts[2])

    # --- 7x7 branches: in-kernel 7-tap convs (no HBM im2col) ---
    for bp in params["branch7x7"][1:]:
        y7 = conv_tap_bn_relu(y7, bp)
    for bp in params["branch7x7_stack"][1:]:
        y7s = conv_tap_bn_relu(y7s, bp)

    # --- pool branch: pool and 1x1 conv commute (both linear, zero-pad safe),
    #     so run the 1x1 conv (no shift/ReLU) first, then pool+shift+ReLU.
    pp = params["branch_pool"][0]
    cpool = pp["w"].shape[0]
    scale, shift = _fold_bn(pp)
    z = _matmul_shift_relu(
        x2d, pp["w"].reshape(cpool, cin).T * scale[None, :],
        jnp.zeros((cpool,), jnp.float32), relu=False, out_dtype=jnp.bfloat16)
    out_pool = avg_pool_shift_relu(z.reshape(n, h, w, cpool), shift)

    out = jnp.concatenate([out1x1, y7, y7s, out_pool], axis=-1)
    return jnp.transpose(out, (0, 3, 1, 2)).astype(jnp.float32)  # (N,768,H,W)


# --------------------------------- main -------------------------------------

if __name__ == "__main__":
    key = jax.random.PRNGKey(0)
    kx, kp = jax.random.split(key)

    N, C_IN, H, W = 2, 4, 16, 16
    OUT_CHANNELS = 16                       # hidden width of the 7x7 branches

    x = jax.random.normal(kx, (N, C_IN, H, W), jnp.float32)   # NCHW like PyTorch
    params = make_inception_c_params(kp, C_IN, OUT_CHANNELS)

    fwd = jax.jit(lambda xx: inception_c_forward(xx, params))
    y = jax.block_until_ready(fwd(x))

    assert y.shape == (N, 4 * 192, H, W), y.shape
    assert bool(jnp.all(jnp.isfinite(y)))
    print("KERNEL_OK")
</pallas_src>

<mosaic_0001>
module attributes {stable_mosaic.version = 11 : i64} {
  func.func @_mm_single_k_kernel(%arg0: i32, %arg1: i32, %arg2: memref<256x4xbf16, #tpu.memory_space<vmem>>, %arg3: memref<4x192xbf16, #tpu.memory_space<vmem>>, %arg4: memref<1x192xf32, #tpu.memory_space<vmem>>, %arg5: memref<256x192xbf16, #tpu.memory_space<vmem>>) attributes {dimension_semantics = [#tpu.dimension_semantics<parallel>, #tpu.dimension_semantics<parallel>], iteration_bounds = array<i64: 2, 1>, scalar_prefetch = 0 : i64, scratch_operands = 0 : i64, tpu.core_type = #tpu.core_type<tc>, window_params = [{transform_indices = @transform_0, window_bounds = array<i64: 256, 4>}, {transform_indices = @transform_1, window_bounds = array<i64: 4, 192>}, {transform_indices = @transform_2, window_bounds = array<i64: 1, 192>}, {transform_indices = @transform_3, window_bounds = array<i64: 256, 192>}]} {
    %c0 = arith.constant 0 : index
    %c0_0 = arith.constant 0 : index
    %0 = vector.load %arg2[%c0, %c0_0] : memref<256x4xbf16, #tpu.memory_space<vmem>>, vector<256x4xbf16>
    %c0_1 = arith.constant 0 : index
    %c0_2 = arith.constant 0 : index
    %1 = vector.load %arg3[%c0_1, %c0_2] : memref<4x192xbf16, #tpu.memory_space<vmem>>, vector<4x192xbf16>
    %cst = arith.constant dense<0.000000e+00> : vector<256x192xf32>
    %2 = tpu.matmul %0, %1, %cst {dimension_numbers = #tpu.dot_dimension_numbers<[1], [0], [0], [1], [0, 0, 1, 1], [], []>} : vector<256x4xbf16>, vector<4x192xbf16>, vector<256x192xf32> -> vector<256x192xf32>
    %c0_3 = arith.constant 0 : index
    %c0_4 = arith.constant 0 : index
    %3 = vector.load %arg4[%c0_3, %c0_4] : memref<1x192xf32, #tpu.memory_space<vmem>>, vector<1x192xf32>
    %4 = vector.broadcast %3 : vector<1x192xf32> to vector<256x192xf32>
    %5 = arith.addf %2, %4 : vector<256x192xf32>
    %6 = arith.truncf %5 : vector<256x192xf32> to vector<256x192xbf16>
    %c0_5 = arith.constant 0 : index
    %c0_6 = arith.constant 0 : index
    %7 = vector.load %arg5[%c0_5, %c0_6] : memref<256x192xbf16, #tpu.memory_space<vmem>>, vector<256x192xbf16>
    tpu.vector_store %arg5[%c0_5, %c0_6], %6 {strides = array<i32>} : memref<256x192xbf16, #tpu.memory_space<vmem>>, vector<256x192xbf16>,
    return
  }
  func.func @transform_0(%arg0: i32, %arg1: i32) -> (i32, i32) {
    %c0_i32 = arith.constant 0 : i32
    %c0_i32_0 = arith.constant 0 : i32
    return %arg0, %c0_i32 : i32, i32
  }
  func.func @transform_1(%arg0: i32, %arg1: i32) -> (i32, i32) {
    %c0_i32 = arith.constant 0 : i32
    %c0_i32_0 = arith.constant 0 : i32
    return %c0_i32, %arg1 : i32, i32
  }
  func.func @transform_2(%arg0: i32, %arg1: i32) -> (i32, i32) {
    %c0_i32 = arith.constant 0 : i32
    %c0_i32_0 = arith.constant 0 : i32
    return %c0_i32, %arg1 : i32, i32
  }
  func.func @transform_3(%arg0: i32, %arg1: i32) -> (i32, i32) {
    %c0_i32 = arith.constant 0 : i32
    return %arg0, %arg1 : i32, i32
  }
}

module attributes {stable_mosaic.version = 11 : i64} {
  func.func @_mm_single_k_kernel(%arg0: i32, %arg1: i32, %arg2: memref<256x4xbf16, #tpu.memory_space<vmem>>, %arg3: memref<4x224xbf16, #tpu.memory_space<vmem>>, %arg4: memref<1x224xf32, #tpu.memory_space<vmem>>, %arg5: memref<256x224xbf16, #tpu.memory_space<vmem>>) attributes {dimension_semantics = [#tpu.dimension_semantics<parallel>, #tpu.dimension_semantics<parallel>], iteration_bounds = array<i64: 2, 1>, scalar_prefetch = 0 : i64, scratch_operands = 0 : i64, tpu.core_type = #tpu.core_type<tc>, window_params = [{transform_indices = @transform_0, window_bounds = array<i64: 256, 4>}, {transform_indices = @transform_1, window_bounds = array<i64: 4, 224>}, {transform_indices = @transform_2, window_bounds = array<i64: 1, 224>}, {transform_indices = @transform_3, window_bounds = array<i64: 256, 224>}]} {
    %c0 = arith.constant 0 : index
    %c0_0 = arith.constant 0 : index
    %0 = vector.load %arg2[%c0, %c0_0] : memref<256x4xbf16, #tpu.memory_space<vmem>>, vector<256x4xbf16>
    %c0_1 = arith.constant 0 : index
    %c0_2 = arith.constant 0 : index
    %1 = vector.load %arg3[%c0_1, %c0_2] : memref<4x224xbf16, #tpu.memory_space<vmem>>, vector<4x224xbf16>
    %cst = arith.constant dense<0.000000e+00> : vector<256x224xf32>
    %2 = tpu.matmul %0, %1, %cst {dimension_numbers = #tpu.dot_dimension_numbers<[1], [0], [0], [1], [0, 0, 1, 1], [], []>} : vector<256x4xbf16>, vector<4x224xbf16>, vector<256x224xf32> -> vector<256x224xf32>
    %c0_3 = arith.constant 0 : index
    %c0_4 = arith.constant 0 : index
    %3 = vector.load %arg4[%c0_3, %c0_4] : memref<1x224xf32, #tpu.memory_space<vmem>>, vector<1x224xf32>
    %4 = vector.broadcast %3 : vector<1x224xf32> to vector<256x224xf32>
    %5 = arith.addf %2, %4 : vector<256x224xf32>
    %cst_5 = arith.constant 0.000000e+00 : f32
    %6 = vector.broadcast %cst_5 : f32 to vector<256x224xf32>
    %7 = arith.maximumf %5, %6 : vector<256x224xf32>
    %8 = arith.truncf %7 : vector<256x224xf32> to vector<256x224xbf16>
    %c0_6 = arith.constant 0 : index
    %c0_7 = arith.constant 0 : index
    %9 = vector.load %arg5[%c0_6, %c0_7] : memref<256x224xbf16, #tpu.memory_space<vmem>>, vector<256x224xbf16>
    tpu.vector_store %arg5[%c0_6, %c0_7], %8 {strides = array<i32>} : memref<256x224xbf16, #tpu.memory_space<vmem>>, vector<256x224xbf16>,
    return
  }
  func.func @transform_0(%arg0: i32, %arg1: i32) -> (i32, i32) {
    %c0_i32 = arith.constant 0 : i32
    %c0_i32_0 = arith.constant 0 : i32
    return %arg0, %c0_i32 : i32, i32
  }
  func.func @transform_1(%arg0: i32, %arg1: i32) -> (i32, i32) {
    %c0_i32 = arith.constant 0 : i32
    %c0_i32_0 = arith.constant 0 : i32
    return %c0_i32, %arg1 : i32, i32
  }
  func.func @transform_2(%arg0: i32, %arg1: i32) -> (i32, i32) {
    %c0_i32 = arith.constant 0 : i32
    %c0_i32_0 = arith.constant 0 : i32
    return %c0_i32, %arg1 : i32, i32
  }
  func.func @transform_3(%arg0: i32, %arg1: i32) -> (i32, i32) {
    %c0_i32 = arith.constant 0 : i32
    return %arg0, %arg1 : i32, i32
  }
}

module attributes {stable_mosaic.version = 11 : i64} {
  func.func @_avgpool3_shift_relu_kernel(%arg0: i32, %arg1: memref<1x18x18x192xbf16, #tpu.memory_space<vmem>>, %arg2: memref<1x192xf32, #tpu.memory_space<vmem>>, %arg3: memref<1x16x16x192xbf16, #tpu.memory_space<vmem>>) attributes {dimension_semantics = [#tpu.dimension_semantics<parallel>], iteration_bounds = array<i64: 2>, scalar_prefetch = 0 : i64, scratch_operands = 0 : i64, tpu.core_type = #tpu.core_type<tc>, window_params = [{transform_indices = @transform_0, window_bounds = array<i64: 1, 18, 18, 192>}, {pipeline_mode = #tpu.pipeline_mode<synchronous>, transform_indices = @transform_1, window_bounds = array<i64: 1, 192>}, {transform_indices = @transform_2, window_bounds = array<i64: 1, 16, 16, 192>}]} {
    %c0 = arith.constant 0 : index
    %c0_0 = arith.constant 0 : index
    %c0_1 = arith.constant 0 : index
    %c0_2 = arith.constant 0 : index
    %0 = vector.load %arg1[%c0, %c0_0, %c0_1, %c0_2] : memref<1x18x18x192xbf16, #tpu.memory_space<vmem>>, vector<1x18x18x192xbf16>
    %1 = arith.extf %0 : vector<1x18x18x192xbf16> to vector<1x18x18x192xf32>
    %2 = vector.extract_strided_slice %1 {offsets = [0, 0, 0, 0], sizes = [1, 18, 16, 192], strides = [1, 1, 1, 1]} : vector<1x18x18x192xf32> to vector<1x18x16x192xf32>
    %3 = vector.extract_strided_slice %1 {offsets = [0, 0, 1, 0], sizes = [1, 18, 16, 192], strides = [1, 1, 1, 1]} : vector<1x18x18x192xf32> to vector<1x18x16x192xf32>
    %4 = arith.addf %2, %3 : vector<1x18x16x192xf32>
    %5 = vector.extract_strided_slice %1 {offsets = [0, 0, 2, 0], sizes = [1, 18, 16, 192], strides = [1, 1, 1, 1]} : vector<1x18x18x192xf32> to vector<1x18x16x192xf32>
    %6 = arith.addf %4, %5 : vector<1x18x16x192xf32>
    %7 = vector.extract_strided_slice %6 {offsets = [0, 0, 0, 0], sizes = [1, 16, 16, 192], strides = [1, 1, 1, 1]} : vector<1x18x16x192xf32> to vector<1x16x16x192xf32>
    %8 = vector.extract_strided_slice %6 {offsets = [0, 1, 0, 0], sizes = [1, 16, 16, 192], strides = [1, 1, 1, 1]} : vector<1x18x16x192xf32> to vector<1x16x16x192xf32>
    %9 = arith.addf %7, %8 : vector<1x16x16x192xf32>
    %10 = vector.extract_strided_slice %6 {offsets = [0, 2, 0, 0], sizes = [1, 16, 16, 192], strides = [1, 1, 1, 1]} : vector<1x18x16x192xf32> to vector<1x16x16x192xf32>
    %11 = arith.addf %9, %10 : vector<1x16x16x192xf32>
    %cst = arith.constant 0.111111112 : f32
    %12 = vector.broadcast %cst : f32 to vector<1x16x16x192xf32>
    %13 = arith.mulf %11, %12 : vector<1x16x16x192xf32>
    %c0_3 = arith.constant 0 : index
    %c0_4 = arith.constant 0 : index
    %14 = vector.load %arg2[%c0_3, %c0_4] : memref<1x192xf32, #tpu.memory_space<vmem>>, vector<1x192xf32>
    %15 = vector.shape_cast %14 : vector<1x192xf32> to vector<1x1x1x192xf32>
    %16 = vector.broadcast %15 : vector<1x1x1x192xf32> to vector<1x16x16x192xf32>
    %17 = arith.addf %13, %16 : vector<1x16x16x192xf32>
    %cst_5 = arith.constant 0.000000e+00 : f32
    %18 = vector.broadcast %cst_5 : f32 to vector<1x16x16x192xf32>
    %19 = arith.maximumf %17, %18 : vector<1x16x16x192xf32>
    %20 = arith.truncf %19 : vector<1x16x16x192xf32> to vector<1x16x16x192xbf16>
    %c0_6 = arith.constant 0 : index
    %c0_7 = arith.constant 0 : index
    %c0_8 = arith.constant 0 : index
    %c0_9 = arith.constant 0 : index
    %21 = vector.load %arg3[%c0_6, %c0_7, %c0_8, %c0_9] : memref<1x16x16x192xbf16, #tpu.memory_space<vmem>>, vector<1x16x16x192xbf16>
    tpu.vector_store %arg3[%c0_6, %c0_7, %c0_8, %c0_9], %20 {strides = array<i32>} : memref<1x16x16x192xbf16, #tpu.memory_space<vmem>>, vector<1x16x16x192xbf16>,
    return
  }
  func.func @transform_0(%arg0: i32) -> (i32, i32, i32, i32) {
    %c0_i32 = arith.constant 0 : i32
    %c0_i32_0 = arith.constant 0 : i32
    %c0_i32_1 = arith.constant 0 : i32
    %c0_i32_2 = arith.constant 0 : i32
    return %arg0, %c0_i32, %c0_i32_0, %c0_i32_1 : i32, i32, i32, i32
  }
  func.func @transform_1(%arg0: i32) -> (i32, i32) {
    %c0_i32 = arith.constant 0 : i32
    %c0_i32_0 = arith.constant 0 : i32
    %c0_i32_1 = arith.constant 0 : i32
    return %c0_i32, %c0_i32_0 : i32, i32
  }
  func.func @transform_2(%arg0: i32) -> (i32, i32, i32, i32) {
    %c0_i32 = arith.constant 0 : i32
    %c0_i32_0 = arith.constant 0 : i32
    %c0_i32_1 = arith.constant 0 : i32
    %c0_i32_2 = arith.constant 0 : i32
    return %arg0, %c0_i32, %c0_i32_0, %c0_i32_1 : i32, i32, i32, i32
  }
}

module attributes {stable_mosaic.version = 11 : i64} {
  func.func @kernel(%arg0: i32, %arg1: memref<1x16x22x16xbf16, #tpu.memory_space<vmem>>, %arg2: memref<7x16x16xbf16, #tpu.memory_space<vmem>>, %arg3: memref<1x16xf32, #tpu.memory_space<vmem>>, %arg4: memref<1x256x16xbf16, #tpu.memory_space<vmem>>) attributes {dimension_semantics = [#tpu.dimension_semantics<parallel>], iteration_bounds = array<i64: 2>, scalar_prefetch = 0 : i64, scratch_operands = 0 : i64, tpu.core_type = #tpu.core_type<tc>, window_params = [{transform_indices = @transform_0, window_bounds = array<i64: 1, 16, 22, 16>}, {pipeline_mode = #tpu.pipeline_mode<synchronous>, transform_indices = @transform_1, window_bounds = array<i64: 7, 16, 16>}, {pipeline_mode = #tpu.pipeline_mode<synchronous>, transform_indices = @transform_2, window_bounds = array<i64: 1, 16>}, {transform_indices = @transform_3, window_bounds = array<i64: 1, 256, 16>}]} {
    %c0 = arith.constant 0 : index
    %c0_0 = arith.constant 0 : index
    %c0_1 = arith.constant 0 : index
    %c0_2 = arith.constant 0 : index
    %0 = vector.load %arg1[%c0, %c0_0, %c0_1, %c0_2] : memref<1x16x22x16xbf16, #tpu.memory_space<vmem>>, vector<1x16x22x16xbf16>
    %cst = arith.constant 0.000000e+00 : f32
    %1 = vector.broadcast %cst : f32 to vector<256x16xf32>
    %2 = vector.extract_strided_slice %0 {offsets = [0, 0, 0, 0], sizes = [1, 16, 16, 16], strides = [1, 1, 1, 1]} : vector<1x16x22x16xbf16> to vector<1x16x16x16xbf16>
    %3 = vector.shape_cast %2 : vector<1x16x16x16xbf16> to vector<256x16xbf16>
    %c0_3 = arith.constant 0 : index
    %c0_4 = arith.constant 0 : index
    %c0_5 = arith.constant 0 : index
    %4 = vector.load %arg2[%c0_3, %c0_4, %c0_5] : memref<7x16x16xbf16, #tpu.memory_space<vmem>>, vector<1x16x16xbf16>
    %5 = vector.shape_cast %4 : vector<1x16x16xbf16> to vector<16x16xbf16>
    %cst_6 = arith.constant dense<0.000000e+00> : vector<256x16xf32>
    %6 = tpu.matmul %3, %5, %cst_6 {dimension_numbers = #tpu.dot_dimension_numbers<[1], [0], [0], [1], [0, 0, 1, 1], [], []>} : vector<256x16xbf16>, vector<16x16xbf16>, vector<256x16xf32> -> vector<256x16xf32>
    %7 = arith.addf %1, %6 : vector<256x16xf32>
    %8 = vector.extract_strided_slice %0 {offsets = [0, 0, 1, 0], sizes = [1, 16, 16, 16], strides = [1, 1, 1, 1]} : vector<1x16x22x16xbf16> to vector<1x16x16x16xbf16>
    %9 = vector.shape_cast %8 : vector<1x16x16x16xbf16> to vector<256x16xbf16>
    %c1 = arith.constant 1 : index
    %c0_7 = arith.constant 0 : index
    %c0_8 = arith.constant 0 : index
    %10 = vector.load %arg2[%c1, %c0_7, %c0_8] : memref<7x16x16xbf16, #tpu.memory_space<vmem>>, vector<1x16x16xbf16>
    %11 = vector.shape_cast %10 : vector<1x16x16xbf16> to vector<16x16xbf16>
    %cst_9 = arith.constant dense<0.000000e+00> : vector<256x16xf32>
    %12 = tpu.matmul %9, %11, %cst_9 {dimension_numbers = #tpu.dot_dimension_numbers<[1], [0], [0], [1], [0, 0, 1, 1], [], []>} : vector<256x16xbf16>, vector<16x16xbf16>, vector<256x16xf32> -> vector<256x16xf32>
    %13 = arith.addf %7, %12 : vector<256x16xf32>
    %14 = vector.extract_strided_slice %0 {offsets = [0, 0, 2, 0], sizes = [1, 16, 16, 16], strides = [1, 1, 1, 1]} : vector<1x16x22x16xbf16> to vector<1x16x16x16xbf16>
    %15 = vector.shape_cast %14 : vector<1x16x16x16xbf16> to vector<256x16xbf16>
    %c2 = arith.constant 2 : index
    %c0_10 = arith.constant 0 : index
    %c0_11 = arith.constant 0 : index
    %16 = vector.load %arg2[%c2, %c0_10, %c0_11] : memref<7x16x16xbf16, #tpu.memory_space<vmem>>, vector<1x16x16xbf16>
    %17 = vector.shape_cast %16 : vector<1x16x16xbf16> to vector<16x16xbf16>
    %cst_12 = arith.constant dense<0.000000e+00> : vector<256x16xf32>
    %18 = tpu.matmul %15, %17, %cst_12 {dimension_numbers = #tpu.dot_dimension_numbers<[1], [0], [0], [1], [0, 0, 1, 1], [], []>} : vector<256x16xbf16>, vector<16x16xbf16>, vector<256x16xf32> -> vector<256x16xf32>
    %19 = arith.addf %13, %18 : vector<256x16xf32>
    %20 = vector.extract_strided_slice %0 {offsets = [0, 0, 3, 0], sizes = [1, 16, 16, 16], strides = [1, 1, 1, 1]} : vector<1x16x22x16xbf16> to vector<1x16x16x16xbf16>
    %21 = vector.shape_cast %20 : vector<1x16x16x16xbf16> to vector<256x16xbf16>
    %c3 = arith.constant 3 : index
    %c0_13 = arith.constant 0 : index
    %c0_14 = arith.constant 0 : index
    %22 = vector.load %arg2[%c3, %c0_13, %c0_14] : memref<7x16x16xbf16, #tpu.memory_space<vmem>>, vector<1x16x16xbf16>
    %23 = vector.shape_cast %22 : vector<1x16x16xbf16> to vector<16x16xbf16>
    %cst_15 = arith.constant dense<0.000000e+00> : vector<256x16xf32>
    %24 = tpu.matmul %21, %23, %cst_15 {dimension_numbers = #tpu.dot_dimension_numbers<[1], [0], [0], [1], [0, 0, 1, 1], [], []>} : vector<256x16xbf16>, vector<16x16xbf16>, vector<256x16xf32> -> vector<256x16xf32>
    %25 = arith.addf %19, %24 : vector<256x16xf32>
    %26 = vector.extract_strided_slice %0 {offsets = [0, 0, 4, 0], sizes = [1, 16, 16, 16], strides = [1, 1, 1, 1]} : vector<1x16x22x16xbf16> to vector<1x16x16x16xbf16>
    %27 = vector.shape_cast %26 : vector<1x16x16x16xbf16> to vector<256x16xbf16>
    %c4 = arith.constant 4 : index
    %c0_16 = arith.constant 0 : index
    %c0_17 = arith.constant 0 : index
    %28 = vector.load %arg2[%c4, %c0_16, %c0_17] : memref<7x16x16xbf16, #tpu.memory_space<vmem>>, vector<1x16x16xbf16>
    %29 = vector.shape_cast %28 : vector<1x16x16xbf16> to vector<16x16xbf16>
    %cst_18 = arith.constant dense<0.000000e+00> : vector<256x16xf32>
    %30 = tpu.matmul %27, %29, %cst_18 {dimension_numbers = #tpu.dot_dimension_numbers<[1], [0], [0], [1], [0, 0, 1, 1], [], []>} : vector<256x16xbf16>, vector<16x16xbf16>, vector<256x16xf32> -> vector<256x16xf32>
    %31 = arith.addf %25, %30 : vector<256x16xf32>
    %32 = vector.extract_strided_slice %0 {offsets = [0, 0, 5, 0], sizes = [1, 16, 16, 16], strides = [1, 1, 1, 1]} : vector<1x16x22x16xbf16> to vector<1x16x16x16xbf16>
    %33 = vector.shape_cast %32 : vector<1x16x16x16xbf16> to vector<256x16xbf16>
    %c5 = arith.constant 5 : index
    %c0_19 = arith.constant 0 : index
    %c0_20 = arith.constant 0 : index
    %34 = vector.load %arg2[%c5, %c0_19, %c0_20] : memref<7x16x16xbf16, #tpu.memory_space<vmem>>, vector<1x16x16xbf16>
    %35 = vector.shape_cast %34 : vector<1x16x16xbf16> to vector<16x16xbf16>
    %cst_21 = arith.constant dense<0.000000e+00> : vector<256x16xf32>
    %36 = tpu.matmul %33, %35, %cst_21 {dimension_numbers = #tpu.dot_dimension_numbers<[1], [0], [0], [1], [0, 0, 1, 1], [], []>} : vector<256x16xbf16>, vector<16x16xbf16>, vector<256x16xf32> -> vector<256x16xf32>
    %37 = arith.addf %31, %36 : vector<256x16xf32>
    %38 = vector.extract_strided_slice %0 {offsets = [0, 0, 6, 0], sizes = [1, 16, 16, 16], strides = [1, 1, 1, 1]} : vector<1x16x22x16xbf16> to vector<1x16x16x16xbf16>
    %39 = vector.shape_cast %38 : vector<1x16x16x16xbf16> to vector<256x16xbf16>
    %c6 = arith.constant 6 : index
    %c0_22 = arith.constant 0 : index
    %c0_23 = arith.constant 0 : index
    %40 = vector.load %arg2[%c6, %c0_22, %c0_23] : memref<7x16x16xbf16, #tpu.memory_space<vmem>>, vector<1x16x16xbf16>
    %41 = vector.shape_cast %40 : vector<1x16x16xbf16> to vector<16x16xbf16>
    %cst_24 = arith.constant dense<0.000000e+00> : vector<256x16xf32>
    %42 = tpu.matmul %39, %41, %cst_24 {dimension_numbers = #tpu.dot_dimension_numbers<[1], [0], [0], [1], [0, 0, 1, 1], [], []>} : vector<256x16xbf16>, vector<16x16xbf16>, vector<256x16xf32> -> vector<256x16xf32>
    %43 = arith.addf %37, %42 : vector<256x16xf32>
    %c0_25 = arith.constant 0 : index
    %c0_26 = arith.constant 0 : index
    %44 = vector.load %arg3[%c0_25, %c0_26] : memref<1x16xf32, #tpu.memory_space<vmem>>, vector<1x16xf32>
    %45 = vector.broadcast %44 : vector<1x16xf32> to vector<256x16xf32>
    %46 = arith.addf %43, %45 : vector<256x16xf32>
    %cst_27 = arith.constant 0.000000e+00 : f32
    %47 = vector.broadcast %cst_27 : f32 to vector<256x16xf32>
    %48 = arith.maximumf %46, %47 : vector<256x16xf32>
    %49 = vector.shape_cast %48 : vector<256x16xf32> to vector<1x256x16xf32>
    %50 = arith.truncf %49 : vector<1x256x16xf32> to vector<1x256x16xbf16>
    %c0_28 = arith.constant 0 : index
    %c0_29 = arith.constant 0 : index
    %c0_30 = arith.constant 0 : index
    %51 = vector.load %arg4[%c0_28, %c0_29, %c0_30] : memref<1x256x16xbf16, #tpu.memory_space<vmem>>, vector<1x256x16xbf16>
    tpu.vector_store %arg4[%c0_28, %c0_29, %c0_30], %50 {strides = array<i32>} : memref<1x256x16xbf16, #tpu.memory_space<vmem>>, vector<1x256x16xbf16>,
    return
  }
  func.func @transform_0(%arg0: i32) -> (i32, i32, i32, i32) {
    %c0_i32 = arith.constant 0 : i32
    %c0_i32_0 = arith.constant 0 : i32
    %c0_i32_1 = arith.constant 0 : i32
    %c0_i32_2 = arith.constant 0 : i32
    return %arg0, %c0_i32, %c0_i32_0, %c0_i32_1 : i32, i32, i32, i32
  }
  func.func @transform_1(%arg0: i32) -> (i32, i32, i32) {
    %c0_i32 = arith.constant 0 : i32
    %c0_i32_0 = arith.constant 0 : i32
    %c0_i32_1 = arith.constant 0 : i32
    %c0_i32_2 = arith.constant 0 : i32
    return %c0_i32, %c0_i32_0, %c0_i32_1 : i32, i32, i32
  }
  func.func @transform_2(%arg0: i32) -> (i32, i32) {
    %c0_i32 = arith.constant 0 : i32
    %c0_i32_0 = arith.constant 0 : i32
    %c0_i32_1 = arith.constant 0 : i32
    return %c0_i32, %c0_i32_0 : i32, i32
  }
  func.func @transform_3(%arg0: i32) -> (i32, i32, i32) {
    %c0_i32 = arith.constant 0 : i32
    %c0_i32_0 = arith.constant 0 : i32
    %c0_i32_1 = arith.constant 0 : i32
    return %arg0, %c0_i32, %c0_i32_0 : i32, i32, i32
  }
}

module attributes {stable_mosaic.version = 11 : i64} {
  func.func @kernel(%arg0: i32, %arg1: memref<1x22x16x16xbf16, #tpu.memory_space<vmem>>, %arg2: memref<7x16x16xbf16, #tpu.memory_space<vmem>>, %arg3: memref<1x16xf32, #tpu.memory_space<vmem>>, %arg4: memref<1x256x16xbf16, #tpu.memory_space<vmem>>) attributes {dimension_semantics = [#tpu.dimension_semantics<parallel>], iteration_bounds = array<i64: 2>, scalar_prefetch = 0 : i64, scratch_operands = 0 : i64, tpu.core_type = #tpu.core_type<tc>, window_params = [{transform_indices = @transform_0, window_bounds = array<i64: 1, 22, 16, 16>}, {pipeline_mode = #tpu.pipeline_mode<synchronous>, transform_indices = @transform_1, window_bounds = array<i64: 7, 16, 16>}, {pipeline_mode = #tpu.pipeline_mode<synchronous>, transform_indices = @transform_2, window_bounds = array<i64: 1, 16>}, {transform_indices = @transform_3, window_bounds = array<i64: 1, 256, 16>}]} {
    %c0 = arith.constant 0 : index
    %c0_0 = arith.constant 0 : index
    %c0_1 = arith.constant 0 : index
    %c0_2 = arith.constant 0 : index
    %0 = vector.load %arg1[%c0, %c0_0, %c0_1, %c0_2] : memref<1x22x16x16xbf16, #tpu.memory_space<vmem>>, vector<1x22x16x16xbf16>
    %cst = arith.constant 0.000000e+00 : f32
    %1 = vector.broadcast %cst : f32 to vector<256x16xf32>
    %2 = vector.extract_strided_slice %0 {offsets = [0, 0, 0, 0], sizes = [1, 16, 16, 16], strides = [1, 1, 1, 1]} : vector<1x22x16x16xbf16> to vector<1x16x16x16xbf16>
    %3 = vector.shape_cast %2 : vector<1x16x16x16xbf16> to vector<256x16xbf16>
    %c0_3 = arith.constant 0 : index
    %c0_4 = arith.constant 0 : index
    %c0_5 = arith.constant 0 : index
    %4 = vector.load %arg2[%c0_3, %c0_4, %c0_5] : memref<7x16x16xbf16, #tpu.memory_space<vmem>>, vector<1x16x16xbf16>
    %5 = vector.shape_cast %4 : vector<1x16x16xbf16> to vector<16x16xbf16>
    %cst_6 = arith.constant dense<0.000000e+00> : vector<256x16xf32>
    %6 = tpu.matmul %3, %5, %cst_6 {dimension_numbers = #tpu.dot_dimension_numbers<[1], [0], [0], [1], [0, 0, 1, 1], [], []>} : vector<256x16xbf16>, vector<16x16xbf16>, vector<256x16xf32> -> vector<256x16xf32>
    %7 = arith.addf %1, %6 : vector<256x16xf32>
    %8 = vector.extract_strided_slice %0 {offsets = [0, 1, 0, 0], sizes = [1, 16, 16, 16], strides = [1, 1, 1, 1]} : vector<1x22x16x16xbf16> to vector<1x16x16x16xbf16>
    %9 = vector.shape_cast %8 : vector<1x16x16x16xbf16> to vector<256x16xbf16>
    %c1 = arith.constant 1 : index
    %c0_7 = arith.constant 0 : index
    %c0_8 = arith.constant 0 : index
    %10 = vector.load %arg2[%c1, %c0_7, %c0_8] : memref<7x16x16xbf16, #tpu.memory_space<vmem>>, vector<1x16x16xbf16>
    %11 = vector.shape_cast %10 : vector<1x16x16xbf16> to vector<16x16xbf16>
    %cst_9 = arith.constant dense<0.000000e+00> : vector<256x16xf32>
    %12 = tpu.matmul %9, %11, %cst_9 {dimension_numbers = #tpu.dot_dimension_numbers<[1], [0], [0], [1], [0, 0, 1, 1], [], []>} : vector<256x16xbf16>, vector<16x16xbf16>, vector<256x16xf32> -> vector<256x16xf32>
    %13 = arith.addf %7, %12 : vector<256x16xf32>
    %14 = vector.extract_strided_slice %0 {offsets = [0, 2, 0, 0], sizes = [1, 16, 16, 16], strides = [1, 1, 1, 1]} : vector<1x22x16x16xbf16> to vector<1x16x16x16xbf16>
    %15 = vector.shape_cast %14 : vector<1x16x16x16xbf16> to vector<256x16xbf16>
    %c2 = arith.constant 2 : index
    %c0_10 = arith.constant 0 : index
    %c0_11 = arith.constant 0 : index
    %16 = vector.load %arg2[%c2, %c0_10, %c0_11] : memref<7x16x16xbf16, #tpu.memory_space<vmem>>, vector<1x16x16xbf16>
    %17 = vector.shape_cast %16 : vector<1x16x16xbf16> to vector<16x16xbf16>
    %cst_12 = arith.constant dense<0.000000e+00> : vector<256x16xf32>
    %18 = tpu.matmul %15, %17, %cst_12 {dimension_numbers = #tpu.dot_dimension_numbers<[1], [0], [0], [1], [0, 0, 1, 1], [], []>} : vector<256x16xbf16>, vector<16x16xbf16>, vector<256x16xf32> -> vector<256x16xf32>
    %19 = arith.addf %13, %18 : vector<256x16xf32>
    %20 = vector.extract_strided_slice %0 {offsets = [0, 3, 0, 0], sizes = [1, 16, 16, 16], strides = [1, 1, 1, 1]} : vector<1x22x16x16xbf16> to vector<1x16x16x16xbf16>
    %21 = vector.shape_cast %20 : vector<1x16x16x16xbf16> to vector<256x16xbf16>
    %c3 = arith.constant 3 : index
    %c0_13 = arith.constant 0 : index
    %c0_14 = arith.constant 0 : index
    %22 = vector.load %arg2[%c3, %c0_13, %c0_14] : memref<7x16x16xbf16, #tpu.memory_space<vmem>>, vector<1x16x16xbf16>
    %23 = vector.shape_cast %22 : vector<1x16x16xbf16> to vector<16x16xbf16>
    %cst_15 = arith.constant dense<0.000000e+00> : vector<256x16xf32>
    %24 = tpu.matmul %21, %23, %cst_15 {dimension_numbers = #tpu.dot_dimension_numbers<[1], [0], [0], [1], [0, 0, 1, 1], [], []>} : vector<256x16xbf16>, vector<16x16xbf16>, vector<256x16xf32> -> vector<256x16xf32>
    %25 = arith.addf %19, %24 : vector<256x16xf32>
    %26 = vector.extract_strided_slice %0 {offsets = [0, 4, 0, 0], sizes = [1, 16, 16, 16], strides = [1, 1, 1, 1]} : vector<1x22x16x16xbf16> to vector<1x16x16x16xbf16>
    %27 = vector.shape_cast %26 : vector<1x16x16x16xbf16> to vector<256x16xbf16>
    %c4 = arith.constant 4 : index
    %c0_16 = arith.constant 0 : index
    %c0_17 = arith.constant 0 : index
    %28 = vector.load %arg2[%c4, %c0_16, %c0_17] : memref<7x16x16xbf16, #tpu.memory_space<vmem>>, vector<1x16x16xbf16>
    %29 = vector.shape_cast %28 : vector<1x16x16xbf16> to vector<16x16xbf16>
    %cst_18 = arith.constant dense<0.000000e+00> : vector<256x16xf32>
    %30 = tpu.matmul %27, %29, %cst_18 {dimension_numbers = #tpu.dot_dimension_numbers<[1], [0], [0], [1], [0, 0, 1, 1], [], []>} : vector<256x16xbf16>, vector<16x16xbf16>, vector<256x16xf32> -> vector<256x16xf32>
    %31 = arith.addf %25, %30 : vector<256x16xf32>
    %32 = vector.extract_strided_slice %0 {offsets = [0, 5, 0, 0], sizes = [1, 16, 16, 16], strides = [1, 1, 1, 1]} : vector<1x22x16x16xbf16> to vector<1x16x16x16xbf16>
    %33 = vector.shape_cast %32 : vector<1x16x16x16xbf16> to vector<256x16xbf16>
    %c5 = arith.constant 5 : index
    %c0_19 = arith.constant 0 : index
    %c0_20 = arith.constant 0 : index
    %34 = vector.load %arg2[%c5, %c0_19, %c0_20] : memref<7x16x16xbf16, #tpu.memory_space<vmem>>, vector<1x16x16xbf16>
    %35 = vector.shape_cast %34 : vector<1x16x16xbf16> to vector<16x16xbf16>
    %cst_21 = arith.constant dense<0.000000e+00> : vector<256x16xf32>
    %36 = tpu.matmul %33, %35, %cst_21 {dimension_numbers = #tpu.dot_dimension_numbers<[1], [0], [0], [1], [0, 0, 1, 1], [], []>} : vector<256x16xbf16>, vector<16x16xbf16>, vector<256x16xf32> -> vector<256x16xf32>
    %37 = arith.addf %31, %36 : vector<256x16xf32>
    %38 = vector.extract_strided_slice %0 {offsets = [0, 6, 0, 0], sizes = [1, 16, 16, 16], strides = [1, 1, 1, 1]} : vector<1x22x16x16xbf16> to vector<1x16x16x16xbf16>
    %39 = vector.shape_cast %38 : vector<1x16x16x16xbf16> to vector<256x16xbf16>
    %c6 = arith.constant 6 : index
    %c0_22 = arith.constant 0 : index
    %c0_23 = arith.constant 0 : index
    %40 = vector.load %arg2[%c6, %c0_22, %c0_23] : memref<7x16x16xbf16, #tpu.memory_space<vmem>>, vector<1x16x16xbf16>
    %41 = vector.shape_cast %40 : vector<1x16x16xbf16> to vector<16x16xbf16>
    %cst_24 = arith.constant dense<0.000000e+00> : vector<256x16xf32>
    %42 = tpu.matmul %39, %41, %cst_24 {dimension_numbers = #tpu.dot_dimension_numbers<[1], [0], [0], [1], [0, 0, 1, 1], [], []>} : vector<256x16xbf16>, vector<16x16xbf16>, vector<256x16xf32> -> vector<256x16xf32>
    %43 = arith.addf %37, %42 : vector<256x16xf32>
    %c0_25 = arith.constant 0 : index
    %c0_26 = arith.constant 0 : index
    %44 = vector.load %arg3[%c0_25, %c0_26] : memref<1x16xf32, #tpu.memory_space<vmem>>, vector<1x16xf32>
    %45 = vector.broadcast %44 : vector<1x16xf32> to vector<256x16xf32>
    %46 = arith.addf %43, %45 : vector<256x16xf32>
    %cst_27 = arith.constant 0.000000e+00 : f32
    %47 = vector.broadcast %cst_27 : f32 to vector<256x16xf32>
    %48 = arith.maximumf %46, %47 : vector<256x16xf32>
    %49 = vector.shape_cast %48 : vector<256x16xf32> to vector<1x256x16xf32>
    %50 = arith.truncf %49 : vector<1x256x16xf32> to vector<1x256x16xbf16>
    %c0_28 = arith.constant 0 : index
    %c0_29 = arith.constant 0 : index
    %c0_30 = arith.constant 0 : index
    %51 = vector.load %arg4[%c0_28, %c0_29, %c0_30] : memref<1x256x16xbf16, #tpu.memory_space<vmem>>, vector<1x256x16xbf16>
    tpu.vector_store %arg4[%c0_28, %c0_29, %c0_30], %50 {strides = array<i32>} : memref<1x256x16xbf16, #tpu.memory_space<vmem>>, vector<1x256x16xbf16>,
    return
  }
  func.func @transform_0(%arg0: i32) -> (i32, i32, i32, i32) {
    %c0_i32 = arith.constant 0 : i32
    %c0_i32_0 = arith.constant 0 : i32
    %c0_i32_1 = arith.constant 0 : i32
    %c0_i32_2 = arith.constant 0 : i32
    return %arg0, %c0_i32, %c0_i32_0, %c0_i32_1 : i32, i32, i32, i32
  }
  func.func @transform_1(%arg0: i32) -> (i32, i32, i32) {
    %c0_i32 = arith.constant 0 : i32
    %c0_i32_0 = arith.constant 0 : i32
    %c0_i32_1 = arith.constant 0 : i32
    %c0_i32_2 = arith.constant 0 : i32
    return %c0_i32, %c0_i32_0, %c0_i32_1 : i32, i32, i32
  }
  func.func @transform_2(%arg0: i32) -> (i32, i32) {
    %c0_i32 = arith.constant 0 : i32
    %c0_i32_0 = arith.constant 0 : i32
    %c0_i32_1 = arith.constant 0 : i32
    return %c0_i32, %c0_i32_0 : i32, i32
  }
  func.func @transform_3(%arg0: i32) -> (i32, i32, i32) {
    %c0_i32 = arith.constant 0 : i32
    %c0_i32_0 = arith.constant 0 : i32
    %c0_i32_1 = arith.constant 0 : i32
    return %arg0, %c0_i32, %c0_i32_0 : i32, i32, i32
  }
}

module attributes {stable_mosaic.version = 11 : i64} {
  func.func @kernel(%arg0: i32, %arg1: memref<1x22x16x16xbf16, #tpu.memory_space<vmem>>, %arg2: memref<7x16x192xbf16, #tpu.memory_space<vmem>>, %arg3: memref<1x192xf32, #tpu.memory_space<vmem>>, %arg4: memref<1x256x192xbf16, #tpu.memory_space<vmem>>) attributes {dimension_semantics = [#tpu.dimension_semantics<parallel>], iteration_bounds = array<i64: 2>, scalar_prefetch = 0 : i64, scratch_operands = 0 : i64, tpu.core_type = #tpu.core_type<tc>, window_params = [{transform_indices = @transform_0, window_bounds = array<i64: 1, 22, 16, 16>}, {pipeline_mode = #tpu.pipeline_mode<synchronous>, transform_indices = @transform_1, window_bounds = array<i64: 7, 16, 192>}, {pipeline_mode = #tpu.pipeline_mode<synchronous>, transform_indices = @transform_2, window_bounds = array<i64: 1, 192>}, {transform_indices = @transform_3, window_bounds = array<i64: 1, 256, 192>}]} {
    %c0 = arith.constant 0 : index
    %c0_0 = arith.constant 0 : index
    %c0_1 = arith.constant 0 : index
    %c0_2 = arith.constant 0 : index
    %0 = vector.load %arg1[%c0, %c0_0, %c0_1, %c0_2] : memref<1x22x16x16xbf16, #tpu.memory_space<vmem>>, vector<1x22x16x16xbf16>
    %cst = arith.constant 0.000000e+00 : f32
    %1 = vector.broadcast %cst : f32 to vector<256x192xf32>
    %2 = vector.extract_strided_slice %0 {offsets = [0, 0, 0, 0], sizes = [1, 16, 16, 16], strides = [1, 1, 1, 1]} : vector<1x22x16x16xbf16> to vector<1x16x16x16xbf16>
    %3 = vector.shape_cast %2 : vector<1x16x16x16xbf16> to vector<256x16xbf16>
    %c0_3 = arith.constant 0 : index
    %c0_4 = arith.constant 0 : index
    %c0_5 = arith.constant 0 : index
    %4 = vector.load %arg2[%c0_3, %c0_4, %c0_5] : memref<7x16x192xbf16, #tpu.memory_space<vmem>>, vector<1x16x192xbf16>
    %5 = vector.shape_cast %4 : vector<1x16x192xbf16> to vector<16x192xbf16>
    %cst_6 = arith.constant dense<0.000000e+00> : vector<256x192xf32>
    %6 = tpu.matmul %3, %5, %cst_6 {dimension_numbers = #tpu.dot_dimension_numbers<[1], [0], [0], [1], [0, 0, 1, 1], [], []>} : vector<256x16xbf16>, vector<16x192xbf16>, vector<256x192xf32> -> vector<256x192xf32>
    %7 = arith.addf %1, %6 : vector<256x192xf32>
    %8 = vector.extract_strided_slice %0 {offsets = [0, 1, 0, 0], sizes = [1, 16, 16, 16], strides = [1, 1, 1, 1]} : vector<1x22x16x16xbf16> to vector<1x16x16x16xbf16>
    %9 = vector.shape_cast %8 : vector<1x16x16x16xbf16> to vector<256x16xbf16>
    %c1 = arith.constant 1 : index
    %c0_7 = arith.constant 0 : index
    %c0_8 = arith.constant 0 : index
    %10 = vector.load %arg2[%c1, %c0_7, %c0_8] : memref<7x16x192xbf16, #tpu.memory_space<vmem>>, vector<1x16x192xbf16>
    %11 = vector.shape_cast %10 : vector<1x16x192xbf16> to vector<16x192xbf16>
    %cst_9 = arith.constant dense<0.000000e+00> : vector<256x192xf32>
    %12 = tpu.matmul %9, %11, %cst_9 {dimension_numbers = #tpu.dot_dimension_numbers<[1], [0], [0], [1], [0, 0, 1, 1], [], []>} : vector<256x16xbf16>, vector<16x192xbf16>, vector<256x192xf32> -> vector<256x192xf32>
    %13 = arith.addf %7, %12 : vector<256x192xf32>
    %14 = vector.extract_strided_slice %0 {offsets = [0, 2, 0, 0], sizes = [1, 16, 16, 16], strides = [1, 1, 1, 1]} : vector<1x22x16x16xbf16> to vector<1x16x16x16xbf16>
    %15 = vector.shape_cast %14 : vector<1x16x16x16xbf16> to vector<256x16xbf16>
    %c2 = arith.constant 2 : index
    %c0_10 = arith.constant 0 : index
    %c0_11 = arith.constant 0 : index
    %16 = vector.load %arg2[%c2, %c0_10, %c0_11] : memref<7x16x192xbf16, #tpu.memory_space<vmem>>, vector<1x16x192xbf16>
    %17 = vector.shape_cast %16 : vector<1x16x192xbf16> to vector<16x192xbf16>
    %cst_12 = arith.constant dense<0.000000e+00> : vector<256x192xf32>
    %18 = tpu.matmul %15, %17, %cst_12 {dimension_numbers = #tpu.dot_dimension_numbers<[1], [0], [0], [1], [0, 0, 1, 1], [], []>} : vector<256x16xbf16>, vector<16x192xbf16>, vector<256x192xf32> -> vector<256x192xf32>
    %19 = arith.addf %13, %18 : vector<256x192xf32>
    %20 = vector.extract_strided_slice %0 {offsets = [0, 3, 0, 0], sizes = [1, 16, 16, 16], strides = [1, 1, 1, 1]} : vector<1x22x16x16xbf16> to vector<1x16x16x16xbf16>
    %21 = vector.shape_cast %20 : vector<1x16x16x16xbf16> to vector<256x16xbf16>
    %c3 = arith.constant 3 : index
    %c0_13 = arith.constant 0 : index
    %c0_14 = arith.constant 0 : index
    %22 = vector.load %arg2[%c3, %c0_13, %c0_14] : memref<7x16x192xbf16, #tpu.memory_space<vmem>>, vector<1x16x192xbf16>
    %23 = vector.shape_cast %22 : vector<1x16x192xbf16> to vector<16x192xbf16>
    %cst_15 = arith.constant dense<0.000000e+00> : vector<256x192xf32>
    %24 = tpu.matmul %21, %23, %cst_15 {dimension_numbers = #tpu.dot_dimension_numbers<[1], [0], [0], [1], [0, 0, 1, 1], [], []>} : vector<256x16xbf16>, vector<16x192xbf16>, vector<256x192xf32> -> vector<256x192xf32>
    %25 = arith.addf %19, %24 : vector<256x192xf32>
    %26 = vector.extract_strided_slice %0 {offsets = [0, 4, 0, 0], sizes = [1, 16, 16, 16], strides = [1, 1, 1, 1]} : vector<1x22x16x16xbf16> to vector<1x16x16x16xbf16>
    %27 = vector.shape_cast %26 : vector<1x16x16x16xbf16> to vector<256x16xbf16>
    %c4 = arith.constant 4 : index
    %c0_16 = arith.constant 0 : index
    %c0_17 = arith.constant 0 : index
    %28 = vector.load %arg2[%c4, %c0_16, %c0_17] : memref<7x16x192xbf16, #tpu.memory_space<vmem>>, vector<1x16x192xbf16>
    %29 = vector.shape_cast %28 : vector<1x16x192xbf16> to vector<16x192xbf16>
    %cst_18 = arith.constant dense<0.000000e+00> : vector<256x192xf32>
    %30 = tpu.matmul %27, %29, %cst_18 {dimension_numbers = #tpu.dot_dimension_numbers<[1], [0], [0], [1], [0, 0, 1, 1], [], []>} : vector<256x16xbf16>, vector<16x192xbf16>, vector<256x192xf32> -> vector<256x192xf32>
    %31 = arith.addf %25, %30 : vector<256x192xf32>
    %32 = vector.extract_strided_slice %0 {offsets = [0, 5, 0, 0], sizes = [1, 16, 16, 16], strides = [1, 1, 1, 1]} : vector<1x22x16x16xbf16> to vector<1x16x16x16xbf16>
    %33 = vector.shape_cast %32 : vector<1x16x16x16xbf16> to vector<256x16xbf16>
    %c5 = arith.constant 5 : index
    %c0_19 = arith.constant 0 : index
    %c0_20 = arith.constant 0 : index
    %34 = vector.load %arg2[%c5, %c0_19, %c0_20] : memref<7x16x192xbf16, #tpu.memory_space<vmem>>, vector<1x16x192xbf16>
    %35 = vector.shape_cast %34 : vector<1x16x192xbf16> to vector<16x192xbf16>
    %cst_21 = arith.constant dense<0.000000e+00> : vector<256x192xf32>
    %36 = tpu.matmul %33, %35, %cst_21 {dimension_numbers = #tpu.dot_dimension_numbers<[1], [0], [0], [1], [0, 0, 1, 1], [], []>} : vector<256x16xbf16>, vector<16x192xbf16>, vector<256x192xf32> -> vector<256x192xf32>
    %37 = arith.addf %31, %36 : vector<256x192xf32>
    %38 = vector.extract_strided_slice %0 {offsets = [0, 6, 0, 0], sizes = [1, 16, 16, 16], strides = [1, 1, 1, 1]} : vector<1x22x16x16xbf16> to vector<1x16x16x16xbf16>
    %39 = vector.shape_cast %38 : vector<1x16x16x16xbf16> to vector<256x16xbf16>
    %c6 = arith.constant 6 : index
    %c0_22 = arith.constant 0 : index
    %c0_23 = arith.constant 0 : index
    %40 = vector.load %arg2[%c6, %c0_22, %c0_23] : memref<7x16x192xbf16, #tpu.memory_space<vmem>>, vector<1x16x192xbf16>
    %41 = vector.shape_cast %40 : vector<1x16x192xbf16> to vector<16x192xbf16>
    %cst_24 = arith.constant dense<0.000000e+00> : vector<256x192xf32>
    %42 = tpu.matmul %39, %41, %cst_24 {dimension_numbers = #tpu.dot_dimension_numbers<[1], [0], [0], [1], [0, 0, 1, 1], [], []>} : vector<256x16xbf16>, vector<16x192xbf16>, vector<256x192xf32> -> vector<256x192xf32>
    %43 = arith.addf %37, %42 : vector<256x192xf32>
    %c0_25 = arith.constant 0 : index
    %c0_26 = arith.constant 0 : index
    %44 = vector.load %arg3[%c0_25, %c0_26] : memref<1x192xf32, #tpu.memory_space<vmem>>, vector<1x192xf32>
    %45 = vector.broadcast %44 : vector<1x192xf32> to vector<256x192xf32>
    %46 = arith.addf %43, %45 : vector<256x192xf32>
    %cst_27 = arith.constant 0.000000e+00 : f32
    %47 = vector.broadcast %cst_27 : f32 to vector<256x192xf32>
    %48 = arith.maximumf %46, %47 : vector<256x192xf32>
    %49 = vector.shape_cast %48 : vector<256x192xf32> to vector<1x256x192xf32>
    %50 = arith.truncf %49 : vector<1x256x192xf32> to vector<1x256x192xbf16>
    %c0_28 = arith.constant 0 : index
    %c0_29 = arith.constant 0 : index
    %c0_30 = arith.constant 0 : index
    %51 = vector.load %arg4[%c0_28, %c0_29, %c0_30] : memref<1x256x192xbf16, #tpu.memory_space<vmem>>, vector<1x256x192xbf16>
    tpu.vector_store %arg4[%c0_28, %c0_29, %c0_30], %50 {strides = array<i32>} : memref<1x256x192xbf16, #tpu.memory_space<vmem>>, vector<1x256x192xbf16>,
    return
  }
  func.func @transform_0(%arg0: i32) -> (i32, i32, i32, i32) {
    %c0_i32 = arith.constant 0 : i32
    %c0_i32_0 = arith.constant 0 : i32
    %c0_i32_1 = arith.constant 0 : i32
    %c0_i32_2 = arith.constant 0 : i32
    return %arg0, %c0_i32, %c0_i32_0, %c0_i32_1 : i32, i32, i32, i32
  }
  func.func @transform_1(%arg0: i32) -> (i32, i32, i32) {
    %c0_i32 = arith.constant 0 : i32
    %c0_i32_0 = arith.constant 0 : i32
    %c0_i32_1 = arith.constant 0 : i32
    %c0_i32_2 = arith.constant 0 : i32
    return %c0_i32, %c0_i32_0, %c0_i32_1 : i32, i32, i32
  }
  func.func @transform_2(%arg0: i32) -> (i32, i32) {
    %c0_i32 = arith.constant 0 : i32
    %c0_i32_0 = arith.constant 0 : i32
    %c0_i32_1 = arith.constant 0 : i32
    return %c0_i32, %c0_i32_0 : i32, i32
  }
  func.func @transform_3(%arg0: i32) -> (i32, i32, i32) {
    %c0_i32 = arith.constant 0 : i32
    %c0_i32_0 = arith.constant 0 : i32
    %c0_i32_1 = arith.constant 0 : i32
    return %arg0, %c0_i32, %c0_i32_0 : i32, i32, i32
  }
}

</mosaic_0001>

<bundles_post_ra>
// kernel: _lambda_.16
= control target key start
LH: loop header
LB: loop body
LE: loop exit
PB: predicated region body
PF: predicated region fallthrough
CT: control target
= control target key end

     0   :  { %8 = vsyncpa [#allocation3], 0  ;;  %s1207_s12 = smov 0   ;;  %s1209_s13 = smov 0   ;;  %s1493_s0 = inlined_call_operand.vmem [shape: bf16[512,4], index: 0, kind: input, shape index: {}]   ;;  %s1494_s1 = inlined_call_operand.hbm [shape: bf16[4,192], index: 1, kind: input, shape index: {}]   ;;  %s1495_s2 = inlined_call_operand.vmem [shape: f32[1,192], index: 2, kind: input, shape index: {}]   ;;  %s1496_s3 = inlined_call_operand.vmem [shape: bf16[512,192], index: 3, kind: output, shape index: {}]  }
   0x1   :  { %s1211_s14 = smov 0  }
   0x2 LB: > { %s961_s15 = sadd.s32 4294967295, %s1183_s14   ;;  %s26_s16 = sadd.s32 1, %s1179_s13  ;;  %s1183_s14 = sphi %s1211_s14, %s14_s14   ;;  %s1179_s13 = sphi %s1209_s13, %s1508_s13   ;;  %s1175_s12 = sphi %s1207_s12, %s1507_s12  }
   0x3   : > { %p28_p0 = scmp.ge.s32.totalorder %s26_s16, 2  ;;  %p963_p1 = scmp.ge.s32.totalorder %s1183_s14, 1 }
   0x4   : > { %p137_p2 = scmp.lt.s32.totalorder %s1183_s14, 3  ;;  %p1232_p4 = scmp.eq.s32.totalorder %s961_s15, 0 }
   0x5   : > { %s1510_s16 = smov (%p28_p0, %s26_s16), 0  ;;  %s1185_s19 = smov [#allocation2]  }
   0x6   : > { %p1228_p3 = pnand %p963_p1, %p137_p2  ;;  %s153_s20 = sshll.u32 %s1185_s19, 4  ;;  %s154_s20 = int_to_ptr.vmem [resolvable:$true] %s153_s20 }
   0x7   : > { %s1501_s18 = scalar_select %p1232_p4, 1, 0 }
   0x8   : > { %s1500_s17 = scalar_select %p1228_p3, 1, 0 }
   0x9   : > { %p1081_p5 = pneg %p1228_p3  ;;  %s1129_s24 = scalar_lea.hbm %s1494_s1, 64 }
   0xa   : > { %p1130_p7 = scmp.ne.s32.totalorder %s1494_s1, %s1129_s24  ;;  %p1136_p11 = scmp.lt.u32.totalorder %s1129_s24, %s1494_s1 }
   0xb   : > { %p1240_p6 = pnand %p1232_p4, %p1081_p5 }
   0xd   : > { %p1131_p8 = pneg %p1240_p6 }
   0xf   : > { %p1132_p9 = pnand %p1131_p8, %p1130_p7 }
  0x11   : > { %p1133_p10 = pneg %p1132_p9 }
  0x13   : > { %p1138_p12 = pnand %p1136_p11, %p1133_p10 }
  0x15   : > { %1141 = shalt.err (!%p1138_p12)
}
  0x16   : > { %s1142_s29 = scalar_lea.vmem %s154_s20, 64  ;;  %p1150_p2 = scmp.lt.s32.totalorder %s154_s20, %s154_s20 }
  0x17   : > { %p1143_p13 = scmp.ne.s32.totalorder %s154_s20, %s1142_s29  ;;  %p1151_p5 = scmp.lt.s32.totalorder %s1142_s29, %s1142_s29 }
  0x19   : > { %p1145_p0 = pnand %p1143_p13, %p1131_p8  ;;  %p1152_p4 = por %p1151_p5, %p1150_p2 }
  0x1b   : > { %p1146_p1 = pneg %p1145_p0 }
  0x1d   : > { %p1153_p3 = pnand %p1152_p4, %p1146_p1 }
  0x1f   : > { %1156 = shalt.err (!%p1153_p3)
}
  0x20   : > { %1084 = dma.hbm_to_vmem [thread:$0]  (!%p1240_p6), %s1494_s1, 64, %s154_s20, [#allocation3]  }
  0x21   : > { %p1503_p7 = scmp.ne.s32.totalorder %s1500_s17, 0 }
  0x22   : > { %p1504_p9 = scmp.ne.s32.totalorder (!%p1503_p7), %s1501_s18, 0 }
  0x23   : > { %183 = sbr.rel (%p1503_p7) target bundleno = 327 (0x147), region = 32 }
  0x2a   : > { %1170 = dma.done.wait (%p1504_p9), [#allocation3], 64  }
  0x2b   : > { %1172 = vsyncadd (%p1504_p9), [#allocation3], 4294967232  ;;  %s969_s5 = sshll.u32 %s1175_s12, 5  ;;  %v1186_v0 = vmov 0   ;;  %vm424_vm0 = vcmask 1041408   ;;  %vm375_vm1 = vcmask 31744   ;;  %v276_v20 = vlaneseq }
  0x2c   : > { %463 = vmatprep.mubr.bf16.mxu0 %v1186_v0  ;;  %543 = vmatprep.mubr.bf16.mxu1 %v1186_v0  ;;  %p217_p3 = scmp.lt.s32.totalorder %s969_s5, 63  ;;  %v990_v1 = vld.sshfl [vmem:[#allocation2] sm:$0x33 pattern:$0x76325410]  ;;  %vm816_vm2 = vcmask 1043456  }
  0x2d   : > { %v374_v2 = vcombine.high %v990_v1, %v990_v1  ;;  %v426_v3 = vsel %vm424_vm0, %v990_v1, 0  ;;  %v277_v21 = vshrl.u32 %v276_v20, 7  ;;  %v274_v23 = vld [vmem:[%s1495_s2] sm:$0x3]  ;;  %vm817_vm3 = vcmask 523268  }
  0x2e   : > { %s1512_s5 = smov (!%p217_p3, %s969_s5), 63  ;;  %vm1324_vm4 = vmor %vm817_vm3, %vm816_vm2 }
  0x2f   : > { %s970_s6 = sshll.u32 %s1512_s5, 2  ;;  %991 = vmatprep.subr.msk.bf16.mxu0 %vm424_vm0, %v374_v2  ;;  %1075 = vmatprep.subr.msk.bf16.mxu1 %vm424_vm0, %v374_v2  ;;  %v278_v22 = vsub.s32 0, %v277_v21  ;;  %v282_v24 = vsub.s32 1, %v277_v21  ;;  %s1042_s12 = sshll.u32 %s1512_s5, 3 }
  0x30   : > { %s1273_s9 = scalar_lea.vmem %s1493_s0, %s970_s6  ;;  %432 = vmatpush1.bf16.msra.mxu0 %v426_v3  ;;  %1076 = vmatpush1.bf16.msra.mxu1 %v426_v3  ;;  %s1322_s18 = scalar_lea.vmem %s1496_s3, %s1042_s12 }
  0x31   : > { %v1113_v4 = vld [vmem:[%s1273_s9] sm:$0xff]   ;;  %v1115_v6 = vld [vmem:[%s1273_s9 + $0x8] sm:$0xff]   ;;  %v1117_v8 = vld [vmem:[%s1273_s9 + $0x10] sm:$0xff]   ;;  %v1310_v25 = vrot.slane %v274_v23, %v278_v22  ;;  %v1312_v26 = vrot.slane %v274_v23, %v282_v24 }
  0x32   : > { %v1114_v5 = vld [vmem:[%s1273_s9 + $0x40] sm:$0xff]   ;;  %v1116_v7 = vld [vmem:[%s1273_s9 + $0x48] sm:$0xff]   ;;  %v1118_v9 = vld [vmem:[%s1273_s9 + $0x50] sm:$0xff]  }
  0x33   : > { %992 = vmatmul.mubr.msk.bf16.vlgmr.msra.gmra.mrb[0].mxu0 %vm375_vm1, %v1113_v4  ;;  %1000 = vmatmul.mubr.msk.bf16.vlgmr.msra.gmra.mrb[0].mxu1 %vm375_vm1, %v1114_v5  ;;  %v1119_v10 = vld [vmem:[%s1273_s9 + $0x18] sm:$0xff]   ;;  %v1121_v12 = vld [vmem:[%s1273_s9 + $0x20] sm:$0xff]   ;;  %v1123_v14 = vld [vmem:[%s1273_s9 + $0x28] sm:$0xff]  }
  0x34   : > { %473 = vmatprep.mubr.bf16.mxu0 %v1186_v0  ;;  %553 = vmatprep.mubr.bf16.mxu1 %v1186_v0  ;;  %v1120_v11 = vld [vmem:[%s1273_s9 + $0x58] sm:$0xff]   ;;  %v1122_v13 = vld [vmem:[%s1273_s9 + $0x60] sm:$0xff]   ;;  %v1124_v15 = vld [vmem:[%s1273_s9 + $0x68] sm:$0xff]  }
  0x35   : > { %v1125_v16 = vld [vmem:[%s1273_s9 + $0x30] sm:$0xff]   ;;  %v1127_v18 = vld [vmem:[%s1273_s9 + $0x38] sm:$0xff]  }
  0x36   : > { %v1126_v17 = vld [vmem:[%s1273_s9 + $0x70] sm:$0xff]   ;;  %v1128_v19 = vld [vmem:[%s1273_s9 + $0x78] sm:$0xff]  }
  0x3b   : > { %993 = vmatmul.mubr.msk.bf16.gmra.mrb[4].mxu0 %vm375_vm1, %v1115_v6  ;;  %1001 = vmatmul.mubr.msk.bf16.gmra.mrb[4].mxu1 %vm375_vm1, %v1116_v7 }
  0x3c   : > { %483 = vmatprep.mubr.bf16.mxu0 %v1186_v0  ;;  %563 = vmatprep.mubr.bf16.mxu1 %v1186_v0 }
  0x43   : > { %994 = vmatmul.mubr.msk.bf16.gmra.mrb[8].mxu0 %vm375_vm1, %v1117_v8  ;;  %1002 = vmatmul.mubr.msk.bf16.gmra.mrb[8].mxu1 %vm375_vm1, %v1118_v9 }
  0x44   : > { %493 = vmatprep.mubr.bf16.mxu0 %v1186_v0  ;;  %573 = vmatprep.mubr.bf16.mxu1 %v1186_v0 }
  0x4b   : > { %995 = vmatmul.mubr.msk.bf16.gmra.mrb[12].mxu0 %vm375_vm1, %v1119_v10  ;;  %1003 = vmatmul.mubr.msk.bf16.gmra.mrb[12].mxu1 %vm375_vm1, %v1120_v11 }
  0x4c   : > { %503 = vmatprep.mubr.bf16.mxu0 %v1186_v0  ;;  %583 = vmatprep.mubr.bf16.mxu1 %v1186_v0 }
  0x53   : > { %996 = vmatmul.mubr.msk.bf16.gmra.mrb[16].mxu0 %vm375_vm1, %v1121_v12  ;;  %1004 = vmatmul.mubr.msk.bf16.gmra.mrb[16].mxu1 %vm375_vm1, %v1122_v13 }
  0x54   : > { %513 = vmatprep.mubr.bf16.mxu0 %v1186_v0  ;;  %593 = vmatprep.mubr.bf16.mxu1 %v1186_v0 }
  0x5b   : > { %997 = vmatmul.mubr.msk.bf16.gmra.mrb[20].mxu0 %vm375_vm1, %v1123_v14  ;;  %1005 = vmatmul.mubr.msk.bf16.gmra.mrb[20].mxu1 %vm375_vm1, %v1124_v15 }
  0x5c   : > { %523 = vmatprep.mubr.bf16.mxu0 %v1186_v0  ;;  %603 = vmatprep.mubr.bf16.mxu1 %v1186_v0 }
  0x63   : > { %998 = vmatmul.mubr.msk.bf16.gmra.mrb[24].mxu0 %vm375_vm1, %v1125_v16  ;;  %1006 = vmatmul.mubr.msk.bf16.gmra.mrb[24].mxu1 %vm375_vm1, %v1126_v17 }
  0x64   : > { %533 = vmatprep.mubr.bf16.mxu0 %v1186_v0  ;;  %613 = vmatprep.mubr.bf16.mxu1 %v1186_v0 }
  0x6b   : > { %999 = vmatmul.mubr.msk.bf16.gmra.mrb[28].mxu0 %vm375_vm1, %v1127_v18  ;;  %1007 = vmatmul.mubr.msk.bf16.gmra.mrb[28].mxu1 %vm375_vm1, %v1128_v19 }
 0x106   : > { %v465_v27 = vpop.f32.mrb[0].mxu0  ;;  %v545_v28 = vpop.f32.mrb[0].mxu1 }
 0x107   : > { %v466_v29 = vadd.f32 %v465_v27, %v1310_v25  ;;  %v546_v30 = vadd.f32 %v545_v28, %v1310_v25  ;;  %v467_v31 = vpop.f32.mrb[1].mxu0  ;;  %v547_v32 = vpop.f32.mrb[1].mxu1 }
 0x108   : > { %v468_v33 = vadd.f32 %v467_v31, %v1312_v26  ;;  %v548_v34 = vadd.f32 %v547_v32, %v1312_v26  ;;  %v469_v35 = vpop.f32.mrb[2].mxu0  ;;  %v549_v36 = vpop.f32.mrb[2].mxu1 }
 0x109   : > { %v470_v38 = vadd.f32 %v469_v35, %v1310_v25  ;;  %v550_v39 = vadd.f32 %v549_v36, %v1310_v25  ;;  %v471_v40 = vpop.f32.mrb[3].mxu0  ;;  %v551_v41 = vpop.f32.mrb[3].mxu1 }
 0x10a   : > { %v1043_v42 = vpack.c.bf16 %v468_v33, %v466_v29  ;;  %v1059_v43 = vpack.c.bf16 %v548_v34, %v546_v30  ;;  %v472_v44 = vadd.f32 %v471_v40, %v1312_v26  ;;  %v552_v45 = vadd.f32 %v551_v41, %v1312_v26 }
 0x10c   : > { %819 = vst.msk [vmem:[%s1322_s18] sm:$0xff] %vm1324_vm4, %v1043_v42  ;;  %835 = vst.msk [vmem:[%s1322_s18 + $0x80] sm:$0xff] %vm1324_vm4, %v1059_v43  ;;  %v1044_v46 = vpack.c.bf16 %v472_v44, %v470_v38  ;;  %v1060_v47 = vpack.c.bf16 %v552_v45, %v550_v39 }
 0x10e   : > { %820 = vst.msk [vmem:[%s1322_s18 + $0x8] sm:$0xff] %vm1324_vm4, %v1044_v46  ;;  %836 = vst.msk [vmem:[%s1322_s18 + $0x88] sm:$0xff] %vm1324_vm4, %v1060_v47  ;;  %v475_v48 = vpop.f32.mrb[4].mxu0  ;;  %v555_v49 = vpop.f32.mrb[4].mxu1 }
 0x10f   : > { %v476_v50 = vadd.f32 %v475_v48, %v1310_v25  ;;  %v556_v51 = vadd.f32 %v555_v49, %v1310_v25  ;;  %v477_v52 = vpop.f32.mrb[5].mxu0  ;;  %v557_v53 = vpop.f32.mrb[5].mxu1 }
 0x110   : > { %v478_v54 = vadd.f32 %v477_v52, %v1312_v26  ;;  %v558_v55 = vadd.f32 %v557_v53, %v1312_v26  ;;  %v479_v56 = vpop.f32.mrb[6].mxu0  ;;  %v559_v57 = vpop.f32.mrb[6].mxu1 }
 0x111   : > { %v480_v58 = vadd.f32 %v479_v56, %v1310_v25  ;;  %v560_v59 = vadd.f32 %v559_v57, %v1310_v25  ;;  %v481_v60 = vpop.f32.mrb[7].mxu0  ;;  %v561_v61 = vpop.f32.mrb[7].mxu1 }
 0x112   : > { %v1045_v62 = vpack.c.bf16 %v478_v54, %v476_v50  ;;  %v1061_v63 = vpack.c.bf16 %v558_v55, %v556_v51  ;;  %v482_v0 = vadd.f32 %v481_v60, %v1312_v26  ;;  %v562_v1 = vadd.f32 %v561_v61, %v1312_v26 }
 0x114   : > { %821 = vst.msk [vmem:[%s1322_s18 + $0x10] sm:$0xff] %vm1324_vm4, %v1045_v62  ;;  %837 = vst.msk [vmem:[%s1322_s18 + $0x90] sm:$0xff] %vm1324_vm4, %v1061_v63  ;;  %v1046_v2 = vpack.c.bf16 %v482_v0, %v480_v58  ;;  %v1062_v3 = vpack.c.bf16 %v562_v1, %v560_v59 }
 0x116   : > { %822 = vst.msk [vmem:[%s1322_s18 + $0x18] sm:$0xff] %vm1324_vm4, %v1046_v2  ;;  %838 = vst.msk [vmem:[%s1322_s18 + $0x98] sm:$0xff] %vm1324_vm4, %v1062_v3  ;;  %v485_v4 = vpop.f32.mrb[8].mxu0  ;;  %v565_v5 = vpop.f32.mrb[8].mxu1 }
 0x117   : > { %v486_v6 = vadd.f32 %v485_v4, %v1310_v25  ;;  %v566_v7 = vadd.f32 %v565_v5, %v1310_v25  ;;  %v487_v8 = vpop.f32.mrb[9].mxu0  ;;  %v567_v9 = vpop.f32.mrb[9].mxu1 }
 0x118   : > { %v488_v10 = vadd.f32 %v487_v8, %v1312_v26  ;;  %v568_v11 = vadd.f32 %v567_v9, %v1312_v26  ;;  %v489_v12 = vpop.f32.mrb[10].mxu0  ;;  %v569_v13 = vpop.f32.mrb[10].mxu1 }
 0x119   : > { %v490_v14 = vadd.f32 %v489_v12, %v1310_v25  ;;  %v570_v15 = vadd.f32 %v569_v13, %v1310_v25  ;;  %v491_v16 = vpop.f32.mrb[11].mxu0  ;;  %v571_v17 = vpop.f32.mrb[11].mxu1 }
 0x11a   : > { %v1047_v18 = vpack.c.bf16 %v488_v10, %v486_v6  ;;  %v1063_v19 = vpack.c.bf16 %v568_v11, %v566_v7  ;;  %v492_v20 = vadd.f32 %v491_v16, %v1312_v26  ;;  %v572_v21 = vadd.f32 %v571_v17, %v1312_v26 }
 0x11c   : > { %823 = vst.msk [vmem:[%s1322_s18 + $0x20] sm:$0xff] %vm1324_vm4, %v1047_v18  ;;  %839 = vst.msk [vmem:[%s1322_s18 + $0xa0] sm:$0xff] %vm1324_vm4, %v1063_v19  ;;  %v1048_v22 = vpack.c.bf16 %v492_v20, %v490_v14  ;;  %v1064_v23 = vpack.c.bf16 %v572_v21, %v570_v15 }
 0x11e   : > { %824 = vst.msk [vmem:[%s1322_s18 + $0x28] sm:$0xff] %vm1324_vm4, %v1048_v22  ;;  %840 = vst.msk [vmem:[%s1322_s18 + $0xa8] sm:$0xff] %vm1324_vm4, %v1064_v23  ;;  %v495_v24 = vpop.f32.mrb[12].mxu0  ;;  %v575_v27 = vpop.f32.mrb[12].mxu1 }
 0x11f   : > { %v496_v28 = vadd.f32 %v495_v24, %v1310_v25  ;;  %v576_v29 = vadd.f32 %v575_v27, %v1310_v25  ;;  %v497_v30 = vpop.f32.mrb[13].mxu0  ;;  %v577_v31 = vpop.f32.mrb[13].mxu1 }
 0x120   : > { %v498_v32 = vadd.f32 %v497_v30, %v1312_v26  ;;  %v578_v33 = vadd.f32 %v577_v31, %v1312_v26  ;;  %v499_v34 = vpop.f32.mrb[14].mxu0  ;;  %v579_v35 = vpop.f32.mrb[14].mxu1 }
 0x121   : > { %v500_v36 = vadd.f32 %v499_v34, %v1310_v25  ;;  %v580_v38 = vadd.f32 %v579_v35, %v1310_v25  ;;  %v501_v39 = vpop.f32.mrb[15].mxu0  ;;  %v581_v40 = vpop.f32.mrb[15].mxu1 }
 0x122   : > { %v1049_v41 = vpack.c.bf16 %v498_v32, %v496_v28  ;;  %v1065_v42 = vpack.c.bf16 %v578_v33, %v576_v29  ;;  %v502_v43 = vadd.f32 %v501_v39, %v1312_v26  ;;  %v582_v44 = vadd.f32 %v581_v40, %v1312_v26 }
 0x124   : > { %825 = vst.msk [vmem:[%s1322_s18 + $0x30] sm:$0xff] %vm1324_vm4, %v1049_v41  ;;  %841 = vst.msk [vmem:[%s1322_s18 + $0xb0] sm:$0xff] %vm1324_vm4, %v1065_v42  ;;  %v1050_v45 = vpack.c.bf16 %v502_v43, %v500_v36  ;;  %v1066_v46 = vpack.c.bf16 %v582_v44, %v580_v38 }
 0x126   : > { %826 = vst.msk [vmem:[%s1322_s18 + $0x38] sm:$0xff] %vm1324_vm4, %v1050_v45  ;;  %842 = vst.msk [vmem:[%s1322_s18 + $0xb8] sm:$0xff] %vm1324_vm4, %v1066_v46  ;;  %v505_v47 = vpop.f32.mrb[16].mxu0  ;;  %v585_v48 = vpop.f32.mrb[16].mxu1 }
 0x127   : > { %v506_v49 = vadd.f32 %v505_v47, %v1310_v25  ;;  %v586_v50 = vadd.f32 %v585_v48, %v1310_v25  ;;  %v507_v51 = vpop.f32.mrb[17].mxu0  ;;  %v587_v52 = vpop.f32.mrb[17].mxu1 }
 0x128   : > { %v508_v53 = vadd.f32 %v507_v51, %v1312_v26  ;;  %v588_v54 = vadd.f32 %v587_v52, %v1312_v26  ;;  %v509_v55 = vpop.f32.mrb[18].mxu0  ;;  %v589_v56 = vpop.f32.mrb[18].mxu1 }
 0x129   : > { %v510_v57 = vadd.f32 %v509_v55, %v1310_v25  ;;  %v590_v58 = vadd.f32 %v589_v56, %v1310_v25  ;;  %v511_v59 = vpop.f32.mrb[19].mxu0  ;;  %v591_v60 = vpop.f32.mrb[19].mxu1 }
 0x12a   : > { %v1051_v61 = vpack.c.bf16 %v508_v53, %v506_v49  ;;  %v1067_v62 = vpack.c.bf16 %v588_v54, %v586_v50  ;;  %v512_v63 = vadd.f32 %v511_v59, %v1312_v26  ;;  %v592_v0 = vadd.f32 %v591_v60, %v1312_v26 }
 0x12c   : > { %827 = vst.msk [vmem:[%s1322_s18 + $0x40] sm:$0xff] %vm1324_vm4, %v1051_v61  ;;  %843 = vst.msk [vmem:[%s1322_s18 + $0xc0] sm:$0xff] %vm1324_vm4, %v1067_v62  ;;  %v1052_v1 = vpack.c.bf16 %v512_v63, %v510_v57  ;;  %v1068_v2 = vpack.c.bf16 %v592_v0, %v590_v58 }
 0x12e   : > { %828 = vst.msk [vmem:[%s1322_s18 + $0x48] sm:$0xff] %vm1324_vm4, %v1052_v1  ;;  %844 = vst.msk [vmem:[%s1322_s18 + $0xc8] sm:$0xff] %vm1324_vm4, %v1068_v2  ;;  %v515_v3 = vpop.f32.mrb[20].mxu0  ;;  %v595_v4 = vpop.f32.mrb[20].mxu1 }
 0x12f   : > { %v516_v5 = vadd.f32 %v515_v3, %v1310_v25  ;;  %v596_v6 = vadd.f32 %v595_v4, %v1310_v25  ;;  %v517_v7 = vpop.f32.mrb[21].mxu0  ;;  %v597_v8 = vpop.f32.mrb[21].mxu1 }
 0x130   : > { %v518_v9 = vadd.f32 %v517_v7, %v1312_v26  ;;  %v598_v10 = vadd.f32 %v597_v8, %v1312_v26  ;;  %v519_v11 = vpop.f32.mrb[22].mxu0  ;;  %v599_v12 = vpop.f32.mrb[22].mxu1 }
 0x131   : > { %v520_v13 = vadd.f32 %v519_v11, %v1310_v25  ;;  %v600_v14 = vadd.f32 %v599_v12, %v1310_v25  ;;  %v521_v15 = vpop.f32.mrb[23].mxu0  ;;  %v601_v16 = vpop.f32.mrb[23].mxu1 }
 0x132   : > { %v1053_v17 = vpack.c.bf16 %v518_v9, %v516_v5  ;;  %v1069_v18 = vpack.c.bf16 %v598_v10, %v596_v6  ;;  %v522_v19 = vadd.f32 %v521_v15, %v1312_v26  ;;  %v602_v20 = vadd.f32 %v601_v16, %v1312_v26 }
 0x134   : > { %829 = vst.msk [vmem:[%s1322_s18 + $0x50] sm:$0xff] %vm1324_vm4, %v1053_v17  ;;  %845 = vst.msk [vmem:[%s1322_s18 + $0xd0] sm:$0xff] %vm1324_vm4, %v1069_v18  ;;  %v1054_v21 = vpack.c.bf16 %v522_v19, %v520_v13  ;;  %v1070_v22 = vpack.c.bf16 %v602_v20, %v600_v14 }
 0x136   : > { %830 = vst.msk [vmem:[%s1322_s18 + $0x58] sm:$0xff] %vm1324_vm4, %v1054_v21  ;;  %846 = vst.msk [vmem:[%s1322_s18 + $0xd8] sm:$0xff] %vm1324_vm4, %v1070_v22  ;;  %v525_v23 = vpop.f32.mrb[24].mxu0  ;;  %v605_v24 = vpop.f32.mrb[24].mxu1 }
 0x137   : > { %v526_v27 = vadd.f32 %v525_v23, %v1310_v25  ;;  %v606_v28 = vadd.f32 %v605_v24, %v1310_v25  ;;  %v527_v29 = vpop.f32.mrb[25].mxu0  ;;  %v607_v30 = vpop.f32.mrb[25].mxu1 }
 0x138   : > { %v528_v31 = vadd.f32 %v527_v29, %v1312_v26  ;;  %v608_v32 = vadd.f32 %v607_v30, %v1312_v26  ;;  %v529_v33 = vpop.f32.mrb[26].mxu0  ;;  %v609_v34 = vpop.f32.mrb[26].mxu1 }
 0x139   : > { %v530_v35 = vadd.f32 %v529_v33, %v1310_v25  ;;  %v610_v36 = vadd.f32 %v609_v34, %v1310_v25  ;;  %v531_v38 = vpop.f32.mrb[27].mxu0  ;;  %v611_v39 = vpop.f32.mrb[27].mxu1 }
 0x13a   : > { %v1055_v40 = vpack.c.bf16 %v528_v31, %v526_v27  ;;  %v1071_v41 = vpack.c.bf16 %v608_v32, %v606_v28  ;;  %v532_v42 = vadd.f32 %v531_v38, %v1312_v26  ;;  %v612_v43 = vadd.f32 %v611_v39, %v1312_v26 }
 0x13c   : > { %831 = vst.msk [vmem:[%s1322_s18 + $0x60] sm:$0xff] %vm1324_vm4, %v1055_v40  ;;  %847 = vst.msk [vmem:[%s1322_s18 + $0xe0] sm:$0xff] %vm1324_vm4, %v1071_v41  ;;  %v1056_v44 = vpack.c.bf16 %v532_v42, %v530_v35  ;;  %v1072_v45 = vpack.c.bf16 %v612_v43, %v610_v36 }
 0x13e   : > { %832 = vst.msk [vmem:[%s1322_s18 + $0x68] sm:$0xff] %vm1324_vm4, %v1056_v44  ;;  %848 = vst.msk [vmem:[%s1322_s18 + $0xe8] sm:$0xff] %vm1324_vm4, %v1072_v45  ;;  %v535_v46 = vpop.f32.mrb[28].mxu0  ;;  %v615_v47 = vpop.f32.mrb[28].mxu1 }
 0x13f   : > { %v536_v48 = vadd.f32 %v535_v46, %v1310_v25  ;;  %v616_v49 = vadd.f32 %v615_v47, %v1310_v25  ;;  %v537_v50 = vpop.f32.mrb[29].mxu0  ;;  %v617_v51 = vpop.f32.mrb[29].mxu1 }
 0x140   : > { %v538_v52 = vadd.f32 %v537_v50, %v1312_v26  ;;  %v618_v53 = vadd.f32 %v617_v51, %v1312_v26  ;;  %v539_v54 = vpop.f32.mrb[30].mxu0  ;;  %v619_v55 = vpop.f32.mrb[30].mxu1 }
 0x141   : > { %v540_v56 = vadd.f32 %v539_v54, %v1310_v25  ;;  %v620_v57 = vadd.f32 %v619_v55, %v1310_v25  ;;  %v541_v58 = vpop.f32.mrb[31].mxu0  ;;  %v621_v59 = vpop.f32.mrb[31].mxu1 }
 0x142   : > { %v1057_v60 = vpack.c.bf16 %v538_v52, %v536_v48  ;;  %v1073_v61 = vpack.c.bf16 %v618_v53, %v616_v49  ;;  %v542_v62 = vadd.f32 %v541_v58, %v1312_v26  ;;  %v622_v63 = vadd.f32 %v621_v59, %v1312_v26 }
 0x144   : > { %833 = vst.msk [vmem:[%s1322_s18 + $0x70] sm:$0xff] %vm1324_vm4, %v1057_v60  ;;  %849 = vst.msk [vmem:[%s1322_s18 + $0xf0] sm:$0xff] %vm1324_vm4, %v1073_v61  ;;  %v1058_v0 = vpack.c.bf16 %v542_v62, %v540_v56  ;;  %v1074_v1 = vpack.c.bf16 %v622_v63, %v620_v57 }
 0x146   : > { %834 = vst.msk [vmem:[%s1322_s18 + $0x78] sm:$0xff] %vm1324_vm4, %v1058_v0  ;;  %850 = vst.msk [vmem:[%s1322_s18 + $0xf8] sm:$0xff] %vm1324_vm4, %v1074_v1 }
 0x147 PF: > { %s14_s14 = sadd.s32 1, %s1183_s14   ;;  %s1507_s12 = smov %s1179_s13 }
 0x148   : > { %p11_p4 = scmp.ge.s32.totalorder %s14_s14, 4   ;;  %s1508_s13 = smov %s1510_s16 }
 0x14a   :  { %13 = sbr.rel (!%p11_p4) target bundleno = 2 (0x2), region = 71 }
 0x151   :  { %884 = vsyncpa [#allocation3], 1 }
 0x152   :  { %886 = vsyncpa [#allocation3 + $0x1], 1 }

// kernel: _lambda_.9
= control target key start
LH: loop header
LB: loop body
LE: loop exit
PB: predicated region body
PF: predicated region fallthrough
CT: control target
= control target key end

     0   :  { %8 = vsyncpa [#allocation3], 0  ;;  %s1640_s0 = inlined_call_operand.vmem [shape: bf16[512,4], index: 0, kind: input, shape index: {}]   ;;  %s1641_s1 = inlined_call_operand.hbm [shape: bf16[4,224], index: 1, kind: input, shape index: {}]   ;;  %s1642_s2 = inlined_call_operand.hbm [shape: f32[1,224], index: 2, kind: input, shape index: {}]   ;;  %s1643_s3 = inlined_call_operand.vmem [shape: bf16[512,224], index: 3, kind: output, shape index: {}]  }
   0x1   :  { %9 = vsyncpa [#allocation5], 0  ;;  %s1318_s12 = smov 0   ;;  %s1320_s13 = smov 0  }
   0x2   :  { %s1322_s14 = smov 0  }
   0x3 LB: > { %s1028_s15 = sadd.s32 4294967295, %s1293_s14   ;;  %s27_s16 = sadd.s32 1, %s1289_s13  ;;  %s1293_s14 = sphi %s1322_s14, %s15_s14   ;;  %s1289_s13 = sphi %s1320_s13, %s1655_s13   ;;  %s1285_s12 = sphi %s1318_s12, %s1654_s12  }
   0x4   : > { %p29_p0 = scmp.ge.s32.totalorder %s27_s16, 2  ;;  %p1030_p1 = scmp.ge.s32.totalorder %s1293_s14, 1 }
   0x5   : > { %p138_p2 = scmp.lt.s32.totalorder %s1293_s14, 3  ;;  %p1343_p4 = scmp.eq.s32.totalorder %s1028_s15, 0 }
   0x6   : > { %s1657_s16 = smov (%p29_p0, %s27_s16), 0  ;;  %s1295_s19 = smov [#allocation2]  }
   0x7   : > { %p1339_p3 = pnand %p1030_p1, %p138_p2  ;;  %s154_s20 = sshll.u32 %s1295_s19, 4  ;;  %s155_s20 = int_to_ptr.vmem [resolvable:$true] %s154_s20 }
   0x8   : > { %s1648_s18 = scalar_select %p1343_p4, 1, 0 }
   0x9   : > { %s1647_s17 = scalar_select %p1339_p3, 1, 0 }
   0xa   : > { %p1153_p5 = pneg %p1339_p3  ;;  %s1296_s21 = smov [#allocation4]  }
   0xb   : > { %s168_s22 = sshll.u32 %s1296_s21, 4  ;;  %s1207_s26 = scalar_lea.hbm %s1641_s1, 64  ;;  %s1355_s22 = int_to_ptr.vmem [resolvable:$true] %s168_s22 }
   0xc   : > { %p1351_p6 = pnand %p1343_p4, %p1153_p5  ;;  %p1208_p7 = scmp.ne.s32.totalorder %s1641_s1, %s1207_s26 }
   0xd   : > { %p1214_p11 = scmp.lt.u32.totalorder %s1207_s26, %s1641_s1 }
   0xe   : > { %p1209_p8 = pneg %p1351_p6 }
  0x10   : > { %p1210_p9 = pnand %p1209_p8, %p1208_p7 }
  0x12   : > { %p1211_p10 = pneg %p1210_p9 }
  0x14   : > { %p1216_p12 = pnand %p1214_p11, %p1211_p10 }
  0x16   : > { %1219 = shalt.err (!%p1216_p12)
}
  0x17   : > { %s1220_s4 = scalar_lea.vmem %s155_s20, 64  ;;  %p1228_p2 = scmp.lt.s32.totalorder %s155_s20, %s155_s20 }
  0x18   : > { %p1221_p13 = scmp.ne.s32.totalorder %s155_s20, %s1220_s4  ;;  %p1229_p5 = scmp.lt.s32.totalorder %s1220_s4, %s1220_s4 }
  0x1a   : > { %p1223_p0 = pnand %p1221_p13, %p1209_p8  ;;  %p1230_p4 = por %p1229_p5, %p1228_p2 }
  0x1c   : > { %p1224_p1 = pneg %p1223_p0 }
  0x1e   : > { %p1231_p3 = pnand %p1230_p4, %p1224_p1 }
  0x20   : > { %1234 = shalt.err (!%p1231_p3)
}
  0x21   : > { %1156 = dma.hbm_to_vmem [thread:$0]  (!%p1351_p6), %s1641_s1, 64, %s155_s20, [#allocation3]  }
  0x22   : > { %s1235_s9 = scalar_lea.hbm %s1642_s2, 32 }
  0x23   : > { %p1236_p7 = scmp.ne.s32.totalorder %s1642_s2, %s1235_s9  ;;  %p1242_p3 = scmp.lt.u32.totalorder %s1235_s9, %s1642_s2 }
  0x25   : > { %p1238_p9 = pnand %p1236_p7, %p1209_p8 }
  0x27   : > { %p1239_p4 = pneg %p1238_p9 }
  0x29   : > { %p1244_p10 = pnand %p1242_p3, %p1239_p4 }
  0x2b   : > { %1247 = shalt.err (!%p1244_p10)
}
  0x2c   : > { %s1248_s20 = scalar_lea.vmem %s1355_s22, 32  ;;  %p1256_p0 = scmp.lt.s32.totalorder %s1355_s22, %s1355_s22 }
  0x2d   : > { %p1249_p11 = scmp.ne.s32.totalorder %s1355_s22, %s1248_s20  ;;  %p1257_p1 = scmp.lt.s32.totalorder %s1248_s20, %s1248_s20 }
  0x2f   : > { %p1251_p12 = pnand %p1249_p11, %p1209_p8  ;;  %p1258_p2 = por %p1257_p1, %p1256_p0 }
  0x31   : > { %p1252_p13 = pneg %p1251_p12 }
  0x33   : > { %p1259_p5 = pnand %p1258_p2, %p1252_p13 }
  0x35   : > { %1262 = shalt.err (!%p1259_p5)
}
  0x36   : > { %1159 = dma.hbm_to_vmem [thread:$0]  (!%p1351_p6), %s1642_s2, 32, %s1355_s22, [#allocation5]  }
  0x37   : > { %p1650_p7 = scmp.ne.s32.totalorder %s1647_s17, 0 }
  0x38   : > { %p1651_p9 = scmp.ne.s32.totalorder (!%p1650_p7), %s1648_s18, 0 }
  0x39   : > { %190 = sbr.rel (%p1650_p7) target bundleno = 353 (0x161), region = 32 }
  0x40   : > { %1276 = dma.done.wait (%p1651_p9), [#allocation3], 64  }
  0x41   : > { %1278 = vsyncadd (%p1651_p9), [#allocation3], 4294967232 }
  0x42   : > { %1280 = dma.done.wait (%p1651_p9), [#allocation5], 32  }
  0x43   : > { %1282 = vsyncadd (%p1651_p9), [#allocation5], 4294967264  ;;  %s1037_s23 = sshll.u32 %s1285_s12, 5  ;;  %v1297_v0 = vmov 0   ;;  %vm427_vm0 = vcmask 1041408   ;;  %vm378_vm1 = vcmask 31744   ;;  %v279_v20 = vlaneseq }
  0x44   : > { %466 = vmatprep.mubr.bf16.mxu0 %v1297_v0  ;;  %546 = vmatprep.mubr.bf16.mxu1 %v1297_v0  ;;  %p224_p6 = scmp.lt.s32.totalorder %s1037_s23, 63  ;;  %v1058_v1 = vld.sshfl [vmem:[#allocation2] sm:$0x33 pattern:$0x76325410]  ;;  %vm883_vm2 = vcmask 1043456  }
  0x45   : > { %v377_v2 = vcombine.high %v1058_v1, %v1058_v1  ;;  %v429_v3 = vsel %vm427_vm0, %v1058_v1, 0  ;;  %v280_v21 = vshrl.u32 %v279_v20, 7  ;;  %v277_v23 = vld [vmem:[#allocation4] sm:$0x3]  ;;  %vm884_vm3 = vcmask 785412  }
  0x46   : > { %s1659_s23 = smov (!%p224_p6, %s1037_s23), 63  ;;  %vm1475_vm4 = vmor %vm884_vm3, %vm883_vm2 }
  0x47   : > { %s1038_s17 = sshll.u32 %s1659_s23, 2  ;;  %1059 = vmatprep.subr.msk.bf16.mxu0 %vm427_vm0, %v377_v2  ;;  %1143 = vmatprep.subr.msk.bf16.mxu1 %vm427_vm0, %v377_v2  ;;  %v281_v22 = vsub.s32 0, %v280_v21  ;;  %v285_v24 = vsub.s32 1, %v280_v21  ;;  %s1110_s12 = sshll.u32 %s1659_s23, 3 }
  0x48   : > { %s1421_s26 = scalar_lea.vmem %s1640_s0, %s1038_s17  ;;  %435 = vmatpush1.bf16.msra.mxu0 %v429_v3  ;;  %1144 = vmatpush1.bf16.msra.mxu1 %v429_v3  ;;  %s1471_s28 = scalar_lea.vmem %s1643_s3, %s1110_s12 }
  0x49   : > { %v1191_v4 = vld [vmem:[%s1421_s26] sm:$0xff]   ;;  %v1193_v6 = vld [vmem:[%s1421_s26 + $0x8] sm:$0xff]   ;;  %v1195_v8 = vld [vmem:[%s1421_s26 + $0x10] sm:$0xff]   ;;  %v1455_v25 = vrot.slane %v277_v23, %v281_v22  ;;  %v1457_v26 = vrot.slane %v277_v23, %v285_v24 }
  0x4a   : > { %v1192_v5 = vld [vmem:[%s1421_s26 + $0x40] sm:$0xff]   ;;  %v1194_v7 = vld [vmem:[%s1421_s26 + $0x48] sm:$0xff]   ;;  %v1196_v9 = vld [vmem:[%s1421_s26 + $0x50] sm:$0xff]  }
  0x4b   : > { %1060 = vmatmul.mubr.msk.bf16.vlgmr.msra.gmra.mrb[0].mxu0 %vm378_vm1, %v1191_v4  ;;  %1068 = vmatmul.mubr.msk.bf16.vlgmr.msra.gmra.mrb[0].mxu1 %vm378_vm1, %v1192_v5  ;;  %v1197_v10 = vld [vmem:[%s1421_s26 + $0x18] sm:$0xff]   ;;  %v1199_v12 = vld [vmem:[%s1421_s26 + $0x20] sm:$0xff]   ;;  %v1201_v14 = vld [vmem:[%s1421_s26 + $0x28] sm:$0xff]  }
  0x4c   : > { %476 = vmatprep.mubr.bf16.mxu0 %v1297_v0  ;;  %556 = vmatprep.mubr.bf16.mxu1 %v1297_v0  ;;  %v1198_v11 = vld [vmem:[%s1421_s26 + $0x58] sm:$0xff]   ;;  %v1200_v13 = vld [vmem:[%s1421_s26 + $0x60] sm:$0xff]   ;;  %v1202_v15 = vld [vmem:[%s1421_s26 + $0x68] sm:$0xff]  }
  0x4d   : > { %v1203_v16 = vld [vmem:[%s1421_s26 + $0x30] sm:$0xff]   ;;  %v1205_v18 = vld [vmem:[%s1421_s26 + $0x38] sm:$0xff]  }
  0x4e   : > { %v1204_v17 = vld [vmem:[%s1421_s26 + $0x70] sm:$0xff]   ;;  %v1206_v19 = vld [vmem:[%s1421_s26 + $0x78] sm:$0xff]  }
  0x53   : > { %1061 = vmatmul.mubr.msk.bf16.gmra.mrb[4].mxu0 %vm378_vm1, %v1193_v6  ;;  %1069 = vmatmul.mubr.msk.bf16.gmra.mrb[4].mxu1 %vm378_vm1, %v1194_v7 }
  0x54   : > { %486 = vmatprep.mubr.bf16.mxu0 %v1297_v0  ;;  %566 = vmatprep.mubr.bf16.mxu1 %v1297_v0 }
  0x5b   : > { %1062 = vmatmul.mubr.msk.bf16.gmra.mrb[8].mxu0 %vm378_vm1, %v1195_v8  ;;  %1070 = vmatmul.mubr.msk.bf16.gmra.mrb[8].mxu1 %vm378_vm1, %v1196_v9 }
  0x5c   : > { %496 = vmatprep.mubr.bf16.mxu0 %v1297_v0  ;;  %576 = vmatprep.mubr.bf16.mxu1 %v1297_v0 }
  0x63   : > { %1063 = vmatmul.mubr.msk.bf16.gmra.mrb[12].mxu0 %vm378_vm1, %v1197_v10  ;;  %1071 = vmatmul.mubr.msk.bf16.gmra.mrb[12].mxu1 %vm378_vm1, %v1198_v11 }
  0x64   : > { %506 = vmatprep.mubr.bf16.mxu0 %v1297_v0  ;;  %586 = vmatprep.mubr.bf16.mxu1 %v1297_v0 }
  0x6b   : > { %1064 = vmatmul.mubr.msk.bf16.gmra.mrb[16].mxu0 %vm378_vm1, %v1199_v12  ;;  %1072 = vmatmul.mubr.msk.bf16.gmra.mrb[16].mxu1 %vm378_vm1, %v1200_v13 }
  0x6c   : > { %516 = vmatprep.mubr.bf16.mxu0 %v1297_v0  ;;  %596 = vmatprep.mubr.bf16.mxu1 %v1297_v0 }
  0x73   : > { %1065 = vmatmul.mubr.msk.bf16.gmra.mrb[20].mxu0 %vm378_vm1, %v1201_v14  ;;  %1073 = vmatmul.mubr.msk.bf16.gmra.mrb[20].mxu1 %vm378_vm1, %v1202_v15 }
  0x74   : > { %526 = vmatprep.mubr.bf16.mxu0 %v1297_v0  ;;  %606 = vmatprep.mubr.bf16.mxu1 %v1297_v0 }
  0x7b   : > { %1066 = vmatmul.mubr.msk.bf16.gmra.mrb[24].mxu0 %vm378_vm1, %v1203_v16  ;;  %1074 = vmatmul.mubr.msk.bf16.gmra.mrb[24].mxu1 %vm378_vm1, %v1204_v17 }
  0x7c   : > { %536 = vmatprep.mubr.bf16.mxu0 %v1297_v0  ;;  %616 = vmatprep.mubr.bf16.mxu1 %v1297_v0 }
  0x83   : > { %1067 = vmatmul.mubr.msk.bf16.gmra.mrb[28].mxu0 %vm378_vm1, %v1205_v18  ;;  %1075 = vmatmul.mubr.msk.bf16.gmra.mrb[28].mxu1 %vm378_vm1, %v1206_v19 }
 0x11e   : > { %v468_v27 = vpop.f32.mrb[0].mxu0  ;;  %v548_v28 = vpop.f32.mrb[0].mxu1 }
 0x11f   : > { %v469_v29 = vadd.f32 %v468_v27, %v1455_v25  ;;  %v549_v30 = vadd.f32 %v548_v28, %v1455_v25  ;;  %v470_v31 = vpop.f32.mrb[1].mxu0  ;;  %v550_v32 = vpop.f32.mrb[1].mxu1 }
 0x120   : > { %v471_v33 = vadd.f32 %v470_v31, %v1457_v26  ;;  %v551_v34 = vadd.f32 %v550_v32, %v1457_v26  ;;  %v472_v35 = vpop.f32.mrb[2].mxu0  ;;  %v552_v36 = vpop.f32.mrb[2].mxu1 }
 0x121   : > { %v627_v37 = vmax.f32 %v469_v29, 0.0  ;;  %v659_v38 = vmax.f32 %v549_v30, 0.0  ;;  %v473_v39 = vadd.f32 %v472_v35, %v1455_v25  ;;  %v553_v40 = vadd.f32 %v552_v36, %v1455_v25  ;;  %v474_v41 = vpop.f32.mrb[3].mxu0  ;;  %v554_v42 = vpop.f32.mrb[3].mxu1 }
 0x122   : > { %v628_v43 = vmax.f32 %v471_v33, 0.0  ;;  %v660_v44 = vmax.f32 %v551_v34, 0.0  ;;  %v475_v45 = vadd.f32 %v474_v41, %v1457_v26  ;;  %v555_v46 = vadd.f32 %v554_v42, %v1457_v26 }
 0x123   : > { %v629_v48 = vmax.f32 %v473_v39, 0.0  ;;  %v661_v49 = vmax.f32 %v553_v40, 0.0 }
 0x124   : > { %v1111_v50 = vpack.c.bf16 %v628_v43, %v627_v37  ;;  %v1127_v51 = vpack.c.bf16 %v660_v44, %v659_v38  ;;  %v630_v52 = vmax.f32 %v475_v45, 0.0  ;;  %v662_v53 = vmax.f32 %v555_v46, 0.0 }
 0x126   : > { %886 = vst.msk [vmem:[%s1471_s28] sm:$0xff] %vm1475_vm4, %v1111_v50  ;;  %902 = vst.msk [vmem:[%s1471_s28 + $0x80] sm:$0xff] %vm1475_vm4, %v1127_v51  ;;  %v1112_v54 = vpack.c.bf16 %v630_v52, %v629_v48  ;;  %v1128_v55 = vpack.c.bf16 %v662_v53, %v661_v49  ;;  %v478_v56 = vpop.f32.mrb[4].mxu0  ;;  %v558_v57 = vpop.f32.mrb[4].mxu1 }
 0x127   : > { %v479_v58 = vadd.f32 %v478_v56, %v1455_v25  ;;  %v559_v59 = vadd.f32 %v558_v57, %v1455_v25  ;;  %v480_v60 = vpop.f32.mrb[5].mxu0  ;;  %v560_v61 = vpop.f32.mrb[5].mxu1 }
 0x128   : > { %887 = vst.msk [vmem:[%s1471_s28 + $0x8] sm:$0xff] %vm1475_vm4, %v1112_v54  ;;  %903 = vst.msk [vmem:[%s1471_s28 + $0x88] sm:$0xff] %vm1475_vm4, %v1128_v55  ;;  %v481_v62 = vadd.f32 %v480_v60, %v1457_v26  ;;  %v561_v63 = vadd.f32 %v560_v61, %v1457_v26  ;;  %v482_v0 = vpop.f32.mrb[6].mxu0  ;;  %v562_v1 = vpop.f32.mrb[6].mxu1 }
 0x129   : > { %v631_v2 = vmax.f32 %v479_v58, 0.0  ;;  %v663_v3 = vmax.f32 %v559_v59, 0.0  ;;  %v483_v4 = vadd.f32 %v482_v0, %v1455_v25  ;;  %v563_v5 = vadd.f32 %v562_v1, %v1455_v25  ;;  %v484_v6 = vpop.f32.mrb[7].mxu0  ;;  %v564_v7 = vpop.f32.mrb[7].mxu1 }
 0x12a   : > { %v632_v8 = vmax.f32 %v481_v62, 0.0  ;;  %v664_v9 = vmax.f32 %v561_v63, 0.0  ;;  %v485_v10 = vadd.f32 %v484_v6, %v1457_v26  ;;  %v565_v11 = vadd.f32 %v564_v7, %v1457_v26 }
 0x12b   : > { %v633_v12 = vmax.f32 %v483_v4, 0.0  ;;  %v665_v13 = vmax.f32 %v563_v5, 0.0 }
 0x12c   : > { %v1113_v14 = vpack.c.bf16 %v632_v8, %v631_v2  ;;  %v1129_v15 = vpack.c.bf16 %v664_v9, %v663_v3  ;;  %v634_v16 = vmax.f32 %v485_v10, 0.0  ;;  %v666_v17 = vmax.f32 %v565_v11, 0.0 }
 0x12e   : > { %888 = vst.msk [vmem:[%s1471_s28 + $0x10] sm:$0xff] %vm1475_vm4, %v1113_v14  ;;  %904 = vst.msk [vmem:[%s1471_s28 + $0x90] sm:$0xff] %vm1475_vm4, %v1129_v15  ;;  %v1114_v18 = vpack.c.bf16 %v634_v16, %v633_v12  ;;  %v1130_v19 = vpack.c.bf16 %v666_v17, %v665_v13  ;;  %v488_v20 = vpop.f32.mrb[8].mxu0  ;;  %v568_v21 = vpop.f32.mrb[8].mxu1 }
 0x12f   : > { %v489_v22 = vadd.f32 %v488_v20, %v1455_v25  ;;  %v569_v23 = vadd.f32 %v568_v21, %v1455_v25  ;;  %v490_v24 = vpop.f32.mrb[9].mxu0  ;;  %v570_v27 = vpop.f32.mrb[9].mxu1 }
 0x130   : > { %889 = vst.msk [vmem:[%s1471_s28 + $0x18] sm:$0xff] %vm1475_vm4, %v1114_v18  ;;  %905 = vst.msk [vmem:[%s1471_s28 + $0x98] sm:$0xff] %vm1475_vm4, %v1130_v19  ;;  %v491_v28 = vadd.f32 %v490_v24, %v1457_v26  ;;  %v571_v29 = vadd.f32 %v570_v27, %v1457_v26  ;;  %v492_v30 = vpop.f32.mrb[10].mxu0  ;;  %v572_v31 = vpop.f32.mrb[10].mxu1 }
 0x131   : > { %v635_v32 = vmax.f32 %v489_v22, 0.0  ;;  %v667_v33 = vmax.f32 %v569_v23, 0.0  ;;  %v493_v34 = vadd.f32 %v492_v30, %v1455_v25  ;;  %v573_v35 = vadd.f32 %v572_v31, %v1455_v25  ;;  %v494_v36 = vpop.f32.mrb[11].mxu0  ;;  %v574_v37 = vpop.f32.mrb[11].mxu1 }
 0x132   : > { %v636_v38 = vmax.f32 %v491_v28, 0.0  ;;  %v668_v39 = vmax.f32 %v571_v29, 0.0  ;;  %v495_v40 = vadd.f32 %v494_v36, %v1457_v26  ;;  %v575_v41 = vadd.f32 %v574_v37, %v1457_v26 }
 0x133   : > { %v637_v42 = vmax.f32 %v493_v34, 0.0  ;;  %v669_v43 = vmax.f32 %v573_v35, 0.0 }
 0x134   : > { %v1115_v44 = vpack.c.bf16 %v636_v38, %v635_v32  ;;  %v1131_v45 = vpack.c.bf16 %v668_v39, %v667_v33  ;;  %v638_v46 = vmax.f32 %v495_v40, 0.0  ;;  %v670_v48 = vmax.f32 %v575_v41, 0.0 }
 0x136   : > { %890 = vst.msk [vmem:[%s1471_s28 + $0x20] sm:$0xff] %vm1475_vm4, %v1115_v44  ;;  %906 = vst.msk [vmem:[%s1471_s28 + $0xa0] sm:$0xff] %vm1475_vm4, %v1131_v45  ;;  %v1116_v49 = vpack.c.bf16 %v638_v46, %v637_v42  ;;  %v1132_v50 = vpack.c.bf16 %v670_v48, %v669_v43  ;;  %v498_v51 = vpop.f32.mrb[12].mxu0  ;;  %v578_v52 = vpop.f32.mrb[12].mxu1 }
 0x137   : > { %v499_v53 = vadd.f32 %v498_v51, %v1455_v25  ;;  %v579_v54 = vadd.f32 %v578_v52, %v1455_v25  ;;  %v500_v55 = vpop.f32.mrb[13].mxu0  ;;  %v580_v56 = vpop.f32.mrb[13].mxu1 }
 0x138   : > { %891 = vst.msk [vmem:[%s1471_s28 + $0x28] sm:$0xff] %vm1475_vm4, %v1116_v49  ;;  %907 = vst.msk [vmem:[%s1471_s28 + $0xa8] sm:$0xff] %vm1475_vm4, %v1132_v50  ;;  %v501_v57 = vadd.f32 %v500_v55, %v1457_v26  ;;  %v581_v58 = vadd.f32 %v580_v56, %v1457_v26  ;;  %v502_v59 = vpop.f32.mrb[14].mxu0  ;;  %v582_v60 = vpop.f32.mrb[14].mxu1 }
 0x139   : > { %v639_v61 = vmax.f32 %v499_v53, 0.0  ;;  %v671_v62 = vmax.f32 %v579_v54, 0.0  ;;  %v503_v63 = vadd.f32 %v502_v59, %v1455_v25  ;;  %v583_v0 = vadd.f32 %v582_v60, %v1455_v25  ;;  %v504_v1 = vpop.f32.mrb[15].mxu0  ;;  %v584_v2 = vpop.f32.mrb[15].mxu1 }
 0x13a   : > { %v640_v3 = vmax.f32 %v501_v57, 0.0  ;;  %v672_v4 = vmax.f32 %v581_v58, 0.0  ;;  %v505_v5 = vadd.f32 %v504_v1, %v1457_v26  ;;  %v585_v6 = vadd.f32 %v584_v2, %v1457_v26 }
 0x13b   : > { %v641_v7 = vmax.f32 %v503_v63, 0.0  ;;  %v673_v8 = vmax.f32 %v583_v0, 0.0 }
 0x13c   : > { %v1117_v9 = vpack.c.bf16 %v640_v3, %v639_v61  ;;  %v1133_v10 = vpack.c.bf16 %v672_v4, %v671_v62  ;;  %v642_v11 = vmax.f32 %v505_v5, 0.0  ;;  %v674_v12 = vmax.f32 %v585_v6, 0.0 }
 0x13e   : > { %892 = vst.msk [vmem:[%s1471_s28 + $0x30] sm:$0xff] %vm1475_vm4, %v1117_v9  ;;  %908 = vst.msk [vmem:[%s1471_s28 + $0xb0] sm:$0xff] %vm1475_vm4, %v1133_v10  ;;  %v1118_v13 = vpack.c.bf16 %v642_v11, %v641_v7  ;;  %v1134_v14 = vpack.c.bf16 %v674_v12, %v673_v8  ;;  %v508_v15 = vpop.f32.mrb[16].mxu0  ;;  %v588_v16 = vpop.f32.mrb[16].mxu1 }
 0x13f   : > { %v509_v17 = vadd.f32 %v508_v15, %v1455_v25  ;;  %v589_v18 = vadd.f32 %v588_v16, %v1455_v25  ;;  %v510_v19 = vpop.f32.mrb[17].mxu0  ;;  %v590_v20 = vpop.f32.mrb[17].mxu1 }
 0x140   : > { %893 = vst.msk [vmem:[%s1471_s28 + $0x38] sm:$0xff] %vm1475_vm4, %v1118_v13  ;;  %909 = vst.msk [vmem:[%s1471_s28 + $0xb8] sm:$0xff] %vm1475_vm4, %v1134_v14  ;;  %v511_v21 = vadd.f32 %v510_v19, %v1457_v26  ;;  %v591_v22 = vadd.f32 %v590_v20, %v1457_v26  ;;  %v512_v23 = vpop.f32.mrb[18].mxu0  ;;  %v592_v24 = vpop.f32.mrb[18].mxu1 }
 0x141   : > { %v643_v27 = vmax.f32 %v509_v17, 0.0  ;;  %v675_v28 = vmax.f32 %v589_v18, 0.0  ;;  %v513_v29 = vadd.f32 %v512_v23, %v1455_v25  ;;  %v593_v30 = vadd.f32 %v592_v24, %v1455_v25  ;;  %v514_v31 = vpop.f32.mrb[19].mxu0  ;;  %v594_v32 = vpop.f32.mrb[19].mxu1 }
 0x142   : > { %v644_v33 = vmax.f32 %v511_v21, 0.0  ;;  %v676_v34 = vmax.f32 %v591_v22, 0.0  ;;  %v515_v35 = vadd.f32 %v514_v31, %v1457_v26  ;;  %v595_v36 = vadd.f32 %v594_v32, %v1457_v26 }
 0x143   : > { %v645_v37 = vmax.f32 %v513_v29, 0.0  ;;  %v677_v38 = vmax.f32 %v593_v30, 0.0 }
 0x144   : > { %v1119_v39 = vpack.c.bf16 %v644_v33, %v643_v27  ;;  %v1135_v40 = vpack.c.bf16 %v676_v34, %v675_v28  ;;  %v646_v41 = vmax.f32 %v515_v35, 0.0  ;;  %v678_v42 = vmax.f32 %v595_v36, 0.0 }
 0x146   : > { %894 = vst.msk [vmem:[%s1471_s28 + $0x40] sm:$0xff] %vm1475_vm4, %v1119_v39  ;;  %910 = vst.msk [vmem:[%s1471_s28 + $0xc0] sm:$0xff] %vm1475_vm4, %v1135_v40  ;;  %v1120_v43 = vpack.c.bf16 %v646_v41, %v645_v37  ;;  %v1136_v44 = vpack.c.bf16 %v678_v42, %v677_v38  ;;  %v518_v45 = vpop.f32.mrb[20].mxu0  ;;  %v598_v46 = vpop.f32.mrb[20].mxu1 }
 0x147   : > { %v519_v48 = vadd.f32 %v518_v45, %v1455_v25  ;;  %v599_v49 = vadd.f32 %v598_v46, %v1455_v25  ;;  %v520_v50 = vpop.f32.mrb[21].mxu0  ;;  %v600_v51 = vpop.f32.mrb[21].mxu1 }
 0x148   : > { %895 = vst.msk [vmem:[%s1471_s28 + $0x48] sm:$0xff] %vm1475_vm4, %v1120_v43  ;;  %911 = vst.msk [vmem:[%s1471_s28 + $0xc8] sm:$0xff] %vm1475_vm4, %v1136_v44  ;;  %v521_v52 = vadd.f32 %v520_v50, %v1457_v26  ;;  %v601_v53 = vadd.f32 %v600_v51, %v1457_v26  ;;  %v522_v54 = vpop.f32.mrb[22].mxu0  ;;  %v602_v55 = vpop.f32.mrb[22].mxu1 }
 0x149   : > { %v647_v56 = vmax.f32 %v519_v48, 0.0  ;;  %v679_v57 = vmax.f32 %v599_v49, 0.0  ;;  %v523_v58 = vadd.f32 %v522_v54, %v1455_v25  ;;  %v603_v59 = vadd.f32 %v602_v55, %v1455_v25  ;;  %v524_v60 = vpop.f32.mrb[23].mxu0  ;;  %v604_v61 = vpop.f32.mrb[23].mxu1 }
 0x14a   : > { %v648_v62 = vmax.f32 %v521_v52, 0.0  ;;  %v680_v63 = vmax.f32 %v601_v53, 0.0  ;;  %v525_v0 = vadd.f32 %v524_v60, %v1457_v26  ;;  %v605_v1 = vadd.f32 %v604_v61, %v1457_v26 }
 0x14b   : > { %v649_v2 = vmax.f32 %v523_v58, 0.0  ;;  %v681_v3 = vmax.f32 %v603_v59, 0.0 }
 0x14c   : > { %v1121_v4 = vpack.c.bf16 %v648_v62, %v647_v56  ;;  %v1137_v5 = vpack.c.bf16 %v680_v63, %v679_v57  ;;  %v650_v6 = vmax.f32 %v525_v0, 0.0  ;;  %v682_v7 = vmax.f32 %v605_v1, 0.0 }
 0x14e   : > { %896 = vst.msk [vmem:[%s1471_s28 + $0x50] sm:$0xff] %vm1475_vm4, %v1121_v4  ;;  %912 = vst.msk [vmem:[%s1471_s28 + $0xd0] sm:$0xff] %vm1475_vm4, %v1137_v5  ;;  %v1122_v8 = vpack.c.bf16 %v650_v6, %v649_v2  ;;  %v1138_v9 = vpack.c.bf16 %v682_v7, %v681_v3  ;;  %v528_v10 = vpop.f32.mrb[24].mxu0  ;;  %v608_v11 = vpop.f32.mrb[24].mxu1 }
 0x14f   : > { %v529_v12 = vadd.f32 %v528_v10, %v1455_v25  ;;  %v609_v13 = vadd.f32 %v608_v11, %v1455_v25  ;;  %v530_v14 = vpop.f32.mrb[25].mxu0  ;;  %v610_v15 = vpop.f32.mrb[25].mxu1 }
 0x150   : > { %897 = vst.msk [vmem:[%s1471_s28 + $0x58] sm:$0xff] %vm1475_vm4, %v1122_v8  ;;  %913 = vst.msk [vmem:[%s1471_s28 + $0xd8] sm:$0xff] %vm1475_vm4, %v1138_v9  ;;  %v531_v16 = vadd.f32 %v530_v14, %v1457_v26  ;;  %v611_v17 = vadd.f32 %v610_v15, %v1457_v26  ;;  %v532_v18 = vpop.f32.mrb[26].mxu0  ;;  %v612_v19 = vpop.f32.mrb[26].mxu1 }
 0x151   : > { %v651_v20 = vmax.f32 %v529_v12, 0.0  ;;  %v683_v21 = vmax.f32 %v609_v13, 0.0  ;;  %v533_v22 = vadd.f32 %v532_v18, %v1455_v25  ;;  %v613_v23 = vadd.f32 %v612_v19, %v1455_v25  ;;  %v534_v24 = vpop.f32.mrb[27].mxu0  ;;  %v614_v27 = vpop.f32.mrb[27].mxu1 }
 0x152   : > { %v652_v28 = vmax.f32 %v531_v16, 0.0  ;;  %v684_v29 = vmax.f32 %v611_v17, 0.0  ;;  %v535_v30 = vadd.f32 %v534_v24, %v1457_v26  ;;  %v615_v31 = vadd.f32 %v614_v27, %v1457_v26 }
 0x153   : > { %v653_v32 = vmax.f32 %v533_v22, 0.0  ;;  %v685_v33 = vmax.f32 %v613_v23, 0.0 }
 0x154   : > { %v1123_v34 = vpack.c.bf16 %v652_v28, %v651_v20  ;;  %v1139_v35 = vpack.c.bf16 %v684_v29, %v683_v21  ;;  %v654_v36 = vmax.f32 %v535_v30, 0.0  ;;  %v686_v37 = vmax.f32 %v615_v31, 0.0 }
 0x156   : > { %898 = vst.msk [vmem:[%s1471_s28 + $0x60] sm:$0xff] %vm1475_vm4, %v1123_v34  ;;  %914 = vst.msk [vmem:[%s1471_s28 + $0xe0] sm:$0xff] %vm1475_vm4, %v1139_v35  ;;  %v1124_v38 = vpack.c.bf16 %v654_v36, %v653_v32  ;;  %v1140_v39 = vpack.c.bf16 %v686_v37, %v685_v33  ;;  %v538_v40 = vpop.f32.mrb[28].mxu0  ;;  %v618_v41 = vpop.f32.mrb[28].mxu1 }
 0x157   : > { %v539_v42 = vadd.f32 %v538_v40, %v1455_v25  ;;  %v619_v43 = vadd.f32 %v618_v41, %v1455_v25  ;;  %v540_v44 = vpop.f32.mrb[29].mxu0  ;;  %v620_v45 = vpop.f32.mrb[29].mxu1 }
 0x158   : > { %899 = vst.msk [vmem:[%s1471_s28 + $0x68] sm:$0xff] %vm1475_vm4, %v1124_v38  ;;  %915 = vst.msk [vmem:[%s1471_s28 + $0xe8] sm:$0xff] %vm1475_vm4, %v1140_v39  ;;  %v541_v46 = vadd.f32 %v540_v44, %v1457_v26  ;;  %v621_v48 = vadd.f32 %v620_v45, %v1457_v26  ;;  %v542_v49 = vpop.f32.mrb[30].mxu0  ;;  %v622_v50 = vpop.f32.mrb[30].mxu1 }
 0x159   : > { %v655_v51 = vmax.f32 %v539_v42, 0.0  ;;  %v687_v52 = vmax.f32 %v619_v43, 0.0  ;;  %v543_v53 = vadd.f32 %v542_v49, %v1455_v25  ;;  %v623_v54 = vadd.f32 %v622_v50, %v1455_v25  ;;  %v544_v55 = vpop.f32.mrb[31].mxu0  ;;  %v624_v56 = vpop.f32.mrb[31].mxu1 }
 0x15a   : > { %v656_v57 = vmax.f32 %v541_v46, 0.0  ;;  %v688_v58 = vmax.f32 %v621_v48, 0.0  ;;  %v545_v59 = vadd.f32 %v544_v55, %v1457_v26  ;;  %v625_v60 = vadd.f32 %v624_v56, %v1457_v26 }
 0x15b   : > { %v657_v61 = vmax.f32 %v543_v53, 0.0  ;;  %v689_v62 = vmax.f32 %v623_v54, 0.0 }
 0x15c   : > { %v1125_v63 = vpack.c.bf16 %v656_v57, %v655_v51  ;;  %v1141_v0 = vpack.c.bf16 %v688_v58, %v687_v52  ;;  %v658_v1 = vmax.f32 %v545_v59, 0.0  ;;  %v690_v2 = vmax.f32 %v625_v60, 0.0 }
 0x15e   : > { %900 = vst.msk [vmem:[%s1471_s28 + $0x70] sm:$0xff] %vm1475_vm4, %v1125_v63  ;;  %916 = vst.msk [vmem:[%s1471_s28 + $0xf0] sm:$0xff] %vm1475_vm4, %v1141_v0  ;;  %v1126_v25 = vpack.c.bf16 %v658_v1, %v657_v61  ;;  %v1142_v3 = vpack.c.bf16 %v690_v2, %v689_v62 }
 0x160   : > { %901 = vst.msk [vmem:[%s1471_s28 + $0x78] sm:$0xff] %vm1475_vm4, %v1126_v25  ;;  %917 = vst.msk [vmem:[%s1471_s28 + $0xf8] sm:$0xff] %vm1475_vm4, %v1142_v3 }
 0x161 PF: > { %s15_s14 = sadd.s32 1, %s1293_s14   ;;  %s1654_s12 = smov %s1289_s13 }
 0x162   : > { %p12_p8 = scmp.ge.s32.totalorder %s15_s14, 4   ;;  %s1655_s13 = smov %s1657_s16 }
 0x164   :  { %14 = sbr.rel (!%p12_p8) target bundleno = 3 (0x3), region = 73 }
 0x16b   :  { %951 = vsyncpa [#allocation3], 1 }
 0x16c   :  { %953 = vsyncpa [#allocation3 + $0x1], 1 }
 0x16d   :  { %954 = vsyncpa [#allocation5], 1 }

// kernel: _lambda_.17
= control target key start
LH: loop header
LB: loop body
LE: loop exit
PB: predicated region body
PF: predicated region fallthrough
CT: control target
= control target key end

     0   :  { %s1785_s9 = smov 0   ;;  %s2543_s0 = inlined_call_operand.vmem [shape: bf16[2,18,18,192], index: 0, kind: input, shape index: {}]   ;;  %s2544_s1 = inlined_call_operand.vmem [shape: f32[1,192], index: 1, kind: input, shape index: {}]   ;;  %s2545_s2 = inlined_call_operand.vmem [shape: bf16[2,16,16,192], index: 2, kind: output, shape index: {}]  }
   0x1 LB: > { %s1678_s10 = sadd.s32 4294967295, %s1768_s9   ;;  %p1682_p0 = scmp.ge.s32.totalorder %s1768_s9, 1  ;;  %s1768_s9 = sphi %s1785_s9, %s12_s9  }
   0x2   : > { %p112_p1 = scmp.lt.s32.totalorder %s1768_s9, 3 }
   0x4   : > { %p113_p2 = pnand %p1682_p0, %p112_p1 }
   0x5   : > { %p134_p3 = scmp.lt.s32.totalorder (!%p113_p2), %s1678_s10, 1  ;;  %v1258_v0 = vlaneseq (!%p113_p2)  ;;  %v1256_v2 = vld [vmem:[%s2544_s1] sm:$0x3] (!%p113_p2)  ;;  %vm414_vm0 = vcmask (!%p113_p2), 1046528   ;;  %vm739_vm1 = vcmask (!%p113_p2), 1045504   ;;  %vm1588_vm2 = vcmask (!%p113_p2), 1043456  }
   0x6   : > { %116 = sbr.rel (%p113_p2) target bundleno = 269 (0x10d), region = 28  ;;  %vm1589_vm3 = vcmask (!%p113_p2), 523268  }
   0x7   : > { %v1259_v1 = vshrl.u32 (!%p113_p2), %v1258_v0, 7  ;;  %vm1920_vm4 = vmor (!%p113_p2), %vm1589_vm3, %vm1588_vm2 }
   0x9   : > { %v1260_v3 = vsub.s32 (!%p113_p2), 0, %v1259_v1  ;;  %v1264_v4 = vsub.s32 (!%p113_p2), 1, %v1259_v1 }
   0xb   : > { %v1807_v8 = vrot.slane (!%p113_p2), %v1256_v2, %v1260_v3  ;;  %v1809_v9 = vrot.slane (!%p113_p2), %v1256_v2, %v1264_v4 }
   0xd   : > { %s2549_s10 = smov (!%p134_p3, %s1678_s10), 1 }
   0xe   : > { %s1753_s11 = smul.u32 432, %s2549_s10  ;;  %s1720_s17 = sshll.u32 %s2549_s10, 8 }
   0xf   : > { %s1916_s20 = scalar_lea.vmem %s2545_s2, %s1720_s17 }
  0x10   : > { %s1802_s16 = scalar_lea.vmem %s2543_s0, %s1753_s11 }
  0x11   : > { %v144_v5 = vld [vmem:[%s1802_s16] sm:$0xff]  ;;  %v145_v6 = vld [vmem:[%s1802_s16 + $0x8] sm:$0xff]  ;;  %v147_v7 = vld [vmem:[%s1802_s16 + $0x18] sm:$0xff] }
  0x12   : > { %v148_v10 = vld [vmem:[%s1802_s16 + $0x20] sm:$0xff]  ;;  %v150_v11 = vld [vmem:[%s1802_s16 + $0x30] sm:$0xff]  ;;  %v151_v12 = vld [vmem:[%s1802_s16 + $0x38] sm:$0xff]  ;;  %v198_v13 = vunpack.c.l.bf16 %v144_v5  ;;  %v199_v14 = vunpack.c.h.bf16 %v144_v5  ;;  %v1814_v15 = vunpack.c.l.bf16 %v145_v6  ;;  %v1816_v16 = vunpack.c.h.bf16 %v145_v6 }
  0x13   : > { %v204_v17 = vunpack.c.l.bf16 %v147_v7  ;;  %v205_v18 = vunpack.c.h.bf16 %v147_v7  ;;  %v1818_v19 = vunpack.c.l.bf16 %v148_v10  ;;  %v1820_v20 = vunpack.c.h.bf16 %v148_v10  ;;  %v146_v61 = vld [vmem:[%s1802_s16 + $0x10] sm:$0x11]  ;;  %v149_v2 = vld [vmem:[%s1802_s16 + $0x28] sm:$0x11]  ;;  %v152_v7 = vld [vmem:[%s1802_s16 + $0x40] sm:$0x11] }
  0x14   : > { %v210_v21 = vunpack.c.l.bf16 %v150_v11  ;;  %v211_v22 = vunpack.c.h.bf16 %v150_v11  ;;  %v1822_v23 = vunpack.c.l.bf16 %v151_v12  ;;  %v1824_v24 = vunpack.c.h.bf16 %v151_v12 }
  0x15   : > { %v415_v25 = vrot.slane %v198_v13, 1  ;;  %v416_v26 = vrot.slane %v1814_v15, 1  ;;  %v418_v27 = vrot.slane %v199_v14, 1  ;;  %v419_v28 = vrot.slane %v1816_v16, 1 }
  0x16   : > { %v425_v29 = vrot.slane %v204_v17, 1  ;;  %v426_v30 = vrot.slane %v1818_v19, 1  ;;  %v428_v31 = vrot.slane %v205_v18, 1  ;;  %v429_v32 = vrot.slane %v1820_v20, 1 }
  0x17   : > { %v417_v33 = vsel %vm414_vm0, %v415_v25, %v416_v26  ;;  %v420_v34 = vsel %vm414_vm0, %v418_v27, %v419_v28  ;;  %v435_v35 = vrot.slane %v210_v21, 1  ;;  %v436_v36 = vrot.slane %v1822_v23, 1 }
  0x18   : > { %v427_v37 = vsel %vm414_vm0, %v425_v29, %v426_v30  ;;  %v430_v38 = vsel %vm414_vm0, %v428_v31, %v429_v32  ;;  %v438_v39 = vrot.slane %v211_v22, 1  ;;  %v439_v40 = vrot.slane %v1824_v24, 1 }
  0x19   : > { %v437_v41 = vsel %vm414_vm0, %v435_v35, %v436_v36  ;;  %v667_v42 = vadd.f32 %v417_v33, %v198_v13  ;;  %v668_v43 = vadd.f32 %v420_v34, %v199_v14  ;;  %v671_v44 = vadd.f32 %v427_v37, %v204_v17 }
  0x1a   : > { %v440_v45 = vsel %vm414_vm0, %v438_v39, %v439_v40  ;;  %v672_v46 = vadd.f32 %v430_v38, %v205_v18  ;;  %v675_v47 = vadd.f32 %v437_v41, %v210_v21  ;;  %v740_v48 = vrot.slane %v198_v13, 2 }
  0x1b   : > { %v676_v49 = vadd.f32 %v440_v45, %v211_v22  ;;  %v741_v50 = vrot.slane %v1814_v15, 2  ;;  %v743_v51 = vrot.slane %v199_v14, 2  ;;  %v744_v52 = vrot.slane %v1816_v16, 2 }
  0x1c   : > { %v750_v53 = vrot.slane %v204_v17, 2  ;;  %v751_v54 = vrot.slane %v1818_v19, 2  ;;  %v753_v55 = vrot.slane %v205_v18, 2  ;;  %v754_v56 = vrot.slane %v1820_v20, 2 }
  0x1d   : > { %v742_v57 = vsel %vm739_vm1, %v740_v48, %v741_v50  ;;  %v745_v58 = vsel %vm739_vm1, %v743_v51, %v744_v52  ;;  %v760_v59 = vrot.slane %v210_v21, 2  ;;  %v761_v60 = vrot.slane %v1822_v23, 2 }
  0x1e   : > { %v752_v62 = vsel %vm739_vm1, %v750_v53, %v751_v54  ;;  %v755_v63 = vsel %vm739_vm1, %v753_v55, %v754_v56  ;;  %v763_v0 = vrot.slane %v211_v22, 2  ;;  %v764_v1 = vrot.slane %v1824_v24, 2 }
  0x1f   : > { %v762_v3 = vsel %vm739_vm1, %v760_v59, %v761_v60  ;;  %v992_v4 = vadd.f32 %v742_v57, %v667_v42  ;;  %v993_v5 = vadd.f32 %v745_v58, %v668_v43  ;;  %v1871_v6 = vadd.f32 %v752_v62, %v671_v44  ;;  %v153_v57 = vld [vmem:[%s1802_s16 + $0x48] sm:$0xff] }
  0x20   : > { %v765_v10 = vsel %vm739_vm1, %v763_v0, %v764_v1  ;;  %v1877_v11 = vadd.f32 %v755_v63, %v672_v46  ;;  %v1879_v12 = vadd.f32 %v762_v3, %v675_v47  ;;  %v202_v13 = vunpack.c.l.bf16 %v146_v61 }
  0x21   : > { %v1881_v14 = vadd.f32 %v765_v10, %v676_v49  ;;  %v1064_v17 = vadd.f32 %v1871_v6, %v992_v4  ;;  %v203_v18 = vunpack.c.h.bf16 %v146_v61  ;;  %v208_v21 = vunpack.c.l.bf16 %v149_v2  ;;  %v154_v10 = vld [vmem:[%s1802_s16 + $0x50] sm:$0xff] }
  0x22   : > { %v1065_v22 = vadd.f32 %v1877_v11, %v993_v5  ;;  %v209_v25 = vunpack.c.h.bf16 %v149_v2  ;;  %v214_v27 = vunpack.c.l.bf16 %v152_v7  ;;  %v215_v29 = vunpack.c.h.bf16 %v152_v7 }
  0x23   : > { %v1128_v31 = vadd.f32 %v1064_v17, %v1879_v12  ;;  %v421_v33 = vrot.slane %v202_v13, 1  ;;  %v423_v34 = vrot.slane %v203_v18, 1  ;;  %v431_v35 = vrot.slane %v208_v21, 1 }
  0x24   : > { %v1129_v37 = vadd.f32 %v1065_v22, %v1881_v14  ;;  %v433_v38 = vrot.slane %v209_v25, 1  ;;  %v441_v39 = vrot.slane %v214_v27, 1  ;;  %v443_v41 = vrot.slane %v215_v29, 1 }
  0x25   : > { %v1192_v42 = vmul.f32 0.11111111, %v1128_v31  ;;  %v422_v43 = vsel %vm414_vm0, %v416_v26, %v421_v33  ;;  %v424_v44 = vsel %vm414_vm0, %v419_v28, %v423_v34  ;;  %v432_v45 = vsel %vm414_vm0, %v426_v30, %v431_v35 }
  0x26   : > { %v1193_v46 = vmul.f32 0.11111111, %v1129_v37  ;;  %v434_v47 = vsel %vm414_vm0, %v429_v32, %v433_v38  ;;  %v442_v48 = vsel %vm414_vm0, %v436_v36, %v441_v39  ;;  %v444_v26 = vsel %vm414_vm0, %v439_v40, %v443_v41  ;;  %v155_v38 = vld [vmem:[%s1802_s16 + $0x58] sm:$0x11] }
  0x27   : > { %v1268_v49 = vadd.f32 %v1807_v8, %v1192_v42  ;;  %v669_v51 = vadd.f32 %v422_v43, %v1814_v15  ;;  %v670_v28 = vadd.f32 %v424_v44, %v1816_v16  ;;  %v673_v53 = vadd.f32 %v432_v45, %v1818_v19 }
  0x28   : > { %v1269_v30 = vadd.f32 %v1809_v9, %v1193_v46  ;;  %v674_v55 = vadd.f32 %v434_v47, %v1820_v20  ;;  %v677_v32 = vadd.f32 %v442_v48, %v1822_v23  ;;  %v678_v36 = vadd.f32 %v444_v26, %v1824_v24 }
  0x29   : > { %v1332_v40 = vmax.f32 %v1268_v49, 0.0  ;;  %v746_v58 = vrot.slane %v202_v13, 2  ;;  %v748_v59 = vrot.slane %v203_v18, 2  ;;  %v756_v61 = vrot.slane %v208_v21, 2 }
  0x2a   : > { %v1333_v62 = vmax.f32 %v1269_v30, 0.0  ;;  %v758_v63 = vrot.slane %v209_v25, 2  ;;  %v766_v0 = vrot.slane %v214_v27, 2  ;;  %v768_v2 = vrot.slane %v215_v29, 2 }
  0x2b   : > { %v747_v4 = vsel %vm739_vm1, %v741_v50, %v746_v58  ;;  %v749_v5 = vsel %vm739_vm1, %v744_v52, %v748_v59  ;;  %v757_v7 = vsel %vm739_vm1, %v751_v54, %v756_v61  ;;  %v216_v13 = vunpack.c.l.bf16 %v153_v57 }
  0x2c   : > { %v1721_v17 = vpack.c.bf16 %v1333_v62, %v1332_v40  ;;  %v759_v18 = vsel %vm739_vm1, %v754_v56, %v758_v63  ;;  %v767_v15 = vsel %vm739_vm1, %v761_v60, %v766_v0  ;;  %v769_v16 = vsel %vm739_vm1, %v764_v1, %v768_v2  ;;  %v156_v2 = vld [vmem:[%s1802_s16 + $0x60] sm:$0xff] }
  0x2d   : > { %v994_v50 = vadd.f32 %v747_v4, %v669_v51  ;;  %v995_v52 = vadd.f32 %v749_v5, %v670_v28  ;;  %v998_v19 = vadd.f32 %v757_v7, %v673_v53  ;;  %v999_v21 = vadd.f32 %v759_v18, %v674_v55 }
  0x2e   : > { %1591 = vst.msk [vmem:[%s1916_s20] sm:$0xff] %vm1920_vm4, %v1721_v17  ;;  %v1946_v54 = vadd.f32 %v767_v15, %v677_v32  ;;  %v1948_v20 = vadd.f32 %v769_v16, %v678_v36  ;;  %v217_v56 = vunpack.c.h.bf16 %v153_v57  ;;  %v218_v23 = vunpack.c.l.bf16 %v154_v10 }
  0x2f   : > { %v1066_v22 = vadd.f32 %v998_v19, %v994_v50  ;;  %v1067_v60 = vadd.f32 %v999_v21, %v995_v52  ;;  %v219_v25 = vunpack.c.h.bf16 %v154_v10  ;;  %v445_v24 = vrot.slane %v216_v13, 1 }
  0x30   : > { %v446_v27 = vrot.slane %v218_v23, 1  ;;  %v448_v1 = vrot.slane %v217_v56, 1  ;;  %v770_v29 = vrot.slane %v216_v13, 2  ;;  %v771_v31 = vrot.slane %v218_v23, 2 }
  0x31   : > { %v1130_v33 = vadd.f32 %v1066_v22, %v1946_v54  ;;  %v1131_v34 = vadd.f32 %v1067_v60, %v1948_v20  ;;  %v449_v35 = vrot.slane %v219_v25, 1  ;;  %v773_v37 = vrot.slane %v217_v56, 2 }
  0x32   : > { %v447_v39 = vsel %vm414_vm0, %v445_v24, %v446_v27  ;;  %v772_v41 = vsel %vm739_vm1, %v770_v29, %v771_v31  ;;  %v774_v42 = vrot.slane %v219_v25, 2  ;;  %v1068_v43 = vadd.f32 %v1879_v12, %v1871_v6 }
  0x33   : > { %v1194_v44 = vmul.f32 0.11111111, %v1130_v33  ;;  %v1195_v45 = vmul.f32 0.11111111, %v1131_v34  ;;  %v450_v46 = vsel %vm414_vm0, %v448_v1, %v449_v35  ;;  %v679_v47 = vadd.f32 %v447_v39, %v216_v13  ;;  %v157_v13 = vld [vmem:[%s1802_s16 + $0x68] sm:$0xff] }
  0x34   : > { %v680_v48 = vadd.f32 %v450_v46, %v217_v56  ;;  %v775_v26 = vsel %vm739_vm1, %v773_v37, %v774_v42  ;;  %v1069_v49 = vadd.f32 %v1881_v14, %v1877_v11  ;;  %v220_v51 = vunpack.c.l.bf16 %v155_v38 }
  0x35   : > { %v1270_v28 = vadd.f32 %v1807_v8, %v1194_v44  ;;  %v1271_v53 = vadd.f32 %v1809_v9, %v1195_v45  ;;  %v1963_v30 = vadd.f32 %v772_v41, %v679_v47  ;;  %v221_v6 = vunpack.c.h.bf16 %v155_v38  ;;  %v158_v45 = vld [vmem:[%s1802_s16 + $0x70] sm:$0x11] }
  0x36   : > { %v1965_v55 = vadd.f32 %v775_v26, %v680_v48  ;;  %v451_v32 = vrot.slane %v220_v51, 1  ;;  %v776_v36 = vrot.slane %v220_v51, 2  ;;  %v1070_v57 = vadd.f32 %v1946_v54, %v998_v19 }
  0x37   : > { %v1334_v40 = vmax.f32 %v1270_v28, 0.0  ;;  %v1335_v58 = vmax.f32 %v1271_v53, 0.0  ;;  %v1132_v11 = vadd.f32 %v1068_v43, %v1963_v30  ;;  %v453_v59 = vrot.slane %v221_v6, 1 }
  0x38   : > { %v1133_v61 = vadd.f32 %v1069_v49, %v1965_v55  ;;  %v452_v62 = vsel %vm414_vm0, %v446_v27, %v451_v32  ;;  %v777_v63 = vsel %vm739_vm1, %v771_v31, %v776_v36  ;;  %v778_v0 = vrot.slane %v221_v6, 2 }
  0x39   : > { %v1722_v4 = vpack.c.bf16 %v1335_v58, %v1334_v40  ;;  %v1196_v5 = vmul.f32 0.11111111, %v1132_v11  ;;  %v454_v7 = vsel %vm414_vm0, %v449_v35, %v453_v59  ;;  %v681_v10 = vadd.f32 %v452_v62, %v218_v23  ;;  %v159_v40 = vld [vmem:[%s1802_s16 + $0x78] sm:$0xff] }
  0x3a   : > { %v1197_v17 = vmul.f32 0.11111111, %v1133_v61  ;;  %v682_v18 = vadd.f32 %v454_v7, %v219_v25  ;;  %v779_v15 = vsel %vm739_vm1, %v774_v42, %v778_v0  ;;  %v1071_v16 = vadd.f32 %v1948_v20, %v999_v21 }
  0x3b   : > { %1592 = vst.msk [vmem:[%s1916_s20 + $0x8] sm:$0xff] %vm1920_vm4, %v1722_v4  ;;  %v1272_v50 = vadd.f32 %v1807_v8, %v1196_v5  ;;  %v1981_v52 = vadd.f32 %v777_v63, %v681_v10  ;;  %v222_v19 = vunpack.c.l.bf16 %v156_v2  ;;  %v223_v56 = vunpack.c.h.bf16 %v156_v2  ;;  %v160_v5 = vld [vmem:[%s1802_s16 + $0x80] sm:$0xff] }
  0x3c   : > { %v1273_v22 = vadd.f32 %v1809_v9, %v1197_v17  ;;  %v1984_v60 = vadd.f32 %v779_v15, %v682_v18  ;;  %v224_v23 = vunpack.c.l.bf16 %v157_v13  ;;  %v225_v24 = vunpack.c.h.bf16 %v157_v13 }
  0x3d   : > { %v1336_v25 = vmax.f32 %v1272_v50, 0.0  ;;  %v1134_v27 = vadd.f32 %v1070_v57, %v1981_v52  ;;  %v455_v21 = vrot.slane %v222_v19, 1  ;;  %v458_v1 = vrot.slane %v223_v56, 1 }
  0x3e   : > { %v1337_v29 = vmax.f32 %v1273_v22, 0.0  ;;  %v1135_v31 = vadd.f32 %v1071_v16, %v1984_v60  ;;  %v456_v33 = vrot.slane %v224_v23, 1  ;;  %v459_v34 = vrot.slane %v225_v24, 1 }
  0x3f   : > { %v1198_v35 = vmul.f32 0.11111111, %v1134_v27  ;;  %v780_v37 = vrot.slane %v222_v19, 2  ;;  %v781_v38 = vrot.slane %v224_v23, 2  ;;  %v783_v39 = vrot.slane %v223_v56, 2 }
  0x40   : > { %v1723_v41 = vpack.c.bf16 %v1337_v29, %v1336_v25  ;;  %v1199_v42 = vmul.f32 0.11111111, %v1135_v31  ;;  %v457_v43 = vsel %vm414_vm0, %v455_v21, %v456_v33  ;;  %v460_v44 = vsel %vm414_vm0, %v458_v1, %v459_v34 }
  0x41   : > { %v1274_v46 = vadd.f32 %v1807_v8, %v1198_v35  ;;  %v683_v47 = vadd.f32 %v457_v43, %v222_v19  ;;  %v684_v48 = vadd.f32 %v460_v44, %v223_v56  ;;  %v782_v26 = vsel %vm739_vm1, %v780_v37, %v781_v38 }
  0x42   : > { %1593 = vst.msk [vmem:[%s1916_s20 + $0x10] sm:$0xff] %vm1920_vm4, %v1723_v41  ;;  %v1275_v49 = vadd.f32 %v1809_v9, %v1199_v42  ;;  %v784_v51 = vrot.slane %v225_v24, 2  ;;  %v1072_v28 = vadd.f32 %v1963_v30, %v1879_v12  ;;  %v1073_v53 = vadd.f32 %v1965_v55, %v1881_v14 }
  0x43   : > { %v1338_v6 = vmax.f32 %v1274_v46, 0.0  ;;  %v2001_v32 = vadd.f32 %v782_v26, %v683_v47  ;;  %v226_v36 = vunpack.c.l.bf16 %v158_v45  ;;  %v227_v57 = vunpack.c.h.bf16 %v158_v45  ;;  %v161_v47 = vld [vmem:[%s1802_s16 + $0x88] sm:$0x11] }
  0x44   : > { %v1339_v58 = vmax.f32 %v1275_v49, 0.0  ;;  %v785_v11 = vsel %vm739_vm1, %v783_v39, %v784_v51  ;;  %v1074_v59 = vadd.f32 %v1981_v52, %v1946_v54  ;;  %v1075_v12 = vadd.f32 %v1984_v60, %v1948_v20 }
  0x45   : > { %v2009_v61 = vadd.f32 %v785_v11, %v684_v48  ;;  %v1136_v14 = vadd.f32 %v1072_v28, %v2001_v32  ;;  %v461_v62 = vrot.slane %v226_v36, 1  ;;  %v463_v63 = vrot.slane %v227_v57, 1 }
  0x46   : > { %v1724_v0 = vpack.c.bf16 %v1339_v58, %v1338_v6  ;;  %v786_v2 = vrot.slane %v226_v36, 2  ;;  %v788_v4 = vrot.slane %v227_v57, 2  ;;  %v228_v7 = vunpack.c.l.bf16 %v159_v40 }
  0x47   : > { %v1137_v10 = vadd.f32 %v1073_v53, %v2009_v61  ;;  %v1200_v13 = vmul.f32 0.11111111, %v1136_v14  ;;  %v462_v17 = vsel %vm414_vm0, %v456_v33, %v461_v62  ;;  %v464_v54 = vsel %vm414_vm0, %v459_v34, %v463_v63 }
  0x48   : > { %1594 = vst.msk [vmem:[%s1916_s20 + $0x18] sm:$0xff] %vm1920_vm4, %v1724_v0  ;;  %v685_v20 = vadd.f32 %v462_v17, %v224_v23  ;;  %v686_v18 = vadd.f32 %v464_v54, %v225_v24  ;;  %v787_v15 = vsel %vm739_vm1, %v781_v38, %v786_v2  ;;  %v789_v16 = vsel %vm739_vm1, %v784_v51, %v788_v4 }
  0x49   : > { %v1201_v50 = vmul.f32 0.11111111, %v1137_v10  ;;  %v1276_v19 = vadd.f32 %v1807_v8, %v1200_v13  ;;  %v229_v56 = vunpack.c.h.bf16 %v159_v40  ;;  %v230_v22 = vunpack.c.l.bf16 %v160_v5  ;;  %v162_v10 = vld [vmem:[%s1802_s16 + $0x90] sm:$0xff]  ;;  %v163_v13 = vld [vmem:[%s1802_s16 + $0x98] sm:$0xff] }
  0x4a   : > { %v2022_v25 = vadd.f32 %v787_v15, %v685_v20  ;;  %v2024_v27 = vadd.f32 %v789_v16, %v686_v18  ;;  %v231_v21 = vunpack.c.h.bf16 %v160_v5  ;;  %v465_v1 = vrot.slane %v228_v7, 1 }
  0x4b   : > { %v1277_v29 = vadd.f32 %v1809_v9, %v1201_v50  ;;  %v1340_v23 = vmax.f32 %v1276_v19, 0.0  ;;  %v466_v24 = vrot.slane %v230_v22, 1  ;;  %v468_v31 = vrot.slane %v229_v56, 1 }
  0x4c   : > { %v1138_v33 = vadd.f32 %v1074_v59, %v2022_v25  ;;  %v1139_v34 = vadd.f32 %v1075_v12, %v2024_v27  ;;  %v469_v35 = vrot.slane %v231_v21, 1  ;;  %v790_v37 = vrot.slane %v228_v7, 2 }
  0x4d   : > { %v1341_v38 = vmax.f32 %v1277_v29, 0.0  ;;  %v467_v39 = vsel %vm414_vm0, %v465_v1, %v466_v24  ;;  %v791_v41 = vrot.slane %v230_v22, 2  ;;  %v793_v42 = vrot.slane %v229_v56, 2 }
  0x4e   : > { %v1202_v43 = vmul.f32 0.11111111, %v1138_v33  ;;  %v1203_v44 = vmul.f32 0.11111111, %v1139_v34  ;;  %v470_v45 = vsel %vm414_vm0, %v468_v31, %v469_v35  ;;  %v687_v46 = vadd.f32 %v467_v39, %v228_v7 }
  0x4f   : > { %v1725_v48 = vpack.c.bf16 %v1341_v38, %v1340_v23  ;;  %v688_v26 = vadd.f32 %v470_v45, %v229_v56  ;;  %v792_v49 = vsel %vm739_vm1, %v790_v37, %v791_v41  ;;  %v794_v51 = vrot.slane %v231_v21, 2 }
  0x50   : > { %v1278_v28 = vadd.f32 %v1807_v8, %v1202_v43  ;;  %v1279_v53 = vadd.f32 %v1809_v9, %v1203_v44  ;;  %v2035_v6 = vadd.f32 %v792_v49, %v687_v46  ;;  %v1076_v36 = vadd.f32 %v2001_v32, %v1963_v30 }
  0x51   : > { %1595 = vst.msk [vmem:[%s1916_s20 + $0x20] sm:$0xff] %vm1920_vm4, %v1725_v48  ;;  %v795_v57 = vsel %vm739_vm1, %v793_v42, %v794_v51  ;;  %v1077_v40 = vadd.f32 %v2009_v61, %v1965_v55  ;;  %v232_v58 = vunpack.c.l.bf16 %v161_v47  ;;  %v233_v11 = vunpack.c.h.bf16 %v161_v47 }
  0x52   : > { %v1342_v59 = vmax.f32 %v1278_v28, 0.0  ;;  %v1343_v12 = vmax.f32 %v1279_v53, 0.0  ;;  %v2045_v14 = vadd.f32 %v795_v57, %v688_v26  ;;  %v1140_v62 = vadd.f32 %v1076_v36, %v2035_v6  ;;  %v164_v26 = vld [vmem:[%s1802_s16 + $0xa0] sm:$0x11] }
  0x53   : > { %v471_v30 = vrot.slane %v232_v58, 1  ;;  %v473_v63 = vrot.slane %v233_v11, 1  ;;  %v796_v0 = vrot.slane %v232_v58, 2  ;;  %v798_v2 = vrot.slane %v233_v11, 2 }
  0x54   : > { %v1726_v4 = vpack.c.bf16 %v1343_v12, %v1342_v59  ;;  %v1141_v5 = vadd.f32 %v1077_v40, %v2045_v14  ;;  %v1204_v7 = vmul.f32 0.11111111, %v1140_v62  ;;  %v1078_v55 = vadd.f32 %v2022_v25, %v1981_v52 }
  0x55   : > { %v472_v17 = vsel %vm414_vm0, %v466_v24, %v471_v30  ;;  %v474_v54 = vsel %vm414_vm0, %v469_v35, %v473_v63  ;;  %v797_v20 = vsel %vm739_vm1, %v791_v41, %v796_v0  ;;  %v799_v18 = vsel %vm739_vm1, %v794_v51, %v798_v2 }
  0x56   : > { %1596 = vst.msk [vmem:[%s1916_s20 + $0x28] sm:$0xff] %vm1920_vm4, %v1726_v4  ;;  %v1205_v15 = vmul.f32 0.11111111, %v1141_v5  ;;  %v1280_v16 = vadd.f32 %v1807_v8, %v1204_v7  ;;  %v689_v50 = vadd.f32 %v472_v17, %v230_v22  ;;  %v690_v19 = vadd.f32 %v474_v54, %v231_v21  ;;  %v165_v17 = vld [vmem:[%s1802_s16 + $0xa8] sm:$0xff]  ;;  %v166_v54 = vld [vmem:[%s1802_s16 + $0xb0] sm:$0xff] }
  0x57   : > { %v1079_v52 = vadd.f32 %v2024_v27, %v1984_v60  ;;  %v234_v56 = vunpack.c.l.bf16 %v162_v10  ;;  %v235_v1 = vunpack.c.h.bf16 %v162_v10  ;;  %v236_v29 = vunpack.c.l.bf16 %v163_v13 }
  0x58   : > { %v1281_v23 = vadd.f32 %v1809_v9, %v1205_v15  ;;  %v1344_v24 = vmax.f32 %v1280_v16, 0.0  ;;  %v2064_v31 = vadd.f32 %v797_v20, %v689_v50  ;;  %v2066_v33 = vadd.f32 %v799_v18, %v690_v19 }
  0x59   : > { %v237_v34 = vunpack.c.h.bf16 %v163_v13  ;;  %v475_v35 = vrot.slane %v234_v56, 1  ;;  %v476_v37 = vrot.slane %v236_v29, 1  ;;  %v478_v38 = vrot.slane %v235_v1, 1 }
  0x5a   : > { %v1345_v22 = vmax.f32 %v1281_v23, 0.0  ;;  %v1142_v21 = vadd.f32 %v1078_v55, %v2064_v31  ;;  %v1143_v60 = vadd.f32 %v1079_v52, %v2066_v33  ;;  %v800_v39 = vrot.slane %v234_v56, 2 }
  0x5b   : > { %v477_v41 = vsel %vm414_vm0, %v475_v35, %v476_v37  ;;  %v479_v42 = vrot.slane %v237_v34, 1  ;;  %v801_v43 = vrot.slane %v236_v29, 2  ;;  %v803_v44 = vrot.slane %v235_v1, 2 }
  0x5c   : > { %v1727_v45 = vpack.c.bf16 %v1345_v22, %v1344_v24  ;;  %v1206_v46 = vmul.f32 0.11111111, %v1142_v21  ;;  %v1207_v47 = vmul.f32 0.11111111, %v1143_v60  ;;  %v691_v48 = vadd.f32 %v477_v41, %v234_v56 }
  0x5d   : > { %v480_v49 = vsel %vm414_vm0, %v478_v38, %v479_v42  ;;  %v802_v51 = vsel %vm739_vm1, %v800_v39, %v801_v43  ;;  %v804_v28 = vrot.slane %v237_v34, 2  ;;  %v1080_v53 = vadd.f32 %v2035_v6, %v2001_v32 }
  0x5e   : > { %1597 = vst.msk [vmem:[%s1916_s20 + $0x30] sm:$0xff] %vm1920_vm4, %v1727_v45  ;;  %v1282_v36 = vadd.f32 %v1807_v8, %v1206_v46  ;;  %v1283_v57 = vadd.f32 %v1809_v9, %v1207_v47  ;;  %v692_v40 = vadd.f32 %v480_v49, %v235_v1  ;;  %v2081_v58 = vadd.f32 %v802_v51, %v691_v48  ;;  %v167_v51 = vld [vmem:[%s1802_s16 + $0xb8] sm:$0x11] }
  0x5f   : > { %v805_v11 = vsel %vm739_vm1, %v803_v44, %v804_v28  ;;  %v1081_v59 = vadd.f32 %v2045_v14, %v2009_v61  ;;  %v238_v12 = vunpack.c.l.bf16 %v164_v26  ;;  %v239_v62 = vunpack.c.h.bf16 %v164_v26 }
  0x60   : > { %v1346_v32 = vmax.f32 %v1282_v36, 0.0  ;;  %v1347_v30 = vmax.f32 %v1283_v57, 0.0  ;;  %v2086_v63 = vadd.f32 %v805_v11, %v692_v40  ;;  %v1144_v0 = vadd.f32 %v1080_v53, %v2081_v58 }
  0x61   : > { %v481_v2 = vrot.slane %v238_v12, 1  ;;  %v483_v4 = vrot.slane %v239_v62, 1  ;;  %v806_v5 = vrot.slane %v238_v12, 2  ;;  %v808_v7 = vrot.slane %v239_v62, 2 }
  0x62   : > { %v1728_v55 = vpack.c.bf16 %v1347_v30, %v1346_v32  ;;  %v1145_v10 = vadd.f32 %v1081_v59, %v2086_v63  ;;  %v1208_v13 = vmul.f32 0.11111111, %v1144_v0  ;;  %v1082_v61 = vadd.f32 %v2064_v31, %v2022_v25 }
  0x63   : > { %v482_v20 = vsel %vm414_vm0, %v476_v37, %v481_v2  ;;  %v484_v18 = vsel %vm414_vm0, %v479_v42, %v483_v4  ;;  %v807_v15 = vsel %vm739_vm1, %v801_v43, %v806_v5  ;;  %v809_v16 = vsel %vm739_vm1, %v804_v28, %v808_v7 }
  0x64   : > { %1598 = vst.msk [vmem:[%s1916_s20 + $0x38] sm:$0xff] %vm1920_vm4, %v1728_v55  ;;  %v1209_v50 = vmul.f32 0.11111111, %v1145_v10  ;;  %v1284_v19 = vadd.f32 %v1807_v8, %v1208_v13  ;;  %v693_v52 = vadd.f32 %v482_v20, %v236_v29  ;;  %v694_v56 = vadd.f32 %v484_v18, %v237_v34  ;;  %v168_v20 = vld [vmem:[%s1802_s16 + $0xc0] sm:$0xff]  ;;  %v169_v18 = vld [vmem:[%s1802_s16 + $0xc8] sm:$0xff] }
  0x65   : > { %v1083_v25 = vadd.f32 %v2066_v33, %v2024_v27  ;;  %v240_v1 = vunpack.c.l.bf16 %v165_v17  ;;  %v241_v23 = vunpack.c.h.bf16 %v165_v17  ;;  %v242_v24 = vunpack.c.l.bf16 %v166_v54 }
  0x66   : > { %v1285_v35 = vadd.f32 %v1809_v9, %v1209_v50  ;;  %v1348_v37 = vmax.f32 %v1284_v19, 0.0  ;;  %v2105_v38 = vadd.f32 %v807_v15, %v693_v52  ;;  %v2107_v22 = vadd.f32 %v809_v16, %v694_v56 }
  0x67   : > { %v243_v21 = vunpack.c.h.bf16 %v166_v54  ;;  %v485_v60 = vrot.slane %v240_v1, 1  ;;  %v486_v39 = vrot.slane %v242_v24, 1  ;;  %v488_v41 = vrot.slane %v241_v23, 1 }
  0x68   : > { %v1349_v29 = vmax.f32 %v1285_v35, 0.0  ;;  %v1146_v34 = vadd.f32 %v1082_v61, %v2105_v38  ;;  %v1147_v27 = vadd.f32 %v1083_v25, %v2107_v22  ;;  %v810_v42 = vrot.slane %v240_v1, 2 }
  0x69   : > { %v487_v43 = vsel %vm414_vm0, %v485_v60, %v486_v39  ;;  %v489_v44 = vrot.slane %v243_v21, 1  ;;  %v811_v45 = vrot.slane %v242_v24, 2  ;;  %v813_v46 = vrot.slane %v241_v23, 2 }
  0x6a   : > { %v1729_v47 = vpack.c.bf16 %v1349_v29, %v1348_v37  ;;  %v1210_v48 = vmul.f32 0.11111111, %v1146_v34  ;;  %v1211_v26 = vmul.f32 0.11111111, %v1147_v27  ;;  %v695_v49 = vadd.f32 %v487_v43, %v240_v1 }
  0x6b   : > { %v490_v28 = vsel %vm414_vm0, %v488_v41, %v489_v44  ;;  %v812_v53 = vsel %vm739_vm1, %v810_v42, %v811_v45  ;;  %v814_v36 = vrot.slane %v243_v21, 2  ;;  %v1084_v57 = vadd.f32 %v2081_v58, %v2035_v6 }
  0x6c   : > { %1599 = vst.msk [vmem:[%s1916_s20 + $0x40] sm:$0xff] %vm1920_vm4, %v1729_v47  ;;  %v1286_v40 = vadd.f32 %v1807_v8, %v1210_v48  ;;  %v1287_v11 = vadd.f32 %v1809_v9, %v1211_v26  ;;  %v696_v59 = vadd.f32 %v490_v28, %v241_v23  ;;  %v2122_v12 = vadd.f32 %v812_v53, %v695_v49  ;;  %v170_v53 = vld [vmem:[%s1802_s16 + $0xd0] sm:$0x11] }
  0x6d   : > { %v815_v62 = vsel %vm739_vm1, %v813_v46, %v814_v36  ;;  %v1085_v32 = vadd.f32 %v2086_v63, %v2045_v14  ;;  %v244_v30 = vunpack.c.l.bf16 %v167_v51  ;;  %v245_v0 = vunpack.c.h.bf16 %v167_v51 }
  0x6e   : > { %v1350_v6 = vmax.f32 %v1286_v40, 0.0  ;;  %v1351_v2 = vmax.f32 %v1287_v11, 0.0  ;;  %v2127_v4 = vadd.f32 %v815_v62, %v696_v59  ;;  %v1148_v5 = vadd.f32 %v1084_v57, %v2122_v12 }
  0x6f   : > { %v491_v7 = vrot.slane %v244_v30, 1  ;;  %v493_v55 = vrot.slane %v245_v0, 1  ;;  %v816_v10 = vrot.slane %v244_v30, 2  ;;  %v818_v13 = vrot.slane %v245_v0, 2 }
  0x70   : > { %v1730_v61 = vpack.c.bf16 %v1351_v2, %v1350_v6  ;;  %v1149_v17 = vadd.f32 %v1085_v32, %v2127_v4  ;;  %v1212_v54 = vmul.f32 0.11111111, %v1148_v5  ;;  %v1086_v14 = vadd.f32 %v2105_v38, %v2064_v31 }
  0x71   : > { %v492_v15 = vsel %vm414_vm0, %v486_v39, %v491_v7  ;;  %v494_v16 = vsel %vm414_vm0, %v489_v44, %v493_v55  ;;  %v817_v50 = vsel %vm739_vm1, %v811_v45, %v816_v10  ;;  %v819_v19 = vsel %vm739_vm1, %v814_v36, %v818_v13 }
  0x72   : > { %1600 = vst.msk [vmem:[%s1916_s20 + $0x48] sm:$0xff] %vm1920_vm4, %v1730_v61  ;;  %v1213_v52 = vmul.f32 0.11111111, %v1149_v17  ;;  %v1288_v56 = vadd.f32 %v1807_v8, %v1212_v54  ;;  %v697_v25 = vadd.f32 %v492_v15, %v242_v24  ;;  %v698_v1 = vadd.f32 %v494_v16, %v243_v21  ;;  %v171_v15 = vld [vmem:[%s1802_s16 + $0xd8] sm:$0xff]  ;;  %v172_v16 = vld [vmem:[%s1802_s16 + $0xe0] sm:$0xff] }
  0x73   : > { %v1087_v31 = vadd.f32 %v2107_v22, %v2066_v33  ;;  %v246_v23 = vunpack.c.l.bf16 %v168_v20  ;;  %v247_v35 = vunpack.c.h.bf16 %v168_v20  ;;  %v248_v37 = vunpack.c.l.bf16 %v169_v18 }
  0x74   : > { %v1289_v60 = vadd.f32 %v1809_v9, %v1213_v52  ;;  %v1352_v39 = vmax.f32 %v1288_v56, 0.0  ;;  %v2146_v41 = vadd.f32 %v817_v50, %v697_v25  ;;  %v2148_v29 = vadd.f32 %v819_v19, %v698_v1 }
  0x75   : > { %v249_v34 = vunpack.c.h.bf16 %v169_v18  ;;  %v495_v27 = vrot.slane %v246_v23, 1  ;;  %v496_v42 = vrot.slane %v248_v37, 1  ;;  %v498_v43 = vrot.slane %v247_v35, 1 }
  0x76   : > { %v1353_v24 = vmax.f32 %v1289_v60, 0.0  ;;  %v1150_v21 = vadd.f32 %v1086_v14, %v2146_v41  ;;  %v1151_v33 = vadd.f32 %v1087_v31, %v2148_v29  ;;  %v820_v44 = vrot.slane %v246_v23, 2 }
  0x77   : > { %v497_v45 = vsel %vm414_vm0, %v495_v27, %v496_v42  ;;  %v499_v46 = vrot.slane %v249_v34, 1  ;;  %v821_v47 = vrot.slane %v248_v37, 2  ;;  %v823_v48 = vrot.slane %v247_v35, 2 }
  0x78   : > { %v1731_v26 = vpack.c.bf16 %v1353_v24, %v1352_v39  ;;  %v1214_v49 = vmul.f32 0.11111111, %v1150_v21  ;;  %v1215_v51 = vmul.f32 0.11111111, %v1151_v33  ;;  %v699_v28 = vadd.f32 %v497_v45, %v246_v23 }
  0x79   : > { %v500_v36 = vsel %vm414_vm0, %v498_v43, %v499_v46  ;;  %v822_v57 = vsel %vm739_vm1, %v820_v44, %v821_v47  ;;  %v824_v40 = vrot.slane %v249_v34, 2  ;;  %v1088_v11 = vadd.f32 %v2122_v12, %v2081_v58 }
  0x7a   : > { %1601 = vst.msk [vmem:[%s1916_s20 + $0x50] sm:$0xff] %vm1920_vm4, %v1731_v26  ;;  %v1290_v59 = vadd.f32 %v1807_v8, %v1214_v49  ;;  %v1291_v62 = vadd.f32 %v1809_v9, %v1215_v51  ;;  %v700_v32 = vadd.f32 %v500_v36, %v247_v35  ;;  %v2163_v30 = vadd.f32 %v822_v57, %v699_v28  ;;  %v173_v57 = vld [vmem:[%s1802_s16 + $0xe8] sm:$0x11] }
  0x7b   : > { %v825_v0 = vsel %vm739_vm1, %v823_v48, %v824_v40  ;;  %v1089_v6 = vadd.f32 %v2127_v4, %v2086_v63  ;;  %v250_v2 = vunpack.c.l.bf16 %v170_v53  ;;  %v251_v5 = vunpack.c.h.bf16 %v170_v53 }
  0x7c   : > { %v1354_v58 = vmax.f32 %v1290_v59, 0.0  ;;  %v1355_v7 = vmax.f32 %v1291_v62, 0.0  ;;  %v2168_v55 = vadd.f32 %v825_v0, %v700_v32  ;;  %v1152_v10 = vadd.f32 %v1088_v11, %v2163_v30 }
  0x7d   : > { %v501_v13 = vrot.slane %v250_v2, 1  ;;  %v503_v61 = vrot.slane %v251_v5, 1  ;;  %v826_v17 = vrot.slane %v250_v2, 2  ;;  %v828_v54 = vrot.slane %v251_v5, 2 }
  0x7e   : > { %v1732_v14 = vpack.c.bf16 %v1355_v7, %v1354_v58  ;;  %v1153_v20 = vadd.f32 %v1089_v6, %v2168_v55  ;;  %v1216_v18 = vmul.f32 0.11111111, %v1152_v10  ;;  %v1090_v63 = vadd.f32 %v2146_v41, %v2105_v38 }
  0x7f   : > { %v502_v50 = vsel %vm414_vm0, %v496_v42, %v501_v13  ;;  %v504_v19 = vsel %vm414_vm0, %v499_v46, %v503_v61  ;;  %v827_v52 = vsel %vm739_vm1, %v821_v47, %v826_v17  ;;  %v829_v56 = vsel %vm739_vm1, %v824_v40, %v828_v54 }
  0x80   : > { %1602 = vst.msk [vmem:[%s1916_s20 + $0x58] sm:$0xff] %vm1920_vm4, %v1732_v14  ;;  %v1217_v25 = vmul.f32 0.11111111, %v1153_v20  ;;  %v1292_v1 = vadd.f32 %v1807_v8, %v1216_v18  ;;  %v701_v31 = vadd.f32 %v502_v50, %v248_v37  ;;  %v702_v23 = vadd.f32 %v504_v19, %v249_v34  ;;  %v174_v50 = vld [vmem:[%s1802_s16 + $0xf0] sm:$0xff]  ;;  %v175_v19 = vld [vmem:[%s1802_s16 + $0xf8] sm:$0xff] }
  0x81   : > { %v1091_v38 = vadd.f32 %v2148_v29, %v2107_v22  ;;  %v252_v35 = vunpack.c.l.bf16 %v171_v15  ;;  %v253_v60 = vunpack.c.h.bf16 %v171_v15  ;;  %v254_v39 = vunpack.c.l.bf16 %v172_v16 }
  0x82   : > { %v1293_v27 = vadd.f32 %v1809_v9, %v1217_v25  ;;  %v1356_v42 = vmax.f32 %v1292_v1, 0.0  ;;  %v2187_v43 = vadd.f32 %v827_v52, %v701_v31  ;;  %v2189_v24 = vadd.f32 %v829_v56, %v702_v23 }
  0x83   : > { %v255_v21 = vunpack.c.h.bf16 %v172_v16  ;;  %v505_v33 = vrot.slane %v252_v35, 1  ;;  %v506_v44 = vrot.slane %v254_v39, 1  ;;  %v508_v45 = vrot.slane %v253_v60, 1 }
  0x84   : > { %v1357_v37 = vmax.f32 %v1293_v27, 0.0  ;;  %v1154_v34 = vadd.f32 %v1090_v63, %v2187_v43  ;;  %v1155_v22 = vadd.f32 %v1091_v38, %v2189_v24  ;;  %v830_v46 = vrot.slane %v252_v35, 2 }
  0x85   : > { %v507_v47 = vsel %vm414_vm0, %v505_v33, %v506_v44  ;;  %v509_v48 = vrot.slane %v255_v21, 1  ;;  %v831_v26 = vrot.slane %v254_v39, 2  ;;  %v833_v49 = vrot.slane %v253_v60, 2 }
  0x86   : > { %v1733_v51 = vpack.c.bf16 %v1357_v37, %v1356_v42  ;;  %v1218_v28 = vmul.f32 0.11111111, %v1154_v34  ;;  %v1219_v53 = vmul.f32 0.11111111, %v1155_v22  ;;  %v703_v36 = vadd.f32 %v507_v47, %v252_v35 }
  0x87   : > { %v510_v40 = vsel %vm414_vm0, %v508_v45, %v509_v48  ;;  %v832_v11 = vsel %vm739_vm1, %v830_v46, %v831_v26  ;;  %v834_v59 = vrot.slane %v255_v21, 2  ;;  %v1092_v62 = vadd.f32 %v2163_v30, %v2122_v12 }
  0x88   : > { %1603 = vst.msk [vmem:[%s1916_s20 + $0x60] sm:$0xff] %vm1920_vm4, %v1733_v51  ;;  %v1294_v32 = vadd.f32 %v1807_v8, %v1218_v28  ;;  %v1295_v0 = vadd.f32 %v1809_v9, %v1219_v53  ;;  %v704_v6 = vadd.f32 %v510_v40, %v253_v60  ;;  %v2204_v2 = vadd.f32 %v832_v11, %v703_v36  ;;  %v176_v11 = vld [vmem:[%s1802_s16 + $0x100] sm:$0x11] }
  0x89   : > { %v835_v5 = vsel %vm739_vm1, %v833_v49, %v834_v59  ;;  %v1093_v58 = vadd.f32 %v2168_v55, %v2127_v4  ;;  %v256_v7 = vunpack.c.l.bf16 %v173_v57  ;;  %v257_v10 = vunpack.c.h.bf16 %v173_v57 }
  0x8a   : > { %v1358_v12 = vmax.f32 %v1294_v32, 0.0  ;;  %v1359_v13 = vmax.f32 %v1295_v0, 0.0  ;;  %v2209_v61 = vadd.f32 %v835_v5, %v704_v6  ;;  %v1156_v17 = vadd.f32 %v1092_v62, %v2204_v2 }
  0x8b   : > { %v511_v54 = vrot.slane %v256_v7, 1  ;;  %v513_v14 = vrot.slane %v257_v10, 1  ;;  %v836_v20 = vrot.slane %v256_v7, 2  ;;  %v838_v18 = vrot.slane %v257_v10, 2 }
  0x8c   : > { %v1734_v63 = vpack.c.bf16 %v1359_v13, %v1358_v12  ;;  %v1157_v15 = vadd.f32 %v1093_v58, %v2209_v61  ;;  %v1220_v16 = vmul.f32 0.11111111, %v1156_v17  ;;  %v1094_v4 = vadd.f32 %v2187_v43, %v2146_v41 }
  0x8d   : > { %v512_v52 = vsel %vm414_vm0, %v506_v44, %v511_v54  ;;  %v514_v56 = vsel %vm414_vm0, %v509_v48, %v513_v14  ;;  %v837_v25 = vsel %vm739_vm1, %v831_v26, %v836_v20  ;;  %v839_v1 = vsel %vm739_vm1, %v834_v59, %v838_v18 }
  0x8e   : > { %1604 = vst.msk [vmem:[%s1916_s20 + $0x68] sm:$0xff] %vm1920_vm4, %v1734_v63  ;;  %v1221_v31 = vmul.f32 0.11111111, %v1157_v15  ;;  %v1296_v23 = vadd.f32 %v1807_v8, %v1220_v16  ;;  %v705_v38 = vadd.f32 %v512_v52, %v254_v39  ;;  %v706_v35 = vadd.f32 %v514_v56, %v255_v21  ;;  %v177_v52 = vld [vmem:[%s1802_s16 + $0x108] sm:$0xff]  ;;  %v178_v56 = vld [vmem:[%s1802_s16 + $0x110] sm:$0xff] }
  0x8f   : > { %v1095_v41 = vadd.f32 %v2189_v24, %v2148_v29  ;;  %v258_v60 = vunpack.c.l.bf16 %v174_v50  ;;  %v259_v27 = vunpack.c.h.bf16 %v174_v50  ;;  %v260_v42 = vunpack.c.l.bf16 %v175_v19 }
  0x90   : > { %v1297_v33 = vadd.f32 %v1809_v9, %v1221_v31  ;;  %v1360_v44 = vmax.f32 %v1296_v23, 0.0  ;;  %v2228_v45 = vadd.f32 %v837_v25, %v705_v38  ;;  %v2230_v37 = vadd.f32 %v839_v1, %v706_v35 }
  0x91   : > { %v261_v34 = vunpack.c.h.bf16 %v175_v19  ;;  %v515_v22 = vrot.slane %v258_v60, 1  ;;  %v516_v46 = vrot.slane %v260_v42, 1  ;;  %v518_v47 = vrot.slane %v259_v27, 1 }
  0x92   : > { %v1361_v39 = vmax.f32 %v1297_v33, 0.0  ;;  %v1158_v21 = vadd.f32 %v1094_v4, %v2228_v45  ;;  %v1159_v29 = vadd.f32 %v1095_v41, %v2230_v37  ;;  %v840_v48 = vrot.slane %v258_v60, 2 }
  0x93   : > { %v517_v26 = vsel %vm414_vm0, %v515_v22, %v516_v46  ;;  %v519_v49 = vrot.slane %v261_v34, 1  ;;  %v841_v51 = vrot.slane %v260_v42, 2  ;;  %v843_v28 = vrot.slane %v259_v27, 2 }
  0x94   : > { %v1735_v53 = vpack.c.bf16 %v1361_v39, %v1360_v44  ;;  %v1222_v36 = vmul.f32 0.11111111, %v1158_v21  ;;  %v1223_v57 = vmul.f32 0.11111111, %v1159_v29  ;;  %v707_v40 = vadd.f32 %v517_v26, %v258_v60 }
  0x95   : > { %v520_v59 = vsel %vm414_vm0, %v518_v47, %v519_v49  ;;  %v842_v62 = vsel %vm739_vm1, %v840_v48, %v841_v51  ;;  %v844_v32 = vrot.slane %v261_v34, 2  ;;  %v1096_v0 = vadd.f32 %v2204_v2, %v2163_v30 }
  0x96   : > { %1605 = vst.msk [vmem:[%s1916_s20 + $0x70] sm:$0xff] %vm1920_vm4, %v1735_v53  ;;  %v1298_v6 = vadd.f32 %v1807_v8, %v1222_v36  ;;  %v1299_v5 = vadd.f32 %v1809_v9, %v1223_v57  ;;  %v708_v58 = vadd.f32 %v520_v59, %v259_v27  ;;  %v2245_v7 = vadd.f32 %v842_v62, %v707_v40  ;;  %v179_v62 = vld [vmem:[%s1802_s16 + $0x118] sm:$0x11] }
  0x97   : > { %v845_v10 = vsel %vm739_vm1, %v843_v28, %v844_v32  ;;  %v1097_v12 = vadd.f32 %v2209_v61, %v2168_v55  ;;  %v262_v13 = vunpack.c.l.bf16 %v176_v11  ;;  %v263_v17 = vunpack.c.h.bf16 %v176_v11 }
  0x98   : > { %v1362_v30 = vmax.f32 %v1298_v6, 0.0  ;;  %v1363_v54 = vmax.f32 %v1299_v5, 0.0  ;;  %v2250_v14 = vadd.f32 %v845_v10, %v708_v58  ;;  %v1160_v20 = vadd.f32 %v1096_v0, %v2245_v7 }
  0x99   : > { %v521_v18 = vrot.slane %v262_v13, 1  ;;  %v523_v63 = vrot.slane %v263_v17, 1  ;;  %v846_v15 = vrot.slane %v262_v13, 2  ;;  %v848_v16 = vrot.slane %v263_v17, 2 }
  0x9a   : > { %v1736_v4 = vpack.c.bf16 %v1363_v54, %v1362_v30  ;;  %v1161_v50 = vadd.f32 %v1097_v12, %v2250_v14  ;;  %v1224_v19 = vmul.f32 0.11111111, %v1160_v20  ;;  %v1098_v55 = vadd.f32 %v2228_v45, %v2187_v43 }
  0x9b   : > { %v522_v25 = vsel %vm414_vm0, %v516_v46, %v521_v18  ;;  %v524_v1 = vsel %vm414_vm0, %v519_v49, %v523_v63  ;;  %v847_v31 = vsel %vm739_vm1, %v841_v51, %v846_v15  ;;  %v849_v23 = vsel %vm739_vm1, %v844_v32, %v848_v16 }
  0x9c   : > { %1606 = vst.msk [vmem:[%s1916_s20 + $0x78] sm:$0xff] %vm1920_vm4, %v1736_v4  ;;  %v1225_v38 = vmul.f32 0.11111111, %v1161_v50  ;;  %v1300_v35 = vadd.f32 %v1807_v8, %v1224_v19  ;;  %v709_v41 = vadd.f32 %v522_v25, %v260_v42  ;;  %v710_v60 = vadd.f32 %v524_v1, %v261_v34  ;;  %v180_v25 = vld [vmem:[%s1802_s16 + $0x120] sm:$0xff]  ;;  %v181_v1 = vld [vmem:[%s1802_s16 + $0x128] sm:$0xff] }
  0x9d   : > { %v1099_v43 = vadd.f32 %v2230_v37, %v2189_v24  ;;  %v264_v27 = vunpack.c.l.bf16 %v177_v52  ;;  %v265_v33 = vunpack.c.h.bf16 %v177_v52  ;;  %v266_v44 = vunpack.c.l.bf16 %v178_v56 }
  0x9e   : > { %v1301_v22 = vadd.f32 %v1809_v9, %v1225_v38  ;;  %v1364_v46 = vmax.f32 %v1300_v35, 0.0  ;;  %v2269_v47 = vadd.f32 %v847_v31, %v709_v41  ;;  %v2271_v39 = vadd.f32 %v849_v23, %v710_v60 }
  0x9f   : > { %v267_v21 = vunpack.c.h.bf16 %v178_v56  ;;  %v525_v29 = vrot.slane %v264_v27, 1  ;;  %v526_v48 = vrot.slane %v266_v44, 1  ;;  %v528_v26 = vrot.slane %v265_v33, 1 }
  0xa0   : > { %v1365_v42 = vmax.f32 %v1301_v22, 0.0  ;;  %v1162_v34 = vadd.f32 %v1098_v55, %v2269_v47  ;;  %v1163_v24 = vadd.f32 %v1099_v43, %v2271_v39  ;;  %v850_v49 = vrot.slane %v264_v27, 2 }
  0xa1   : > { %v527_v51 = vsel %vm414_vm0, %v525_v29, %v526_v48  ;;  %v529_v28 = vrot.slane %v267_v21, 1  ;;  %v851_v53 = vrot.slane %v266_v44, 2  ;;  %v853_v36 = vrot.slane %v265_v33, 2 }
  0xa2   : > { %v1737_v57 = vpack.c.bf16 %v1365_v42, %v1364_v46  ;;  %v1226_v40 = vmul.f32 0.11111111, %v1162_v34  ;;  %v1227_v11 = vmul.f32 0.11111111, %v1163_v24  ;;  %v711_v59 = vadd.f32 %v527_v51, %v264_v27 }
  0xa3   : > { %v530_v32 = vsel %vm414_vm0, %v528_v26, %v529_v28  ;;  %v852_v0 = vsel %vm739_vm1, %v850_v49, %v851_v53  ;;  %v854_v6 = vrot.slane %v267_v21, 2  ;;  %v1100_v5 = vadd.f32 %v2245_v7, %v2204_v2 }
  0xa4   : > { %1607 = vst.msk [vmem:[%s1916_s20 + $0x80] sm:$0xff] %vm1920_vm4, %v1737_v57  ;;  %v1302_v58 = vadd.f32 %v1807_v8, %v1226_v40  ;;  %v1303_v10 = vadd.f32 %v1809_v9, %v1227_v11  ;;  %v712_v12 = vadd.f32 %v530_v32, %v265_v33  ;;  %v2286_v13 = vadd.f32 %v852_v0, %v711_v59  ;;  %v182_v0 = vld [vmem:[%s1802_s16 + $0x130] sm:$0x11] }
  0xa5   : > { %v855_v17 = vsel %vm739_vm1, %v853_v36, %v854_v6  ;;  %v1101_v30 = vadd.f32 %v2250_v14, %v2209_v61  ;;  %v268_v54 = vunpack.c.l.bf16 %v179_v62  ;;  %v269_v20 = vunpack.c.h.bf16 %v179_v62 }
  0xa6   : > { %v1366_v2 = vmax.f32 %v1302_v58, 0.0  ;;  %v1367_v18 = vmax.f32 %v1303_v10, 0.0  ;;  %v2291_v63 = vadd.f32 %v855_v17, %v712_v12  ;;  %v1164_v15 = vadd.f32 %v1100_v5, %v2286_v13 }
  0xa7   : > { %v531_v16 = vrot.slane %v268_v54, 1  ;;  %v533_v4 = vrot.slane %v269_v20, 1  ;;  %v856_v50 = vrot.slane %v268_v54, 2  ;;  %v858_v19 = vrot.slane %v269_v20, 2 }
  0xa8   : > { %v1738_v55 = vpack.c.bf16 %v1367_v18, %v1366_v2  ;;  %v1165_v52 = vadd.f32 %v1101_v30, %v2291_v63  ;;  %v1228_v56 = vmul.f32 0.11111111, %v1164_v15  ;;  %v1102_v61 = vadd.f32 %v2269_v47, %v2228_v45 }
  0xa9   : > { %v532_v31 = vsel %vm414_vm0, %v526_v48, %v531_v16  ;;  %v534_v23 = vsel %vm414_vm0, %v529_v28, %v533_v4  ;;  %v857_v38 = vsel %vm739_vm1, %v851_v53, %v856_v50  ;;  %v859_v35 = vsel %vm739_vm1, %v854_v6, %v858_v19 }
  0xaa   : > { %1608 = vst.msk [vmem:[%s1916_s20 + $0x88] sm:$0xff] %vm1920_vm4, %v1738_v55  ;;  %v1229_v41 = vmul.f32 0.11111111, %v1165_v52  ;;  %v1304_v60 = vadd.f32 %v1807_v8, %v1228_v56  ;;  %v713_v43 = vadd.f32 %v532_v31, %v266_v44  ;;  %v714_v27 = vadd.f32 %v534_v23, %v267_v21  ;;  %v183_v31 = vld [vmem:[%s1802_s16 + $0x138] sm:$0xff]  ;;  %v184_v23 = vld [vmem:[%s1802_s16 + $0x140] sm:$0xff] }
  0xab   : > { %v1103_v45 = vadd.f32 %v2271_v39, %v2230_v37  ;;  %v270_v33 = vunpack.c.l.bf16 %v180_v25  ;;  %v271_v22 = vunpack.c.h.bf16 %v180_v25  ;;  %v272_v46 = vunpack.c.l.bf16 %v181_v1 }
  0xac   : > { %v1305_v29 = vadd.f32 %v1809_v9, %v1229_v41  ;;  %v1368_v48 = vmax.f32 %v1304_v60, 0.0  ;;  %v2310_v26 = vadd.f32 %v857_v38, %v713_v43  ;;  %v2312_v42 = vadd.f32 %v859_v35, %v714_v27 }
  0xad   : > { %v273_v34 = vunpack.c.h.bf16 %v181_v1  ;;  %v535_v24 = vrot.slane %v270_v33, 1  ;;  %v536_v49 = vrot.slane %v272_v46, 1  ;;  %v538_v51 = vrot.slane %v271_v22, 1 }
  0xae   : > { %v1369_v44 = vmax.f32 %v1305_v29, 0.0  ;;  %v1166_v21 = vadd.f32 %v1102_v61, %v2310_v26  ;;  %v1167_v37 = vadd.f32 %v1103_v45, %v2312_v42  ;;  %v860_v28 = vrot.slane %v270_v33, 2 }
  0xaf   : > { %v537_v53 = vsel %vm414_vm0, %v535_v24, %v536_v49  ;;  %v539_v36 = vrot.slane %v273_v34, 1  ;;  %v861_v57 = vrot.slane %v272_v46, 2  ;;  %v863_v40 = vrot.slane %v271_v22, 2 }
  0xb0   : > { %v1739_v11 = vpack.c.bf16 %v1369_v44, %v1368_v48  ;;  %v1230_v59 = vmul.f32 0.11111111, %v1166_v21  ;;  %v1231_v62 = vmul.f32 0.11111111, %v1167_v37  ;;  %v715_v32 = vadd.f32 %v537_v53, %v270_v33 }
  0xb1   : > { %v540_v6 = vsel %vm414_vm0, %v538_v51, %v539_v36  ;;  %v862_v5 = vsel %vm739_vm1, %v860_v28, %v861_v57  ;;  %v864_v58 = vrot.slane %v273_v34, 2  ;;  %v1104_v10 = vadd.f32 %v2286_v13, %v2245_v7 }
  0xb2   : > { %1609 = vst.msk [vmem:[%s1916_s20 + $0x90] sm:$0xff] %vm1920_vm4, %v1739_v11  ;;  %v1306_v12 = vadd.f32 %v1807_v8, %v1230_v59  ;;  %v1307_v17 = vadd.f32 %v1809_v9, %v1231_v62  ;;  %v716_v30 = vadd.f32 %v540_v6, %v271_v22  ;;  %v2327_v54 = vadd.f32 %v862_v5, %v715_v32  ;;  %v185_v5 = vld [vmem:[%s1802_s16 + $0x148] sm:$0x11] }
  0xb3   : > { %v865_v20 = vsel %vm739_vm1, %v863_v40, %v864_v58  ;;  %v1105_v2 = vadd.f32 %v2291_v63, %v2250_v14  ;;  %v274_v18 = vunpack.c.l.bf16 %v182_v0  ;;  %v275_v15 = vunpack.c.h.bf16 %v182_v0 }
  0xb4   : > { %v1370_v7 = vmax.f32 %v1306_v12, 0.0  ;;  %v1371_v16 = vmax.f32 %v1307_v17, 0.0  ;;  %v2332_v4 = vadd.f32 %v865_v20, %v716_v30  ;;  %v1168_v50 = vadd.f32 %v1104_v10, %v2327_v54 }
  0xb5   : > { %v541_v19 = vrot.slane %v274_v18, 1  ;;  %v543_v55 = vrot.slane %v275_v15, 1  ;;  %v866_v52 = vrot.slane %v274_v18, 2  ;;  %v868_v56 = vrot.slane %v275_v15, 2 }
  0xb6   : > { %v1740_v61 = vpack.c.bf16 %v1371_v16, %v1370_v7  ;;  %v1169_v25 = vadd.f32 %v1105_v2, %v2332_v4  ;;  %v1232_v1 = vmul.f32 0.11111111, %v1168_v50  ;;  %v1106_v14 = vadd.f32 %v2310_v26, %v2269_v47 }
  0xb7   : > { %v542_v38 = vsel %vm414_vm0, %v536_v49, %v541_v19  ;;  %v544_v35 = vsel %vm414_vm0, %v539_v36, %v543_v55  ;;  %v867_v41 = vsel %vm739_vm1, %v861_v57, %v866_v52  ;;  %v869_v60 = vsel %vm739_vm1, %v864_v58, %v868_v56 }
  0xb8   : > { %1610 = vst.msk [vmem:[%s1916_s20 + $0x98] sm:$0xff] %vm1920_vm4, %v1740_v61  ;;  %v1233_v43 = vmul.f32 0.11111111, %v1169_v25  ;;  %v1308_v27 = vadd.f32 %v1807_v8, %v1232_v1  ;;  %v717_v45 = vadd.f32 %v542_v38, %v272_v46  ;;  %v718_v33 = vadd.f32 %v544_v35, %v273_v34  ;;  %v186_v38 = vld [vmem:[%s1802_s16 + $0x150] sm:$0xff]  ;;  %v187_v35 = vld [vmem:[%s1802_s16 + $0x158] sm:$0xff] }
  0xb9   : > { %v1107_v47 = vadd.f32 %v2312_v42, %v2271_v39  ;;  %v276_v22 = vunpack.c.l.bf16 %v183_v31  ;;  %v277_v29 = vunpack.c.h.bf16 %v183_v31  ;;  %v278_v48 = vunpack.c.l.bf16 %v184_v23 }
  0xba   : > { %v1309_v24 = vadd.f32 %v1809_v9, %v1233_v43  ;;  %v1372_v49 = vmax.f32 %v1308_v27, 0.0  ;;  %v2351_v51 = vadd.f32 %v867_v41, %v717_v45  ;;  %v2353_v44 = vadd.f32 %v869_v60, %v718_v33 }
  0xbb   : > { %v279_v21 = vunpack.c.h.bf16 %v184_v23  ;;  %v545_v37 = vrot.slane %v276_v22, 1  ;;  %v546_v28 = vrot.slane %v278_v48, 1  ;;  %v548_v53 = vrot.slane %v277_v29, 1 }
  0xbc   : > { %v1373_v46 = vmax.f32 %v1309_v24, 0.0  ;;  %v1170_v34 = vadd.f32 %v1106_v14, %v2351_v51  ;;  %v1171_v39 = vadd.f32 %v1107_v47, %v2353_v44  ;;  %v870_v36 = vrot.slane %v276_v22, 2 }
  0xbd   : > { %v547_v57 = vsel %vm414_vm0, %v545_v37, %v546_v28  ;;  %v549_v40 = vrot.slane %v279_v21, 1  ;;  %v871_v11 = vrot.slane %v278_v48, 2  ;;  %v873_v59 = vrot.slane %v277_v29, 2 }
  0xbe   : > { %v1741_v62 = vpack.c.bf16 %v1373_v46, %v1372_v49  ;;  %v1234_v32 = vmul.f32 0.11111111, %v1170_v34  ;;  %v1235_v0 = vmul.f32 0.11111111, %v1171_v39  ;;  %v719_v6 = vadd.f32 %v547_v57, %v276_v22 }
  0xbf   : > { %v550_v58 = vsel %vm414_vm0, %v548_v53, %v549_v40  ;;  %v872_v10 = vsel %vm739_vm1, %v870_v36, %v871_v11  ;;  %v874_v12 = vrot.slane %v279_v21, 2  ;;  %v1108_v17 = vadd.f32 %v2327_v54, %v2286_v13 }
  0xc0   : > { %1611 = vst.msk [vmem:[%s1916_s20 + $0xa0] sm:$0xff] %vm1920_vm4, %v1741_v62  ;;  %v1310_v30 = vadd.f32 %v1807_v8, %v1234_v32  ;;  %v1311_v20 = vadd.f32 %v1809_v9, %v1235_v0  ;;  %v720_v2 = vadd.f32 %v550_v58, %v277_v29  ;;  %v2368_v18 = vadd.f32 %v872_v10, %v719_v6  ;;  %v188_v10 = vld [vmem:[%s1802_s16 + $0x160] sm:$0x11] }
  0xc1   : > { %v875_v15 = vsel %vm739_vm1, %v873_v59, %v874_v12  ;;  %v1109_v7 = vadd.f32 %v2332_v4, %v2291_v63  ;;  %v280_v16 = vunpack.c.l.bf16 %v185_v5  ;;  %v281_v50 = vunpack.c.h.bf16 %v185_v5 }
  0xc2   : > { %v1374_v13 = vmax.f32 %v1310_v30, 0.0  ;;  %v1375_v19 = vmax.f32 %v1311_v20, 0.0  ;;  %v2373_v55 = vadd.f32 %v875_v15, %v720_v2  ;;  %v1172_v52 = vadd.f32 %v1108_v17, %v2368_v18 }
  0xc3   : > { %v551_v56 = vrot.slane %v280_v16, 1  ;;  %v553_v61 = vrot.slane %v281_v50, 1  ;;  %v876_v25 = vrot.slane %v280_v16, 2  ;;  %v878_v1 = vrot.slane %v281_v50, 2 }
  0xc4   : > { %v1742_v14 = vpack.c.bf16 %v1375_v19, %v1374_v13  ;;  %v1173_v31 = vadd.f32 %v1109_v7, %v2373_v55  ;;  %v1236_v23 = vmul.f32 0.11111111, %v1172_v52  ;;  %v1110_v63 = vadd.f32 %v2351_v51, %v2310_v26 }
  0xc5   : > { %v552_v41 = vsel %vm414_vm0, %v546_v28, %v551_v56  ;;  %v554_v60 = vsel %vm414_vm0, %v549_v40, %v553_v61  ;;  %v877_v43 = vsel %vm739_vm1, %v871_v11, %v876_v25  ;;  %v879_v27 = vsel %vm739_vm1, %v874_v12, %v878_v1 }
  0xc6   : > { %1612 = vst.msk [vmem:[%s1916_s20 + $0xa8] sm:$0xff] %vm1920_vm4, %v1742_v14  ;;  %v1237_v45 = vmul.f32 0.11111111, %v1173_v31  ;;  %v1312_v33 = vadd.f32 %v1807_v8, %v1236_v23  ;;  %v721_v47 = vadd.f32 %v552_v41, %v278_v48  ;;  %v722_v22 = vadd.f32 %v554_v60, %v279_v21  ;;  %v189_v41 = vld [vmem:[%s1802_s16 + $0x168] sm:$0xff]  ;;  %v190_v60 = vld [vmem:[%s1802_s16 + $0x170] sm:$0xff] }
  0xc7   : > { %v1111_v26 = vadd.f32 %v2353_v44, %v2312_v42  ;;  %v282_v29 = vunpack.c.l.bf16 %v186_v38  ;;  %v283_v24 = vunpack.c.h.bf16 %v186_v38  ;;  %v284_v49 = vunpack.c.l.bf16 %v187_v35 }
  0xc8   : > { %v1313_v37 = vadd.f32 %v1809_v9, %v1237_v45  ;;  %v1376_v28 = vmax.f32 %v1312_v33, 0.0  ;;  %v2392_v53 = vadd.f32 %v877_v43, %v721_v47  ;;  %v2394_v46 = vadd.f32 %v879_v27, %v722_v22 }
  0xc9   : > { %v285_v34 = vunpack.c.h.bf16 %v187_v35  ;;  %v555_v39 = vrot.slane %v282_v29, 1  ;;  %v556_v36 = vrot.slane %v284_v49, 1  ;;  %v558_v57 = vrot.slane %v283_v24, 1 }
  0xca   : > { %v1377_v48 = vmax.f32 %v1313_v37, 0.0  ;;  %v1174_v21 = vadd.f32 %v1110_v63, %v2392_v53  ;;  %v1175_v42 = vadd.f32 %v1111_v26, %v2394_v46  ;;  %v880_v40 = vrot.slane %v282_v29, 2 }
  0xcb   : > { %v557_v11 = vsel %vm414_vm0, %v555_v39, %v556_v36  ;;  %v559_v59 = vrot.slane %v285_v34, 1  ;;  %v881_v62 = vrot.slane %v284_v49, 2  ;;  %v883_v32 = vrot.slane %v283_v24, 2 }
  0xcc   : > { %v1743_v0 = vpack.c.bf16 %v1377_v48, %v1376_v28  ;;  %v1238_v6 = vmul.f32 0.11111111, %v1174_v21  ;;  %v1239_v5 = vmul.f32 0.11111111, %v1175_v42  ;;  %v723_v58 = vadd.f32 %v557_v11, %v282_v29 }
  0xcd   : > { %v560_v12 = vsel %vm414_vm0, %v558_v57, %v559_v59  ;;  %v882_v17 = vsel %vm739_vm1, %v880_v40, %v881_v62  ;;  %v884_v30 = vrot.slane %v285_v34, 2  ;;  %v1112_v20 = vadd.f32 %v2368_v18, %v2327_v54 }
  0xce   : > { %1613 = vst.msk [vmem:[%s1916_s20 + $0xb0] sm:$0xff] %vm1920_vm4, %v1743_v0  ;;  %v1314_v2 = vadd.f32 %v1807_v8, %v1238_v6  ;;  %v1315_v15 = vadd.f32 %v1809_v9, %v1239_v5  ;;  %v724_v7 = vadd.f32 %v560_v12, %v283_v24  ;;  %v2409_v16 = vadd.f32 %v882_v17, %v723_v58  ;;  %v191_v17 = vld [vmem:[%s1802_s16 + $0x178] sm:$0x11] }
  0xcf   : > { %v885_v50 = vsel %vm739_vm1, %v883_v32, %v884_v30  ;;  %v1113_v13 = vadd.f32 %v2373_v55, %v2332_v4  ;;  %v286_v19 = vunpack.c.l.bf16 %v188_v10  ;;  %v287_v52 = vunpack.c.h.bf16 %v188_v10 }
  0xd0   : > { %v1378_v54 = vmax.f32 %v1314_v2, 0.0  ;;  %v1379_v56 = vmax.f32 %v1315_v15, 0.0  ;;  %v2414_v61 = vadd.f32 %v885_v50, %v724_v7  ;;  %v1176_v25 = vadd.f32 %v1112_v20, %v2409_v16 }
  0xd1   : > { %v561_v1 = vrot.slane %v286_v19, 1  ;;  %v563_v14 = vrot.slane %v287_v52, 1  ;;  %v886_v31 = vrot.slane %v286_v19, 2  ;;  %v888_v23 = vrot.slane %v287_v52, 2 }
  0xd2   : > { %v1744_v63 = vpack.c.bf16 %v1379_v56, %v1378_v54  ;;  %v1177_v38 = vadd.f32 %v1113_v13, %v2414_v61  ;;  %v1240_v35 = vmul.f32 0.11111111, %v1176_v25  ;;  %v1114_v4 = vadd.f32 %v2392_v53, %v2351_v51 }
  0xd3   : > { %v562_v43 = vsel %vm414_vm0, %v556_v36, %v561_v1  ;;  %v564_v27 = vsel %vm414_vm0, %v559_v59, %v563_v14  ;;  %v887_v45 = vsel %vm739_vm1, %v881_v62, %v886_v31  ;;  %v889_v33 = vsel %vm739_vm1, %v884_v30, %v888_v23 }
  0xd4   : > { %1614 = vst.msk [vmem:[%s1916_s20 + $0xb8] sm:$0xff] %vm1920_vm4, %v1744_v63  ;;  %v1241_v47 = vmul.f32 0.11111111, %v1177_v38  ;;  %v1316_v22 = vadd.f32 %v1807_v8, %v1240_v35  ;;  %v725_v26 = vadd.f32 %v562_v43, %v284_v49  ;;  %v726_v29 = vadd.f32 %v564_v27, %v285_v34  ;;  %v192_v43 = vld [vmem:[%s1802_s16 + $0x180] sm:$0xff]  ;;  %v193_v27 = vld [vmem:[%s1802_s16 + $0x188] sm:$0xff] }
  0xd5   : > { %v1115_v51 = vadd.f32 %v2394_v46, %v2353_v44  ;;  %v288_v24 = vunpack.c.l.bf16 %v189_v41  ;;  %v289_v37 = vunpack.c.h.bf16 %v189_v41  ;;  %v290_v28 = vunpack.c.l.bf16 %v190_v60 }
  0xd6   : > { %v1317_v39 = vadd.f32 %v1809_v9, %v1241_v47  ;;  %v1380_v36 = vmax.f32 %v1316_v22, 0.0  ;;  %v2433_v57 = vadd.f32 %v887_v45, %v725_v26  ;;  %v2435_v48 = vadd.f32 %v889_v33, %v726_v29 }
  0xd7   : > { %v291_v21 = vunpack.c.h.bf16 %v190_v60  ;;  %v565_v42 = vrot.slane %v288_v24, 1  ;;  %v566_v40 = vrot.slane %v290_v28, 1  ;;  %v568_v11 = vrot.slane %v289_v37, 1 }
  0xd8   : > { %v1381_v49 = vmax.f32 %v1317_v39, 0.0  ;;  %v1178_v34 = vadd.f32 %v1114_v4, %v2433_v57  ;;  %v1179_v44 = vadd.f32 %v1115_v51, %v2435_v48  ;;  %v890_v59 = vrot.slane %v288_v24, 2 }
  0xd9   : > { %v567_v62 = vsel %vm414_vm0, %v565_v42, %v566_v40  ;;  %v569_v32 = vrot.slane %v291_v21, 1  ;;  %v891_v0 = vrot.slane %v290_v28, 2  ;;  %v893_v6 = vrot.slane %v289_v37, 2 }
  0xda   : > { %v1745_v5 = vpack.c.bf16 %v1381_v49, %v1380_v36  ;;  %v1242_v58 = vmul.f32 0.11111111, %v1178_v34  ;;  %v1243_v10 = vmul.f32 0.11111111, %v1179_v44  ;;  %v727_v12 = vadd.f32 %v567_v62, %v288_v24 }
  0xdb   : > { %v570_v30 = vsel %vm414_vm0, %v568_v11, %v569_v32  ;;  %v892_v20 = vsel %vm739_vm1, %v890_v59, %v891_v0  ;;  %v894_v2 = vrot.slane %v291_v21, 2  ;;  %v1116_v15 = vadd.f32 %v2409_v16, %v2368_v18 }
  0xdc   : > { %1615 = vst.msk [vmem:[%s1916_s20 + $0xc0] sm:$0xff] %vm1920_vm4, %v1745_v5  ;;  %v1318_v7 = vadd.f32 %v1807_v8, %v1242_v58  ;;  %v1319_v50 = vadd.f32 %v1809_v9, %v1243_v10  ;;  %v728_v13 = vadd.f32 %v570_v30, %v289_v37  ;;  %v2450_v19 = vadd.f32 %v892_v20, %v727_v12  ;;  %v194_v20 = vld [vmem:[%s1802_s16 + $0x190] sm:$0x11] }
  0xdd   : > { %v895_v52 = vsel %vm739_vm1, %v893_v6, %v894_v2  ;;  %v1117_v54 = vadd.f32 %v2414_v61, %v2373_v55  ;;  %v292_v56 = vunpack.c.l.bf16 %v191_v17  ;;  %v293_v25 = vunpack.c.h.bf16 %v191_v17 }
  0xde   : > { %v1382_v18 = vmax.f32 %v1318_v7, 0.0  ;;  %v1383_v1 = vmax.f32 %v1319_v50, 0.0  ;;  %v2455_v14 = vadd.f32 %v895_v52, %v728_v13  ;;  %v1180_v31 = vadd.f32 %v1116_v15, %v2450_v19 }
  0xdf   : > { %v571_v23 = vrot.slane %v292_v56, 1  ;;  %v573_v63 = vrot.slane %v293_v25, 1  ;;  %v896_v38 = vrot.slane %v292_v56, 2  ;;  %v898_v35 = vrot.slane %v293_v25, 2 }
  0xe0   : > { %v1746_v4 = vpack.c.bf16 %v1383_v1, %v1382_v18  ;;  %v1181_v41 = vadd.f32 %v1117_v54, %v2455_v14  ;;  %v1244_v60 = vmul.f32 0.11111111, %v1180_v31  ;;  %v1118_v55 = vadd.f32 %v2433_v57, %v2392_v53 }
  0xe1   : > { %v572_v45 = vsel %vm414_vm0, %v566_v40, %v571_v23  ;;  %v574_v33 = vsel %vm414_vm0, %v569_v32, %v573_v63  ;;  %v897_v47 = vsel %vm739_vm1, %v891_v0, %v896_v38  ;;  %v899_v22 = vsel %vm739_vm1, %v894_v2, %v898_v35 }
  0xe2   : > { %1616 = vst.msk [vmem:[%s1916_s20 + $0xc8] sm:$0xff] %vm1920_vm4, %v1746_v4  ;;  %v1245_v26 = vmul.f32 0.11111111, %v1181_v41  ;;  %v1320_v29 = vadd.f32 %v1807_v8, %v1244_v60  ;;  %v729_v51 = vadd.f32 %v572_v45, %v290_v28  ;;  %v730_v24 = vadd.f32 %v574_v33, %v291_v21  ;;  %v195_v33 = vld [vmem:[%s1802_s16 + $0x198] sm:$0xff] }
  0xe3   : > { %v1119_v53 = vadd.f32 %v2435_v48, %v2394_v46  ;;  %v294_v37 = vunpack.c.l.bf16 %v192_v43  ;;  %v295_v39 = vunpack.c.h.bf16 %v192_v43  ;;  %v296_v36 = vunpack.c.l.bf16 %v193_v27 }
  0xe4   : > { %v1321_v42 = vadd.f32 %v1809_v9, %v1245_v26  ;;  %v1384_v40 = vmax.f32 %v1320_v29, 0.0  ;;  %v2474_v11 = vadd.f32 %v897_v47, %v729_v51  ;;  %v2476_v49 = vadd.f32 %v899_v22, %v730_v24 }
  0xe5   : > { %v297_v34 = vunpack.c.h.bf16 %v193_v27  ;;  %v575_v44 = vrot.slane %v294_v37, 1  ;;  %v576_v59 = vrot.slane %v296_v36, 1  ;;  %v578_v62 = vrot.slane %v295_v39, 1 }
  0xe6   : > { %v1385_v28 = vmax.f32 %v1321_v42, 0.0  ;;  %v1182_v21 = vadd.f32 %v1118_v55, %v2474_v11  ;;  %v1183_v46 = vadd.f32 %v1119_v53, %v2476_v49  ;;  %v900_v32 = vrot.slane %v294_v37, 2 }
  0xe7   : > { %v577_v0 = vsel %vm414_vm0, %v575_v44, %v576_v59  ;;  %v579_v6 = vrot.slane %v297_v34, 1  ;;  %v901_v5 = vrot.slane %v296_v36, 2  ;;  %v903_v58 = vrot.slane %v295_v39, 2 }
  0xe8   : > { %v1747_v10 = vpack.c.bf16 %v1385_v28, %v1384_v40  ;;  %v1246_v12 = vmul.f32 0.11111111, %v1182_v21  ;;  %v1247_v17 = vmul.f32 0.11111111, %v1183_v46  ;;  %v731_v30 = vadd.f32 %v577_v0, %v294_v37 }
  0xe9   : > { %v580_v2 = vsel %vm414_vm0, %v578_v62, %v579_v6  ;;  %v902_v15 = vsel %vm739_vm1, %v900_v32, %v901_v5  ;;  %v904_v7 = vrot.slane %v297_v34, 2  ;;  %v1120_v50 = vadd.f32 %v2450_v19, %v2409_v16 }
  0xea   : > { %1617 = vst.msk [vmem:[%s1916_s20 + $0xd0] sm:$0xff] %vm1920_vm4, %v1747_v10  ;;  %v1322_v13 = vadd.f32 %v1807_v8, %v1246_v12  ;;  %v1323_v52 = vadd.f32 %v1809_v9, %v1247_v17  ;;  %v732_v54 = vadd.f32 %v580_v2, %v295_v39  ;;  %v1056_v56 = vadd.f32 %v902_v15, %v731_v30  ;;  %v197_v15 = vld [vmem:[%s1802_s16 + $0x1a8] sm:$0x11] }
  0xeb   : > { %v905_v25 = vsel %vm739_vm1, %v903_v58, %v904_v7  ;;  %v1121_v18 = vadd.f32 %v2455_v14, %v2414_v61  ;;  %v298_v1 = vunpack.c.l.bf16 %v194_v20  ;;  %v299_v31 = vunpack.c.h.bf16 %v194_v20  ;;  %v196_v61 = vld [vmem:[%s1802_s16 + $0x1a0] sm:$0xff] }
  0xec   : > { %v1386_v23 = vmax.f32 %v1322_v13, 0.0  ;;  %v1387_v16 = vmax.f32 %v1323_v52, 0.0  ;;  %v1057_v63 = vadd.f32 %v905_v25, %v732_v54  ;;  %v1184_v38 = vadd.f32 %v1120_v50, %v1056_v56 }
  0xed   : > { %v581_v35 = vrot.slane %v298_v1, 1  ;;  %v583_v4 = vrot.slane %v299_v31, 1  ;;  %v906_v41 = vrot.slane %v298_v1, 2  ;;  %v908_v60 = vrot.slane %v299_v31, 2 }
  0xee   : > { %v1748_v55 = vpack.c.bf16 %v1387_v16, %v1386_v23  ;;  %v1185_v43 = vadd.f32 %v1121_v18, %v1057_v63  ;;  %v1248_v27 = vmul.f32 0.11111111, %v1184_v38  ;;  %v1122_v45 = vadd.f32 %v2474_v11, %v2433_v57 }
  0xef   : > { %v582_v47 = vsel %vm414_vm0, %v576_v59, %v581_v35  ;;  %v584_v22 = vsel %vm414_vm0, %v579_v6, %v583_v4  ;;  %v907_v26 = vsel %vm739_vm1, %v901_v5, %v906_v41  ;;  %v909_v29 = vsel %vm739_vm1, %v904_v7, %v908_v60 }
  0xf0   : > { %1618 = vst.msk [vmem:[%s1916_s20 + $0xd8] sm:$0xff] %vm1920_vm4, %v1748_v55  ;;  %v1249_v51 = vmul.f32 0.11111111, %v1185_v43  ;;  %v1324_v24 = vadd.f32 %v1807_v8, %v1248_v27  ;;  %v733_v53 = vadd.f32 %v582_v47, %v296_v36  ;;  %v734_v37 = vadd.f32 %v584_v22, %v297_v34 }
  0xf1   : > { %v1123_v57 = vadd.f32 %v2476_v49, %v2435_v48  ;;  %v300_v39 = vunpack.c.l.bf16 %v195_v33  ;;  %v301_v42 = vunpack.c.h.bf16 %v195_v33  ;;  %v302_v40 = vunpack.c.l.bf16 %v196_v61 }
  0xf2   : > { %v1325_v44 = vadd.f32 %v1809_v9, %v1249_v51  ;;  %v1388_v59 = vmax.f32 %v1324_v24, 0.0  ;;  %v1058_v62 = vadd.f32 %v907_v26, %v733_v53  ;;  %v1059_v28 = vadd.f32 %v909_v29, %v734_v37 }
  0xf3   : > { %v303_v21 = vunpack.c.h.bf16 %v196_v61  ;;  %v585_v46 = vrot.slane %v300_v39, 1  ;;  %v586_v32 = vrot.slane %v302_v40, 1  ;;  %v588_v0 = vrot.slane %v301_v42, 1 }
  0xf4   : > { %v1389_v6 = vmax.f32 %v1325_v44, 0.0  ;;  %v1186_v5 = vadd.f32 %v1122_v45, %v1058_v62  ;;  %v1187_v36 = vadd.f32 %v1123_v57, %v1059_v28  ;;  %v910_v34 = vrot.slane %v300_v39, 2 }
  0xf5   : > { %v587_v48 = vsel %vm414_vm0, %v585_v46, %v586_v32  ;;  %v589_v58 = vrot.slane %v303_v21, 1  ;;  %v911_v10 = vrot.slane %v302_v40, 2  ;;  %v913_v12 = vrot.slane %v301_v42, 2 }
  0xf6   : > { %v1749_v17 = vpack.c.bf16 %v1389_v6, %v1388_v59  ;;  %v1250_v30 = vmul.f32 0.11111111, %v1186_v5  ;;  %v1251_v20 = vmul.f32 0.11111111, %v1187_v36  ;;  %v735_v2 = vadd.f32 %v587_v48, %v300_v39 }
  0xf7   : > { %v590_v7 = vsel %vm414_vm0, %v588_v0, %v589_v58  ;;  %v912_v50 = vsel %vm739_vm1, %v910_v34, %v911_v10  ;;  %v914_v13 = vrot.slane %v303_v21, 2  ;;  %v1124_v52 = vadd.f32 %v1056_v56, %v2450_v19 }
  0xf8   : > { %1619 = vst.msk [vmem:[%s1916_s20 + $0xe0] sm:$0xff] %vm1920_vm4, %v1749_v17  ;;  %v1326_v54 = vadd.f32 %v1807_v8, %v1250_v30  ;;  %v1327_v25 = vadd.f32 %v1809_v9, %v1251_v20  ;;  %v736_v18 = vadd.f32 %v590_v7, %v301_v42  ;;  %v1060_v1 = vadd.f32 %v912_v50, %v735_v2 }
  0xf9   : > { %v915_v31 = vsel %vm739_vm1, %v913_v12, %v914_v13  ;;  %v1125_v23 = vadd.f32 %v1057_v63, %v2455_v14  ;;  %v304_v16 = vunpack.c.l.bf16 %v197_v15  ;;  %v305_v38 = vunpack.c.h.bf16 %v197_v15 }
  0xfa   : > { %v1390_v35 = vmax.f32 %v1326_v54, 0.0  ;;  %v1391_v4 = vmax.f32 %v1327_v25, 0.0  ;;  %v1061_v41 = vadd.f32 %v915_v31, %v736_v18  ;;  %v1188_v19 = vadd.f32 %v1124_v52, %v1060_v1 }
  0xfb   : > { %v591_v56 = vrot.slane %v304_v16, 1  ;;  %v593_v60 = vrot.slane %v305_v38, 1  ;;  %v916_v55 = vrot.slane %v304_v16, 2  ;;  %v918_v43 = vrot.slane %v305_v38, 2 }
  0xfc   : > { %v1750_v27 = vpack.c.bf16 %v1391_v4, %v1390_v35  ;;  %v1189_v45 = vadd.f32 %v1125_v23, %v1061_v41  ;;  %v1252_v33 = vmul.f32 0.11111111, %v1188_v19  ;;  %v1126_v61 = vadd.f32 %v1058_v62, %v2474_v11 }
  0xfd   : > { %v592_v47 = vsel %vm414_vm0, %v586_v32, %v591_v56  ;;  %v594_v14 = vsel %vm414_vm0, %v589_v58, %v593_v60  ;;  %v917_v63 = vsel %vm739_vm1, %v911_v10, %v916_v55  ;;  %v919_v22 = vsel %vm739_vm1, %v914_v13, %v918_v43 }
  0xfe   : > { %1620 = vst.msk [vmem:[%s1916_s20 + $0xe8] sm:$0xff] %vm1920_vm4, %v1750_v27  ;;  %v1253_v26 = vmul.f32 0.11111111, %v1189_v45  ;;  %v1328_v29 = vadd.f32 %v1807_v8, %v1252_v33  ;;  %v737_v51 = vadd.f32 %v592_v47, %v302_v40  ;;  %v738_v24 = vadd.f32 %v594_v14, %v303_v21 }
  0xff   : > { %v1127_v53 = vadd.f32 %v1059_v28, %v2476_v49 }
 0x100   : > { %v1329_v11 = vadd.f32 %v1809_v9, %v1253_v26  ;;  %v1392_v37 = vmax.f32 %v1328_v29, 0.0  ;;  %v1062_v57 = vadd.f32 %v917_v63, %v737_v51  ;;  %v1063_v39 = vadd.f32 %v919_v22, %v738_v24 }
 0x102   : > { %v1393_v42 = vmax.f32 %v1329_v11, 0.0  ;;  %v1190_v44 = vadd.f32 %v1126_v61, %v1062_v57  ;;  %v1191_v59 = vadd.f32 %v1127_v53, %v1063_v39 }
 0x104   : > { %v1751_v62 = vpack.c.bf16 %v1393_v42, %v1392_v37  ;;  %v1254_v46 = vmul.f32 0.11111111, %v1190_v44  ;;  %v1255_v32 = vmul.f32 0.11111111, %v1191_v59 }
 0x106   : > { %1621 = vst.msk [vmem:[%s1916_s20 + $0xf0] sm:$0xff] %vm1920_vm4, %v1751_v62  ;;  %v1330_v40 = vadd.f32 %v1807_v8, %v1254_v46  ;;  %v1331_v21 = vadd.f32 %v1809_v9, %v1255_v32 }
 0x108   : > { %v1394_v49 = vmax.f32 %v1330_v40, 0.0  ;;  %v1395_v28 = vmax.f32 %v1331_v21, 0.0 }
 0x10a   : > { %v1752_v0 = vpack.c.bf16 %v1395_v28, %v1394_v49 }
 0x10c   : > { %1622 = vst.msk [vmem:[%s1916_s20 + $0xf8] sm:$0xff] %vm1920_vm4, %v1752_v0 }
 0x10d PF: > { %s12_s9 = sadd.s32 1, %s1768_s9  }
 0x10e   : > { %p9_p4 = scmp.ge.s32.totalorder %s12_s9, 4  }
 0x110   :  { %11 = sbr.rel (!%p9_p4) target bundleno = 1 (0x1), region = 58 }

// kernel: _lambda_.13
= control target key start
LH: loop header
LB: loop body
LE: loop exit
PB: predicated region body
PF: predicated region fallthrough
CT: control target
= control target key end

     0   :  { %s2875_s12 = smov 0   ;;  %s3322_s0 = inlined_call_operand.vmem [shape: bf16[2,22,16,16], index: 0, kind: input, shape index: {}]   ;;  %s3323_s1 = inlined_call_operand.vmem [shape: bf16[7,16,16], index: 1, kind: input, shape index: {}]   ;;  %s3324_s2 = inlined_call_operand.vmem [shape: f32[1,16], index: 2, kind: input, shape index: {}]   ;;  %s3325_s3 = inlined_call_operand.vmem [shape: bf16[2,256,16], index: 3, kind: output, shape index: {}]  }
   0x1 LB: > { %s2029_s13 = sadd.s32 4294967295, %s2853_s12   ;;  %p2033_p0 = scmp.ge.s32.totalorder %s2853_s12, 1  ;;  %s2853_s12 = sphi %s2875_s12, %s13_s12  }
   0x2   : > { %p137_p1 = scmp.lt.s32.totalorder %s2853_s12, 3 }
   0x4   : > { %p138_p2 = pnand %p2033_p0, %p137_p1 }
   0x5   : > { %v2818_v0 = vld [vmem:[%s3323_s1 + $0x8] sm:$0xff] (!%p138_p2)   ;;  %p161_p3 = scmp.lt.s32.totalorder (!%p138_p2), %s2029_s13, 1  ;;  %v2889_v1 = vld [vmem:[%s3323_s1 + $0x18] sm:$0xff] (!%p138_p2)   ;;  %v2821_v2 = vld [vmem:[%s3323_s1] sm:$0xff] (!%p138_p2)   ;;  %vm307_vm0 = vcmask (!%p138_p2), 130048   ;;  %vm1941_vm1 = vcmask (!%p138_p2), 125952  }
   0x6   : > { %141 = sbr.rel (%p138_p2) target bundleno = 459 (0x1cb), region = 32  ;;  %2377 = vmatprep.subr.bf16.mxu1 (!%p138_p2), %v2818_v0  ;;  %2479 = vmatprep.subr.bf16.mxu0 (!%p138_p2), %v2889_v1  ;;  %v2823_v3 = vld [vmem:[%s3323_s1 + $0x20] sm:$0xff] (!%p138_p2)   ;;  %v2832_v6 = vld [vmem:[%s3323_s1 + $0x28] sm:$0xff] (!%p138_p2)   ;;  %v2840_v8 = vld [vmem:[%s3323_s1 + $0x10] sm:$0xff] (!%p138_p2)  }
   0x7   : > { %2378 = vmatpush3.bf16.msra.mxu1 (!%p138_p2), %v2818_v0  ;;  %2480 = vmatpush3.bf16.msra.mxu0 (!%p138_p2), %v2889_v1  ;;  %v2844_v17 = vld [vmem:[%s3323_s1 + $0x30] sm:$0xff] (!%p138_p2)   ;;  %v3209_v46 = vld [vmem:[%s3324_s2] ss:$0 sm:$0xff] (!%p138_p2) }
   0x8   : > { %2411 = vmatprep.subr.bf16.mxu1 (!%p138_p2), %v2821_v2  ;;  %2513 = vmatprep.subr.bf16.mxu0 (!%p138_p2), %v2823_v3 }
   0xd   : > { %s3327_s13 = smov (!%p161_p3, %s2029_s13), 1 }
   0xe   : > { %s2809_s22 = smul.u32 176, %s3327_s13  ;;  %s2225_s7 = sshll.u32 %s3327_s13, 7 }
   0xf   : > { %s3218_s10 = scalar_lea.vmem %s3325_s3, %s2225_s7 }
  0x10   : > { %s2905_s25 = scalar_lea.vmem %s3322_s0, %s2809_s22 }
  0x11   : > { %v2820_v4 = vld [vmem:[%s2905_s25 + $0x8] sm:$0xff]   ;;  %v2909_v5 = vld [vmem:[%s2905_s25 + $0x18] sm:$0xff]   ;;  %v2916_v7 = vld [vmem:[%s2905_s25 + $0x10] sm:$0xff]  }
  0x12   : > { %2379 = vmatprep.mubr.msk.bf16.mxu1 %vm307_vm0, %v2820_v4  ;;  %2481 = vmatprep.mubr.msk.bf16.mxu0 %vm307_vm0, %v2909_v5  ;;  %v2924_v9 = vld [vmem:[%s2905_s25 + $0x20] sm:$0xff]   ;;  %v2929_v10 = vld [vmem:[%s2905_s25 + $0x28] sm:$0xff]   ;;  %v2938_v11 = vld [vmem:[%s2905_s25 + $0x30] sm:$0xff]  }
  0x13   : > { %2380 = vmatmul.mubr.msk.bf16.vlgmr.msra.gmra.mrb[0].mxu1 %vm307_vm0, %v2916_v7  ;;  %2482 = vmatmul.mubr.msk.bf16.vlgmr.msra.gmra.mrb[0].mxu0 %vm307_vm0, %v2924_v9  ;;  %v2941_v12 = vld [vmem:[%s2905_s25 + $0x38] sm:$0xff]   ;;  %v2952_v13 = vld [vmem:[%s2905_s25 + $0x40] sm:$0xff]   ;;  %v2955_v14 = vld [vmem:[%s2905_s25 + $0x48] sm:$0xff]  }
  0x14   : > { %2412 = vmatpush3.bf16.msra.mxu1 %v2821_v2  ;;  %2514 = vmatpush3.bf16.msra.mxu0 %v2823_v3  ;;  %v2966_v15 = vld [vmem:[%s2905_s25 + $0x50] sm:$0xff]   ;;  %v2977_v16 = vld [vmem:[%s2905_s25 + $0x58] sm:$0xff]   ;;  %v2991_v18 = vld [vmem:[%s2905_s25 + $0x60] sm:$0xff]  }
  0x15   : > { %2383 = vmatprep.mubr.msk.bf16.mxu1 %vm307_vm0, %v2909_v5  ;;  %2485 = vmatprep.mubr.msk.bf16.mxu0 %vm307_vm0, %v2929_v10  ;;  %v2994_v19 = vld [vmem:[%s2905_s25 + $0x68] sm:$0xff]   ;;  %v3005_v20 = vld [vmem:[%s2905_s25 + $0x70] sm:$0xff]   ;;  %v3008_v21 = vld [vmem:[%s2905_s25 + $0x78] sm:$0xff]  }
  0x16   : > { %2547 = vmatprep.subr.bf16.mxu0 %v2832_v6  ;;  %2445 = vmatprep.subr.bf16.mxu1 %v2840_v8  ;;  %v3019_v22 = vld [vmem:[%s2905_s25 + $0x80] sm:$0xff]   ;;  %v3046_v24 = vld [vmem:[%s2905_s25 + $0x88] sm:$0xff]   ;;  %v3049_v25 = vld [vmem:[%s2905_s25 + $0x90] sm:$0xff]  }
  0x17   : > { %v2839_v23 = vld [vmem:[%s2905_s25] sm:$0xff]   ;;  %v3060_v26 = vld [vmem:[%s2905_s25 + $0x98] sm:$0xff]   ;;  %v2846_v28 = vld [vmem:[%s2905_s25 + $0xa8] sm:$0xff]  }
  0x18   : > { %v2845_v27 = vld [vmem:[%s2905_s25 + $0xa0] sm:$0xff]  }
  0x1b   : > { %2384 = vmatmul.mubr.msk.bf16.gmra.mrb[4].mxu1 %vm307_vm0, %v2924_v9  ;;  %2486 = vmatmul.mubr.msk.bf16.gmra.mrb[4].mxu0 %vm307_vm0, %v2938_v11 }
  0x1c   : > { %2387 = vmatprep.mubr.msk.bf16.mxu1 %vm307_vm0, %v2929_v10  ;;  %2489 = vmatprep.mubr.msk.bf16.mxu0 %vm307_vm0, %v2941_v12 }
  0x23   : > { %2388 = vmatmul.mubr.msk.bf16.gmra.mrb[8].mxu1 %vm307_vm0, %v2938_v11  ;;  %2490 = vmatmul.mubr.msk.bf16.gmra.mrb[8].mxu0 %vm307_vm0, %v2952_v13 }
  0x24   : > { %2391 = vmatprep.mubr.msk.bf16.mxu1 %vm307_vm0, %v2941_v12  ;;  %2493 = vmatprep.mubr.msk.bf16.mxu0 %vm307_vm0, %v2955_v14 }
  0x2b   : > { %2392 = vmatmul.mubr.msk.bf16.gmra.mrb[12].mxu1 %vm307_vm0, %v2952_v13  ;;  %2494 = vmatmul.mubr.msk.bf16.gmra.mrb[12].mxu0 %vm307_vm0, %v2966_v15 }
  0x2c   : > { %2395 = vmatprep.mubr.msk.bf16.mxu1 %vm307_vm0, %v2955_v14  ;;  %2515 = vmatprep.mubr.msk.bf16.mxu0 %vm307_vm0, %v2924_v9 }
  0x33   : > { %2396 = vmatmul.mubr.msk.bf16.gmra.mrb[16].mxu1 %vm307_vm0, %v2966_v15  ;;  %2516 = vmatmul.mubr.msk.bf16.vlgmr.msra.gmra.mrb[0].mxu0 %vm307_vm0, %v2929_v10 }
  0x34   : > { %2399 = vmatprep.mubr.msk.bf16.mxu1 %vm307_vm0, %v2977_v16  ;;  %2548 = vmatpush3.bf16.msra.mxu0 %v2832_v6 }
  0x35   : > { %2519 = vmatprep.mubr.msk.bf16.mxu0 %vm307_vm0, %v2938_v11  ;;  %2581 = vmatprep.subr.bf16.mxu0 %v2844_v17 }
  0x3b   : > { %2400 = vmatmul.mubr.msk.bf16.gmra.mrb[20].mxu1 %vm307_vm0, %v2991_v18  ;;  %2520 = vmatmul.mubr.msk.bf16.gmra.mrb[4].mxu0 %vm307_vm0, %v2941_v12 }
  0x3c   : > { %2403 = vmatprep.mubr.msk.bf16.mxu1 %vm307_vm0, %v2994_v19  ;;  %2523 = vmatprep.mubr.msk.bf16.mxu0 %vm307_vm0, %v2952_v13 }
  0x43   : > { %2404 = vmatmul.mubr.msk.bf16.gmra.mrb[24].mxu1 %vm307_vm0, %v3005_v20  ;;  %2524 = vmatmul.mubr.msk.bf16.gmra.mrb[8].mxu0 %vm307_vm0, %v2955_v14 }
  0x44   : > { %2407 = vmatprep.mubr.msk.bf16.mxu1 %vm307_vm0, %v3008_v21  ;;  %2527 = vmatprep.mubr.msk.bf16.mxu0 %vm307_vm0, %v2966_v15 }
  0x4b   : > { %2408 = vmatmul.mubr.msk.bf16.gmra.mrb[28].mxu1 %vm307_vm0, %v3019_v22  ;;  %2528 = vmatmul.mubr.msk.bf16.gmra.mrb[12].mxu0 %vm307_vm0, %v2977_v16 }
  0x4c   : > { %2413 = vmatprep.mubr.msk.bf16.mxu1 %vm307_vm0, %v2839_v23  ;;  %2531 = vmatprep.mubr.msk.bf16.mxu0 %vm307_vm0, %v2991_v18 }
  0x53   : > { %2414 = vmatmul.mubr.msk.bf16.vlgmr.msra.gmra.mrb[0].mxu1 %vm307_vm0, %v2820_v4  ;;  %2532 = vmatmul.mubr.msk.bf16.gmra.mrb[16].mxu0 %vm307_vm0, %v2994_v19 }
  0x54   : > { %2446 = vmatpush3.bf16.msra.mxu1 %v2840_v8  ;;  %2417 = vmatprep.mubr.msk.bf16.mxu1 %vm307_vm0, %v2916_v7 }
  0x55   : > { %2535 = vmatprep.mubr.msk.bf16.mxu0 %vm307_vm0, %v3005_v20  ;;  %2615 = vmatprep.subr.bf16.mxu1 %v2889_v1 }
  0x5b   : > { %2418 = vmatmul.mubr.msk.bf16.gmra.mrb[4].mxu1 %vm307_vm0, %v2909_v5  ;;  %2536 = vmatmul.mubr.msk.bf16.gmra.mrb[20].mxu0 %vm307_vm0, %v3008_v21 }
  0x5c   : > { %2421 = vmatprep.mubr.msk.bf16.mxu1 %vm307_vm0, %v2924_v9  ;;  %2539 = vmatprep.mubr.msk.bf16.mxu0 %vm307_vm0, %v3019_v22 }
  0x63   : > { %2422 = vmatmul.mubr.msk.bf16.gmra.mrb[8].mxu1 %vm307_vm0, %v2929_v10  ;;  %2540 = vmatmul.mubr.msk.bf16.gmra.mrb[24].mxu0 %vm307_vm0, %v3046_v24 }
  0x64   : > { %2425 = vmatprep.mubr.msk.bf16.mxu1 %vm307_vm0, %v2938_v11  ;;  %2543 = vmatprep.mubr.msk.bf16.mxu0 %vm307_vm0, %v3049_v25 }
  0x6b   : > { %2426 = vmatmul.mubr.msk.bf16.gmra.mrb[12].mxu1 %vm307_vm0, %v2941_v12  ;;  %2544 = vmatmul.mubr.msk.bf16.gmra.mrb[28].mxu0 %vm307_vm0, %v3060_v26 }
  0x6c   : > { %2429 = vmatprep.mubr.msk.bf16.mxu1 %vm307_vm0, %v2952_v13  ;;  %2549 = vmatprep.mubr.msk.bf16.mxu0 %vm307_vm0, %v2929_v10 }
  0x73   : > { %2430 = vmatmul.mubr.msk.bf16.gmra.mrb[16].mxu1 %vm307_vm0, %v2955_v14  ;;  %2550 = vmatmul.mubr.msk.bf16.vlgmr.msra.gmra.mrb[0].mxu0 %vm307_vm0, %v2938_v11 }
  0x74   : > { %2433 = vmatprep.mubr.msk.bf16.mxu1 %vm307_vm0, %v2966_v15  ;;  %2582 = vmatpush3.bf16.msra.mxu0 %v2844_v17 }
  0x75   : > { %2553 = vmatprep.mubr.msk.bf16.mxu0 %vm307_vm0, %v2941_v12 }
  0x7b   : > { %2434 = vmatmul.mubr.msk.bf16.gmra.mrb[20].mxu1 %vm307_vm0, %v2977_v16  ;;  %2554 = vmatmul.mubr.msk.bf16.gmra.mrb[4].mxu0 %vm307_vm0, %v2952_v13 }
  0x7c   : > { %2437 = vmatprep.mubr.msk.bf16.mxu1 %vm307_vm0, %v2991_v18  ;;  %2557 = vmatprep.mubr.msk.bf16.mxu0 %vm307_vm0, %v2955_v14 }
  0x83   : > { %2438 = vmatmul.mubr.msk.bf16.gmra.mrb[24].mxu1 %vm307_vm0, %v2994_v19  ;;  %2558 = vmatmul.mubr.msk.bf16.gmra.mrb[8].mxu0 %vm307_vm0, %v2966_v15 }
  0x84   : > { %2441 = vmatprep.mubr.msk.bf16.mxu1 %vm307_vm0, %v3005_v20  ;;  %2561 = vmatprep.mubr.msk.bf16.mxu0 %vm307_vm0, %v2977_v16 }
  0x8b   : > { %2442 = vmatmul.mubr.msk.bf16.gmra.mrb[28].mxu1 %vm307_vm0, %v3008_v21  ;;  %2562 = vmatmul.mubr.msk.bf16.gmra.mrb[12].mxu0 %vm307_vm0, %v2991_v18 }
  0x8c   : > { %2447 = vmatprep.mubr.msk.bf16.mxu1 %vm307_vm0, %v2916_v7  ;;  %2565 = vmatprep.mubr.msk.bf16.mxu0 %vm307_vm0, %v2994_v19 }
  0x93   : > { %2448 = vmatmul.mubr.msk.bf16.vlgmr.msra.gmra.mrb[0].mxu1 %vm307_vm0, %v2909_v5  ;;  %2566 = vmatmul.mubr.msk.bf16.gmra.mrb[16].mxu0 %vm307_vm0, %v3005_v20 }
  0x94   : > { %2616 = vmatpush3.bf16.msra.mxu1 %v2889_v1  ;;  %2451 = vmatprep.mubr.msk.bf16.mxu1 %vm307_vm0, %v2924_v9 }
  0x95   : > { %2569 = vmatprep.mubr.msk.bf16.mxu0 %vm307_vm0, %v3008_v21 }
  0x9b   : > { %2452 = vmatmul.mubr.msk.bf16.gmra.mrb[4].mxu1 %vm307_vm0, %v2929_v10  ;;  %2570 = vmatmul.mubr.msk.bf16.gmra.mrb[20].mxu0 %vm307_vm0, %v3019_v22 }
  0x9c   : > { %2455 = vmatprep.mubr.msk.bf16.mxu1 %vm307_vm0, %v2938_v11  ;;  %2573 = vmatprep.mubr.msk.bf16.mxu0 %vm307_vm0, %v3046_v24 }
  0xa3   : > { %2456 = vmatmul.mubr.msk.bf16.gmra.mrb[8].mxu1 %vm307_vm0, %v2941_v12  ;;  %2574 = vmatmul.mubr.msk.bf16.gmra.mrb[24].mxu0 %vm307_vm0, %v3049_v25 }
  0xa4   : > { %2459 = vmatprep.mubr.msk.bf16.mxu1 %vm307_vm0, %v2952_v13  ;;  %2577 = vmatprep.mubr.msk.bf16.mxu0 %vm307_vm0, %v3060_v26 }
  0xab   : > { %2460 = vmatmul.mubr.msk.bf16.gmra.mrb[12].mxu1 %vm307_vm0, %v2955_v14  ;;  %2578 = vmatmul.mubr.msk.bf16.gmra.mrb[28].mxu0 %vm307_vm0, %v2845_v27 }
  0xac   : > { %2463 = vmatprep.mubr.msk.bf16.mxu1 %vm307_vm0, %v2966_v15  ;;  %2583 = vmatprep.mubr.msk.bf16.mxu0 %vm307_vm0, %v2938_v11 }
  0xb3   : > { %2464 = vmatmul.mubr.msk.bf16.gmra.mrb[16].mxu1 %vm307_vm0, %v2977_v16  ;;  %2584 = vmatmul.mubr.msk.bf16.vlgmr.msra.gmra.mrb[0].mxu0 %vm307_vm0, %v2941_v12 }
  0xb4   : > { %2467 = vmatprep.mubr.msk.bf16.mxu1 %vm307_vm0, %v2991_v18  ;;  %2587 = vmatprep.mubr.msk.bf16.mxu0 %vm307_vm0, %v2952_v13 }
  0xbb   : > { %2468 = vmatmul.mubr.msk.bf16.gmra.mrb[20].mxu1 %vm307_vm0, %v2994_v19  ;;  %2588 = vmatmul.mubr.msk.bf16.gmra.mrb[4].mxu0 %vm307_vm0, %v2955_v14 }
  0xbc   : > { %2471 = vmatprep.mubr.msk.bf16.mxu1 %vm307_vm0, %v3005_v20  ;;  %2591 = vmatprep.mubr.msk.bf16.mxu0 %vm307_vm0, %v2966_v15 }
  0xc3   : > { %2472 = vmatmul.mubr.msk.bf16.gmra.mrb[24].mxu1 %vm307_vm0, %v3008_v21  ;;  %2592 = vmatmul.mubr.msk.bf16.gmra.mrb[8].mxu0 %vm307_vm0, %v2977_v16 }
  0xc4   : > { %2475 = vmatprep.mubr.msk.bf16.mxu1 %vm307_vm0, %v3019_v22  ;;  %2595 = vmatprep.mubr.msk.bf16.mxu0 %vm307_vm0, %v2991_v18 }
  0xcb   : > { %2476 = vmatmul.mubr.msk.bf16.gmra.mrb[28].mxu1 %vm307_vm0, %v3046_v24  ;;  %2596 = vmatmul.mubr.msk.bf16.gmra.mrb[12].mxu0 %vm307_vm0, %v2994_v19 }
  0xcc   : > { %2497 = vmatprep.mubr.msk.bf16.mxu1 %vm307_vm0, %v2977_v16  ;;  %2599 = vmatprep.mubr.msk.bf16.mxu0 %vm307_vm0, %v3005_v20 }
  0xd3   : > { %2498 = vmatmul.mubr.msk.bf16.vlgmr.msra.gmra.mrb[16].mxu1 %vm307_vm0, %v2991_v18  ;;  %2600 = vmatmul.mubr.msk.bf16.gmra.mrb[16].mxu0 %vm307_vm0, %v3008_v21 }
  0xd4   : > { %2501 = vmatprep.mubr.msk.bf16.mxu1 %vm307_vm0, %v2994_v19  ;;  %2603 = vmatprep.mubr.msk.bf16.mxu0 %vm307_vm0, %v3019_v22 }
  0xdb   : > { %2502 = vmatmul.mubr.msk.bf16.gmra.mrb[20].mxu1 %vm307_vm0, %v3005_v20  ;;  %2604 = vmatmul.mubr.msk.bf16.gmra.mrb[20].mxu0 %vm307_vm0, %v3046_v24 }
  0xdc   : > { %2505 = vmatprep.mubr.msk.bf16.mxu1 %vm307_vm0, %v3008_v21  ;;  %2607 = vmatprep.mubr.msk.bf16.mxu0 %vm307_vm0, %v3049_v25 }
  0xe3   : > { %2506 = vmatmul.mubr.msk.bf16.gmra.mrb[24].mxu1 %vm307_vm0, %v3019_v22  ;;  %2608 = vmatmul.mubr.msk.bf16.gmra.mrb[24].mxu0 %vm307_vm0, %v3060_v26 }
  0xe4   : > { %2509 = vmatprep.mubr.msk.bf16.mxu1 %vm307_vm0, %v3046_v24  ;;  %2611 = vmatprep.mubr.msk.bf16.mxu0 %vm307_vm0, %v2845_v27 }
  0xeb   : > { %2510 = vmatmul.mubr.msk.bf16.gmra.mrb[28].mxu1 %vm307_vm0, %v3049_v25  ;;  %2612 = vmatmul.mubr.msk.bf16.gmra.mrb[28].mxu0 %vm307_vm0, %v2846_v28 }
 0x166   : > { %v2449_v29 = vpop.f32.mrb[0].mxu1 }
 0x167   : > { %v743_v30 = vpop.f32.mrb[1].mxu1 }
 0x168   : > { %v2450_v31 = vpop.f32.mrb[2].mxu1 }
 0x169   : > { %v746_v32 = vpop.f32.mrb[3].mxu1 }
 0x16e   : > { %v2453_v33 = vpop.f32.mrb[4].mxu1 }
 0x16f   : > { %v759_v34 = vpop.f32.mrb[5].mxu1 }
 0x170   : > { %v2454_v35 = vpop.f32.mrb[6].mxu1 }
 0x171   : > { %v762_v36 = vpop.f32.mrb[7].mxu1 }
 0x176   : > { %v2457_v37 = vpop.f32.mrb[8].mxu1 }
 0x177   : > { %v775_v38 = vpop.f32.mrb[9].mxu1 }
 0x178   : > { %v3194_v39 = vpop.f32.mrb[10].mxu1 }
 0x179   : > { %v3196_v40 = vpop.f32.mrb[11].mxu1 }
 0x17e   : > { %v3198_v41 = vpop.f32.mrb[12].mxu1 }
 0x17f   : > { %v3200_v42 = vpop.f32.mrb[13].mxu1 }
 0x180   : > { %v3202_v43 = vpop.f32.mrb[14].mxu1 }
 0x181   : > { %v3204_v44 = vpop.f32.mrb[15].mxu1 }
 0x186   : > { %v2585_v45 = vpop.f32.mrb[0].mxu0 }
 0x187   : > { %v2617_v47 = vadd.f32 %v2585_v45, %v2449_v29  ;;  %v1583_v48 = vpop.f32.mrb[1].mxu0 }
 0x188   : > { %v2618_v49 = vadd.f32 %v1583_v48, %v743_v30  ;;  %v2586_v50 = vpop.f32.mrb[2].mxu0 }
 0x189   : > { %v1751_v51 = vadd.f32 %v2617_v47, %v3209_v46  ;;  %v2619_v52 = vadd.f32 %v2586_v50, %v2450_v31  ;;  %v1586_v53 = vpop.f32.mrb[3].mxu0 }
 0x18a   : > { %v1749_v54 = vadd.f32 %v2618_v49, %v3209_v46  ;;  %v2620_v55 = vadd.f32 %v1586_v53, %v746_v32 }
 0x18b   : > { %v1783_v56 = vmax.f32 %v1751_v51, 0.0  ;;  %v1752_v57 = vadd.f32 %v2619_v52, %v3209_v46 }
 0x18c   : > { %v1781_v58 = vmax.f32 %v1749_v54, 0.0  ;;  %v1750_v59 = vadd.f32 %v2620_v55, %v3209_v46 }
 0x18d   : > { %v2228_v60 = vpack.c.bf16 %v1783_v56, %v1783_v56  ;;  %v1784_v61 = vmax.f32 %v1752_v57, 0.0 }
 0x18e   : > { %v2226_v62 = vpack.c.bf16 %v1781_v58, %v1781_v58  ;;  %v1782_v63 = vmax.f32 %v1750_v59, 0.0  ;;  %v2589_v0 = vpop.f32.mrb[4].mxu0 }
 0x18f   : > { %1944 = vst.msk [vmem:[%s3218_s10 + $0x8] sm:$0xf] %vm1941_vm1, %v2228_v60  ;;  %v2229_v1 = vpack.c.bf16 %v1784_v61, %v1784_v61  ;;  %v2621_v2 = vadd.f32 %v2589_v0, %v2453_v33  ;;  %v1599_v3 = vpop.f32.mrb[5].mxu0 }
 0x190   : > { %1942 = vst.msk [vmem:[%s3218_s10] sm:$0xf] %vm1941_vm1, %v2226_v62  ;;  %v2227_v4 = vpack.c.bf16 %v1782_v63, %v1782_v63  ;;  %v2622_v5 = vadd.f32 %v1599_v3, %v759_v34  ;;  %v2590_v6 = vpop.f32.mrb[6].mxu0 }
 0x191   : > { %1945 = vst.msk [vmem:[%s3218_s10 + $0xc] sm:$0xf] %vm1941_vm1, %v2229_v1  ;;  %v1755_v7 = vadd.f32 %v2621_v2, %v3209_v46  ;;  %v2623_v8 = vadd.f32 %v2590_v6, %v2454_v35  ;;  %v1602_v9 = vpop.f32.mrb[7].mxu0 }
 0x192   : > { %1943 = vst.msk [vmem:[%s3218_s10 + $0x4] sm:$0xf] %vm1941_vm1, %v2227_v4  ;;  %v1753_v10 = vadd.f32 %v2622_v5, %v3209_v46  ;;  %v2624_v11 = vadd.f32 %v1602_v9, %v762_v36 }
 0x193   : > { %v1787_v12 = vmax.f32 %v1755_v7, 0.0  ;;  %v1756_v13 = vadd.f32 %v2623_v8, %v3209_v46 }
 0x194   : > { %v1785_v14 = vmax.f32 %v1753_v10, 0.0  ;;  %v1754_v15 = vadd.f32 %v2624_v11, %v3209_v46 }
 0x195   : > { %v2232_v16 = vpack.c.bf16 %v1787_v12, %v1787_v12  ;;  %v1788_v17 = vmax.f32 %v1756_v13, 0.0 }
 0x196   : > { %v2230_v18 = vpack.c.bf16 %v1785_v14, %v1785_v14  ;;  %v1786_v19 = vmax.f32 %v1754_v15, 0.0  ;;  %v2593_v20 = vpop.f32.mrb[8].mxu0 }
 0x197   : > { %1948 = vst.msk [vmem:[%s3218_s10 + $0x18] sm:$0xf] %vm1941_vm1, %v2232_v16  ;;  %v2233_v21 = vpack.c.bf16 %v1788_v17, %v1788_v17  ;;  %v2625_v22 = vadd.f32 %v2593_v20, %v2457_v37  ;;  %v1615_v23 = vpop.f32.mrb[9].mxu0 }
 0x198   : > { %1946 = vst.msk [vmem:[%s3218_s10 + $0x10] sm:$0xf] %vm1941_vm1, %v2230_v18  ;;  %v2231_v24 = vpack.c.bf16 %v1786_v19, %v1786_v19  ;;  %v2626_v25 = vadd.f32 %v1615_v23, %v775_v38  ;;  %v2594_v26 = vpop.f32.mrb[10].mxu0 }
 0x199   : > { %1949 = vst.msk [vmem:[%s3218_s10 + $0x1c] sm:$0xf] %vm1941_vm1, %v2233_v21  ;;  %v1759_v27 = vadd.f32 %v2625_v22, %v3209_v46  ;;  %v2627_v28 = vadd.f32 %v2594_v26, %v3194_v39  ;;  %v1618_v29 = vpop.f32.mrb[11].mxu0 }
 0x19a   : > { %1947 = vst.msk [vmem:[%s3218_s10 + $0x14] sm:$0xf] %vm1941_vm1, %v2231_v24  ;;  %v1757_v30 = vadd.f32 %v2626_v25, %v3209_v46  ;;  %v2628_v31 = vadd.f32 %v1618_v29, %v3196_v40 }
 0x19b   : > { %v1791_v32 = vmax.f32 %v1759_v27, 0.0  ;;  %v1760_v33 = vadd.f32 %v2627_v28, %v3209_v46 }
 0x19c   : > { %v1789_v34 = vmax.f32 %v1757_v30, 0.0  ;;  %v1758_v35 = vadd.f32 %v2628_v31, %v3209_v46 }
 0x19d   : > { %v2236_v36 = vpack.c.bf16 %v1791_v32, %v1791_v32  ;;  %v1792_v37 = vmax.f32 %v1760_v33, 0.0 }
 0x19e   : > { %v2234_v38 = vpack.c.bf16 %v1789_v34, %v1789_v34  ;;  %v1790_v39 = vmax.f32 %v1758_v35, 0.0  ;;  %v2597_v45 = vpop.f32.mrb[12].mxu0 }
 0x19f   : > { %1952 = vst.msk [vmem:[%s3218_s10 + $0x28] sm:$0xf] %vm1941_vm1, %v2236_v36  ;;  %v2237_v47 = vpack.c.bf16 %v1792_v37, %v1792_v37  ;;  %v2629_v48 = vadd.f32 %v2597_v45, %v3198_v41  ;;  %v1631_v49 = vpop.f32.mrb[13].mxu0 }
 0x1a0   : > { %1950 = vst.msk [vmem:[%s3218_s10 + $0x20] sm:$0xf] %vm1941_vm1, %v2234_v38  ;;  %v2235_v40 = vpack.c.bf16 %v1790_v39, %v1790_v39  ;;  %v2630_v50 = vadd.f32 %v1631_v49, %v3200_v42  ;;  %v2598_v51 = vpop.f32.mrb[14].mxu0 }
 0x1a1   : > { %1953 = vst.msk [vmem:[%s3218_s10 + $0x2c] sm:$0xf] %vm1941_vm1, %v2237_v47  ;;  %v1763_v52 = vadd.f32 %v2629_v48, %v3209_v46  ;;  %v2631_v53 = vadd.f32 %v2598_v51, %v3202_v43  ;;  %v1634_v54 = vpop.f32.mrb[15].mxu0 }
 0x1a2   : > { %1951 = vst.msk [vmem:[%s3218_s10 + $0x24] sm:$0xf] %vm1941_vm1, %v2235_v40  ;;  %v1761_v55 = vadd.f32 %v2630_v50, %v3209_v46  ;;  %v2632_v41 = vadd.f32 %v1634_v54, %v3204_v44 }
 0x1a3   : > { %v1795_v56 = vmax.f32 %v1763_v52, 0.0  ;;  %v1764_v57 = vadd.f32 %v2631_v53, %v3209_v46 }
 0x1a4   : > { %v1793_v42 = vmax.f32 %v1761_v55, 0.0  ;;  %v1762_v58 = vadd.f32 %v2632_v41, %v3209_v46 }
 0x1a5   : > { %v2240_v59 = vpack.c.bf16 %v1795_v56, %v1795_v56  ;;  %v1796_v60 = vmax.f32 %v1764_v57, 0.0 }
 0x1a6   : > { %v2499_v61 = vpop.f32.mrb[16].mxu1  ;;  %v2238_v43 = vpack.c.bf16 %v1793_v42, %v1793_v42  ;;  %v1794_v62 = vmax.f32 %v1762_v58, 0.0  ;;  %v2601_v63 = vpop.f32.mrb[16].mxu0 }
 0x1a7   : > { %v1017_v0 = vpop.f32.mrb[17].mxu1  ;;  %1956 = vst.msk [vmem:[%s3218_s10 + $0x38] sm:$0xf] %vm1941_vm1, %v2240_v59  ;;  %v2241_v1 = vpack.c.bf16 %v1796_v60, %v1796_v60  ;;  %v2633_v44 = vadd.f32 %v2601_v63, %v2499_v61  ;;  %v1647_v2 = vpop.f32.mrb[17].mxu0 }
 0x1a8   : > { %v2500_v3 = vpop.f32.mrb[18].mxu1  ;;  %1954 = vst.msk [vmem:[%s3218_s10 + $0x30] sm:$0xf] %vm1941_vm1, %v2238_v43  ;;  %v2239_v4 = vpack.c.bf16 %v1794_v62, %v1794_v62  ;;  %v2634_v5 = vadd.f32 %v1647_v2, %v1017_v0  ;;  %v2602_v6 = vpop.f32.mrb[18].mxu0 }
 0x1a9   : > { %v1020_v7 = vpop.f32.mrb[19].mxu1  ;;  %1957 = vst.msk [vmem:[%s3218_s10 + $0x3c] sm:$0xf] %vm1941_vm1, %v2241_v1  ;;  %v1767_v8 = vadd.f32 %v2633_v44, %v3209_v46  ;;  %v2635_v9 = vadd.f32 %v2602_v6, %v2500_v3  ;;  %v1650_v10 = vpop.f32.mrb[19].mxu0 }
 0x1aa   : > { %1955 = vst.msk [vmem:[%s3218_s10 + $0x34] sm:$0xf] %vm1941_vm1, %v2239_v4  ;;  %v1765_v11 = vadd.f32 %v2634_v5, %v3209_v46  ;;  %v2636_v12 = vadd.f32 %v1650_v10, %v1020_v7 }
 0x1ab   : > { %v1799_v13 = vmax.f32 %v1767_v8, 0.0  ;;  %v1768_v14 = vadd.f32 %v2635_v9, %v3209_v46 }
 0x1ac   : > { %v1797_v15 = vmax.f32 %v1765_v11, 0.0  ;;  %v1766_v16 = vadd.f32 %v2636_v12, %v3209_v46 }
 0x1ad   : > { %v2244_v17 = vpack.c.bf16 %v1799_v13, %v1799_v13  ;;  %v1800_v18 = vmax.f32 %v1768_v14, 0.0 }
 0x1ae   : > { %v2503_v19 = vpop.f32.mrb[20].mxu1  ;;  %v2242_v20 = vpack.c.bf16 %v1797_v15, %v1797_v15  ;;  %v1798_v21 = vmax.f32 %v1766_v16, 0.0  ;;  %v2605_v22 = vpop.f32.mrb[20].mxu0 }
 0x1af   : > { %v1033_v23 = vpop.f32.mrb[21].mxu1  ;;  %1960 = vst.msk [vmem:[%s3218_s10 + $0x48] sm:$0xf] %vm1941_vm1, %v2244_v17  ;;  %v2245_v24 = vpack.c.bf16 %v1800_v18, %v1800_v18  ;;  %v2637_v25 = vadd.f32 %v2605_v22, %v2503_v19  ;;  %v1663_v26 = vpop.f32.mrb[21].mxu0 }
 0x1b0   : > { %v2504_v27 = vpop.f32.mrb[22].mxu1  ;;  %1958 = vst.msk [vmem:[%s3218_s10 + $0x40] sm:$0xf] %vm1941_vm1, %v2242_v20  ;;  %v2243_v28 = vpack.c.bf16 %v1798_v21, %v1798_v21  ;;  %v2638_v29 = vadd.f32 %v1663_v26, %v1033_v23  ;;  %v2606_v30 = vpop.f32.mrb[22].mxu0 }
 0x1b1   : > { %v1036_v31 = vpop.f32.mrb[23].mxu1  ;;  %1961 = vst.msk [vmem:[%s3218_s10 + $0x4c] sm:$0xf] %vm1941_vm1, %v2245_v24  ;;  %v1771_v32 = vadd.f32 %v2637_v25, %v3209_v46  ;;  %v2639_v33 = vadd.f32 %v2606_v30, %v2504_v27  ;;  %v1666_v34 = vpop.f32.mrb[23].mxu0 }
 0x1b2   : > { %1959 = vst.msk [vmem:[%s3218_s10 + $0x44] sm:$0xf] %vm1941_vm1, %v2243_v28  ;;  %v1769_v35 = vadd.f32 %v2638_v29, %v3209_v46  ;;  %v2640_v36 = vadd.f32 %v1666_v34, %v1036_v31 }
 0x1b3   : > { %v1803_v37 = vmax.f32 %v1771_v32, 0.0  ;;  %v1772_v38 = vadd.f32 %v2639_v33, %v3209_v46 }
 0x1b4   : > { %v1801_v39 = vmax.f32 %v1769_v35, 0.0  ;;  %v1770_v45 = vadd.f32 %v2640_v36, %v3209_v46 }
 0x1b5   : > { %v2248_v47 = vpack.c.bf16 %v1803_v37, %v1803_v37  ;;  %v1804_v48 = vmax.f32 %v1772_v38, 0.0 }
 0x1b6   : > { %v2507_v49 = vpop.f32.mrb[24].mxu1  ;;  %v2246_v40 = vpack.c.bf16 %v1801_v39, %v1801_v39  ;;  %v1802_v50 = vmax.f32 %v1770_v45, 0.0  ;;  %v2609_v51 = vpop.f32.mrb[24].mxu0 }
 0x1b7   : > { %v1049_v52 = vpop.f32.mrb[25].mxu1  ;;  %1964 = vst.msk [vmem:[%s3218_s10 + $0x58] sm:$0xf] %vm1941_vm1, %v2248_v47  ;;  %v2249_v53 = vpack.c.bf16 %v1804_v48, %v1804_v48  ;;  %v2641_v54 = vadd.f32 %v2609_v51, %v2507_v49  ;;  %v1679_v55 = vpop.f32.mrb[25].mxu0 }
 0x1b8   : > { %v2508_v41 = vpop.f32.mrb[26].mxu1  ;;  %1962 = vst.msk [vmem:[%s3218_s10 + $0x50] sm:$0xf] %vm1941_vm1, %v2246_v40  ;;  %v2247_v56 = vpack.c.bf16 %v1802_v50, %v1802_v50  ;;  %v2642_v57 = vadd.f32 %v1679_v55, %v1049_v52  ;;  %v2610_v42 = vpop.f32.mrb[26].mxu0 }
 0x1b9   : > { %v1052_v58 = vpop.f32.mrb[27].mxu1  ;;  %1965 = vst.msk [vmem:[%s3218_s10 + $0x5c] sm:$0xf] %vm1941_vm1, %v2249_v53  ;;  %v1775_v59 = vadd.f32 %v2641_v54, %v3209_v46  ;;  %v2643_v60 = vadd.f32 %v2610_v42, %v2508_v41  ;;  %v1682_v61 = vpop.f32.mrb[27].mxu0 }
 0x1ba   : > { %1963 = vst.msk [vmem:[%s3218_s10 + $0x54] sm:$0xf] %vm1941_vm1, %v2247_v56  ;;  %v1773_v43 = vadd.f32 %v2642_v57, %v3209_v46  ;;  %v2644_v62 = vadd.f32 %v1682_v61, %v1052_v58 }
 0x1bb   : > { %v1807_v63 = vmax.f32 %v1775_v59, 0.0  ;;  %v1776_v0 = vadd.f32 %v2643_v60, %v3209_v46 }
 0x1bc   : > { %v1805_v1 = vmax.f32 %v1773_v43, 0.0  ;;  %v1774_v44 = vadd.f32 %v2644_v62, %v3209_v46 }
 0x1bd   : > { %v2252_v2 = vpack.c.bf16 %v1807_v63, %v1807_v63  ;;  %v1808_v3 = vmax.f32 %v1776_v0, 0.0 }
 0x1be   : > { %v2511_v4 = vpop.f32.mrb[28].mxu1  ;;  %v2250_v5 = vpack.c.bf16 %v1805_v1, %v1805_v1  ;;  %v1806_v6 = vmax.f32 %v1774_v44, 0.0  ;;  %v2613_v7 = vpop.f32.mrb[28].mxu0 }
 0x1bf   : > { %v1065_v8 = vpop.f32.mrb[29].mxu1  ;;  %1968 = vst.msk [vmem:[%s3218_s10 + $0x68] sm:$0xf] %vm1941_vm1, %v2252_v2  ;;  %v2253_v9 = vpack.c.bf16 %v1808_v3, %v1808_v3  ;;  %v2645_v10 = vadd.f32 %v2613_v7, %v2511_v4  ;;  %v1695_v11 = vpop.f32.mrb[29].mxu0 }
 0x1c0   : > { %v2512_v12 = vpop.f32.mrb[30].mxu1  ;;  %1966 = vst.msk [vmem:[%s3218_s10 + $0x60] sm:$0xf] %vm1941_vm1, %v2250_v5  ;;  %v2251_v13 = vpack.c.bf16 %v1806_v6, %v1806_v6  ;;  %v2646_v14 = vadd.f32 %v1695_v11, %v1065_v8  ;;  %v2614_v15 = vpop.f32.mrb[30].mxu0 }
 0x1c1   : > { %v1068_v16 = vpop.f32.mrb[31].mxu1  ;;  %1969 = vst.msk [vmem:[%s3218_s10 + $0x6c] sm:$0xf] %vm1941_vm1, %v2253_v9  ;;  %v1779_v17 = vadd.f32 %v2645_v10, %v3209_v46  ;;  %v2647_v18 = vadd.f32 %v2614_v15, %v2512_v12  ;;  %v1698_v19 = vpop.f32.mrb[31].mxu0 }
 0x1c2   : > { %1967 = vst.msk [vmem:[%s3218_s10 + $0x64] sm:$0xf] %vm1941_vm1, %v2251_v13  ;;  %v1777_v20 = vadd.f32 %v2646_v14, %v3209_v46  ;;  %v2648_v21 = vadd.f32 %v1698_v19, %v1068_v16 }
 0x1c3   : > { %v1811_v22 = vmax.f32 %v1779_v17, 0.0  ;;  %v1780_v23 = vadd.f32 %v2647_v18, %v3209_v46 }
 0x1c4   : > { %v1809_v24 = vmax.f32 %v1777_v20, 0.0  ;;  %v1778_v25 = vadd.f32 %v2648_v21, %v3209_v46 }
 0x1c5   : > { %v2256_v26 = vpack.c.bf16 %v1811_v22, %v1811_v22  ;;  %v1812_v27 = vmax.f32 %v1780_v23, 0.0 }
 0x1c6   : > { %v2254_v28 = vpack.c.bf16 %v1809_v24, %v1809_v24  ;;  %v1810_v29 = vmax.f32 %v1778_v25, 0.0 }
 0x1c7   : > { %1972 = vst.msk [vmem:[%s3218_s10 + $0x78] sm:$0xf] %vm1941_vm1, %v2256_v26  ;;  %v2257_v30 = vpack.c.bf16 %v1812_v27, %v1812_v27 }
 0x1c8   : > { %1970 = vst.msk [vmem:[%s3218_s10 + $0x70] sm:$0xf] %vm1941_vm1, %v2254_v28  ;;  %v2255_v31 = vpack.c.bf16 %v1810_v29, %v1810_v29 }
 0x1c9   : > { %1973 = vst.msk [vmem:[%s3218_s10 + $0x7c] sm:$0xf] %vm1941_vm1, %v2257_v30 }
 0x1ca   : > { %1971 = vst.msk [vmem:[%s3218_s10 + $0x74] sm:$0xf] %vm1941_vm1, %v2255_v31 }
 0x1cb PF: > { %s13_s12 = sadd.s32 1, %s2853_s12  }
 0x1cc   : > { %p10_p4 = scmp.ge.s32.totalorder %s13_s12, 4  }
 0x1ce   :  { %12 = sbr.rel (!%p10_p4) target bundleno = 1 (0x1), region = 68 }

// kernel: _lambda_.12
= control target key start
LH: loop header
LB: loop body
LE: loop exit
PB: predicated region body
PF: predicated region fallthrough
CT: control target
= control target key end

     0   :  { %s4791_s12 = smov 0   ;;  %s6831_s0 = inlined_call_operand.vmem [shape: bf16[2,16,22,16], index: 0, kind: input, shape index: {}]   ;;  %s6832_s1 = inlined_call_operand.vmem [shape: bf16[7,16,16], index: 1, kind: input, shape index: {}]   ;;  %s6833_s2 = inlined_call_operand.vmem [shape: f32[1,16], index: 2, kind: input, shape index: {}]   ;;  %s6834_s3 = inlined_call_operand.vmem [shape: bf16[2,256,16], index: 3, kind: output, shape index: {}]  }
   0x1 LB: > { %s3763_s13 = sadd.s32 4294967295, %s4769_s12   ;;  %p3767_p0 = scmp.ge.s32.totalorder %s4769_s12, 1  ;;  %s4769_s12 = sphi %s4791_s12, %s13_s12  }
   0x2   : > { %p137_p1 = scmp.lt.s32.totalorder %s4769_s12, 3 }
   0x4   : > { %p138_p2 = pnand %p3767_p0, %p137_p1 }
   0x6   : > { %141 = sbr.rel (%p138_p2) target bundleno = 527 (0x20f), region = 32 }
   0xd   : > { %v4690_v0 = vld [vmem:[%s6832_s1 + $0x8] sm:$0xff]   ;;  %p161_p3 = scmp.lt.s32.totalorder %s3763_s13, 1  ;;  %v4691_v1 = vld [vmem:[%s6832_s1 + $0x18] sm:$0xff]   ;;  %v4810_v2 = vld [vmem:[%s6832_s1] sm:$0xff]   ;;  %vm222_vm0 = vsmask.f32 3328 }
   0xe   : > { %4249 = vmatprep.subr.bf16.mxu1 %v4690_v0  ;;  %4351 = vmatprep.subr.bf16.mxu0 %v4691_v1  ;;  %v4817_v3 = vld [vmem:[%s6832_s1 + $0x20] sm:$0xff]   ;;  %vm223_vm1 = vsmask.f32 7440  ;;  %vm1600_vm2 = vsmask.f32 2304  ;;  %vm666_vm3 = vcmask 130048  }
   0xf   : > { %s7271_s13 = smov (!%p161_p3, %s3763_s13), 1  ;;  %4250 = vmatpush3.bf16.msra.mxu1 %v4690_v0  ;;  %4352 = vmatpush3.bf16.msra.mxu0 %v4691_v1  ;;  %vm1601_vm4 = vsmask.f32 6416  ;;  %vm4869_vm5 = vmor %vm222_vm0, %vm223_vm1  ;;  %v6987_v35 = vmov 0  ;;  %vm2141_vm7 = vcmask 1041408   ;;  %vm2142_vm8 = vcmask 1045508  }
  0x10   : > { %s4681_s20 = smul.u32 192, %s7271_s13  ;;  %4283 = vmatprep.subr.bf16.mxu1 %v4810_v2  ;;  %4385 = vmatprep.subr.bf16.mxu0 %v4817_v3  ;;  %vm4881_vm6 = vmor %vm1600_vm2, %vm1601_vm4  ;;  %vm2554_vm10 = vsmask.f32 1280  ;;  %vm2555_vm11 = vsmask.f32 5392  ;;  %vm1187_vm13 = vcmask 1042432  }
  0x11   : > { %v6988_v35 = vsel %vm4881_vm6, 4294967295, %v6987_v35  ;;  %vm5257_vm9 = vmor %vm2141_vm7, %vm2142_vm8  ;;  %vm1188_vm14 = vcmask 1046532   ;;  %vm3063_vm0 = vcmask 1040384   ;;  %vm3064_vm1 = vcmask 1044484   ;;  %s4097_s11 = sshll.u32 %s7271_s13, 7 }
  0x12   : > { %s4822_s25 = scalar_lea.vmem %s6831_s0, %s4681_s20  ;;  %6989 = vst [vmem:[#allocation7_spill] sm:$0xff] %v6988_v35  ;;  %vm5699_vm12 = vmor %vm2554_vm10, %vm2555_vm11  ;;  %s6727_s16 = scalar_lea.vmem %s6834_s3, %s4097_s11 }
  0x13   : > { %v4826_v4 = vld [vmem:[%s4822_s25] sm:$0xf]  ;;  %v4829_v5 = vld [vmem:[%s4822_s25 + $0x4] sm:$0xf]  ;;  %v4832_v6 = vld [vmem:[%s4822_s25 + $0x8] sm:$0x7] }
  0x14   : > { %v4835_v7 = vshrl.u32 %v4826_v4, 16  ;;  %v4838_v8 = vshll.u32 %v4826_v4, 16  ;;  %v4841_v9 = vshll.u32 %v4829_v5, 16  ;;  %v4844_v10 = vshrl.u32 %v4829_v5, 16  ;;  %v4857_v18 = vld [vmem:[%s4822_s25 + $0xc] sm:$0xf]  ;;  %vm5881_vm15 = vmor %vm1187_vm13, %vm1188_vm14 }
  0x15   : > { %v4847_v11 = vshll.u32 %v4832_v6, 16  ;;  %v1612_v12 = vshrl.u32 %v4832_v6, 16  ;;  %v4865_v27 = vld [vmem:[%s4822_s25 + $0x10] sm:$0xf]  ;;  %v4877_v32 = vshrl.u32 %v4857_v18, 16  ;;  %v4886_v37 = vshll.u32 %v4857_v18, 16  ;;  %vm6285_vm2 = vmor %vm3063_vm0, %vm3064_vm1 }
  0x16   : > { %6980 = vst [vmem:[#allocation2_spill] sm:$0xff] %v4841_v9  ;;  %6981 = vst [vmem:[#allocation3_spill] sm:$0xff] %v4844_v10  ;;  %v228_v14 = vrot.slane %v4835_v7, 4  ;;  %v231_v15 = vrot.slane %v4838_v8, 5  ;;  %v237_v16 = vrot.slane %v4841_v9, 5  ;;  %v241_v17 = vrot.slane %v4844_v10, 4 }
  0x17   : > { %6982 = vst [vmem:[#allocation4_spill] sm:$0xff] %v4847_v11  ;;  %v247_v19 = vrot.slane %v4847_v11, 5  ;;  %v1603_v20 = vrot.slane %v4835_v7, 5  ;;  %v1604_v21 = vrot.slane %v4838_v8, 6  ;;  %v1607_v22 = vrot.slane %v4844_v10, 5  ;;  %6986 = vst [vmem:[#allocation6_spill] sm:$0xff] %v4877_v32 }
  0x18   : > { %v232_v23 = vor.u32 %v231_v15, %v228_v14  ;;  %v242_v24 = vor.u32 %v241_v17, %v237_v16  ;;  %v1608_v25 = vrot.slane %v4841_v9, 6  ;;  %v1614_v26 = vrot.slane %v1612_v12, 5  ;;  %6990 = vst [vmem:[#allocation8_spill] sm:$0xff] %v4886_v37  ;;  %v4889_v40 = vld [vmem:[%s4822_s25 + $0x14] sm:$0x7] }
  0x19   : > { %v1605_v29 = vor.u32 %v1604_v21, %v1603_v20  ;;  %v1615_v30 = vrot.slane %v4847_v11, 6  ;;  %v4874_v31 = vrot.slane %v1612_v12, 6  ;;  %v252_v41 = vrot.slane %v4877_v32, 4  ;;  %v4916_v63 = vld [vmem:[%s4822_s25 + $0x18] sm:$0xf] }
  0x1a   : > { %v233_v33 = vrot.slane %v232_v23, 4  ;;  %v243_v34 = vrot.slane %v242_v24, 4  ;;  %v1609_v36 = vor.u32 %v1608_v25, %v1607_v22  ;;  %v4893_v42 = vshll.u32 %v4865_v27, 16  ;;  %v4923_v15 = vld [vmem:[%s4822_s25 + $0x1c] sm:$0xf] }
  0x1b   : > { %6985 = vst [vmem:[#allocation5_spill] sm:$0xff] %v4874_v31  ;;  %v1606_v38 = vrot.slane %v1605_v29, 4  ;;  %v1616_v39 = vor.u32 %v1615_v30, %v1614_v26  ;;  %v255_v46 = vrot.slane %v4886_v37, 5  ;;  %v4904_v50 = vshrl.u32 %v4865_v27, 16  ;;  %v5090_v13 = vld [vmem:[%s4822_s25 + $0x44] sm:$0x7] }
  0x1c   : > { %6991 = vst [vmem:[#allocation9_spill] sm:$0xff] %v4893_v42  ;;  %v238_v43 = vsel %vm4869_vm5, %v233_v33, %v237_v16  ;;  %v248_v44 = vsel %vm4869_vm5, %v243_v34, %v247_v19  ;;  %v1611_v45 = vrot.slane %v1609_v36, 4  ;;  %v261_v49 = vrot.slane %v4893_v42, 5  ;;  %7014 = vst [vmem:[#allocation32_spill] sm:$0xff] %v5090_v13  ;;  %v5534_v10 = vld [vmem:[%s4822_s25 + $0xbc] sm:$0x7] }
  0x1d   : > { %v3773_v47 = vcombine.low %v238_v43, %v248_v44  ;;  %v1610_v48 = vsel %vm4881_vm6, %v1606_v38, %v1609_v36  ;;  %6992 = vst [vmem:[#allocation10_spill] sm:$0xff] %v4904_v50  ;;  %v256_v52 = vor.u32 %v255_v46, %v252_v41  ;;  %v269_v53 = vshll.u32 %v4889_v40, 16  ;;  %v4941_v36 = vld [vmem:[%s4822_s25 + $0x20] sm:$0x7]  ;;  %v4696_v46 = vld [vmem:[%s6832_s1 + $0x10] sm:$0xff]   ;;  %7071 = vst [vmem:[#allocation87_spill] sm:$0xff] %v5534_v10 }
  0x1e   : > { %v1617_v51 = vsel %vm4881_vm6, %v1611_v45, %v1616_v39  ;;  %v265_v56 = vrot.slane %v4904_v50, 4  ;;  %v1618_v1 = vrot.slane %v4877_v32, 5  ;;  %v1619_v12 = vrot.slane %v4886_v37, 6  ;;  %6996 = vst [vmem:[#allocation14_spill] sm:$0xff] %v4941_v36  ;;  %v5450_v37 = vld [vmem:[%s4822_s25 + $0xa4] sm:$0x7] }
  0x1f   : > { %4251 = vmatprep.mubr.msk.bf16.mxu1 %vm666_vm3, %v3773_v47  ;;  %v3892_v55 = vcombine.low %v1610_v48, %v1617_v51  ;;  %v257_v59 = vrot.slane %v256_v52, 4  ;;  %v271_v60 = vrot.slane %v269_v53, 5  ;;  %v2580_v62 = vrot.slane %v269_v53, 7  ;;  %7060 = vst [vmem:[#allocation76_spill] sm:$0xff] %v5450_v37 }
  0x20   : > { %v266_v0 = vor.u32 %v265_v56, %v261_v49  ;;  %v1622_v14 = vrot.slane %v4904_v50, 5  ;;  %v1623_v17 = vrot.slane %v4893_v42, 6  ;;  %v1627_v19 = vshrl.u32 %v4889_v40, 16  ;;  %v5308_v42 = vld [vmem:[%s4822_s25 + $0x7c] sm:$0xf] }
  0x21   : > { %4353 = vmatprep.mubr.msk.bf16.mxu0 %vm666_vm3, %v3892_v55  ;;  %v262_v16 = vsel %vm4869_vm5, %v257_v59, %v261_v49  ;;  %v1630_v20 = vrot.slane %v269_v53, 6  ;;  %v1620_v22 = vor.u32 %v1619_v12, %v1618_v1  ;;  %v4930_v23 = vshrl.u32 %v4916_v63, 16  ;;  %v4965_v59 = vld [vmem:[%s4822_s25 + $0x24] sm:$0xf]  ;;  %v4973_v12 = vld [vmem:[%s6832_s1 + $0x28] sm:$0xff]  }
  0x22   : > { %v267_v21 = vrot.slane %v266_v0, 4  ;;  %v4933_v24 = vshll.u32 %v4916_v63, 16  ;;  %v1624_v25 = vor.u32 %v1623_v17, %v1622_v14  ;;  %v1629_v26 = vrot.slane %v1627_v19, 5 }
  0x23   : > { %6993 = vst [vmem:[#allocation11_spill] sm:$0xff] %v4930_v23  ;;  %v2579_v29 = vrot.slane %v1627_v19, 6  ;;  %v4936_v30 = vshll.u32 %v4923_v15, 16  ;;  %v1621_v34 = vrot.slane %v1620_v22, 4  ;;  %v276_v38 = vrot.slane %v4930_v23, 4 }
  0x24   : > { %6994 = vst [vmem:[#allocation12_spill] sm:$0xff] %v4933_v24  ;;  %v272_v33 = vsel %vm4869_vm5, %v267_v21, %v271_v60  ;;  %v279_v39 = vrot.slane %v4933_v24, 5  ;;  %v1626_v43 = vrot.slane %v1624_v25, 4  ;;  %v1631_v44 = vor.u32 %v1630_v20, %v1629_v26 }
  0x25   : > { %6995 = vst [vmem:[#allocation13_spill] sm:$0xff] %v4936_v30  ;;  %v3774_v41 = vcombine.low %v262_v16, %v272_v33  ;;  %v4945_v45 = vor.u32 %v2580_v62, %v2579_v29  ;;  %v1625_v47 = vsel %vm4881_vm6, %v1621_v34, %v1624_v25  ;;  %v285_v49 = vrot.slane %v4936_v30, 5  ;;  %v4992_v34 = vld [vmem:[%s4822_s25 + $0x2c] sm:$0x7] }
  0x26   : > { %v280_v48 = vor.u32 %v279_v39, %v276_v38  ;;  %v4954_v51 = vshrl.u32 %v4923_v15, 16  ;;  %v1632_v52 = vsel %vm4881_vm6, %v1626_v43, %v1631_v44  ;;  %v4960_v53 = vshll.u32 %v4941_v36, 16  ;;  %7001 = vst [vmem:[#allocation19_spill] sm:$0xff] %v4992_v34 }
  0x27   : > { %6997 = vst [vmem:[#allocation15_spill] sm:$0xff] %v4945_v45  ;;  %4252 = vmatmul.mubr.msk.bf16.vlgmr.msra.gmra.mrb[0].mxu1 %vm666_vm3, %v3774_v41  ;;  %v1633_v55 = vrot.slane %v4930_v23, 5  ;;  %v1634_v56 = vrot.slane %v4933_v24, 6  ;;  %v3893_v60 = vcombine.low %v1625_v47, %v1632_v52  ;;  %v1638_v17 = vrot.slane %v4936_v30, 6  ;;  %v5302_v24 = vld [vmem:[%s4822_s25 + $0x78] sm:$0xf] }
  0x28   : > { %6998 = vst [vmem:[#allocation16_spill] sm:$0xff] %v4954_v51  ;;  %6999 = vst [vmem:[#allocation17_spill] sm:$0xff] %v4960_v53  ;;  %4284 = vmatpush3.bf16.msra.mxu1 %v4810_v2  ;;  %v281_v62 = vrot.slane %v280_v48, 4  ;;  %v289_v0 = vrot.slane %v4954_v51, 4  ;;  %v1637_v1 = vrot.slane %v4954_v51, 5  ;;  %v295_v14 = vrot.slane %v4960_v53, 5 }
  0x29   : > { %v1635_v16 = vor.u32 %v1634_v56, %v1633_v55  ;;  %v6836_v19 = vshrl.u32 %v4941_v36, 16  ;;  %v4979_v2 = vld [vmem:[%s4822_s25 + $0x28] sm:$0xf]  ;;  %4317 = vmatprep.subr.bf16.mxu1 %v4696_v46  ;;  %4354 = vmatmul.mubr.msk.bf16.vlgmr.msra.gmra.mrb[0].mxu0 %vm666_vm3, %v3893_v60  ;;  %v1645_v22 = vrot.slane %v4960_v53, 6  ;;  %v4986_v25 = vshrl.u32 %v4965_v59, 16 }
  0x2a   : > { %v286_v20 = vsel %vm4869_vm5, %v281_v62, %v285_v49  ;;  %v290_v21 = vor.u32 %v289_v0, %v285_v49  ;;  %4386 = vmatpush3.bf16.msra.mxu0 %v4817_v3  ;;  %v1639_v29 = vor.u32 %v1638_v17, %v1637_v1  ;;  %v4995_v38 = vshll.u32 %v4965_v59, 16 }
  0x2b   : > { %7000 = vst [vmem:[#allocation18_spill] sm:$0xff] %v4986_v25  ;;  %v1636_v26 = vrot.slane %v1635_v16, 4  ;;  %v1644_v33 = vrot.slane %v6836_v19, 5  ;;  %v300_v41 = vrot.slane %v4986_v25, 4  ;;  %v4999_v43 = vshll.u32 %v4979_v2, 16  ;;  %4419 = vmatprep.subr.bf16.mxu0 %v4973_v12 }
  0x2c   : > { %7002 = vst [vmem:[#allocation20_spill] sm:$0xff] %v4995_v38  ;;  %v291_v39 = vrot.slane %v290_v21, 4  ;;  %v5002_v44 = vshrl.u32 %v4979_v2, 16  ;;  %v1641_v46 = vrot.slane %v1639_v29, 4  ;;  %v303_v48 = vrot.slane %v4995_v38, 5 }
  0x2d   : > { %7003 = vst [vmem:[#allocation21_spill] sm:$0xff] %v4999_v43  ;;  %v1640_v3 = vsel %vm4881_vm6, %v1636_v26, %v1639_v29  ;;  %v1646_v47 = vor.u32 %v1645_v22, %v1644_v33  ;;  %v309_v52 = vrot.slane %v4999_v43, 5  ;;  %v5013_v56 = vshll.u32 %v4992_v34, 16  ;;  %v5019_v16 = vld [vmem:[%s4822_s25 + $0x30] sm:$0xf] }
  0x2e   : > { %7004 = vst [vmem:[#allocation22_spill] sm:$0xff] %v5002_v44  ;;  %v296_v49 = vsel %vm4869_vm5, %v291_v39, %v295_v14  ;;  %v313_v55 = vrot.slane %v5002_v44, 4  ;;  %v304_v0 = vor.u32 %v303_v48, %v300_v41  ;;  %v1648_v1 = vrot.slane %v4986_v25, 5  ;;  %v5028_v39 = vld [vmem:[%s4822_s25 + $0x34] sm:$0xf] }
  0x2f   : > { %7005 = vst [vmem:[#allocation23_spill] sm:$0xff] %v5013_v56  ;;  %v3775_v60 = vcombine.low %v286_v20, %v296_v49  ;;  %v1647_v62 = vsel %vm4881_vm6, %v1641_v46, %v1646_v47  ;;  %v319_v14 = vrot.slane %v5013_v56, 5  ;;  %v1649_v22 = vrot.slane %v4995_v38, 6 }
  0x30   : > { %v3894_v17 = vcombine.low %v1640_v3, %v1647_v62  ;;  %v314_v21 = vor.u32 %v313_v55, %v309_v52  ;;  %v305_v26 = vrot.slane %v304_v0, 4  ;;  %v1652_v20 = vrot.slane %v5002_v44, 5 }
  0x31   : > { %4255 = vmatprep.mubr.msk.bf16.mxu1 %vm666_vm3, %v3775_v60  ;;  %v1653_v29 = vrot.slane %v4999_v43, 6  ;;  %v6835_v33 = vshrl.u32 %v4992_v34, 16  ;;  %v1650_v3 = vor.u32 %v1649_v22, %v1648_v1  ;;  %v1660_v46 = vrot.slane %v5013_v56, 6  ;;  %v5040_v60 = vld [vmem:[%s4822_s25 + $0x38] sm:$0x7] }
  0x32   : > { %4357 = vmatprep.mubr.msk.bf16.mxu0 %vm666_vm3, %v3894_v17  ;;  %v315_v41 = vrot.slane %v314_v21, 4  ;;  %v5033_v47 = vshrl.u32 %v5019_v16, 16  ;;  %v310_v48 = vsel %vm4869_vm5, %v305_v26, %v309_v52  ;;  %7007 = vst [vmem:[#allocation25_spill] sm:$0xff] %v5040_v60  ;;  %v5043_v62 = vshll.u32 %v5019_v16, 16 }
  0x33   : > { %v1654_v49 = vor.u32 %v1653_v29, %v1652_v20  ;;  %v1659_v55 = vrot.slane %v6835_v33, 5  ;;  %v1651_v1 = vrot.slane %v1650_v3, 4  ;;  %v5049_v21 = vshll.u32 %v5028_v39, 16 }
  0x34   : > { %7006 = vst [vmem:[#allocation24_spill] sm:$0xff] %v5033_v47  ;;  %7008 = vst [vmem:[#allocation26_spill] sm:$0xff] %v5043_v62  ;;  %v320_v0 = vsel %vm4869_vm5, %v315_v41, %v319_v14  ;;  %v324_v17 = vrot.slane %v5033_v47, 4  ;;  %v327_v20 = vrot.slane %v5043_v62, 5  ;;  %v5056_v19 = vshrl.u32 %v5028_v39, 16 }
  0x35   : > { %7009 = vst [vmem:[#allocation27_spill] sm:$0xff] %v5049_v21  ;;  %v3776_v52 = vcombine.low %v310_v48, %v320_v0  ;;  %v1656_v22 = vrot.slane %v1654_v49, 4  ;;  %v1661_v26 = vor.u32 %v1660_v46, %v1659_v55  ;;  %v1655_v29 = vsel %vm4881_vm6, %v1651_v1, %v1654_v49  ;;  %v5067_v49 = vld [vmem:[%s4822_s25 + $0x3c] sm:$0xf] }
  0x36   : > { %v333_v33 = vrot.slane %v5049_v21, 5  ;;  %7010 = vst [vmem:[#allocation28_spill] sm:$0xff] %v5056_v19  ;;  %v5059_v14 = vshll.u32 %v5040_v60, 16  ;;  %v328_v3 = vor.u32 %v327_v20, %v324_v17  ;;  %v1663_v46 = vrot.slane %v5033_v47, 5 }
  0x37   : > { %4256 = vmatmul.mubr.msk.bf16.gmra.mrb[4].mxu1 %vm666_vm3, %v3776_v52  ;;  %v1662_v41 = vsel %vm4881_vm6, %v1656_v22, %v1661_v26  ;;  %v1664_v48 = vrot.slane %v5043_v62, 6  ;;  %v337_v0 = vrot.slane %v5056_v19, 4  ;;  %v1667_v61 = vrot.slane %v5056_v19, 5  ;;  %v5075_v22 = vld [vmem:[%s4822_s25 + $0x40] sm:$0xf] }
  0x38   : > { %7011 = vst [vmem:[#allocation29_spill] sm:$0xff] %v5059_v14  ;;  %v3895_v55 = vcombine.low %v1655_v29, %v1662_v41  ;;  %v343_v1 = vrot.slane %v5059_v14, 5  ;;  %v329_v58 = vrot.slane %v328_v3, 4  ;;  %v1668_v57 = vrot.slane %v5049_v21, 6 }
  0x39   : > { %v1665_v52 = vor.u32 %v1664_v48, %v1663_v46  ;;  %v6840_v17 = vshrl.u32 %v5040_v60, 16  ;;  %v338_v26 = vor.u32 %v337_v0, %v333_v33  ;;  %v1675_v20 = vrot.slane %v5059_v14, 6 }
  0x3a   : > { %4358 = vmatmul.mubr.msk.bf16.gmra.mrb[4].mxu0 %vm666_vm3, %v3895_v55  ;;  %v5080_v29 = vshrl.u32 %v5067_v49, 16  ;;  %v5083_v41 = vshll.u32 %v5067_v49, 16  ;;  %v334_v3 = vsel %vm4869_vm5, %v329_v58, %v333_v33  ;;  %v1669_v48 = vor.u32 %v1668_v57, %v1667_v61 }
  0x3b   : > { %v1666_v46 = vrot.slane %v1665_v52, 4  ;;  %v1674_v54 = vrot.slane %v6840_v17, 5  ;;  %v339_v55 = vrot.slane %v338_v26, 4  ;;  %v5095_v21 = vshll.u32 %v5075_v22, 16 }
  0x3c   : > { %7012 = vst [vmem:[#allocation30_spill] sm:$0xff] %v5080_v29  ;;  %7013 = vst [vmem:[#allocation31_spill] sm:$0xff] %v5083_v41  ;;  %v348_v0 = vrot.slane %v5080_v29, 4  ;;  %v351_v14 = vrot.slane %v5083_v41, 5  ;;  %v1671_v58 = vrot.slane %v1669_v48, 4  ;;  %v5100_v57 = vshrl.u32 %v5075_v22, 16 }
  0x3d   : > { %7015 = vst [vmem:[#allocation33_spill] sm:$0xff] %v5095_v21  ;;  %v1670_v19 = vsel %vm4881_vm6, %v1666_v46, %v1669_v48  ;;  %v1676_v33 = vor.u32 %v1675_v20, %v1674_v54  ;;  %v344_v61 = vsel %vm4869_vm5, %v339_v55, %v343_v1  ;;  %v357_v26 = vrot.slane %v5095_v21, 5  ;;  %v5113_v20 = vld [vmem:[%s4822_s25 + $0x48] sm:$0xf] }
  0x3e   : > { %7016 = vst [vmem:[#allocation34_spill] sm:$0xff] %v5100_v57  ;;  %v352_v52 = vor.u32 %v351_v14, %v348_v0  ;;  %v5106_v17 = vshll.u32 %v5090_v13, 16  ;;  %v3777_v62 = vcombine.low %v334_v3, %v344_v61  ;;  %v361_v46 = vrot.slane %v5100_v57, 4 }
  0x3f   : > { %v1677_v47 = vsel %vm4881_vm6, %v1671_v58, %v1676_v33  ;;  %v1678_v54 = vrot.slane %v5080_v29, 5  ;;  %v1679_v1 = vrot.slane %v5083_v41, 6  ;;  %v1682_v3 = vrot.slane %v5100_v57, 5  ;;  %v5122_v33 = vld [vmem:[%s4822_s25 + $0x4c] sm:$0xf] }
  0x40   : > { %7017 = vst [vmem:[#allocation35_spill] sm:$0xff] %v5106_v17  ;;  %v3896_v48 = vcombine.low %v1670_v19, %v1677_v47  ;;  %v353_v56 = vrot.slane %v352_v52, 4  ;;  %v367_v14 = vrot.slane %v5106_v17, 5  ;;  %4259 = vmatprep.mubr.msk.bf16.mxu1 %vm666_vm3, %v3777_v62  ;;  %v362_v55 = vor.u32 %v361_v46, %v357_v26  ;;  %v5137_v29 = vld [vmem:[%s4822_s25 + $0x50] sm:$0x7] }
  0x41   : > { %v1683_v0 = vrot.slane %v5095_v21, 6  ;;  %v6848_v58 = vshrl.u32 %v5090_v13, 16  ;;  %v1680_v47 = vor.u32 %v1679_v1, %v1678_v54  ;;  %v1690_v61 = vrot.slane %v5106_v17, 6  ;;  %7020 = vst [vmem:[#allocation38_spill] sm:$0xff] %v5137_v29 }
  0x42   : > { %4361 = vmatprep.mubr.msk.bf16.mxu0 %vm666_vm3, %v3896_v48  ;;  %v358_v19 = vsel %vm4869_vm5, %v353_v56, %v357_v26  ;;  %v5129_v62 = vshrl.u32 %v5113_v20, 16  ;;  %v363_v52 = vrot.slane %v362_v55, 4  ;;  %v5134_v57 = vshll.u32 %v5113_v20, 16 }
  0x43   : > { %v1684_v46 = vor.u32 %v1683_v0, %v1682_v3  ;;  %v1689_v21 = vrot.slane %v6848_v58, 5  ;;  %v1681_v41 = vrot.slane %v1680_v47, 4  ;;  %v5141_v26 = vshll.u32 %v5122_v33, 16 }
  0x44   : > { %7018 = vst [vmem:[#allocation36_spill] sm:$0xff] %v5129_v62  ;;  %7019 = vst [vmem:[#allocation37_spill] sm:$0xff] %v5134_v57  ;;  %v372_v56 = vrot.slane %v5129_v62, 4  ;;  %v5144_v54 = vshrl.u32 %v5122_v33, 16  ;;  %v368_v48 = vsel %vm4869_vm5, %v363_v52, %v367_v14  ;;  %v375_v3 = vrot.slane %v5134_v57, 5 }
  0x45   : > { %7021 = vst [vmem:[#allocation39_spill] sm:$0xff] %v5141_v26  ;;  %v1686_v1 = vrot.slane %v1684_v46, 4  ;;  %v1691_v55 = vor.u32 %v1690_v61, %v1689_v21  ;;  %v3778_v0 = vcombine.low %v358_v19, %v368_v48  ;;  %v1685_v47 = vsel %vm4881_vm6, %v1681_v41, %v1684_v46  ;;  %v5160_v14 = vld [vmem:[%s4822_s25 + $0x54] sm:$0xf] }
  0x46   : > { %7022 = vst [vmem:[#allocation40_spill] sm:$0xff] %v5144_v54  ;;  %v381_v58 = vrot.slane %v5141_v26, 5  ;;  %v385_v17 = vrot.slane %v5144_v54, 4  ;;  %v376_v44 = vor.u32 %v375_v3, %v372_v56  ;;  %v5156_v38 = vshll.u32 %v5137_v29, 16 }
  0x47   : > { %v1692_v43 = vsel %vm4881_vm6, %v1686_v1, %v1691_v55  ;;  %v1693_v21 = vrot.slane %v5129_v62, 5  ;;  %4260 = vmatmul.mubr.msk.bf16.gmra.mrb[8].mxu1 %vm666_vm3, %v3778_v0  ;;  %v1694_v61 = vrot.slane %v5134_v57, 6  ;;  %v1697_v52 = vrot.slane %v5144_v54, 5  ;;  %v5169_v55 = vld [vmem:[%s4822_s25 + $0x58] sm:$0xf] }
  0x48   : > { %7023 = vst [vmem:[#allocation41_spill] sm:$0xff] %v5156_v38  ;;  %v3897_v19 = vcombine.low %v1685_v47, %v1692_v43  ;;  %v386_v41 = vor.u32 %v385_v17, %v381_v58  ;;  %v377_v46 = vrot.slane %v376_v44, 4  ;;  %v391_v48 = vrot.slane %v5156_v38, 5  ;;  %v5181_v54 = vld [vmem:[%s4822_s25 + $0x5c] sm:$0x7] }
  0x49   : > { %v1698_v56 = vrot.slane %v5141_v26, 6  ;;  %v6856_v1 = vshrl.u32 %v5137_v29, 16  ;;  %v1695_v0 = vor.u32 %v1694_v61, %v1693_v21  ;;  %v1705_v43 = vrot.slane %v5156_v38, 6 }
  0x4a   : > { %4362 = vmatmul.mubr.msk.bf16.gmra.mrb[8].mxu0 %vm666_vm3, %v3897_v19  ;;  %v387_v3 = vrot.slane %v386_v41, 4  ;;  %v5174_v17 = vshrl.u32 %v5160_v14, 16  ;;  %v382_v44 = vsel %vm4869_vm5, %v377_v46, %v381_v58  ;;  %v5184_v57 = vshll.u32 %v5160_v14, 16 }
  0x4b   : > { %v1699_v47 = vor.u32 %v1698_v56, %v1697_v52  ;;  %v1704_v26 = vrot.slane %v6856_v1, 5  ;;  %v1696_v19 = vrot.slane %v1695_v0, 4  ;;  %v5190_v61 = vshll.u32 %v5169_v55, 16 }
  0x4c   : > { %7024 = vst [vmem:[#allocation42_spill] sm:$0xff] %v5174_v17  ;;  %7025 = vst [vmem:[#allocation43_spill] sm:$0xff] %v5184_v57  ;;  %v392_v21 = vsel %vm4869_vm5, %v387_v3, %v391_v48  ;;  %v396_v41 = vrot.slane %v5174_v17, 4  ;;  %v399_v56 = vrot.slane %v5184_v57, 5  ;;  %v5197_v48 = vshrl.u32 %v5169_v55, 16 }
  0x4d   : > { %7026 = vst [vmem:[#allocation44_spill] sm:$0xff] %v5190_v61  ;;  %v3779_v58 = vcombine.low %v382_v44, %v392_v21  ;;  %v1701_v52 = vrot.slane %v1699_v47, 4  ;;  %v1706_v46 = vor.u32 %v1705_v43, %v1704_v26  ;;  %v1700_v1 = vsel %vm4881_vm6, %v1696_v19, %v1699_v47  ;;  %v5208_v47 = vld [vmem:[%s4822_s25 + $0x60] sm:$0xf] }
  0x4e   : > { %v405_v38 = vrot.slane %v5190_v61, 5  ;;  %7027 = vst [vmem:[#allocation45_spill] sm:$0xff] %v5197_v48  ;;  %v5200_v3 = vshll.u32 %v5181_v54, 16  ;;  %v400_v26 = vor.u32 %v399_v56, %v396_v41  ;;  %v1708_v43 = vrot.slane %v5174_v17, 5 }
  0x4f   : > { %4263 = vmatprep.mubr.msk.bf16.mxu1 %vm666_vm3, %v3779_v58  ;;  %v1707_v0 = vsel %vm4881_vm6, %v1701_v52, %v1706_v46  ;;  %v1709_v44 = vrot.slane %v5184_v57, 6  ;;  %v409_v19 = vrot.slane %v5197_v48, 4  ;;  %v1712_v25 = vrot.slane %v5197_v48, 5  ;;  %v5216_v52 = vld [vmem:[%s4822_s25 + $0x64] sm:$0xf] }
  0x50   : > { %7028 = vst [vmem:[#allocation46_spill] sm:$0xff] %v5200_v3  ;;  %v3898_v21 = vcombine.low %v1700_v1, %v1707_v0  ;;  %v415_v62 = vrot.slane %v5200_v3, 5  ;;  %v401_v53 = vrot.slane %v400_v26, 4  ;;  %v1713_v45 = vrot.slane %v5190_v61, 6  ;;  %v5231_v48 = vld [vmem:[%s4822_s25 + $0x68] sm:$0x7] }
  0x51   : > { %v1710_v58 = vor.u32 %v1709_v44, %v1708_v43  ;;  %v6865_v41 = vshrl.u32 %v5181_v54, 16  ;;  %v410_v46 = vor.u32 %v409_v19, %v405_v38  ;;  %v1720_v1 = vrot.slane %v5200_v3, 6 }
  0x52   : > { %4365 = vmatprep.mubr.msk.bf16.mxu0 %vm666_vm3, %v3898_v21  ;;  %v5221_v56 = vshrl.u32 %v5208_v47, 16  ;;  %v5224_v0 = vshll.u32 %v5208_v47, 16  ;;  %v406_v26 = vsel %vm4869_vm5, %v401_v53, %v405_v38  ;;  %v1714_v44 = vor.u32 %v1713_v45, %v1712_v25 }
  0x53   : > { %v1711_v43 = vrot.slane %v1710_v58, 4  ;;  %v1719_v61 = vrot.slane %v6865_v41, 5  ;;  %v411_v21 = vrot.slane %v410_v46, 4  ;;  %v5236_v57 = vshll.u32 %v5216_v52, 16 }
  0x54   : > { %7029 = vst [vmem:[#allocation47_spill] sm:$0xff] %v5221_v56  ;;  %7030 = vst [vmem:[#allocation48_spill] sm:$0xff] %v5224_v0  ;;  %v420_v19 = vrot.slane %v5221_v56, 4  ;;  %v423_v3 = vrot.slane %v5224_v0, 5  ;;  %v1716_v38 = vrot.slane %v1714_v44, 4  ;;  %v5241_v45 = vshrl.u32 %v5216_v52, 16 }
  0x55   : > { %7031 = vst [vmem:[#allocation49_spill] sm:$0xff] %v5236_v57  ;;  %v1715_v53 = vsel %vm4881_vm6, %v1711_v43, %v1714_v44  ;;  %v1721_v58 = vor.u32 %v1720_v1, %v1719_v61  ;;  %v416_v25 = vsel %vm4869_vm5, %v411_v21, %v415_v62  ;;  %v429_v41 = vrot.slane %v5236_v57, 5  ;;  %v5250_v56 = vld [vmem:[%s4822_s25 + $0x6c] sm:$0xf] }
  0x56   : > { %7032 = vst [vmem:[#allocation50_spill] sm:$0xff] %v5241_v45  ;;  %v424_v46 = vor.u32 %v423_v3, %v420_v19  ;;  %v5247_v0 = vshll.u32 %v5231_v48, 16  ;;  %v3780_v17 = vcombine.low %v406_v26, %v416_v25  ;;  %v433_v61 = vrot.slane %v5241_v45, 4  ;;  %v5263_v3 = vld [vmem:[%s4822_s25 + $0x70] sm:$0xf] }
  0x57   : > { %v1722_v43 = vsel %vm4881_vm6, %v1716_v38, %v1721_v58  ;;  %v3925_v62 = vrot.slane %v4826_v4, 10  ;;  %v2146_v26 = vrot.slane %v4829_v5, 6  ;;  %v2149_v58 = vrot.slane %v4832_v6, 6  ;;  %v5270_v25 = vld [vmem:[%s4822_s25 + $0x74] sm:$0x7] }
  0x58   : > { %7033 = vst [vmem:[#allocation51_spill] sm:$0xff] %v5247_v0  ;;  %v3899_v44 = vcombine.low %v1715_v53, %v1722_v43  ;;  %v425_v21 = vrot.slane %v424_v46, 4  ;;  %v439_v19 = vrot.slane %v5247_v0, 5  ;;  %4264 = vmatmul.mubr.msk.bf16.gmra.mrb[12].mxu1 %vm666_vm3, %v3780_v17  ;;  %v434_v38 = vor.u32 %v433_v61, %v429_v41 }
  0x59   : > { %v5273_v35 = vshrl.u32 %v5250_v56, 16  ;;  %v5276_v57 = vshll.u32 %v5250_v56, 16  ;;  %v2147_v17 = vsel %vm5257_vm9, %v3925_v62, %v2146_v26  ;;  %v2148_v46 = vrot.slane %v2146_v26, 4 }
  0x5a   : > { %4366 = vmatmul.mubr.msk.bf16.gmra.mrb[12].mxu0 %vm666_vm3, %v3899_v44  ;;  %v430_v53 = vsel %vm4869_vm5, %v425_v21, %v429_v41  ;;  %v5284_v6 = vshll.u32 %v5263_v3, 16  ;;  %v435_v43 = vrot.slane %v434_v38, 4  ;;  %v5289_v45 = vshrl.u32 %v5263_v3, 16 }
  0x5b   : > { %7036 = vst [vmem:[#allocation52_spill] sm:$0xff] %v5273_v35  ;;  %7037 = vst [vmem:[#allocation53_spill] sm:$0xff] %v5276_v57  ;;  %v444_v61 = vrot.slane %v5273_v35, 4  ;;  %v447_v0 = vrot.slane %v5276_v57, 5  ;;  %v2150_v41 = vsel %vm5257_vm9, %v2148_v46, %v2149_v58  ;;  %v5295_v62 = vshll.u32 %v5270_v25, 16 }
  0x5c   : > { %7038 = vst [vmem:[#allocation54_spill] sm:$0xff] %v5284_v6  ;;  %7039 = vst [vmem:[#allocation55_spill] sm:$0xff] %v5289_v45  ;;  %v453_v44 = vrot.slane %v5284_v6, 5  ;;  %v440_v26 = vsel %vm4869_vm5, %v435_v43, %v439_v19  ;;  %v3943_v38 = vcombine.low %v2147_v17, %v2150_v41  ;;  %v457_v51 = vrot.slane %v5289_v45, 4  ;;  %v5318_v41 = vld [vmem:[%s4822_s25 + $0x80] sm:$0x7] }
  0x5d   : > { %7040 = vst [vmem:[#allocation56_spill] sm:$0xff] %v5295_v62  ;;  %v448_v30 = vor.u32 %v447_v0, %v444_v61  ;;  %v3781_v23 = vcombine.low %v430_v53, %v440_v26  ;;  %v463_v58 = vrot.slane %v5295_v62, 5  ;;  %v3926_v53 = vrot.slane %v4857_v18, 10  ;;  %7041 = vst [vmem:[#allocation57_spill] sm:$0xff] %v5318_v41  ;;  %v5345_v46 = vld [vmem:[%s4822_s25 + $0x84] sm:$0xf] }
  0x5e   : > { %4387 = vmatprep.mubr.msk.bf16.mxu0 %vm666_vm3, %v3943_v38  ;;  %v458_v19 = vor.u32 %v457_v51, %v453_v44  ;;  %v2153_v43 = vrot.slane %v4865_v27, 6  ;;  %v2156_v61 = vrot.slane %v4889_v40, 6  ;;  %v5321_v26 = vshrl.u32 %v5302_v24, 16  ;;  %v5352_v62 = vld [vmem:[%s4822_s25 + $0x88] sm:$0xf]  ;;  %v5359_v6 = vld [vmem:[%s6832_s1 + $0x30] sm:$0xff]  }
  0x5f   : > { %v449_v21 = vrot.slane %v448_v30, 4  ;;  %4267 = vmatprep.mubr.msk.bf16.mxu1 %vm666_vm3, %v3781_v23  ;;  %v5326_v38 = vshll.u32 %v5302_v24, 16  ;;  %v5329_v18 = vshll.u32 %v5308_v42, 16  ;;  %v5335_v0 = vshrl.u32 %v5308_v42, 16  ;;  %7047 = vst [vmem:[#allocation63_spill] sm:$0xff] %v5359_v6 }
  0x60   : > { %7042 = vst [vmem:[#allocation58_spill] sm:$0xff] %v5321_v26  ;;  %v459_v51 = vrot.slane %v458_v19, 4  ;;  %v2154_v27 = vsel %vm5257_vm9, %v3926_v53, %v2153_v43  ;;  %v2155_v40 = vrot.slane %v2153_v43, 4  ;;  %v468_v23 = vrot.slane %v5321_v26, 4 }
  0x61   : > { %v454_v30 = vsel %vm4869_vm5, %v449_v21, %v453_v44  ;;  %7043 = vst [vmem:[#allocation59_spill] sm:$0xff] %v5326_v38  ;;  %7044 = vst [vmem:[#allocation60_spill] sm:$0xff] %v5329_v18  ;;  %v471_v21 = vrot.slane %v5326_v38, 5  ;;  %v477_v19 = vrot.slane %v5329_v18, 5  ;;  %v5342_v31 = vshll.u32 %v5318_v41, 16 }
  0x62   : > { %7045 = vst [vmem:[#allocation61_spill] sm:$0xff] %v5335_v0  ;;  %v464_v44 = vsel %vm4869_vm5, %v459_v51, %v463_v58  ;;  %v2157_v43 = vsel %vm5257_vm9, %v2155_v40, %v2156_v61  ;;  %v481_v17 = vrot.slane %v5335_v0, 4  ;;  %v3927_v26 = vrot.slane %v4916_v63, 10  ;;  %v5364_v40 = vld [vmem:[%s4822_s25 + $0x8c] sm:$0x7] }
  0x63   : > { %7046 = vst [vmem:[#allocation62_spill] sm:$0xff] %v5342_v31  ;;  %v3782_v53 = vcombine.low %v454_v30, %v464_v44  ;;  %v3944_v58 = vcombine.low %v2154_v27, %v2157_v43  ;;  %v472_v51 = vor.u32 %v471_v21, %v468_v23  ;;  %v487_v18 = vrot.slane %v5342_v31, 5  ;;  %7048 = vst [vmem:[#allocation64_spill] sm:$0xff] %v5364_v40 }
  0x64   : > { %v2160_v38 = vrot.slane %v4923_v15, 6  ;;  %v482_v61 = vor.u32 %v481_v17, %v477_v19  ;;  %v2163_v30 = vrot.slane %v4941_v36, 6  ;;  %v5367_v44 = vshrl.u32 %v5345_v46, 16 }
  0x65   : > { %4268 = vmatmul.mubr.msk.bf16.gmra.mrb[16].mxu1 %vm666_vm3, %v3782_v53  ;;  %v5370_v27 = vshll.u32 %v5345_v46, 16  ;;  %4388 = vmatmul.mubr.msk.bf16.vlgmr.msra.gmra.mrb[0].mxu0 %vm666_vm3, %v3944_v58  ;;  %v473_v23 = vrot.slane %v472_v51, 4  ;;  %v5376_v17 = vshll.u32 %v5352_v62, 16  ;;  %v5382_v45 = vshrl.u32 %v5352_v62, 16 }
  0x66   : > { %7049 = vst [vmem:[#allocation65_spill] sm:$0xff] %v5367_v44  ;;  %v2161_v21 = vsel %vm5257_vm9, %v3927_v26, %v2160_v38  ;;  %v2162_v43 = vrot.slane %v2160_v38, 4  ;;  %4420 = vmatpush3.bf16.msra.mxu0 %v4973_v12  ;;  %v483_v53 = vrot.slane %v482_v61, 4  ;;  %v492_v31 = vrot.slane %v5367_v44, 4  ;;  %v5393_v12 = vld [vmem:[%s4822_s25 + $0x90] sm:$0xf] }
  0x67   : > { %7050 = vst [vmem:[#allocation66_spill] sm:$0xff] %v5370_v27  ;;  %7051 = vst [vmem:[#allocation67_spill] sm:$0xff] %v5376_v17  ;;  %v495_v0 = vrot.slane %v5370_v27, 5  ;;  %v478_v58 = vsel %vm4869_vm5, %v473_v23, %v477_v19  ;;  %v501_v38 = vrot.slane %v5376_v17, 5  ;;  %v5390_v51 = vshll.u32 %v5364_v40, 16  ;;  %4453 = vmatprep.subr.bf16.mxu0 %v5359_v6 }
  0x68   : > { %7052 = vst [vmem:[#allocation68_spill] sm:$0xff] %v5382_v45  ;;  %v2164_v26 = vsel %vm5257_vm9, %v2162_v43, %v2163_v30  ;;  %v488_v61 = vsel %vm4869_vm5, %v483_v53, %v487_v18  ;;  %v505_v19 = vrot.slane %v5382_v45, 4  ;;  %v5400_v23 = vld [vmem:[%s4822_s25 + $0x94] sm:$0xf]  ;;  %v3928_v17 = vrot.slane %v4965_v59, 10 }
  0x69   : > { %7053 = vst [vmem:[#allocation69_spill] sm:$0xff] %v5390_v51  ;;  %v3945_v27 = vcombine.low %v2161_v21, %v2164_v26  ;;  %v496_v44 = vor.u32 %v495_v0, %v492_v31  ;;  %v3783_v30 = vcombine.low %v478_v58, %v488_v61  ;;  %v511_v43 = vrot.slane %v5390_v51, 5  ;;  %v5408_v18 = vld [vmem:[%s4822_s25 + $0x98] sm:$0x7]  ;;  %v5436_v51 = vld [vmem:[%s4822_s25 + $0x9c] sm:$0xf] }
  0x6a   : > { %v2167_v57 = vrot.slane %v4979_v2, 6  ;;  %v506_v6 = vor.u32 %v505_v19, %v501_v38  ;;  %v2170_v36 = vrot.slane %v4992_v34, 6  ;;  %7054 = vst [vmem:[#allocation70_spill] sm:$0xff] %v5408_v18  ;;  %v5411_v31 = vshrl.u32 %v5393_v12, 16  ;;  %v5443_v45 = vld [vmem:[%s4822_s25 + $0xa0] sm:$0xf] }
  0x6b   : > { %4391 = vmatprep.mubr.msk.bf16.mxu0 %vm666_vm3, %v3945_v27  ;;  %v497_v35 = vrot.slane %v496_v44, 4  ;;  %4271 = vmatprep.mubr.msk.bf16.mxu1 %vm666_vm3, %v3783_v30  ;;  %v5417_v53 = vshll.u32 %v5393_v12, 16  ;;  %v5420_v44 = vshll.u32 %v5400_v23, 16  ;;  %v5426_v61 = vshrl.u32 %v5400_v23, 16 }
  0x6c   : > { %7055 = vst [vmem:[#allocation71_spill] sm:$0xff] %v5411_v31  ;;  %v2168_v0 = vsel %vm5257_vm9, %v3928_v17, %v2167_v57  ;;  %v2169_v21 = vrot.slane %v2167_v57, 4  ;;  %v507_v58 = vrot.slane %v506_v6, 4  ;;  %v516_v26 = vrot.slane %v5411_v31, 4 }
  0x6d   : > { %7056 = vst [vmem:[#allocation72_spill] sm:$0xff] %v5417_v53  ;;  %7057 = vst [vmem:[#allocation73_spill] sm:$0xff] %v5420_v44  ;;  %v502_v27 = vsel %vm4869_vm5, %v497_v35, %v501_v38  ;;  %v519_v57 = vrot.slane %v5417_v53, 5  ;;  %v525_v19 = vrot.slane %v5420_v44, 5  ;;  %v5433_v30 = vshll.u32 %v5408_v18, 16 }
  0x6e   : > { %7058 = vst [vmem:[#allocation74_spill] sm:$0xff] %v5426_v61  ;;  %v2171_v17 = vsel %vm5257_vm9, %v2169_v21, %v2170_v36  ;;  %v512_v35 = vsel %vm4869_vm5, %v507_v58, %v511_v43  ;;  %v529_v38 = vrot.slane %v5426_v61, 4  ;;  %v3929_v31 = vrot.slane %v5019_v16, 10 }
  0x6f   : > { %7059 = vst [vmem:[#allocation75_spill] sm:$0xff] %v5433_v30  ;;  %v3946_v6 = vcombine.low %v2168_v0, %v2171_v17  ;;  %v3784_v36 = vcombine.low %v502_v27, %v512_v35  ;;  %v520_v21 = vor.u32 %v519_v57, %v516_v26  ;;  %v535_v53 = vrot.slane %v5433_v30, 5 }
  0x70   : > { %v2174_v44 = vrot.slane %v5028_v39, 6  ;;  %v530_v34 = vor.u32 %v529_v38, %v525_v19  ;;  %v2177_v50 = vrot.slane %v5040_v60, 6  ;;  %v5453_v43 = vshrl.u32 %v5436_v51, 16  ;;  %v5484_v60 = vld [vmem:[%s4822_s25 + $0xac] sm:$0xf] }
  0x71   : > { %4392 = vmatmul.mubr.msk.bf16.gmra.mrb[4].mxu0 %vm666_vm3, %v3946_v6  ;;  %v5456_v0 = vshll.u32 %v5436_v51, 16  ;;  %4272 = vmatmul.mubr.msk.bf16.gmra.mrb[20].mxu1 %vm666_vm3, %v3784_v36  ;;  %v521_v27 = vrot.slane %v520_v21, 4  ;;  %v5462_v17 = vshll.u32 %v5443_v45, 16  ;;  %v5467_v38 = vshrl.u32 %v5443_v45, 16 }
  0x72   : > { %7061 = vst [vmem:[#allocation77_spill] sm:$0xff] %v5453_v43  ;;  %v2175_v58 = vsel %vm5257_vm9, %v3929_v31, %v2174_v44  ;;  %v2176_v26 = vrot.slane %v2174_v44, 4  ;;  %v531_v57 = vrot.slane %v530_v34, 4  ;;  %v540_v35 = vrot.slane %v5453_v43, 4  ;;  %v5478_v34 = vld [vmem:[%s4822_s25 + $0xa8] sm:$0xf] }
  0x73   : > { %7062 = vst [vmem:[#allocation78_spill] sm:$0xff] %v5456_v0  ;;  %7063 = vst [vmem:[#allocation79_spill] sm:$0xff] %v5462_v17  ;;  %v543_v6 = vrot.slane %v5456_v0, 5  ;;  %v526_v36 = vsel %vm4869_vm5, %v521_v27, %v525_v19  ;;  %v549_v31 = vrot.slane %v5462_v17, 5  ;;  %v5475_v44 = vshll.u32 %v5450_v37, 16 }
  0x74   : > { %7064 = vst [vmem:[#allocation80_spill] sm:$0xff] %v5467_v38  ;;  %v2178_v21 = vsel %vm5257_vm9, %v2176_v26, %v2177_v50  ;;  %v536_v0 = vsel %vm4869_vm5, %v531_v57, %v535_v53  ;;  %v553_v61 = vrot.slane %v5467_v38, 4  ;;  %v3930_v27 = vrot.slane %v5067_v49, 10  ;;  %v5492_v53 = vld [vmem:[%s4822_s25 + $0xb0] sm:$0x7] }
  0x75   : > { %7065 = vst [vmem:[#allocation81_spill] sm:$0xff] %v5475_v44  ;;  %v3947_v43 = vcombine.low %v2175_v58, %v2178_v21  ;;  %v544_v30 = vor.u32 %v543_v6, %v540_v35  ;;  %v3785_v19 = vcombine.low %v526_v36, %v536_v0  ;;  %v559_v50 = vrot.slane %v5475_v44, 5  ;;  %v5520_v44 = vld [vmem:[%s4822_s25 + $0xb4] sm:$0xf]  ;;  %v5527_v38 = vld [vmem:[%s4822_s25 + $0xb8] sm:$0xf] }
  0x76   : > { %v2181_v26 = vrot.slane %v5075_v22, 6  ;;  %v554_v32 = vor.u32 %v553_v61, %v549_v31  ;;  %v2184_v11 = vrot.slane %v5090_v13, 6  ;;  %v5495_v58 = vshrl.u32 %v5478_v34, 16 }
  0x77   : > { %4395 = vmatprep.mubr.msk.bf16.mxu0 %vm666_vm3, %v3947_v43  ;;  %v545_v17 = vrot.slane %v544_v30, 4  ;;  %4275 = vmatprep.mubr.msk.bf16.mxu1 %vm666_vm3, %v3785_v19  ;;  %v5501_v35 = vshll.u32 %v5478_v34, 16  ;;  %v5504_v61 = vshll.u32 %v5484_v60, 16  ;;  %v5510_v36 = vshrl.u32 %v5484_v60, 16 }
  0x78   : > { %7066 = vst [vmem:[#allocation82_spill] sm:$0xff] %v5495_v58  ;;  %v2182_v0 = vsel %vm5257_vm9, %v3930_v27, %v2181_v26  ;;  %v2183_v57 = vrot.slane %v2181_v26, 4  ;;  %v555_v43 = vrot.slane %v554_v32, 4  ;;  %v564_v6 = vrot.slane %v5495_v58, 4 }
  0x79   : > { %7067 = vst [vmem:[#allocation83_spill] sm:$0xff] %v5501_v35  ;;  %7068 = vst [vmem:[#allocation84_spill] sm:$0xff] %v5504_v61  ;;  %v550_v30 = vsel %vm4869_vm5, %v545_v17, %v549_v31  ;;  %v567_v19 = vrot.slane %v5501_v35, 5  ;;  %v573_v27 = vrot.slane %v5504_v61, 5  ;;  %v5517_v26 = vshll.u32 %v5492_v53, 16 }
  0x7a   : > { %7069 = vst [vmem:[#allocation85_spill] sm:$0xff] %v5510_v36  ;;  %v2185_v21 = vsel %vm5257_vm9, %v2183_v57, %v2184_v11  ;;  %v560_v32 = vsel %vm4869_vm5, %v555_v43, %v559_v50  ;;  %v577_v31 = vrot.slane %v5510_v36, 4  ;;  %v3931_v58 = vrot.slane %v5113_v20, 10 }
  0x7b   : > { %7070 = vst [vmem:[#allocation86_spill] sm:$0xff] %v5517_v26  ;;  %v3948_v17 = vcombine.low %v2182_v0, %v2185_v21  ;;  %v3786_v11 = vcombine.low %v550_v30, %v560_v32  ;;  %v568_v57 = vor.u32 %v567_v19, %v564_v6  ;;  %v583_v35 = vrot.slane %v5517_v26, 5 }
  0x7c   : > { %v2188_v61 = vrot.slane %v5122_v33, 6  ;;  %v578_v13 = vor.u32 %v577_v31, %v573_v27  ;;  %v2191_v9 = vrot.slane %v5137_v29, 6  ;;  %v5537_v50 = vshrl.u32 %v5520_v44, 16 }
  0x7d   : > { %4396 = vmatmul.mubr.msk.bf16.gmra.mrb[8].mxu0 %vm666_vm3, %v3948_v17  ;;  %v5540_v0 = vshll.u32 %v5520_v44, 16  ;;  %4276 = vmatmul.mubr.msk.bf16.gmra.mrb[24].mxu1 %vm666_vm3, %v3786_v11  ;;  %v569_v30 = vrot.slane %v568_v57, 4  ;;  %v5546_v21 = vshll.u32 %v5527_v38, 16  ;;  %v5551_v31 = vshrl.u32 %v5527_v38, 16 }
  0x7e   : > { %7072 = vst [vmem:[#allocation88_spill] sm:$0xff] %v5537_v50  ;;  %v2189_v43 = vsel %vm5257_vm9, %v3931_v58, %v2188_v61  ;;  %v2190_v6 = vrot.slane %v2188_v61, 4  ;;  %v579_v19 = vrot.slane %v578_v13, 4  ;;  %v588_v32 = vrot.slane %v5537_v50, 4 }
  0x7f   : > { %7073 = vst [vmem:[#allocation89_spill] sm:$0xff] %v5540_v0  ;;  %7074 = vst [vmem:[#allocation90_spill] sm:$0xff] %v5546_v21  ;;  %v591_v17 = vrot.slane %v5540_v0, 5  ;;  %v574_v26 = vsel %vm4869_vm5, %v569_v30, %v573_v27  ;;  %v597_v58 = vrot.slane %v5546_v21, 5  ;;  %v5559_v61 = vshll.u32 %v5534_v10, 16 }
  0x80   : > { %7075 = vst [vmem:[#allocation91_spill] sm:$0xff] %v5551_v31  ;;  %v2192_v11 = vsel %vm5257_vm9, %v2190_v6, %v2191_v9  ;;  %v584_v13 = vsel %vm4869_vm5, %v579_v19, %v583_v35  ;;  %v601_v0 = vrot.slane %v5551_v31, 4  ;;  %v3932_v27 = vrot.slane %v5160_v14, 10 }
  0x81   : > { %7076 = vst [vmem:[#allocation92_spill] sm:$0xff] %v5559_v61  ;;  %v3949_v57 = vcombine.low %v2189_v43, %v2192_v11  ;;  %v592_v50 = vor.u32 %v591_v17, %v588_v32  ;;  %v3787_v36 = vcombine.low %v574_v26, %v584_v13  ;;  %v607_v29 = vrot.slane %v5559_v61, 5 }
  0x82   : > { %v2195_v9 = vrot.slane %v5169_v55, 6  ;;  %v602_v6 = vor.u32 %v601_v0, %v597_v58  ;;  %v2198_v21 = vrot.slane %v5181_v54, 6  ;;  %v3933_v35 = vrot.slane %v5208_v47, 10  ;;  %v5581_v0 = vld [vmem:[%s4822_s25 + $0x10] sm:$0xf] }
  0x83   : > { %4399 = vmatprep.mubr.msk.bf16.mxu0 %vm666_vm3, %v3949_v57  ;;  %v593_v30 = vrot.slane %v592_v50, 4  ;;  %4279 = vmatprep.mubr.msk.bf16.mxu1 %vm666_vm3, %v3787_v36  ;;  %v2202_v19 = vrot.slane %v5216_v52, 6  ;;  %v2205_v32 = vrot.slane %v5231_v48, 6  ;;  %v5578_v50 = vld [vmem:[%s4822_s25 + $0xc] sm:$0xf]  ;;  %7078 = vst [vmem:[#allocation94_spill] sm:$0xff] %v5581_v0  ;;  %v3808_v31 = vcombine.low %v4916_v63, %v4923_v15 }
  0x84   : > { %v2196_v26 = vsel %vm5257_vm9, %v3932_v27, %v2195_v9  ;;  %v2197_v43 = vrot.slane %v2195_v9, 4  ;;  %v603_v11 = vrot.slane %v602_v6, 4  ;;  %7077 = vst [vmem:[#allocation93_spill] sm:$0xff] %v5578_v50  ;;  %v3807_v13 = vcombine.low %v5578_v50, %v5581_v0  ;;  %v7094_v15 = vld [vmem:[#allocation11_spill] sm:$0xff] }
  0x85   : > { %v598_v17 = vsel %vm4869_vm5, %v593_v30, %v597_v58  ;;  %v3934_v36 = vrot.slane %v5250_v56, 10  ;;  %v2203_v27 = vsel %vm5257_vm9, %v3933_v35, %v2202_v19  ;;  %v2204_v9 = vrot.slane %v2202_v19, 4 }
  0x86   : > { %v2199_v57 = vsel %vm5257_vm9, %v2197_v43, %v2198_v21  ;;  %v2209_v61 = vrot.slane %v5263_v3, 6  ;;  %v608_v58 = vsel %vm4869_vm5, %v603_v11, %v607_v29  ;;  %v2212_v6 = vrot.slane %v5270_v25, 6 }
  0x87   : > { %v3950_v30 = vcombine.low %v2196_v26, %v2199_v57  ;;  %v3788_v0 = vcombine.low %v598_v17, %v608_v58  ;;  %v2206_v50 = vsel %vm5257_vm9, %v2204_v9, %v2205_v32  ;;  %v3935_v28 = vrot.slane %v5302_v24, 10 }
  0x88   : > { %v2210_v21 = vsel %vm5257_vm9, %v3934_v36, %v2209_v61  ;;  %v2211_v35 = vrot.slane %v2209_v61, 4  ;;  %v3951_v43 = vcombine.low %v2203_v27, %v2206_v50  ;;  %v2216_v29 = vrot.slane %v5308_v42, 6 }
  0x89   : > { %4400 = vmatmul.mubr.msk.bf16.gmra.mrb[12].mxu0 %vm666_vm3, %v3950_v30  ;;  %v2219_v26 = vrot.slane %v5318_v41, 6  ;;  %4280 = vmatmul.mubr.msk.bf16.gmra.mrb[28].mxu1 %vm666_vm3, %v3788_v0  ;;  %v3936_v19 = vrot.slane %v5345_v46, 10  ;;  %v2223_v61 = vrot.slane %v5352_v62, 6  ;;  %v7079_v32 = vcombine.low %v4826_v4, %v4829_v5 }
  0x8a   : > { %v2213_v63 = vsel %vm5257_vm9, %v2211_v35, %v2212_v6  ;;  %4403 = vmatprep.mubr.msk.bf16.mxu0 %vm666_vm3, %v3951_v43  ;;  %v2217_v11 = vsel %vm5257_vm9, %v3935_v28, %v2216_v29  ;;  %v2218_v50 = vrot.slane %v2216_v29, 4  ;;  %v2226_v0 = vrot.slane %v5364_v40, 6 }
  0x8b   : > { %4285 = vmatprep.mubr.msk.bf16.mxu1 %vm666_vm3, %v7079_v32  ;;  %v3952_v17 = vcombine.low %v2210_v21, %v2213_v63  ;;  %v2224_v36 = vsel %vm5257_vm9, %v3936_v19, %v2223_v61  ;;  %v2225_v57 = vrot.slane %v2223_v61, 4  ;;  %v3937_v4 = vrot.slane %v5393_v12, 10 }
  0x8c   : > { %v2220_v5 = vsel %vm5257_vm9, %v2218_v50, %v2219_v26  ;;  %v2230_v9 = vrot.slane %v5400_v23, 6  ;;  %v2233_v58 = vrot.slane %v5408_v18, 6  ;;  %v3938_v35 = vrot.slane %v5436_v51, 10 }
  0x8d   : > { %v3953_v6 = vcombine.low %v2217_v11, %v2220_v5  ;;  %v2227_v21 = vsel %vm5257_vm9, %v2225_v57, %v2226_v0  ;;  %v2237_v43 = vrot.slane %v5443_v45, 6  ;;  %v2240_v63 = vrot.slane %v5450_v37, 6  ;;  %v7091_v57 = vld [vmem:[#allocation9_spill] sm:$0xff] }
  0x8e   : > { %v3954_v28 = vcombine.low %v2224_v36, %v2227_v21  ;;  %v2231_v29 = vsel %vm5257_vm9, %v3937_v4, %v2230_v9  ;;  %v2232_v26 = vrot.slane %v2230_v9, 4  ;;  %v3939_v11 = vrot.slane %v5478_v34, 10 }
  0x8f   : > { %v5639_v19 = vsel %vm5257_vm9, %v3938_v35, %v2237_v43  ;;  %v2239_v61 = vrot.slane %v2237_v43, 4  ;;  %v2244_v0 = vrot.slane %v5484_v60, 6  ;;  %v2247_v36 = vrot.slane %v5492_v53, 6 }
  0x90   : > { %v2234_v50 = vsel %vm5257_vm9, %v2232_v26, %v2233_v58  ;;  %v2251_v9 = vrot.slane %v5527_v38, 6  ;;  %v4715_v58 = vld [vmem:[%s6832_s1 + $0x10] sm:$0xff]   ;;  %v2254_v35 = vrot.slane %v5534_v10, 6 }
  0x91   : > { %4404 = vmatmul.mubr.msk.bf16.gmra.mrb[16].mxu0 %vm666_vm3, %v3952_v17  ;;  %4286 = vmatmul.mubr.msk.bf16.vlgmr.msra.gmra.mrb[0].mxu1 %vm666_vm3, %v3807_v13  ;;  %v3955_v4 = vcombine.low %v2231_v29, %v2234_v50  ;;  %v5655_v5 = vsel %vm5257_vm9, %v2239_v61, %v2240_v63  ;;  %v3940_v17 = vrot.slane %v5520_v44, 10  ;;  %v2246_v21 = vrot.slane %v2244_v0, 4  ;;  %v7093_v13 = vld [vmem:[#allocation5_spill] sm:$0xff] }
  0x92   : > { %4407 = vmatprep.mubr.msk.bf16.mxu0 %vm666_vm3, %v3953_v6  ;;  %4318 = vmatpush3.bf16.msra.mxu1 %v4715_v58  ;;  %v5667_v6 = vsel %vm5257_vm9, %v3939_v11, %v2244_v0  ;;  %v2253_v29 = vrot.slane %v2251_v9, 4  ;;  %v2557_v61 = vrot.slane %v4835_v7, 6  ;;  %v2558_v11 = vrot.slane %v4838_v8, 7  ;;  %v7081_v58 = vld [vmem:[#allocation2_spill] sm:$0xff] }
  0x93   : > { %4289 = vmatprep.mubr.msk.bf16.mxu1 %vm666_vm3, %v3808_v31  ;;  %v5672_v43 = vsel %vm5257_vm9, %v3940_v17, %v2251_v9  ;;  %v5679_v31 = vld [vmem:[%s6832_s1 + $0x18] sm:$0xff]   ;;  %v2248_v63 = vsel %vm5257_vm9, %v2246_v21, %v2247_v36  ;;  %v7080_v17 = vld [vmem:[#allocation3_spill] sm:$0xff]  ;;  %v2562_v26 = vrot.slane %v7081_v58, 7  ;;  %v7082_v36 = vld [vmem:[#allocation4_spill] sm:$0xff] }
  0x94   : > { %4487 = vmatprep.subr.bf16.mxu1 %v5679_v31  ;;  %v3957_v50 = vcombine.low %v5667_v6, %v2248_v63  ;;  %v5689_v0 = vsel %vm5257_vm9, %v2253_v29, %v2254_v35  ;;  %v2561_v9 = vrot.slane %v7080_v17, 6  ;;  %v2559_v32 = vor.u32 %v2558_v11, %v2557_v61  ;;  %v7085_v6 = vld [vmem:[#allocation6_spill] sm:$0xff]  ;;  %v7087_v29 = vld [vmem:[#allocation8_spill] sm:$0xff] }
  0x95   : > { %v2567_v21 = vrot.slane %v7082_v36, 7  ;;  %v7086_v35 = vrot.slane %v7085_v6, 6  ;;  %v7088_v63 = vrot.slane %v7087_v29, 7  ;;  %v7089_v58 = vld [vmem:[#allocation10_spill] sm:$0xff]  ;;  %v7092_v61 = vrot.slane %v7091_v57, 7 }
  0x96   : > { %v2563_v1 = vor.u32 %v2562_v26, %v2561_v9  ;;  %v7090_v30 = vrot.slane %v7089_v58, 6  ;;  %v3816_v36 = vcombine.low %v5302_v24, %v5308_v42  ;;  %v2560_v7 = vrot.slane %v2559_v32, 4  ;;  %v7095_v9 = vld [vmem:[#allocation12_spill] sm:$0xff]  ;;  %v7150_v24 = vld [vmem:[#allocation50_spill] sm:$0xff] }
  0x97   : > { %v2572_v17 = vor.u32 %v7088_v63, %v7086_v35  ;;  %v2568_v27 = vor.u32 %v2567_v21, %v7093_v13  ;;  %v2583_v26 = vrot.slane %v7094_v15, 6  ;;  %v2584_v6 = vrot.slane %v7095_v9, 7  ;;  %v7097_v63 = vld [vmem:[#allocation16_spill] sm:$0xff]  ;;  %v7100_v13 = vld [vmem:[#allocation14_spill] sm:$0xff] }
  0x98   : > { %v2576_v11 = vor.u32 %v7092_v61, %v7090_v30  ;;  %v7096_v35 = vcombine.low %v4965_v59, %v4979_v2  ;;  %v2565_v30 = vrot.slane %v2563_v1, 4  ;;  %v2587_v58 = vrot.slane %v7097_v63, 6  ;;  %v7099_v59 = vld [vmem:[#allocation13_spill] sm:$0xff]  ;;  %v7105_v63 = vld [vmem:[#allocation20_spill] sm:$0xff] }
  0x99   : > { %4408 = vmatmul.mubr.msk.bf16.gmra.mrb[20].mxu0 %vm666_vm3, %v3954_v28  ;;  %v2573_v57 = vrot.slane %v2572_v17, 4  ;;  %v7098_v28 = vcombine.low %v5019_v16, %v5028_v39  ;;  %v5729_v15 = vsel %vm5699_vm12, %v2560_v7, %v2563_v1  ;;  %v2585_v32 = vor.u32 %v2584_v6, %v2583_v26  ;;  %v7102_v16 = vld [vmem:[#allocation15_spill] sm:$0xff]  ;;  %v7103_v7 = vld [vmem:[#allocation17_spill] sm:$0xff] }
  0x9a   : > { %4290 = vmatmul.mubr.msk.bf16.gmra.mrb[4].mxu1 %vm666_vm3, %v7096_v35  ;;  %4411 = vmatprep.mubr.msk.bf16.mxu0 %vm666_vm3, %v3955_v4  ;;  %v2578_v29 = vrot.slane %v2576_v11, 4  ;;  %v2588_v2 = vrot.slane %v7099_v59, 7  ;;  %v7101_v21 = vshrl.u32 %v7100_v13, 16  ;;  %v5736_v17 = vsel %vm5699_vm12, %v2565_v30, %v2568_v27  ;;  %v7104_v30 = vld [vmem:[#allocation18_spill] sm:$0xff] }
  0x9b   : > { %4293 = vmatprep.mubr.msk.bf16.mxu1 %vm666_vm3, %v7098_v28  ;;  %v5740_v61 = vsel %vm5699_vm12, %v2573_v57, %v2576_v11  ;;  %v2593_v1 = vrot.slane %v7103_v7, 7  ;;  %v3978_v26 = vcombine.low %v5729_v15, %v5736_v17  ;;  %v2586_v6 = vrot.slane %v2585_v32, 4  ;;  %v7106_v13 = vld [vmem:[#allocation22_spill] sm:$0xff]  ;;  %v7108_v32 = vld [vmem:[#allocation19_spill] sm:$0xff] }
  0x9c   : > { %v2592_v4 = vrot.slane %v7101_v21, 6  ;;  %v5745_v39 = vsel %vm5699_vm12, %v2578_v29, %v7102_v16  ;;  %v2589_v27 = vor.u32 %v2588_v2, %v2587_v58  ;;  %v3817_v11 = vcombine.low %v5345_v46, %v5352_v62  ;;  %v7107_v21 = vld [vmem:[#allocation21_spill] sm:$0xff] }
  0x9d   : > { %v3979_v9 = vcombine.low %v5740_v61, %v5745_v39  ;;  %v2596_v57 = vrot.slane %v7104_v30, 6  ;;  %v2597_v28 = vrot.slane %v7105_v63, 7  ;;  %v2600_v15 = vrot.slane %v7106_v13, 6  ;;  %v7112_v63 = vld [vmem:[#allocation24_spill] sm:$0xff]  ;;  %v7147_v61 = vld [vmem:[#allocation63_spill] sm:$0xff] }
  0x9e   : > { %v2594_v35 = vor.u32 %v2593_v1, %v2592_v4  ;;  %v5758_v29 = vsel %vm5699_vm12, %v2586_v6, %v2589_v27  ;;  %v2591_v59 = vrot.slane %v2589_v27, 4  ;;  %v2601_v17 = vrot.slane %v7107_v21, 7  ;;  %v7110_v4 = vld [vmem:[#allocation23_spill] sm:$0xff] }
  0x9f   : > { %v2598_v16 = vor.u32 %v2597_v28, %v2596_v57  ;;  %v7109_v58 = vshrl.u32 %v7108_v32, 16  ;;  %v2606_v7 = vrot.slane %v7110_v4, 7  ;;  %v7111_v30 = vcombine.low %v5639_v19, %v5655_v5  ;;  %v7113_v28 = vld [vmem:[#allocation26_spill] sm:$0xff]  ;;  %v7117_v4 = vld [vmem:[#allocation27_spill] sm:$0xff] }
  0xa0   : > { %v5773_v6 = vsel %vm5699_vm12, %v2591_v59, %v2594_v35  ;;  %v2602_v27 = vor.u32 %v2601_v17, %v2600_v15  ;;  %v2609_v57 = vrot.slane %v7112_v63, 6  ;;  %v2610_v13 = vrot.slane %v7113_v28, 7  ;;  %v7121_v28 = vld [vmem:[#allocation30_spill] sm:$0xff] }
  0xa1   : > { %v2605_v2 = vrot.slane %v7109_v58, 6  ;;  %4412 = vmatmul.mubr.msk.bf16.gmra.mrb[24].mxu0 %vm666_vm3, %v7111_v30  ;;  %v7114_v21 = vcombine.low %v5067_v49, %v5075_v22  ;;  %v3980_v19 = vcombine.low %v5758_v29, %v5773_v6  ;;  %v2599_v5 = vrot.slane %v2598_v16, 4  ;;  %v7115_v58 = vld [vmem:[#allocation28_spill] sm:$0xff]  ;;  %v7118_v22 = vld [vmem:[#allocation25_spill] sm:$0xff] }
  0xa2   : > { %4415 = vmatprep.mubr.msk.bf16.mxu0 %vm666_vm3, %v3957_v50  ;;  %v2613_v35 = vrot.slane %v7115_v58, 6  ;;  %v7116_v59 = vcombine.low %v5113_v20, %v5122_v33  ;;  %v2604_v15 = vrot.slane %v2602_v27, 4  ;;  %v2611_v17 = vor.u32 %v2610_v13, %v2609_v57  ;;  %v7120_v16 = vld [vmem:[#allocation29_spill] sm:$0xff] }
  0xa3   : > { %4294 = vmatmul.mubr.msk.bf16.gmra.mrb[8].mxu1 %vm666_vm3, %v7114_v21  ;;  %v2607_v32 = vor.u32 %v2606_v7, %v2605_v2  ;;  %v2614_v49 = vrot.slane %v7117_v4, 7  ;;  %v7119_v30 = vshrl.u32 %v7118_v22, 16  ;;  %v5794_v50 = vsel %vm5699_vm12, %v2599_v5, %v2602_v27  ;;  %v7122_v21 = vld [vmem:[#allocation31_spill] sm:$0xff]  ;;  %v7123_v5 = vld [vmem:[#allocation34_spill] sm:$0xff]  ;;  %v7124_v22 = vld [vmem:[#allocation33_spill] sm:$0xff] }
  0xa4   : > { %4297 = vmatprep.mubr.msk.bf16.mxu1 %vm666_vm3, %v7116_v59  ;;  %v2619_v2 = vrot.slane %v7120_v16, 7  ;;  %v2622_v20 = vrot.slane %v7121_v28, 6  ;;  %v2612_v57 = vrot.slane %v2611_v17, 4  ;;  %v2623_v58 = vrot.slane %v7122_v21, 7  ;;  %v7151_v29 = vld [vmem:[#allocation49_spill] sm:$0xff] }
  0xa5   : > { %v2618_v63 = vrot.slane %v7119_v30, 6  ;;  %v5802_v33 = vsel %vm5699_vm12, %v2604_v15, %v2607_v32  ;;  %v2615_v13 = vor.u32 %v2614_v49, %v2613_v35  ;;  %v2626_v4 = vrot.slane %v7123_v5, 6  ;;  %v7125_v32 = vld [vmem:[#allocation32_spill] sm:$0xff]  ;;  %v7127_v49 = vld [vmem:[#allocation35_spill] sm:$0xff] }
  0xa6   : > { %v3981_v59 = vcombine.low %v5794_v50, %v5802_v33  ;;  %v2627_v30 = vrot.slane %v7124_v22, 7  ;;  %v2624_v7 = vor.u32 %v2623_v58, %v2622_v20  ;;  %v7126_v15 = vshrl.u32 %v7125_v32, 16  ;;  %v7158_v33 = vld [vmem:[#allocation54_spill] sm:$0xff] }
  0xa7   : > { %v2620_v27 = vor.u32 %v2619_v2, %v2618_v63  ;;  %v5811_v16 = vsel %vm5699_vm12, %v2612_v57, %v2615_v13  ;;  %v2617_v28 = vrot.slane %v2615_v13, 4  ;;  %v2632_v21 = vrot.slane %v7127_v49, 7  ;;  %v7128_v63 = vld [vmem:[#allocation36_spill] sm:$0xff]  ;;  %v7130_v13 = vld [vmem:[#allocation37_spill] sm:$0xff] }
  0xa8   : > { %v2631_v17 = vrot.slane %v7126_v15, 6  ;;  %v2628_v35 = vor.u32 %v2627_v30, %v2626_v4  ;;  %v2635_v2 = vrot.slane %v7128_v63, 6  ;;  %v7129_v5 = vcombine.low %v5672_v43, %v5689_v0  ;;  %v7131_v4 = vld [vmem:[#allocation40_spill] sm:$0xff]  ;;  %v7133_v15 = vld [vmem:[#allocation39_spill] sm:$0xff]  ;;  %v7137_v63 = vld [vmem:[#allocation41_spill] sm:$0xff] }
  0xa9   : > { %v5825_v57 = vsel %vm5699_vm12, %v2617_v28, %v2620_v27  ;;  %v2625_v20 = vrot.slane %v2624_v7, 4  ;;  %v2636_v58 = vrot.slane %v7130_v13, 7  ;;  %v2639_v22 = vrot.slane %v7131_v4, 6 }
  0xaa   : > { %4416 = vmatmul.mubr.msk.bf16.gmra.mrb[28].mxu0 %vm666_vm3, %v7129_v5  ;;  %v7132_v30 = vcombine.low %v5160_v14, %v5169_v55  ;;  %v3982_v43 = vcombine.low %v5811_v16, %v5825_v57  ;;  %v2630_v0 = vrot.slane %v2628_v35, 4  ;;  %v2633_v32 = vor.u32 %v2632_v21, %v2631_v17  ;;  %v7135_v55 = vld [vmem:[#allocation38_spill] sm:$0xff]  ;;  %v7160_v57 = vld [vmem:[#allocation56_spill] sm:$0xff] }
  0xab   : > { %4421 = vmatprep.mubr.msk.bf16.mxu0 %vm666_vm3, %v3978_v26  ;;  %v2640_v27 = vrot.slane %v7133_v15, 7  ;;  %v7134_v7 = vcombine.low %v5208_v47, %v5216_v52  ;;  %v5843_v28 = vsel %vm5699_vm12, %v2625_v20, %v2628_v35  ;;  %v2637_v14 = vor.u32 %v2636_v58, %v2635_v2  ;;  %v7138_v52 = vld [vmem:[#allocation42_spill] sm:$0xff]  ;;  %v7139_v58 = vld [vmem:[#allocation43_spill] sm:$0xff]  ;;  %v7140_v15 = vld [vmem:[#allocation45_spill] sm:$0xff] }
  0xac   : > { %4298 = vmatmul.mubr.msk.bf16.gmra.mrb[12].mxu1 %vm666_vm3, %v7132_v30  ;;  %v7136_v49 = vshrl.u32 %v7135_v55, 16  ;;  %v2645_v5 = vrot.slane %v7137_v63, 7  ;;  %v5850_v17 = vsel %vm5699_vm12, %v2630_v0, %v2633_v32  ;;  %v2648_v13 = vrot.slane %v7138_v52, 6  ;;  %v7141_v55 = vld [vmem:[#allocation44_spill] sm:$0xff]  ;;  %v7143_v63 = vld [vmem:[#allocation46_spill] sm:$0xff] }
  0xad   : > { %4301 = vmatprep.mubr.msk.bf16.mxu1 %vm666_vm3, %v7134_v7  ;;  %v2641_v21 = vor.u32 %v2640_v27, %v2639_v22  ;;  %v2638_v2 = vrot.slane %v2637_v14, 4  ;;  %v2649_v4 = vrot.slane %v7139_v58, 7  ;;  %v2652_v7 = vrot.slane %v7140_v15, 6 }
  0xae   : > { %v2644_v26 = vrot.slane %v7136_v49, 6  ;;  %v2653_v0 = vrot.slane %v7141_v55, 7  ;;  %v7142_v22 = vshrl.u32 %v5181_v54, 16  ;;  %v2658_v52 = vrot.slane %v7143_v63, 7  ;;  %v7148_v55 = vld [vmem:[#allocation47_spill] sm:$0xff] }
  0xaf   : > { %v2643_v30 = vrot.slane %v2641_v21, 4  ;;  %v5864_v27 = vsel %vm5699_vm12, %v2638_v2, %v2641_v21  ;;  %v2650_v49 = vor.u32 %v2649_v4, %v2648_v13  ;;  %v2666_v6 = vrot.slane %v7151_v29, 7  ;;  %v5937_v21 = vld [vmem:[%s4822_s25 + $0x14] sm:$0x7] }
  0xb0   : > { %v2646_v20 = vor.u32 %v2645_v5, %v2644_v26  ;;  %v2657_v32 = vrot.slane %v7142_v22, 6  ;;  %v2654_v26 = vor.u32 %v2653_v0, %v2652_v7  ;;  %v5872_v5 = vld [vmem:[%s4822_s25] sm:$0xf]  ;;  %v6970_v7 = vshrl.u32 %v5231_v48, 16 }
  0xb1   : > { %v3839_v54 = vrot.slane %v5872_v5, 9  ;;  %v2651_v13 = vrot.slane %v2650_v49, 4  ;;  %v2661_v0 = vrot.slane %v7148_v55, 6  ;;  %v1202_v63 = vrot.slane %v5937_v21, 5 }
  0xb2   : > { %v5869_v14 = vsel %vm5699_vm12, %v2643_v30, %v2646_v20  ;;  %4422 = vmatmul.mubr.msk.bf16.vlgmr.msra.gmra.mrb[0].mxu0 %vm666_vm3, %v3979_v9  ;;  %v2659_v2 = vor.u32 %v2658_v52, %v2657_v32  ;;  %v5886_v20 = vld [vmem:[%s4822_s25 + $0x4] sm:$0xf]  ;;  %v7146_v30 = vcombine.low %v5250_v56, %v5263_v3  ;;  %v2656_v39 = vrot.slane %v2654_v26, 4  ;;  %v5895_v9 = vld [vmem:[%s4822_s25 + $0x8] sm:$0x7]  ;;  %v7149_v32 = vld [vmem:[#allocation48_spill] sm:$0xff] }
  0xb3   : > { %v1192_v4 = vrot.slane %v5886_v20, 5  ;;  %4454 = vmatpush3.bf16.msra.mxu0 %v7147_v61  ;;  %v1195_v15 = vrot.slane %v5895_v9, 5  ;;  %4425 = vmatprep.mubr.msk.bf16.mxu0 %vm666_vm3, %v3980_v19  ;;  %v5910_v56 = vsel %vm5699_vm12, %v2651_v13, %v2654_v26  ;;  %v2662_v49 = vrot.slane %v7149_v32, 7 }
  0xb4   : > { %4302 = vmatmul.mubr.msk.bf16.gmra.mrb[16].mxu1 %vm666_vm3, %v7146_v30  ;;  %v5919_v42 = vsel %vm5699_vm12, %v2656_v39, %v2659_v2  ;;  %v2670_v19 = vrot.slane %v6970_v7, 6  ;;  %v7153_v30 = vld [vmem:[#allocation93_spill] sm:$0xff]  ;;  %v7154_v39 = vld [vmem:[#allocation94_spill] sm:$0xff]  ;;  %v7155_v2 = vld [vmem:[#allocation52_spill] sm:$0xff]  ;;  %v7159_v46 = vcombine.low %v5393_v12, %v5400_v23  ;;  %v7219_v58 = vshrl.u32 %v5231_v48, 16 }
  0xb5   : > { %4305 = vmatprep.mubr.msk.bf16.mxu1 %vm666_vm3, %v3816_v36  ;;  %v5914_v3 = vsel %vm5881_vm15, %v3839_v54, %v1192_v4  ;;  %v1194_v22 = vrot.slane %v1192_v4, 4  ;;  %v2665_v36 = vrot.slane %v7150_v24, 6  ;;  %v2663_v26 = vor.u32 %v2662_v49, %v2661_v0  ;;  %v7152_v54 = vld [vmem:[#allocation51_spill] sm:$0xff]  ;;  %v5991_v23 = vld [vmem:[%s4822_s25 + $0x1c] sm:$0xf] }
  0xb6   : > { %v2671_v13 = vrot.slane %v7152_v54, 7  ;;  %v3840_v61 = vrot.slane %v7153_v30, 9  ;;  %v1199_v47 = vrot.slane %v7154_v39, 5 }
  0xb7   : > { %v5929_v52 = vsel %vm5881_vm15, %v1194_v22, %v1195_v15  ;;  %v2667_v4 = vor.u32 %v2666_v6, %v2665_v36  ;;  %v2664_v1 = vrot.slane %v2663_v26, 4  ;;  %v1747_v15 = vshrl.u32 %v5270_v25, 16  ;;  %v7156_v26 = vld [vmem:[#allocation53_spill] sm:$0xff] }
  0xb8   : > { %v2672_v7 = vor.u32 %v2671_v13, %v2670_v19  ;;  %v5943_v0 = vsel %vm5881_vm15, %v3840_v61, %v1199_v47  ;;  %v1201_v49 = vrot.slane %v1199_v47, 4  ;;  %v2674_v36 = vrot.slane %v7155_v2, 6  ;;  %v7157_v13 = vld [vmem:[#allocation55_spill] sm:$0xff]  ;;  %v5987_v61 = vld [vmem:[%s4822_s25 + $0x18] sm:$0xf] }
  0xb9   : > { %v2669_v22 = vrot.slane %v2667_v4, 4  ;;  %v5952_v6 = vsel %vm5699_vm12, %v2664_v1, %v2667_v4  ;;  %v1749_v19 = vrot.slane %v1747_v15, 5  ;;  %v2675_v25 = vrot.slane %v7156_v26, 7 }
  0xba   : > { %4426 = vmatmul.mubr.msk.bf16.gmra.mrb[4].mxu0 %vm666_vm3, %v3981_v59  ;;  %v2678_v35 = vrot.slane %v7157_v13, 6  ;;  %v5970_v50 = vsel %vm5881_vm15, %v1201_v49, %v1202_v63  ;;  %v2679_v59 = vrot.slane %v7158_v33, 7  ;;  %v2683_v62 = vrot.slane %v1747_v15, 6  ;;  %v5995_v49 = vld [vmem:[%s4822_s25 + $0x20] sm:$0x7]  ;;  %v7166_v13 = vld [vmem:[#allocation60_spill] sm:$0xff] }
  0xbb   : > { %4429 = vmatprep.mubr.msk.bf16.mxu0 %vm666_vm3, %v3982_v43  ;;  %v5966_v1 = vsel %vm5699_vm12, %v2669_v22, %v2672_v7  ;;  %v7161_v43 = vrot.slane %v7160_v57, 6  ;;  %v2676_v7 = vor.u32 %v2675_v25, %v2674_v36  ;;  %v2684_v4 = vrot.slane %v7160_v57, 7 }
  0xbc   : > { %4306 = vmatmul.mubr.msk.bf16.gmra.mrb[20].mxu1 %vm666_vm3, %v3817_v11  ;;  %v2680_v63 = vor.u32 %v2679_v59, %v2678_v35  ;;  %v3841_v12 = vrot.slane %v5987_v61, 9  ;;  %v1206_v15 = vrot.slane %v5991_v23, 5 }
  0xbd   : > { %4309 = vmatprep.mubr.msk.bf16.mxu1 %vm666_vm3, %v7159_v46  ;;  %v5983_v47 = vor.u32 %v7161_v43, %v1749_v19  ;;  %v2677_v22 = vrot.slane %v2676_v7, 4  ;;  %v1209_v46 = vrot.slane %v5995_v49, 5  ;;  %v7163_v43 = vld [vmem:[#allocation58_spill] sm:$0xff]  ;;  %v2685_v25 = vor.u32 %v2684_v4, %v2683_v62  ;;  %v7164_v7 = vld [vmem:[#allocation59_spill] sm:$0xff] }
  0xbe   : > { %v2687_v36 = vrot.slane %v7163_v43, 6  ;;  %v2682_v35 = vrot.slane %v2680_v63, 4  ;;  %v6002_v59 = vsel %vm5881_vm15, %v3841_v12, %v1206_v15  ;;  %v1208_v57 = vrot.slane %v1206_v15, 4  ;;  %v7168_v15 = vld [vmem:[#allocation62_spill] sm:$0xff] }
  0xbf   : > { %7162 = vst [vmem:[#allocation3_spill] sm:$0xff] %v5983_v47  ;;  %v6006_v16 = vsel %vm5699_vm12, %v2677_v22, %v2680_v63  ;;  %v2688_v11 = vrot.slane %v7164_v7, 7  ;;  %v7165_v47 = vld [vmem:[#allocation61_spill] sm:$0xff]  ;;  %v2692_v19 = vrot.slane %v7166_v13, 7  ;;  %v7167_v63 = vshrl.u32 %v5318_v41, 16  ;;  %v7175_v13 = vld [vmem:[#allocation68_spill] sm:$0xff] }
  0xc0   : > { %v2691_v33 = vrot.slane %v7165_v47, 6  ;;  %v6013_v62 = vsel %vm5699_vm12, %v2682_v35, %v2685_v25  ;;  %v6017_v4 = vsel %vm5881_vm15, %v1208_v57, %v1209_v46  ;;  %v2697_v22 = vrot.slane %v7168_v15, 7  ;;  %v6091_v41 = vld [vmem:[%s4822_s25 + $0x38] sm:$0x7] }
  0xc1   : > { %v2696_v12 = vrot.slane %v7167_v63, 6  ;;  %v7169_v47 = vcombine.low %v5843_v28, %v5850_v17  ;;  %v2689_v25 = vor.u32 %v2688_v11, %v2687_v36  ;;  %v7170_v46 = vcombine.low %v5436_v51, %v5443_v45  ;;  %v6039_v17 = vld [vmem:[%s4822_s25 + $0x24] sm:$0xf]  ;;  %v6043_v63 = vld [vmem:[%s4822_s25 + $0x28] sm:$0xf]  ;;  %v7173_v36 = vld [vmem:[#allocation65_spill] sm:$0xff] }
  0xc2   : > { %v2693_v7 = vor.u32 %v2692_v19, %v2691_v33  ;;  %v7171_v57 = vcombine.low %v5864_v27, %v5869_v14  ;;  %v1213_v11 = vrot.slane %v6043_v63, 5  ;;  %v6047_v33 = vld [vmem:[%s4822_s25 + $0x2c] sm:$0x7]  ;;  %v7172_v51 = vcombine.low %v5478_v34, %v5484_v60 }
  0xc3   : > { %4430 = vmatmul.mubr.msk.bf16.gmra.mrb[8].mxu0 %vm666_vm3, %v7169_v47  ;;  %v2698_v28 = vor.u32 %v2697_v22, %v2696_v12  ;;  %v3842_v47 = vrot.slane %v6039_v17, 9  ;;  %v1216_v45 = vrot.slane %v6047_v33, 5  ;;  %v2690_v27 = vrot.slane %v2689_v25, 4  ;;  %v7176_v25 = vld [vmem:[#allocation67_spill] sm:$0xff] }
  0xc4   : > { %4310 = vmatmul.mubr.msk.bf16.gmra.mrb[24].mxu1 %vm666_vm3, %v7170_v46  ;;  %4433 = vmatprep.mubr.msk.bf16.mxu0 %vm666_vm3, %v7171_v57  ;;  %v2695_v14 = vrot.slane %v2693_v7, 4  ;;  %v6972_v19 = vshrl.u32 %v5364_v40, 16  ;;  %v2700_v12 = vrot.slane %v7173_v36, 6  ;;  %v1215_v46 = vrot.slane %v1213_v11, 4  ;;  %v7174_v57 = vld [vmem:[#allocation66_spill] sm:$0xff]  ;;  %v7179_v36 = vld [vmem:[#allocation71_spill] sm:$0xff] }
  0xc5   : > { %4313 = vmatprep.mubr.msk.bf16.mxu1 %vm666_vm3, %v7172_v51  ;;  %v6058_v22 = vsel %vm5881_vm15, %v3842_v47, %v1213_v11  ;;  %v2701_v35 = vrot.slane %v7174_v57, 7  ;;  %v2704_v15 = vrot.slane %v7175_v13, 6  ;;  %v6064_v60 = vsel %vm5699_vm12, %v2690_v27, %v2693_v7  ;;  %v7177_v7 = vld [vmem:[#allocation69_spill] sm:$0xff]  ;;  %v6087_v40 = vld [vmem:[%s4822_s25 + $0x34] sm:$0xf] }
  0xc6   : > { %v6068_v34 = vsel %vm5699_vm12, %v2695_v14, %v2698_v28  ;;  %v2705_v51 = vrot.slane %v7176_v25, 7  ;;  %v2709_v47 = vrot.slane %v6972_v19, 6  ;;  %v6077_v13 = vsel %vm5881_vm15, %v1215_v46, %v1216_v45  ;;  %v6083_v14 = vld [vmem:[%s4822_s25 + $0x30] sm:$0xf]  ;;  %v7184_v45 = vld [vmem:[#allocation73_spill] sm:$0xff] }
  0xc7   : > { %v3988_v11 = vcombine.low %v6064_v60, %v6068_v34  ;;  %v2702_v57 = vor.u32 %v2701_v35, %v2700_v12  ;;  %v2710_v27 = vrot.slane %v7177_v7, 7  ;;  %v3843_v25 = vrot.slane %v6083_v14, 9 }
  0xc8   : > { %v2706_v28 = vor.u32 %v2705_v51, %v2704_v15  ;;  %v1220_v19 = vrot.slane %v6087_v40, 5  ;;  %v1223_v35 = vrot.slane %v6091_v41, 5  ;;  %v7178_v12 = vcombine.low %v5910_v56, %v5919_v42  ;;  %v7182_v42 = vld [vmem:[#allocation72_spill] sm:$0xff] }
  0xc9   : > { %v2703_v60 = vrot.slane %v2702_v57, 4  ;;  %v2711_v34 = vor.u32 %v2710_v27, %v2709_v47  ;;  %v2713_v57 = vrot.slane %v7179_v36, 6  ;;  %v7180_v47 = vcombine.low %v5520_v44, %v5527_v38 }
  0xca   : > { %v2708_v15 = vrot.slane %v2706_v28, 4  ;;  %v6101_v46 = vsel %vm5881_vm15, %v3843_v25, %v1220_v19  ;;  %v1222_v51 = vrot.slane %v1220_v19, 4  ;;  %v7181_v27 = vcombine.low %v5952_v6, %v5966_v1  ;;  %v7183_v25 = vld [vmem:[#allocation74_spill] sm:$0xff] }
  0xcb   : > { %4434 = vmatmul.mubr.msk.bf16.gmra.mrb[12].mxu0 %vm666_vm3, %v7178_v12  ;;  %v6114_v56 = vsel %vm5699_vm12, %v2703_v60, %v2706_v28  ;;  %v2714_v19 = vrot.slane %v7182_v42, 7  ;;  %v2717_v12 = vrot.slane %v7183_v25, 6  ;;  %v2718_v38 = vrot.slane %v7184_v45, 7  ;;  %v7191_v42 = vld [vmem:[#allocation79_spill] sm:$0xff] }
  0xcc   : > { %4314 = vmatmul.mubr.msk.bf16.gmra.mrb[28].mxu1 %vm666_vm3, %v7180_v47  ;;  %4437 = vmatprep.mubr.msk.bf16.mxu0 %vm666_vm3, %v7181_v27  ;;  %v7185_v44 = vcombine.low %v5914_v3, %v5929_v52  ;;  %v6125_v6 = vsel %vm5699_vm12, %v2708_v15, %v2711_v34  ;;  %v6129_v1 = vsel %vm5881_vm15, %v1222_v51, %v1223_v35  ;;  %v7186_v28 = vshrl.u32 %v5408_v18, 16  ;;  %v7187_v47 = vld [vmem:[#allocation75_spill] sm:$0xff]  ;;  %v6139_v34 = vld [vmem:[%s4822_s25 + $0x3c] sm:$0xf]  ;;  %v6143_v35 = vld [vmem:[%s4822_s25 + $0x40] sm:$0xf] }
  0xcd   : > { %v2723_v27 = vrot.slane %v7187_v47, 7  ;;  %v2715_v52 = vor.u32 %v2714_v19, %v2713_v57  ;;  %v3844_v15 = vrot.slane %v6139_v34, 9  ;;  %v1227_v51 = vrot.slane %v6143_v35, 5  ;;  %v7188_v3 = vld [vmem:[#allocation77_spill] sm:$0xff] }
  0xce   : > { %4319 = vmatprep.mubr.msk.bf16.mxu1 %vm666_vm3, %v7185_v44  ;;  %v2722_v60 = vrot.slane %v7186_v28, 6  ;;  %v2719_v44 = vor.u32 %v2718_v38, %v2717_v12  ;;  %v6147_v28 = vld [vmem:[%s4822_s25 + $0x44] sm:$0x7]  ;;  %v2726_v57 = vrot.slane %v7188_v3, 6  ;;  %v2731_v43 = vrot.slane %v7191_v42, 7 }
  0xcf   : > { %v1230_v47 = vrot.slane %v6147_v28, 5  ;;  %v2716_v18 = vrot.slane %v2715_v52, 4  ;;  %v6154_v19 = vsel %vm5881_vm15, %v3844_v15, %v1227_v51  ;;  %v1229_v12 = vrot.slane %v1227_v51, 4  ;;  %v7189_v38 = vld [vmem:[#allocation78_spill] sm:$0xff] }
  0xd0   : > { %v2724_v25 = vor.u32 %v2723_v27, %v2722_v60  ;;  %v2721_v45 = vrot.slane %v2719_v44, 4  ;;  %v2727_v60 = vrot.slane %v7189_v38, 7  ;;  %v7190_v27 = vld [vmem:[#allocation80_spill] sm:$0xff]  ;;  %v7192_v3 = vshrl.u32 %v5450_v37, 16 }
  0xd1   : > { %v2730_v36 = vrot.slane %v7190_v27, 6  ;;  %v2720_v7 = vsel %vm5699_vm12, %v2716_v18, %v2719_v44  ;;  %v7193_v15 = vcombine.low %v6006_v16, %v6013_v62  ;;  %v6171_v27 = vsel %vm5881_vm15, %v1229_v12, %v1230_v47  ;;  %v7194_v44 = vld [vmem:[#allocation81_spill] sm:$0xff]  ;;  %v6186_v47 = vld [vmem:[%s4822_s25 + $0x4c] sm:$0xf] }
  0xd2   : > { %v2725_v52 = vsel %vm5699_vm12, %v2721_v45, %v2724_v25  ;;  %v2735_v26 = vrot.slane %v7192_v3, 6  ;;  %v2728_v18 = vor.u32 %v2727_v60, %v2726_v57  ;;  %v2736_v38 = vrot.slane %v7194_v44, 7  ;;  %v6195_v57 = vld [vmem:[%s4822_s25 + $0x50] sm:$0x7] }
  0xd3   : > { %4438 = vmatmul.mubr.msk.bf16.gmra.mrb[16].mxu0 %vm666_vm3, %v7193_v15  ;;  %v3990_v51 = vcombine.low %v2720_v7, %v2725_v52  ;;  %v7195_v45 = vcombine.low %v5943_v0, %v5970_v50  ;;  %v2732_v62 = vor.u32 %v2731_v43, %v2730_v36  ;;  %v6182_v7 = vld [vmem:[%s4822_s25 + $0x48] sm:$0xf]  ;;  %v1234_v3 = vrot.slane %v6186_v47, 5  ;;  %v7197_v52 = vld [vmem:[#allocation82_spill] sm:$0xff] }
  0xd4   : > { %4441 = vmatprep.mubr.msk.bf16.mxu0 %vm666_vm3, %v3988_v11  ;;  %v3845_v25 = vrot.slane %v6182_v7, 9  ;;  %v7196_v0 = vcombine.low %v6002_v59, %v6017_v4  ;;  %v2729_v50 = vrot.slane %v2728_v18, 4  ;;  %v2737_v11 = vor.u32 %v2736_v38, %v2735_v26  ;;  %v7198_v26 = vld [vmem:[#allocation83_spill] sm:$0xff]  ;;  %v7199_v38 = vld [vmem:[#allocation85_spill] sm:$0xff] }
  0xd5   : > { %4320 = vmatmul.mubr.msk.bf16.vlgmr.msra.gmra.mrb[0].mxu1 %vm666_vm3, %v7195_v45  ;;  %v1237_v43 = vrot.slane %v6195_v57, 5  ;;  %v6976_v36 = vshrl.u32 %v5492_v53, 16  ;;  %v2734_v12 = vrot.slane %v2732_v62, 4  ;;  %v2739_v15 = vrot.slane %v7197_v52, 6  ;;  %v7200_v45 = vld [vmem:[#allocation84_spill] sm:$0xff]  ;;  %v7201_v52 = vld [vmem:[#allocation86_spill] sm:$0xff] }
  0xd6   : > { %4488 = vmatpush3.bf16.msra.mxu1 %v5679_v31  ;;  %4323 = vmatprep.mubr.msk.bf16.mxu1 %vm666_vm3, %v7196_v0  ;;  %v6201_v60 = vsel %vm5881_vm15, %v3845_v25, %v1234_v3  ;;  %v1236_v31 = vrot.slane %v1234_v3, 4  ;;  %v2733_v59 = vsel %vm5699_vm12, %v2729_v50, %v2732_v62  ;;  %v2740_v4 = vrot.slane %v7198_v26, 7 }
  0xd7   : > { %v2743_v18 = vrot.slane %v7199_v38, 6  ;;  %v2744_v0 = vrot.slane %v7200_v45, 7  ;;  %v2738_v16 = vsel %vm5699_vm12, %v2734_v12, %v2737_v11  ;;  %v2748_v3 = vrot.slane %v6976_v36, 6  ;;  %v6221_v45 = vld [vmem:[%s4822_s25 + $0x54] sm:$0xf] }
  0xd8   : > { %v6213_v25 = vsel %vm5881_vm15, %v1236_v31, %v1237_v43  ;;  %v2749_v44 = vrot.slane %v7201_v52, 7  ;;  %v3991_v62 = vcombine.low %v2733_v59, %v2738_v16  ;;  %v2741_v26 = vor.u32 %v2740_v4, %v2739_v15  ;;  %v6225_v12 = vld [vmem:[%s4822_s25 + $0x58] sm:$0xf]  ;;  %v6229_v31 = vld [vmem:[%s4822_s25 + $0x5c] sm:$0x7]  ;;  %v7203_v4 = vld [vmem:[#allocation88_spill] sm:$0xff] }
  0xd9   : > { %v2745_v38 = vor.u32 %v2744_v0, %v2743_v18  ;;  %v3846_v11 = vrot.slane %v6221_v45, 9  ;;  %v1241_v43 = vrot.slane %v6225_v12, 5  ;;  %v1244_v36 = vrot.slane %v6229_v31, 5 }
  0xda   : > { %v2750_v37 = vor.u32 %v2749_v44, %v2748_v3  ;;  %v7202_v16 = vcombine.low %v6114_v56, %v6125_v6  ;;  %v2742_v15 = vrot.slane %v2741_v26, 4  ;;  %v2752_v18 = vrot.slane %v7203_v4, 6  ;;  %v7205_v6 = vld [vmem:[#allocation89_spill] sm:$0xff]  ;;  %v6268_v4 = vld [vmem:[%s4822_s25 + $0x60] sm:$0xf] }
  0xdb   : > { %v2747_v59 = vrot.slane %v2745_v38, 4  ;;  %v7204_v0 = vcombine.low %v6058_v22, %v6077_v13  ;;  %v6245_v3 = vsel %vm5881_vm15, %v3846_v11, %v1241_v43  ;;  %v1243_v56 = vrot.slane %v1241_v43, 4 }
  0xdc   : > { %4442 = vmatmul.mubr.msk.bf16.gmra.mrb[20].mxu0 %vm666_vm3, %v7202_v16  ;;  %v2753_v26 = vrot.slane %v7205_v6, 7  ;;  %v7206_v16 = vld [vmem:[#allocation91_spill] sm:$0xff]  ;;  %v7207_v44 = vcombine.low %v6101_v46, %v6129_v1  ;;  %v2746_v13 = vsel %vm5699_vm12, %v2742_v15, %v2745_v38  ;;  %v7209_v43 = vshrl.u32 %v5534_v10, 16  ;;  %v7210_v1 = vld [vmem:[#allocation92_spill] sm:$0xff] }
  0xdd   : > { %4324 = vmatmul.mubr.msk.bf16.gmra.mrb[4].mxu1 %vm666_vm3, %v7204_v0  ;;  %4445 = vmatprep.mubr.msk.bf16.mxu0 %vm666_vm3, %v3990_v51  ;;  %v2756_v50 = vrot.slane %v7206_v16, 6  ;;  %v2751_v22 = vsel %vm5699_vm12, %v2747_v59, %v2750_v37  ;;  %v7208_v51 = vld [vmem:[#allocation90_spill] sm:$0xff]  ;;  %v6262_v16 = vsel %vm5881_vm15, %v1243_v56, %v1244_v36  ;;  %v3847_v37 = vrot.slane %v6268_v4, 9  ;;  %v6276_v36 = vld [vmem:[%s4822_s25 + $0x68] sm:$0x7] }
  0xde   : > { %4327 = vmatprep.mubr.msk.bf16.mxu1 %vm666_vm3, %v7207_v44  ;;  %v2757_v11 = vrot.slane %v7208_v51, 7  ;;  %v2761_v0 = vrot.slane %v7209_v43, 6  ;;  %v3992_v6 = vcombine.low %v2746_v13, %v2751_v22  ;;  %v2754_v46 = vor.u32 %v2753_v26, %v2752_v18  ;;  %v6272_v59 = vld [vmem:[%s4822_s25 + $0x64] sm:$0xf] }
  0xdf   : > { %v2762_v44 = vrot.slane %v7210_v1, 7  ;;  %v1248_v43 = vrot.slane %v6272_v59, 5  ;;  %v1251_v18 = vrot.slane %v6276_v36, 5  ;;  %v3071_v38 = vrot.slane %v5895_v9, 7  ;;  %v6302_v1 = vld [vmem:[%s4822_s25 + $0x70] sm:$0xf] }
  0xe0   : > { %v2758_v15 = vor.u32 %v2757_v11, %v2756_v50  ;;  %v2755_v13 = vrot.slane %v2754_v46, 4 }
  0xe1   : > { %v2763_v22 = vor.u32 %v2762_v44, %v2761_v0  ;;  %v6281_v50 = vsel %vm5881_vm15, %v3847_v37, %v1248_v43  ;;  %v1250_v26 = vrot.slane %v1248_v43, 4  ;;  %v4011_v0 = vrot.slane %v5872_v5, 11 }
  0xe2   : > { %v2760_v56 = vrot.slane %v2758_v15, 4  ;;  %v2759_v11 = vsel %vm5699_vm12, %v2755_v13, %v2758_v15  ;;  %v3068_v44 = vrot.slane %v5886_v20, 7  ;;  %v6298_v15 = vld [vmem:[%s4822_s25 + $0x6c] sm:$0xf]  ;;  %v1255_v5 = vrot.slane %v6302_v1, 5 }
  0xe3   : > { %v1252_v43 = vsel %vm5881_vm15, %v1250_v26, %v1251_v18  ;;  %v3848_v13 = vrot.slane %v6298_v15, 9  ;;  %v7213_v20 = vcombine.low %v6154_v19, %v6171_v27  ;;  %v7214_v18 = vcombine.low %v6201_v60, %v6213_v25  ;;  %v6331_v25 = vld [vmem:[%s4822_s25 + $0x78] sm:$0xf] }
  0xe4   : > { %4446 = vmatmul.mubr.msk.bf16.gmra.mrb[24].mxu0 %vm666_vm3, %v3991_v62  ;;  %v2764_v37 = vsel %vm5699_vm12, %v2760_v56, %v2763_v22  ;;  %v3865_v9 = vcombine.low %v6281_v50, %v1252_v43  ;;  %v3069_v62 = vsel %vm6285_vm2, %v4011_v0, %v3068_v44  ;;  %v3070_v22 = vrot.slane %v3068_v44, 4  ;;  %v6339_v43 = vld [vmem:[%s4822_s25 + $0x7c] sm:$0xf] }
  0xe5   : > { %4328 = vmatmul.mubr.msk.bf16.gmra.mrb[8].mxu1 %vm666_vm3, %v7213_v20  ;;  %4449 = vmatprep.mubr.msk.bf16.mxu0 %vm666_vm3, %v3992_v6  ;;  %v3993_v8 = vcombine.low %v2759_v11, %v2764_v37  ;;  %v6319_v19 = vsel %vm5881_vm15, %v3848_v13, %v1255_v5  ;;  %v1257_v27 = vrot.slane %v1255_v5, 4  ;;  %v6322_v6 = vld [vmem:[%s4822_s25 + $0x74] sm:$0x7]  ;;  %v4012_v50 = vrot.slane %v7153_v30, 11 }
  0xe6   : > { %4331 = vmatprep.mubr.msk.bf16.mxu1 %vm666_vm3, %v7214_v18  ;;  %v1258_v56 = vrot.slane %v6322_v6, 5  ;;  %v3072_v26 = vsel %vm6285_vm2, %v3070_v22, %v3071_v38  ;;  %v3075_v11 = vrot.slane %v7154_v39, 7  ;;  %v3078_v60 = vrot.slane %v5937_v21, 7  ;;  %v6343_v38 = vld [vmem:[%s4822_s25 + $0x80] sm:$0x7] }
  0xe7   : > { %v3849_v0 = vrot.slane %v6331_v25, 9  ;;  %v4029_v44 = vcombine.low %v3069_v62, %v3072_v26  ;;  %v1262_v30 = vrot.slane %v6339_v43, 5  ;;  %v1265_v21 = vrot.slane %v6343_v38, 5  ;;  %v6360_v26 = vld [vmem:[%s4822_s25 + $0x84] sm:$0xf] }
  0xe8   : > { %v6336_v37 = vsel %vm5881_vm15, %v1257_v27, %v1258_v56  ;;  %v3076_v13 = vsel %vm6285_vm2, %v4012_v50, %v3075_v11  ;;  %v3077_v5 = vrot.slane %v3075_v11, 4  ;;  %v4013_v20 = vrot.slane %v5987_v61, 11  ;;  %v6364_v50 = vld [vmem:[%s4822_s25 + $0x88] sm:$0xf]  ;;  %v6368_v11 = vld [vmem:[%s4822_s25 + $0x8c] sm:$0x7] }
  0xe9   : > { %v3866_v39 = vcombine.low %v6319_v19, %v6336_v37  ;;  %v6353_v62 = vsel %vm5881_vm15, %v3849_v0, %v1262_v30  ;;  %v1264_v22 = vrot.slane %v1262_v30, 4  ;;  %v3082_v18 = vrot.slane %v5991_v23, 7 }
  0xea   : > { %v3085_v27 = vrot.slane %v5995_v49, 7  ;;  %v3079_v56 = vsel %vm6285_vm2, %v3077_v5, %v3078_v60  ;;  %v3850_v19 = vrot.slane %v6360_v26, 9  ;;  %v1269_v61 = vrot.slane %v6364_v50, 5 }
  0xeb   : > { %v1272_v0 = vrot.slane %v6368_v11, 5  ;;  %v4030_v23 = vcombine.low %v3076_v13, %v3079_v56  ;;  %v1266_v49 = vsel %vm5881_vm15, %v1264_v22, %v1265_v21  ;;  %v3083_v60 = vsel %vm6285_vm2, %v4013_v20, %v3082_v18  ;;  %v6393_v22 = vld [vmem:[%s4822_s25 + $0x90] sm:$0xf] }
  0xec   : > { %4450 = vmatmul.mubr.msk.bf16.gmra.mrb[28].mxu0 %vm666_vm3, %v3993_v8  ;;  %v3084_v37 = vrot.slane %v3082_v18, 4  ;;  %v7215_v30 = vcombine.low %v6245_v3, %v6262_v16  ;;  %v3867_v5 = vcombine.low %v6353_v62, %v1266_v49  ;;  %v6384_v8 = vsel %vm5881_vm15, %v3850_v19, %v1269_v61 }
  0xed   : > { %4455 = vmatprep.mubr.msk.bf16.mxu0 %vm666_vm3, %v4029_v44  ;;  %v1271_v21 = vrot.slane %v1269_v61, 4  ;;  %v4014_v13 = vrot.slane %v6039_v17, 11  ;;  %v3089_v3 = vrot.slane %v6043_v63, 7  ;;  %v3092_v16 = vrot.slane %v6047_v33, 7  ;;  %v6401_v17 = vld [vmem:[%s4822_s25 + $0x94] sm:$0xf] }
  0xee   : > { %4332 = vmatmul.mubr.msk.bf16.gmra.mrb[12].mxu1 %vm666_vm3, %v7215_v30  ;;  %v3086_v20 = vsel %vm6285_vm2, %v3084_v37, %v3085_v27  ;;  %v3851_v44 = vrot.slane %v6393_v22, 9  ;;  %v6405_v27 = vld [vmem:[%s4822_s25 + $0x98] sm:$0x7]  ;;  %v4015_v61 = vrot.slane %v6083_v14, 11  ;;  %v3099_v37 = vrot.slane %v6091_v41, 7 }
  0xef   : > { %4335 = vmatprep.mubr.msk.bf16.mxu1 %vm666_vm3, %v3865_v9  ;;  %v4031_v62 = vcombine.low %v3083_v60, %v3086_v20  ;;  %v6398_v18 = vsel %vm5881_vm15, %v1271_v21, %v1272_v0  ;;  %v1276_v9 = vrot.slane %v6401_v17, 5  ;;  %v1279_v63 = vrot.slane %v6405_v27, 5  ;;  %v6422_v21 = vld [vmem:[%s4822_s25 + $0x9c] sm:$0xf] }
  0xf0   : > { %v3090_v56 = vsel %vm6285_vm2, %v4014_v13, %v3089_v3  ;;  %v3091_v19 = vrot.slane %v3089_v3, 4  ;;  %v3096_v60 = vrot.slane %v6087_v40, 7  ;;  %v3852_v20 = vrot.slane %v6422_v21, 9  ;;  %v6426_v13 = vld [vmem:[%s4822_s25 + $0xa0] sm:$0xf] }
  0xf1   : > { %v6415_v0 = vsel %vm5881_vm15, %v3851_v44, %v1276_v9  ;;  %v1278_v49 = vrot.slane %v1276_v9, 4  ;;  %v1283_v14 = vrot.slane %v6426_v13, 5  ;;  %v6430_v3 = vld [vmem:[%s4822_s25 + $0xa4] sm:$0x7] }
  0xf2   : > { %v3093_v30 = vsel %vm6285_vm2, %v3091_v19, %v3092_v16  ;;  %v1286_v44 = vrot.slane %v6430_v3, 5  ;;  %v3097_v40 = vsel %vm6285_vm2, %v4015_v61, %v3096_v60  ;;  %v3098_v16 = vrot.slane %v3096_v60, 4 }
  0xf3   : > { %v4032_v9 = vcombine.low %v3090_v56, %v3093_v30  ;;  %v1280_v41 = vsel %vm5881_vm15, %v1278_v49, %v1279_v63  ;;  %v6441_v33 = vsel %vm5881_vm15, %v3852_v20, %v1283_v14  ;;  %v1285_v10 = vrot.slane %v1283_v14, 4 }
  0xf4   : > { %4456 = vmatmul.mubr.msk.bf16.vlgmr.msra.gmra.mrb[0].mxu0 %vm666_vm3, %v4030_v23  ;;  %v3869_v19 = vcombine.low %v6415_v0, %v1280_v41  ;;  %v4016_v56 = vrot.slane %v6139_v34, 11  ;;  %v3100_v63 = vsel %vm6285_vm2, %v3098_v16, %v3099_v37  ;;  %v3103_v61 = vrot.slane %v6143_v35, 7  ;;  %v6451_v0 = vld [vmem:[%s4822_s25 + $0xa8] sm:$0xf]  ;;  %v6464_v35 = vld [vmem:[%s4822_s25 + $0xb0] sm:$0x7] }
  0xf5   : > { %4459 = vmatprep.mubr.msk.bf16.mxu0 %vm666_vm3, %v4031_v62  ;;  %v3106_v23 = vrot.slane %v6147_v28, 7  ;;  %v3853_v49 = vrot.slane %v6451_v0, 9  ;;  %v4033_v60 = vcombine.low %v3097_v40, %v3100_v63  ;;  %v6457_v34 = vsel %vm5881_vm15, %v1285_v10, %v1286_v44  ;;  %v6481_v16 = vld [vmem:[%s4822_s25 + $0xb4] sm:$0xf] }
  0xf6   : > { %4336 = vmatmul.mubr.msk.bf16.gmra.mrb[16].mxu1 %vm666_vm3, %v3866_v39  ;;  %v6460_v39 = vld [vmem:[%s4822_s25 + $0xac] sm:$0xf]  ;;  %v1293_v28 = vrot.slane %v6464_v35, 5  ;;  %v3105_v30 = vrot.slane %v3103_v61, 4  ;;  %v4017_v10 = vrot.slane %v6182_v7, 11  ;;  %v3110_v44 = vrot.slane %v6186_v47, 7 }
  0xf7   : > { %4339 = vmatprep.mubr.msk.bf16.mxu1 %vm666_vm3, %v3867_v5  ;;  %v1290_v62 = vrot.slane %v6460_v39, 5  ;;  %v3104_v5 = vsel %vm6285_vm2, %v4016_v56, %v3103_v61  ;;  %v3113_v41 = vrot.slane %v6195_v57, 7  ;;  %7216 = vst [vmem:[#allocation2_spill] sm:$0xff] %v6481_v16  ;;  %v3854_v63 = vrot.slane %v6481_v16, 9  ;;  %v6485_v56 = vld [vmem:[%s4822_s25 + $0xb8] sm:$0xf] }
  0xf8   : > { %v3107_v40 = vsel %vm6285_vm2, %v3105_v30, %v3106_v23  ;;  %7217 = vst [vmem:[#allocation4_spill] sm:$0xff] %v6485_v56  ;;  %v1297_v7 = vrot.slane %v6485_v56, 5  ;;  %v6489_v61 = vld [vmem:[%s4822_s25 + $0xbc] sm:$0x7]  ;;  %v3111_v57 = vsel %vm6285_vm2, %v4017_v10, %v3110_v44  ;;  %v3112_v23 = vrot.slane %v3110_v44, 4 }
  0xf9   : > { %v6474_v20 = vsel %vm5881_vm15, %v3853_v49, %v1290_v62  ;;  %v1292_v14 = vrot.slane %v1290_v62, 4  ;;  %v1300_v49 = vrot.slane %v6489_v61, 5  ;;  %v4034_v62 = vcombine.low %v3104_v5, %v3107_v40 }
  0xfa   : > { %v6499_v37 = vsel %vm5881_vm15, %v3854_v63, %v1297_v7  ;;  %v1299_v16 = vrot.slane %v1297_v7, 4  ;;  %v4018_v56 = vrot.slane %v6221_v45, 11  ;;  %v3114_v5 = vsel %vm6285_vm2, %v3112_v23, %v3113_v41 }
  0xfb   : > { %v1294_v47 = vsel %vm5881_vm15, %v1292_v14, %v1293_v28  ;;  %v3117_v28 = vrot.slane %v6225_v12, 7  ;;  %v3120_v14 = vrot.slane %v6229_v31, 7  ;;  %v1723_v10 = vrot.slane %v7148_v55, 5 }
  0xfc   : > { %v3871_v30 = vcombine.low %v6474_v20, %v1294_v47  ;;  %4460 = vmatmul.mubr.msk.bf16.gmra.mrb[4].mxu0 %vm666_vm3, %v4032_v9  ;;  %v7218_v20 = vcombine.low %v6384_v8, %v6398_v18  ;;  %v4035_v44 = vcombine.low %v3111_v57, %v3114_v5  ;;  %v6515_v45 = vsel %vm5881_vm15, %v1299_v16, %v1300_v49  ;;  %v7221_v47 = vld [vmem:[#allocation53_spill] sm:$0xff]  ;;  %v7223_v5 = vld [vmem:[#allocation55_spill] sm:$0xff] }
  0xfd   : > { %4463 = vmatprep.mubr.msk.bf16.mxu0 %vm666_vm3, %v4033_v60  ;;  %v1724_v9 = vrot.slane %v7149_v32, 6  ;;  %v1727_v12 = vrot.slane %v7150_v24, 5  ;;  %v3872_v55 = vcombine.low %v6499_v37, %v6515_v45  ;;  %v3118_v31 = vsel %vm6285_vm2, %v4018_v56, %v3117_v28 }
  0xfe   : > { %4340 = vmatmul.mubr.msk.bf16.gmra.mrb[20].mxu1 %vm666_vm3, %v7218_v20  ;;  %v3119_v8 = vrot.slane %v3117_v28, 4  ;;  %v1728_v18 = vrot.slane %v7151_v29, 6  ;;  %v1734_v41 = vrot.slane %v7219_v58, 5  ;;  %v1735_v40 = vrot.slane %v7152_v54, 6 }
  0xff   : > { %4343 = vmatprep.mubr.msk.bf16.mxu1 %vm666_vm3, %v3869_v19  ;;  %v1725_v60 = vor.u32 %v1724_v9, %v1723_v10  ;;  %v4019_v32 = vrot.slane %v6268_v4, 11  ;;  %v3124_v16 = vrot.slane %v6272_v59, 7  ;;  %v3127_v63 = vrot.slane %v6276_v36, 7 }
 0x100   : > { %v3121_v24 = vsel %vm6285_vm2, %v3119_v8, %v3120_v14  ;;  %v1729_v19 = vor.u32 %v1728_v18, %v1727_v12  ;;  %v1736_v49 = vor.u32 %v1735_v40, %v1734_v41  ;;  %v7220_v29 = vrot.slane %v7155_v2, 5  ;;  %v7225_v14 = vld [vmem:[#allocation54_spill] sm:$0xff]  ;;  %v7229_v40 = vld [vmem:[#allocation3_spill] sm:$0xff] }
 0x101   : > { %v4036_v56 = vcombine.low %v3118_v31, %v3121_v24  ;;  %v1726_v7 = vrot.slane %v1725_v60, 4  ;;  %v7222_v48 = vrot.slane %v7221_v47, 6  ;;  %v3125_v54 = vsel %vm6285_vm2, %v4019_v32, %v3124_v16 }
 0x102   : > { %v1731_v23 = vrot.slane %v1729_v19, 4  ;;  %v3126_v4 = vrot.slane %v3124_v16, 4  ;;  %v7224_v28 = vrot.slane %v7223_v5, 5  ;;  %v7226_v10 = vrot.slane %v7225_v14, 6 }
 0x103   : > { %v1740_v57 = vor.u32 %v7222_v48, %v7220_v29  ;;  %v1730_v36 = vsel %vm4881_vm6, %v1726_v7, %v1729_v19  ;;  %v4020_v12 = vrot.slane %v6298_v15, 11  ;;  %v3131_v2 = vrot.slane %v6302_v1, 7  ;;  %v7233_v7 = vld [vmem:[#allocation60_spill] sm:$0xff]  ;;  %v7234_v48 = vld [vmem:[#allocation57_spill] sm:$0xff] }
 0x104   : > { %v1744_v59 = vor.u32 %v7226_v10, %v7224_v28  ;;  %4464 = vmatmul.mubr.msk.bf16.gmra.mrb[8].mxu0 %vm666_vm3, %v4034_v62  ;;  %v1737_v31 = vsel %vm4881_vm6, %v1731_v23, %v1736_v49  ;;  %v3128_v8 = vsel %vm6285_vm2, %v3126_v4, %v3127_v63  ;;  %v3134_v60 = vrot.slane %v6322_v6, 7  ;;  %v7232_v63 = vld [vmem:[#allocation61_spill] sm:$0xff] }
 0x105   : > { %v1741_v9 = vrot.slane %v1740_v57, 4  ;;  %v7228_v58 = vcombine.low %v6441_v33, %v6457_v34  ;;  %4467 = vmatprep.mubr.msk.bf16.mxu0 %vm666_vm3, %v4035_v44  ;;  %v3900_v15 = vcombine.low %v1730_v36, %v1737_v31  ;;  %v4037_v1 = vcombine.low %v3125_v54, %v3128_v8  ;;  %v7230_v34 = vld [vmem:[#allocation58_spill] sm:$0xff]  ;;  %v7231_v44 = vld [vmem:[#allocation59_spill] sm:$0xff] }
 0x106   : > { %v1746_v18 = vrot.slane %v1744_v59, 4  ;;  %v3133_v41 = vrot.slane %v3131_v2, 4  ;;  %v3132_v33 = vsel %vm6285_vm2, %v4020_v12, %v3131_v2  ;;  %v1753_v32 = vrot.slane %v7230_v34, 5  ;;  %v7236_v54 = vld [vmem:[#allocation62_spill] sm:$0xff] }
 0x107   : > { %4344 = vmatmul.mubr.msk.bf16.gmra.mrb[24].mxu1 %vm666_vm3, %v7228_v58  ;;  %v6560_v62 = vsel %vm4881_vm6, %v1741_v9, %v1744_v59  ;;  %v1754_v24 = vrot.slane %v7231_v44, 6  ;;  %v1758_v49 = vrot.slane %v7233_v7, 6  ;;  %v7235_v57 = vshrl.u32 %v7234_v48, 16  ;;  %v7237_v9 = vld [vmem:[#allocation65_spill] sm:$0xff]  ;;  %v7238_v2 = vld [vmem:[#allocation66_spill] sm:$0xff]  ;;  %v7239_v58 = vld [vmem:[#allocation68_spill] sm:$0xff] }
 0x108   : > { %4347 = vmatprep.mubr.msk.bf16.mxu1 %vm666_vm3, %v3871_v30  ;;  %v6566_v6 = vsel %vm4881_vm6, %v1746_v18, %v7229_v40  ;;  %v3135_v16 = vsel %vm6285_vm2, %v3133_v41, %v3134_v60  ;;  %v1757_v30 = vrot.slane %v7232_v63, 5  ;;  %v1765_v4 = vrot.slane %v7236_v54, 6  ;;  %v7241_v40 = vld [vmem:[#allocation64_spill] sm:$0xff]  ;;  %v7244_v7 = vld [vmem:[#allocation71_spill] sm:$0xff] }
 0x109   : > { %v3901_v19 = vcombine.low %v6560_v62, %v6566_v6  ;;  %v4038_v29 = vcombine.low %v3132_v33, %v3135_v16  ;;  %v1755_v47 = vor.u32 %v1754_v24, %v1753_v32  ;;  %v1764_v23 = vrot.slane %v7235_v57, 5  ;;  %v7243_v32 = vld [vmem:[#allocation69_spill] sm:$0xff]  ;;  %v7245_v57 = vld [vmem:[#allocation72_spill] sm:$0xff] }
 0x10a   : > { %v1759_v5 = vor.u32 %v1758_v49, %v1757_v30  ;;  %v4021_v28 = vrot.slane %v6331_v25, 11  ;;  %v3138_v14 = vrot.slane %v6339_v43, 7  ;;  %v3141_v10 = vrot.slane %v6343_v38, 7  ;;  %v7240_v38 = vld [vmem:[#allocation67_spill] sm:$0xff] }
 0x10b   : > { %v1756_v59 = vrot.slane %v1755_v47, 4  ;;  %v1766_v36 = vor.u32 %v1765_v4, %v1764_v23  ;;  %v1768_v12 = vrot.slane %v7237_v9, 5  ;;  %v1769_v31 = vrot.slane %v7238_v2, 6 }
 0x10c   : > { %v1761_v8 = vrot.slane %v1759_v5, 4  ;;  %v3139_v18 = vsel %vm6285_vm2, %v4021_v28, %v3138_v14  ;;  %v3140_v60 = vrot.slane %v3138_v14, 4  ;;  %v1772_v62 = vrot.slane %v7239_v58, 5  ;;  %4468 = vmatmul.mubr.msk.bf16.gmra.mrb[12].mxu0 %vm666_vm3, %v4036_v56  ;;  %v7248_v14 = vld [vmem:[#allocation70_spill] sm:$0xff] }
 0x10d   : > { %v1760_v25 = vsel %vm4881_vm6, %v1756_v59, %v1759_v5  ;;  %v1770_v43 = vor.u32 %v1769_v31, %v1768_v12  ;;  %v1773_v41 = vrot.slane %v7240_v38, 6  ;;  %v7242_v6 = vshrl.u32 %v7241_v40, 16  ;;  %4471 = vmatprep.mubr.msk.bf16.mxu0 %vm666_vm3, %v4037_v1  ;;  %v7247_v5 = vld [vmem:[#allocation73_spill] sm:$0xff] }
 0x10e   : > { %v1767_v34 = vsel %vm4881_vm6, %v1761_v8, %v1766_v36  ;;  %v3142_v56 = vsel %vm6285_vm2, %v3140_v60, %v3141_v10  ;;  %v1780_v44 = vrot.slane %v7243_v32, 6  ;;  %v4022_v24 = vrot.slane %v6360_v26, 11  ;;  %v7246_v26 = vld [vmem:[#allocation74_spill] sm:$0xff]  ;;  %v7250_v36 = vld [vmem:[#allocation75_spill] sm:$0xff]  ;;  %v7254_v32 = vld [vmem:[#allocation76_spill] sm:$0xff] }
 0x10f   : > { %v1779_v33 = vrot.slane %v7242_v6, 5  ;;  %4348 = vmatmul.mubr.msk.bf16.gmra.mrb[28].mxu1 %vm666_vm3, %v3872_v55  ;;  %v3902_v16 = vcombine.low %v1760_v25, %v1767_v34  ;;  %v4039_v63 = vcombine.low %v3139_v18, %v3142_v56  ;;  %v1771_v30 = vrot.slane %v1770_v43, 4 }
 0x110   : > { %4369 = vmatprep.mubr.msk.bf16.mxu1 %vm666_vm3, %v3900_v15  ;;  %v1774_v37 = vor.u32 %v1773_v41, %v1772_v62  ;;  %v3145_v55 = vrot.slane %v6364_v50, 7  ;;  %v3148_v1 = vrot.slane %v6368_v11, 7  ;;  %v1783_v49 = vrot.slane %v7244_v7, 5  ;;  %v7251_v41 = vld [vmem:[#allocation77_spill] sm:$0xff] }
 0x111   : > { %v1781_v45 = vor.u32 %v1780_v44, %v1779_v33  ;;  %v1784_v23 = vrot.slane %v7245_v57, 6  ;;  %v1787_v54 = vrot.slane %v7246_v26, 5  ;;  %v1788_v28 = vrot.slane %v7247_v5, 6  ;;  %v7253_v33 = vld [vmem:[#allocation80_spill] sm:$0xff]  ;;  %v7257_v57 = vld [vmem:[#allocation82_spill] sm:$0xff]  ;;  %v7258_v26 = vld [vmem:[#allocation83_spill] sm:$0xff] }
 0x112   : > { %v1775_v47 = vsel %vm4881_vm6, %v1771_v30, %v1774_v37  ;;  %v1776_v48 = vrot.slane %v1774_v37, 4  ;;  %v3146_v15 = vsel %vm6285_vm2, %v4022_v24, %v3145_v55  ;;  %v3147_v4 = vrot.slane %v3145_v55, 4  ;;  %v7259_v5 = vld [vmem:[#allocation85_spill] sm:$0xff] }
 0x113   : > { %v7249_v50 = vshrl.u32 %v7248_v14, 16  ;;  %v1785_v59 = vor.u32 %v1784_v23, %v1783_v49  ;;  %v1795_v9 = vrot.slane %v7250_v36, 6  ;;  %v4023_v12 = vrot.slane %v6393_v22, 11  ;;  %v7260_v14 = vld [vmem:[#allocation84_spill] sm:$0xff] }
 0x114   : > { %v1782_v11 = vsel %vm4881_vm6, %v1776_v48, %v1781_v45  ;;  %v3149_v31 = vsel %vm6285_vm2, %v3147_v4, %v3148_v1  ;;  %v1789_v8 = vor.u32 %v1788_v28, %v1787_v54  ;;  %v3152_v18 = vrot.slane %v6401_v17, 7  ;;  %4472 = vmatmul.mubr.msk.bf16.gmra.mrb[16].mxu0 %vm666_vm3, %v4038_v29  ;;  %v7252_v29 = vld [vmem:[#allocation78_spill] sm:$0xff] }
 0x115   : > { %v1794_v10 = vrot.slane %v7249_v50, 5  ;;  %v3903_v2 = vcombine.low %v1775_v47, %v1782_v11  ;;  %v4040_v60 = vcombine.low %v3146_v15, %v3149_v31  ;;  %v1786_v58 = vrot.slane %v1785_v59, 4  ;;  %4475 = vmatprep.mubr.msk.bf16.mxu0 %vm666_vm3, %v4039_v63  ;;  %v7256_v63 = vld [vmem:[#allocation81_spill] sm:$0xff] }
 0x116   : > { %v3155_v25 = vrot.slane %v6405_v27, 7  ;;  %v1791_v43 = vrot.slane %v1789_v8, 4  ;;  %v3153_v22 = vsel %vm6285_vm2, %v4023_v12, %v3152_v18  ;;  %v3154_v38 = vrot.slane %v3152_v18, 4 }
 0x117   : > { %v1796_v62 = vor.u32 %v1795_v9, %v1794_v10  ;;  %4370 = vmatmul.mubr.msk.bf16.vlgmr.msra.gmra.mrb[16].mxu1 %vm666_vm3, %v3901_v19  ;;  %v1798_v40 = vrot.slane %v7251_v41, 5  ;;  %v1790_v17 = vsel %vm4881_vm6, %v1786_v58, %v1789_v8  ;;  %v1799_v6 = vrot.slane %v7252_v29, 6  ;;  %v7265_v29 = vld [vmem:[#allocation87_spill] sm:$0xff] }
 0x118   : > { %4373 = vmatprep.mubr.msk.bf16.mxu1 %vm666_vm3, %v3902_v16  ;;  %v1802_v27 = vrot.slane %v7253_v33, 5  ;;  %v1803_v19 = vrot.slane %v7191_v42, 6  ;;  %v3156_v56 = vsel %vm6285_vm2, %v3154_v38, %v3155_v25  ;;  %v7255_v44 = vshrl.u32 %v7254_v32, 16  ;;  %v7263_v38 = vld [vmem:[#allocation89_spill] sm:$0xff] }
 0x119   : > { %v1797_v34 = vsel %vm4881_vm6, %v1791_v43, %v1796_v62  ;;  %v1810_v16 = vrot.slane %v7256_v63, 6  ;;  %v4041_v37 = vcombine.low %v3153_v22, %v3156_v56  ;;  %v1800_v45 = vor.u32 %v1799_v6, %v1798_v40  ;;  %v7262_v62 = vld [vmem:[#allocation88_spill] sm:$0xff]  ;;  %v7264_v40 = vld [vmem:[#allocation91_spill] sm:$0xff] }
 0x11a   : > { %v1809_v24 = vrot.slane %v7255_v44, 5  ;;  %v3904_v30 = vcombine.low %v1790_v17, %v1797_v34  ;;  %v1804_v55 = vor.u32 %v1803_v19, %v1802_v27  ;;  %v4024_v7 = vrot.slane %v6422_v21, 11  ;;  %v7267_v34 = vld [vmem:[#allocation92_spill] sm:$0xff] }
 0x11b   : > { %v3159_v42 = vrot.slane %v6426_v13, 7  ;;  %v3162_v49 = vrot.slane %v6430_v3, 7  ;;  %v1801_v47 = vrot.slane %v1800_v45, 4  ;;  %v1813_v23 = vrot.slane %v7257_v57, 5 }
 0x11c   : > { %v1811_v1 = vor.u32 %v1810_v16, %v1809_v24  ;;  %v1806_v48 = vrot.slane %v1804_v55, 4  ;;  %v1814_v54 = vrot.slane %v7258_v26, 6  ;;  %v1817_v28 = vrot.slane %v7259_v5, 5  ;;  %4476 = vmatmul.mubr.msk.bf16.gmra.mrb[20].mxu0 %vm666_vm3, %v4040_v60  ;;  %v7268_v24 = vld [vmem:[#allocation2_spill] sm:$0xff]  ;;  %v7269_v16 = vld [vmem:[#allocation4_spill] sm:$0xff] }
 0x11d   : > { %v3160_v15 = vsel %vm6285_vm2, %v4024_v7, %v3159_v42  ;;  %v3161_v4 = vrot.slane %v3159_v42, 4  ;;  %v1818_v50 = vrot.slane %v7260_v14, 6  ;;  %v1805_v21 = vsel %vm4881_vm6, %v1801_v47, %v1804_v55  ;;  %4479 = vmatprep.mubr.msk.bf16.mxu0 %vm666_vm3, %v4041_v37 }
 0x11e   : > { %v1812_v13 = vsel %vm4881_vm6, %v1806_v48, %v1811_v1  ;;  %v1815_v3 = vor.u32 %v1814_v54, %v1813_v23  ;;  %v7261_v10 = vshrl.u32 %v5492_v53, 16  ;;  %v1825_v12 = vrot.slane %v7201_v52, 6 }
 0x11f   : > { %4374 = vmatmul.mubr.msk.bf16.gmra.mrb[20].mxu1 %vm666_vm3, %v3903_v2  ;;  %v3905_v59 = vcombine.low %v1805_v21, %v1812_v13  ;;  %v3163_v36 = vsel %vm6285_vm2, %v3161_v4, %v3162_v49  ;;  %v1819_v9 = vor.u32 %v1818_v50, %v1817_v28  ;;  %v4025_v18 = vrot.slane %v6451_v0, 11 }
 0x120   : > { %v1824_v11 = vrot.slane %v7261_v10, 5  ;;  %4377 = vmatprep.mubr.msk.bf16.mxu1 %vm666_vm3, %v3904_v30  ;;  %v4042_v31 = vcombine.low %v3160_v15, %v3163_v36  ;;  %v1816_v8 = vrot.slane %v1815_v3, 4  ;;  %v3166_v53 = vrot.slane %v6460_v39, 7 }
 0x121   : > { %v1821_v60 = vrot.slane %v1819_v9, 4  ;;  %v3169_v2 = vrot.slane %v6464_v35, 7  ;;  %v1828_v25 = vrot.slane %v7262_v62, 5  ;;  %v1829_v41 = vrot.slane %v7263_v38, 6 }
 0x122   : > { %v1826_v58 = vor.u32 %v1825_v12, %v1824_v11  ;;  %v1820_v43 = vsel %vm4881_vm6, %v1816_v8, %v1819_v9  ;;  %v3167_v52 = vsel %vm6285_vm2, %v4025_v18, %v3166_v53  ;;  %v3168_v22 = vrot.slane %v3166_v53, 4 }
 0x123   : > { %v1832_v39 = vrot.slane %v7264_v40, 5  ;;  %v1833_v17 = vrot.slane %v7208_v51, 6  ;;  %v7266_v35 = vshrl.u32 %v7265_v29, 16  ;;  %v1830_v19 = vor.u32 %v1829_v41, %v1828_v25 }
 0x124   : > { %v1827_v0 = vsel %vm4881_vm6, %v1821_v60, %v1826_v58  ;;  %v3170_v27 = vsel %vm6285_vm2, %v3168_v22, %v3169_v2  ;;  %v1840_v56 = vrot.slane %v7267_v34, 6  ;;  %v4026_v63 = vrot.slane %v7268_v24, 11  ;;  %4480 = vmatmul.mubr.msk.bf16.gmra.mrb[24].mxu0 %vm666_vm3, %v4042_v31 }
 0x125   : > { %v1839_v6 = vrot.slane %v7266_v35, 5  ;;  %v3906_v33 = vcombine.low %v1820_v43, %v1827_v0  ;;  %v4043_v32 = vcombine.low %v3167_v52, %v3170_v27  ;;  %v1834_v44 = vor.u32 %v1833_v17, %v1832_v39 }
 0x126   : > { %v3173_v30 = vrot.slane %v7269_v16, 7  ;;  %v1831_v37 = vrot.slane %v1830_v19, 4  ;;  %v3176_v45 = vrot.slane %v6489_v61, 7 }
 0x127   : > { %v1841_v51 = vor.u32 %v1840_v56, %v1839_v6  ;;  %4378 = vmatmul.mubr.msk.bf16.gmra.mrb[24].mxu1 %vm666_vm3, %v3905_v59  ;;  %4483 = vmatprep.mubr.msk.bf16.mxu0 %vm666_vm3, %v4043_v32  ;;  %v1836_v55 = vrot.slane %v1834_v44, 4  ;;  %v6718_v59 = vld [vmem:[%s6833_s2] ss:$0 sm:$0xff] }
 0x128   : > { %v3174_v1 = vsel %vm6285_vm2, %v4026_v63, %v3173_v30  ;;  %v3175_v7 = vrot.slane %v3173_v30, 4  ;;  %4381 = vmatprep.mubr.msk.bf16.mxu1 %vm666_vm3, %v3906_v33  ;;  %v1835_v42 = vsel %vm4881_vm6, %v1831_v37, %v1834_v44 }
 0x129   : > { %v1842_v49 = vsel %vm4881_vm6, %v1836_v55, %v1841_v51 }
 0x12a   : > { %v3177_v61 = vsel %vm6285_vm2, %v3175_v7, %v3176_v45  ;;  %v3907_v48 = vcombine.low %v1835_v42, %v1842_v49 }
 0x12b   : > { %v4044_v47 = vcombine.low %v3174_v1, %v3177_v61 }
 0x12d   : > { %4484 = vmatmul.mubr.msk.bf16.gmra.mrb[28].mxu0 %vm666_vm3, %v4044_v47 }
 0x12f   : > { %4382 = vmatmul.mubr.msk.bf16.gmra.mrb[28].mxu1 %vm666_vm3, %v3907_v48  ;;  %vm3675_vm3 = vcmask 125952  }
 0x1a8   : > { %v4321_v57 = vpop.f32.mrb[0].mxu1 }
 0x1a9   : > { %v1441_v23 = vpop.f32.mrb[1].mxu1 }
 0x1aa   : > { %v4322_v26 = vpop.f32.mrb[2].mxu1 }
 0x1ab   : > { %v1444_v54 = vpop.f32.mrb[3].mxu1 }
 0x1b0   : > { %v4325_v15 = vpop.f32.mrb[4].mxu1 }
 0x1b1   : > { %v1457_v4 = vpop.f32.mrb[5].mxu1 }
 0x1b2   : > { %v4326_v5 = vpop.f32.mrb[6].mxu1 }
 0x1b3   : > { %v1460_v28 = vpop.f32.mrb[7].mxu1 }
 0x1b8   : > { %v4329_v20 = vpop.f32.mrb[8].mxu1 }
 0x1b9   : > { %v1473_v14 = vpop.f32.mrb[9].mxu1 }
 0x1ba   : > { %v6703_v50 = vpop.f32.mrb[10].mxu1 }
 0x1bb   : > { %v6705_v46 = vpop.f32.mrb[11].mxu1 }
 0x1c1   : > { %v6707_v21 = vpop.f32.mrb[12].mxu1 }
 0x1c2   : > { %v6709_v13 = vpop.f32.mrb[13].mxu1 }
 0x1c3   : > { %v6711_v3 = vpop.f32.mrb[14].mxu1 }
 0x1c4   : > { %v6713_v10 = vpop.f32.mrb[15].mxu1 }
 0x1c7   : > { %v4457_v11 = vpop.f32.mrb[0].mxu0 }
 0x1c8   : > { %v4489_v36 = vadd.f32 %v4457_v11, %v4321_v57  ;;  %v3317_v9 = vpop.f32.mrb[1].mxu0 }
 0x1c9   : > { %v4490_v12 = vadd.f32 %v3317_v9, %v1441_v23  ;;  %v4458_v31 = vpop.f32.mrb[2].mxu0 }
 0x1ca   : > { %v3485_v8 = vadd.f32 %v4489_v36, %v6718_v59  ;;  %v4491_v18 = vadd.f32 %v4458_v31, %v4322_v26  ;;  %v3320_v53 = vpop.f32.mrb[3].mxu0 }
 0x1cb   : > { %v3483_v60 = vadd.f32 %v4490_v12, %v6718_v59  ;;  %v4492_v58 = vadd.f32 %v3320_v53, %v1444_v54 }
 0x1cc   : > { %v3517_v2 = vmax.f32 %v3485_v8, 0.0  ;;  %v3486_v62 = vadd.f32 %v4491_v18, %v6718_v59 }
 0x1cd   : > { %v3515_v25 = vmax.f32 %v3483_v60, 0.0  ;;  %v3484_v43 = vadd.f32 %v4492_v58, %v6718_v59 }
 0x1ce   : > { %v4100_v52 = vpack.c.bf16 %v3517_v2, %v3517_v2  ;;  %v3518_v22 = vmax.f32 %v3486_v62, 0.0 }
 0x1cf   : > { %v4098_v38 = vpack.c.bf16 %v3515_v25, %v3515_v25  ;;  %v3516_v41 = vmax.f32 %v3484_v43, 0.0  ;;  %v4461_v0 = vpop.f32.mrb[4].mxu0 }
 0x1d0   : > { %3678 = vst.msk [vmem:[%s6727_s16 + $0x8] sm:$0xf] %vm3675_vm3, %v4100_v52  ;;  %v4101_v40 = vpack.c.bf16 %v3518_v22, %v3518_v22  ;;  %v4493_v39 = vadd.f32 %v4461_v0, %v4325_v15  ;;  %v3333_v17 = vpop.f32.mrb[5].mxu0 }
 0x1d1   : > { %3676 = vst.msk [vmem:[%s6727_s16] sm:$0xf] %vm3675_vm3, %v4098_v38  ;;  %v4099_v29 = vpack.c.bf16 %v3516_v41, %v3516_v41  ;;  %v4494_v35 = vadd.f32 %v3333_v17, %v1457_v4  ;;  %v4462_v6 = vpop.f32.mrb[6].mxu0 }
 0x1d2   : > { %3679 = vst.msk [vmem:[%s6727_s16 + $0xc] sm:$0xf] %vm3675_vm3, %v4101_v40  ;;  %v3489_v33 = vadd.f32 %v4493_v39, %v6718_v59  ;;  %v4495_v27 = vadd.f32 %v4462_v6, %v4326_v5  ;;  %v3336_v19 = vpop.f32.mrb[7].mxu0 }
 0x1d3   : > { %3677 = vst.msk [vmem:[%s6727_s16 + $0x4] sm:$0xf] %vm3675_vm3, %v4099_v29  ;;  %v3487_v34 = vadd.f32 %v4494_v35, %v6718_v59  ;;  %v4496_v56 = vadd.f32 %v3336_v19, %v1460_v28 }
 0x1d4   : > { %v3521_v32 = vmax.f32 %v3489_v33, 0.0  ;;  %v3490_v44 = vadd.f32 %v4495_v27, %v6718_v59 }
 0x1d5   : > { %v3519_v24 = vmax.f32 %v3487_v34, 0.0  ;;  %v3488_v63 = vadd.f32 %v4496_v56, %v6718_v59 }
 0x1d6   : > { %v4104_v16 = vpack.c.bf16 %v3521_v32, %v3521_v32  ;;  %v3522_v30 = vmax.f32 %v3490_v44, 0.0 }
 0x1d7   : > { %v4102_v37 = vpack.c.bf16 %v3519_v24, %v3519_v24  ;;  %v3520_v51 = vmax.f32 %v3488_v63, 0.0  ;;  %v4465_v45 = vpop.f32.mrb[8].mxu0 }
 0x1d8   : > { %3682 = vst.msk [vmem:[%s6727_s16 + $0x18] sm:$0xf] %vm3675_vm3, %v4104_v16  ;;  %v4105_v55 = vpack.c.bf16 %v3522_v30, %v3522_v30  ;;  %v4497_v1 = vadd.f32 %v4465_v45, %v4329_v20  ;;  %v3349_v7 = vpop.f32.mrb[9].mxu0 }
 0x1d9   : > { %3680 = vst.msk [vmem:[%s6727_s16 + $0x10] sm:$0xf] %vm3675_vm3, %v4102_v37  ;;  %v4103_v42 = vpack.c.bf16 %v3520_v51, %v3520_v51  ;;  %v4498_v49 = vadd.f32 %v3349_v7, %v1473_v14  ;;  %v4466_v61 = vpop.f32.mrb[10].mxu0 }
 0x1da   : > { %3683 = vst.msk [vmem:[%s6727_s16 + $0x1c] sm:$0xf] %vm3675_vm3, %v4105_v55  ;;  %v3493_v47 = vadd.f32 %v4497_v1, %v6718_v59  ;;  %v4499_v48 = vadd.f32 %v4466_v61, %v6703_v50  ;;  %v3352_v57 = vpop.f32.mrb[11].mxu0 }
 0x1db   : > { %3681 = vst.msk [vmem:[%s6727_s16 + $0x14] sm:$0xf] %vm3675_vm3, %v4103_v42  ;;  %v3491_v23 = vadd.f32 %v4498_v49, %v6718_v59  ;;  %v4500_v26 = vadd.f32 %v3352_v57, %v6705_v46 }
 0x1dc   : > { %v3525_v54 = vmax.f32 %v3493_v47, 0.0  ;;  %v3494_v15 = vadd.f32 %v4499_v48, %v6718_v59 }
 0x1dd   : > { %v3523_v4 = vmax.f32 %v3491_v23, 0.0  ;;  %v3492_v5 = vadd.f32 %v4500_v26, %v6718_v59 }
 0x1de   : > { %v4108_v28 = vpack.c.bf16 %v3525_v54, %v3525_v54  ;;  %v3526_v20 = vmax.f32 %v3494_v15, 0.0 }
 0x1df   : > { %v4106_v14 = vpack.c.bf16 %v3523_v4, %v3523_v4  ;;  %v3524_v50 = vmax.f32 %v3492_v5, 0.0  ;;  %v4469_v11 = vpop.f32.mrb[12].mxu0 }
 0x1e0   : > { %3686 = vst.msk [vmem:[%s6727_s16 + $0x28] sm:$0xf] %vm3675_vm3, %v4108_v28  ;;  %v4109_v36 = vpack.c.bf16 %v3526_v20, %v3526_v20  ;;  %v4501_v9 = vadd.f32 %v4469_v11, %v6707_v21  ;;  %v3365_v12 = vpop.f32.mrb[13].mxu0 }
 0x1e1   : > { %3684 = vst.msk [vmem:[%s6727_s16 + $0x20] sm:$0xf] %vm3675_vm3, %v4106_v14  ;;  %v4107_v46 = vpack.c.bf16 %v3524_v50, %v3524_v50  ;;  %v4502_v31 = vadd.f32 %v3365_v12, %v6709_v13  ;;  %v4470_v8 = vpop.f32.mrb[14].mxu0 }
 0x1e2   : > { %3687 = vst.msk [vmem:[%s6727_s16 + $0x2c] sm:$0xf] %vm3675_vm3, %v4109_v36  ;;  %v3497_v18 = vadd.f32 %v4501_v9, %v6718_v59  ;;  %v4503_v53 = vadd.f32 %v4470_v8, %v6711_v3  ;;  %v3368_v60 = vpop.f32.mrb[15].mxu0 }
 0x1e3   : > { %3685 = vst.msk [vmem:[%s6727_s16 + $0x24] sm:$0xf] %vm3675_vm3, %v4107_v46  ;;  %v3495_v21 = vadd.f32 %v4502_v31, %v6718_v59  ;;  %v4504_v58 = vadd.f32 %v3368_v60, %v6713_v10 }
 0x1e4   : > { %v3529_v2 = vmax.f32 %v3497_v18, 0.0  ;;  %v3498_v62 = vadd.f32 %v4503_v53, %v6718_v59 }
 0x1e5   : > { %v3527_v13 = vmax.f32 %v3495_v21, 0.0  ;;  %v3496_v25 = vadd.f32 %v4504_v58, %v6718_v59 }
 0x1e6   : > { %v4112_v43 = vpack.c.bf16 %v3529_v2, %v3529_v2  ;;  %v3530_v52 = vmax.f32 %v3498_v62, 0.0 }
 0x1e7   : > { %v4110_v22 = vpack.c.bf16 %v3527_v13, %v3527_v13  ;;  %v3528_v3 = vmax.f32 %v3496_v25, 0.0  ;;  %v4473_v38 = vpop.f32.mrb[16].mxu0 }
 0x1e8   : > { %3690 = vst.msk [vmem:[%s6727_s16 + $0x38] sm:$0xf] %vm3675_vm3, %v4112_v43  ;;  %v4113_v41 = vpack.c.bf16 %v3530_v52, %v3530_v52  ;;  %v3381_v40 = vpop.f32.mrb[17].mxu0 }
 0x1e9   : > { %3688 = vst.msk [vmem:[%s6727_s16 + $0x30] sm:$0xf] %vm3675_vm3, %v4110_v22  ;;  %v4111_v10 = vpack.c.bf16 %v3528_v3, %v3528_v3  ;;  %v4474_v29 = vpop.f32.mrb[18].mxu0 }
 0x1ea   : > { %v4371_v0 = vpop.f32.mrb[16].mxu1  ;;  %3691 = vst.msk [vmem:[%s6727_s16 + $0x3c] sm:$0xf] %vm3675_vm3, %v4113_v41  ;;  %v3384_v33 = vpop.f32.mrb[19].mxu0 }
 0x1eb   : > { %v4505_v39 = vadd.f32 %v4473_v38, %v4371_v0  ;;  %v2046_v17 = vpop.f32.mrb[17].mxu1  ;;  %3689 = vst.msk [vmem:[%s6727_s16 + $0x34] sm:$0xf] %vm3675_vm3, %v4111_v10 }
 0x1ec   : > { %v4506_v35 = vadd.f32 %v3381_v40, %v2046_v17  ;;  %v4372_v6 = vpop.f32.mrb[18].mxu1 }
 0x1ed   : > { %v3501_v27 = vadd.f32 %v4505_v39, %v6718_v59  ;;  %v4507_v19 = vadd.f32 %v4474_v29, %v4372_v6  ;;  %v2049_v34 = vpop.f32.mrb[19].mxu1 }
 0x1ee   : > { %v3499_v56 = vadd.f32 %v4506_v35, %v6718_v59  ;;  %v4508_v32 = vadd.f32 %v3384_v33, %v2049_v34 }
 0x1ef   : > { %v3533_v44 = vmax.f32 %v3501_v27, 0.0  ;;  %v3502_v24 = vadd.f32 %v4507_v19, %v6718_v59  ;;  %v4477_v51 = vpop.f32.mrb[20].mxu0 }
 0x1f0   : > { %v3531_v63 = vmax.f32 %v3499_v56, 0.0  ;;  %v3500_v16 = vadd.f32 %v4508_v32, %v6718_v59  ;;  %v3397_v7 = vpop.f32.mrb[21].mxu0 }
 0x1f1   : > { %v4116_v30 = vpack.c.bf16 %v3533_v44, %v3533_v44  ;;  %v3534_v37 = vmax.f32 %v3502_v24, 0.0  ;;  %v4478_v47 = vpop.f32.mrb[22].mxu0 }
 0x1f2   : > { %v4114_v45 = vpack.c.bf16 %v3531_v63, %v3531_v63  ;;  %v3532_v55 = vmax.f32 %v3500_v16, 0.0  ;;  %v4375_v1 = vpop.f32.mrb[20].mxu1  ;;  %v3400_v26 = vpop.f32.mrb[23].mxu0 }
 0x1f3   : > { %3694 = vst.msk [vmem:[%s6727_s16 + $0x48] sm:$0xf] %vm3675_vm3, %v4116_v30  ;;  %v4117_v42 = vpack.c.bf16 %v3534_v37, %v3534_v37  ;;  %v4509_v49 = vadd.f32 %v4477_v51, %v4375_v1  ;;  %v2062_v61 = vpop.f32.mrb[21].mxu1 }
 0x1f4   : > { %3692 = vst.msk [vmem:[%s6727_s16 + $0x40] sm:$0xf] %vm3675_vm3, %v4114_v45  ;;  %v4115_v48 = vpack.c.bf16 %v3532_v55, %v3532_v55  ;;  %v4510_v57 = vadd.f32 %v3397_v7, %v2062_v61  ;;  %v4376_v23 = vpop.f32.mrb[22].mxu1 }
 0x1f5   : > { %3695 = vst.msk [vmem:[%s6727_s16 + $0x4c] sm:$0xf] %vm3675_vm3, %v4117_v42  ;;  %v3505_v54 = vadd.f32 %v4509_v49, %v6718_v59  ;;  %v4511_v15 = vadd.f32 %v4478_v47, %v4376_v23  ;;  %v2065_v4 = vpop.f32.mrb[23].mxu1 }
 0x1f6   : > { %3693 = vst.msk [vmem:[%s6727_s16 + $0x44] sm:$0xf] %vm3675_vm3, %v4115_v48  ;;  %v3503_v5 = vadd.f32 %v4510_v57, %v6718_v59  ;;  %v4512_v28 = vadd.f32 %v3400_v26, %v2065_v4 }
 0x1f7   : > { %v3537_v20 = vmax.f32 %v3505_v54, 0.0  ;;  %v3506_v14 = vadd.f32 %v4511_v15, %v6718_v59  ;;  %v4481_v12 = vpop.f32.mrb[24].mxu0 }
 0x1f8   : > { %v3535_v50 = vmax.f32 %v3503_v5, 0.0  ;;  %v3504_v11 = vadd.f32 %v4512_v28, %v6718_v59  ;;  %v3413_v18 = vpop.f32.mrb[25].mxu0 }
 0x1f9   : > { %v4120_v36 = vpack.c.bf16 %v3537_v20, %v3537_v20  ;;  %v3538_v9 = vmax.f32 %v3506_v14, 0.0  ;;  %v4482_v58 = vpop.f32.mrb[26].mxu0 }
 0x1fa   : > { %v4118_v46 = vpack.c.bf16 %v3535_v50, %v3535_v50  ;;  %v3536_v31 = vmax.f32 %v3504_v11, 0.0  ;;  %v4379_v8 = vpop.f32.mrb[24].mxu1  ;;  %v3416_v25 = vpop.f32.mrb[27].mxu0 }
 0x1fb   : > { %3698 = vst.msk [vmem:[%s6727_s16 + $0x58] sm:$0xf] %vm3675_vm3, %v4120_v36  ;;  %v4121_v53 = vpack.c.bf16 %v3538_v9, %v3538_v9  ;;  %v4513_v60 = vadd.f32 %v4481_v12, %v4379_v8  ;;  %v2078_v21 = vpop.f32.mrb[25].mxu1 }
 0x1fc   : > { %3696 = vst.msk [vmem:[%s6727_s16 + $0x50] sm:$0xf] %vm3675_vm3, %v4118_v46  ;;  %v4119_v2 = vpack.c.bf16 %v3536_v31, %v3536_v31  ;;  %v4514_v62 = vadd.f32 %v3413_v18, %v2078_v21  ;;  %v4380_v13 = vpop.f32.mrb[26].mxu1 }
 0x1fd   : > { %3699 = vst.msk [vmem:[%s6727_s16 + $0x5c] sm:$0xf] %vm3675_vm3, %v4121_v53  ;;  %v3509_v43 = vadd.f32 %v4513_v60, %v6718_v59  ;;  %v4515_v52 = vadd.f32 %v4482_v58, %v4380_v13  ;;  %v2081_v22 = vpop.f32.mrb[27].mxu1 }
 0x1fe   : > { %3697 = vst.msk [vmem:[%s6727_s16 + $0x54] sm:$0xf] %vm3675_vm3, %v4119_v2  ;;  %v3507_v3 = vadd.f32 %v4514_v62, %v6718_v59  ;;  %v4516_v38 = vadd.f32 %v3416_v25, %v2081_v22 }
 0x1ff   : > { %v3541_v41 = vmax.f32 %v3509_v43, 0.0  ;;  %v3510_v0 = vadd.f32 %v4515_v52, %v6718_v59 }
 0x200   : > { %v3539_v40 = vmax.f32 %v3507_v3, 0.0  ;;  %v3508_v10 = vadd.f32 %v4516_v38, %v6718_v59  ;;  %v4485_v29 = vpop.f32.mrb[28].mxu0 }
 0x201   : > { %v4124_v39 = vpack.c.bf16 %v3541_v41, %v3541_v41  ;;  %v3542_v17 = vmax.f32 %v3510_v0, 0.0  ;;  %v3429_v27 = vpop.f32.mrb[29].mxu0 }
 0x202   : > { %v4122_v35 = vpack.c.bf16 %v3539_v40, %v3539_v40  ;;  %v3540_v6 = vmax.f32 %v3508_v10, 0.0  ;;  %v4383_v33 = vpop.f32.mrb[28].mxu1  ;;  %v4486_v32 = vpop.f32.mrb[30].mxu0 }
 0x203   : > { %3702 = vst.msk [vmem:[%s6727_s16 + $0x68] sm:$0xf] %vm3675_vm3, %v4124_v39  ;;  %v4125_v19 = vpack.c.bf16 %v3542_v17, %v3542_v17  ;;  %v4517_v34 = vadd.f32 %v4485_v29, %v4383_v33  ;;  %v2094_v56 = vpop.f32.mrb[29].mxu1  ;;  %v3432_v16 = vpop.f32.mrb[31].mxu0 }
 0x204   : > { %3700 = vst.msk [vmem:[%s6727_s16 + $0x60] sm:$0xf] %vm3675_vm3, %v4122_v35  ;;  %v4123_v44 = vpack.c.bf16 %v3540_v6, %v3540_v6  ;;  %v4518_v24 = vadd.f32 %v3429_v27, %v2094_v56  ;;  %v4384_v63 = vpop.f32.mrb[30].mxu1 }
 0x205   : > { %3703 = vst.msk [vmem:[%s6727_s16 + $0x6c] sm:$0xf] %vm3675_vm3, %v4125_v19  ;;  %v3513_v30 = vadd.f32 %v4517_v34, %v6718_v59  ;;  %v4519_v37 = vadd.f32 %v4486_v32, %v4384_v63  ;;  %v2097_v51 = vpop.f32.mrb[31].mxu1 }
 0x206   : > { %3701 = vst.msk [vmem:[%s6727_s16 + $0x64] sm:$0xf] %vm3675_vm3, %v4123_v44  ;;  %v3511_v45 = vadd.f32 %v4518_v24, %v6718_v59  ;;  %v4520_v55 = vadd.f32 %v3432_v16, %v2097_v51 }
 0x207   : > { %v3545_v1 = vmax.f32 %v3513_v30, 0.0  ;;  %v3514_v7 = vadd.f32 %v4519_v37, %v6718_v59 }
 0x208   : > { %v3543_v42 = vmax.f32 %v3511_v45, 0.0  ;;  %v3512_v49 = vadd.f32 %v4520_v55, %v6718_v59 }
 0x209   : > { %v4128_v61 = vpack.c.bf16 %v3545_v1, %v3545_v1  ;;  %v3546_v47 = vmax.f32 %v3514_v7, 0.0 }
 0x20a   : > { %v4126_v48 = vpack.c.bf16 %v3543_v42, %v3543_v42  ;;  %v3544_v57 = vmax.f32 %v3512_v49, 0.0 }
 0x20b   : > { %3706 = vst.msk [vmem:[%s6727_s16 + $0x78] sm:$0xf] %vm3675_vm3, %v4128_v61  ;;  %v4129_v23 = vpack.c.bf16 %v3546_v47, %v3546_v47 }
 0x20c   : > { %3704 = vst.msk [vmem:[%s6727_s16 + $0x70] sm:$0xf] %vm3675_vm3, %v4126_v48  ;;  %v4127_v26 = vpack.c.bf16 %v3544_v57, %v3544_v57 }
 0x20d   : > { %3707 = vst.msk [vmem:[%s6727_s16 + $0x7c] sm:$0xf] %vm3675_vm3, %v4129_v23 }
 0x20e   : > { %3705 = vst.msk [vmem:[%s6727_s16 + $0x74] sm:$0xf] %vm3675_vm3, %v4127_v26 }
 0x20f PF: > { %s13_s12 = sadd.s32 1, %s4769_s12  }
 0x210   : > { %p10_p4 = scmp.ge.s32.totalorder %s13_s12, 4  }
 0x212   :  { %12 = sbr.rel (!%p10_p4) target bundleno = 1 (0x1), region = 68 }

// kernel: _lambda_.15
= control target key start
LH: loop header
LB: loop body
LE: loop exit
PB: predicated region body
PF: predicated region fallthrough
CT: control target
= control target key end

     0   :  { %s3279_s12 = smov 0   ;;  %s3995_s0 = inlined_call_operand.vmem [shape: bf16[2,22,16,16], index: 0, kind: input, shape index: {}]   ;;  %s3996_s1 = inlined_call_operand.vmem [shape: bf16[7,16,192], index: 1, kind: input, shape index: {}]   ;;  %s3997_s2 = inlined_call_operand.vmem [shape: f32[1,192], index: 2, kind: input, shape index: {}]   ;;  %s3998_s3 = inlined_call_operand.vmem [shape: bf16[2,256,192], index: 3, kind: output, shape index: {}]  }
   0x1 LB: > { %s2576_s13 = sadd.s32 4294967295, %s3256_s12   ;;  %p2580_p0 = scmp.ge.s32.totalorder %s3256_s12, 1  ;;  %s3256_s12 = sphi %s3279_s12, %s13_s12  }
   0x2   : > { %p137_p1 = scmp.lt.s32.totalorder %s3256_s12, 3 }
   0x4   : > { %p138_p2 = pnand %p2580_p0, %p137_p1 }
   0x5   : > { %v3207_v0 = vld [vmem:[%s3996_s1 + $0x14] ss:$8 sps:$4 sm:$0xff] (!%p138_p2)   ;;  %p161_p3 = scmp.lt.s32.totalorder (!%p138_p2), %s2576_s13, 1  ;;  %v3258_v2 = vmov (!%p138_p2), 0   ;;  %v3211_v3 = vld [vmem:[%s3996_s1 + $0x10] ss:$8 sps:$4 sm:$0xff] (!%p138_p2)  }
   0x6   : > { %141 = sbr.rel (%p138_p2) target bundleno = 682 (0x2aa), region = 32  ;;  %v3293_v1 = vld [vmem:[%s3996_s1 + $0x34] ss:$8 sps:$4 sm:$0xff] (!%p138_p2)   ;;  %392 = vmatprep.mubr.bf16.mxu1 (!%p138_p2), %v3258_v2  ;;  %1095 = vmatprep.mubr.bf16.mxu0 (!%p138_p2), %v3258_v2  ;;  %v3303_v4 = vld [vmem:[%s3996_s1 + $0x30] ss:$8 sps:$4 sm:$0xff] (!%p138_p2)   ;;  %vm311_vm0 = vcmask (!%p138_p2), 130048  }
   0x7   : > { %360 = vmatprep.subr.bf16.mxu1 (!%p138_p2), %v3207_v0  ;;  %1063 = vmatprep.subr.bf16.mxu0 (!%p138_p2), %v3293_v1  ;;  %v3215_v5 = vld [vmem:[%s3996_s1 + $0x4] ss:$8 sps:$4 sm:$0xff] (!%p138_p2)   ;;  %v3213_v6 = vld [vmem:[%s3996_s1] ss:$8 sps:$4 sm:$0xff] (!%p138_p2)   ;;  %v3231_v9 = vld [vmem:[%s3996_s1 + $0x54] ss:$8 sps:$4 sm:$0xff] (!%p138_p2)  }
   0x8   : > { %361 = vmatpush1.bf16.msra.mxu1 (!%p138_p2), %v3211_v3  ;;  %1064 = vmatpush1.bf16.msra.mxu0 (!%p138_p2), %v3303_v4  ;;  %v3218_v7 = vld [vmem:[%s3996_s1 + $0x44] ss:$8 sps:$4 sm:$0xff] (!%p138_p2)   ;;  %v3216_v8 = vld [vmem:[%s3996_s1 + $0x40] ss:$8 sps:$4 sm:$0xff] (!%p138_p2)   ;;  %v3229_v21 = vld [vmem:[%s3996_s1 + $0x50] ss:$8 sps:$4 sm:$0xff] (!%p138_p2)  }
   0x9   : > { %571 = vmatprep.subr.bf16.mxu1 (!%p138_p2), %v3215_v5  ;;  %1341 = vmatprep.subr.bf16.mxu0 (!%p138_p2), %v3218_v7  ;;  %v3240_v15 = vld [vmem:[%s3996_s1 + $0x24] ss:$8 sps:$4 sm:$0xff] (!%p138_p2)   ;;  %v3238_v30 = vld [vmem:[%s3996_s1 + $0x20] ss:$8 sps:$4 sm:$0xff] (!%p138_p2)   ;;  %vm2486_vm1 = vcmask (!%p138_p2), 1043456   ;;  %vm2487_vm2 = vcmask (!%p138_p2), 523268  }
   0xa   : > { %v3247_v22 = vld [vmem:[%s3996_s1 + $0x64] ss:$8 sps:$4 sm:$0xff] (!%p138_p2)   ;;  %v3245_v34 = vld [vmem:[%s3996_s1 + $0x60] ss:$8 sps:$4 sm:$0xff] (!%p138_p2)   ;;  %vm3806_vm3 = vmor (!%p138_p2), %vm2487_vm2, %vm2486_vm1 }
   0xd   : > { %s4002_s13 = smov (!%p161_p3, %s2576_s13), 1 }
   0xe   : > { %s3197_s26 = smul.u32 176, %s4002_s13  ;;  %s2778_s23 = sshll.u32 %s4002_s13, 8 }
  0x10   : > { %s3325_s6 = scalar_lea.vmem %s3995_s0, %s3197_s26  ;;  %s3804_s26 = scalar_lea.vmem %s3998_s3, %s2778_s23 }
  0x11   : > { %v3331_v10 = vld [vmem:[%s3325_s6 + $0x8] sm:$0xff]   ;;  %v3334_v11 = vld [vmem:[%s3325_s6 + $0x18] sm:$0xff]   ;;  %v3343_v12 = vld [vmem:[%s3325_s6 + $0x10] sm:$0xff]  }
  0x12   : > { %2604 = vmatmul.mubr.msk.bf16.vlgmr.msra.gmra.mrb[0].mxu1 %vm311_vm0, %v3331_v10  ;;  %2665 = vmatmul.mubr.msk.bf16.vlgmr.msra.gmra.mrb[0].mxu0 %vm311_vm0, %v3334_v11  ;;  %v3346_v13 = vld [vmem:[%s3325_s6 + $0x20] sm:$0xff]   ;;  %v3355_v14 = vld [vmem:[%s3325_s6 + $0x28] sm:$0xff]   ;;  %v3367_v16 = vld [vmem:[%s3325_s6 + $0x30] sm:$0xff]  }
  0x13   : > { %572 = vmatpush1.bf16.msra.mxu1 %v3213_v6  ;;  %1342 = vmatpush1.bf16.msra.mxu0 %v3216_v8  ;;  %v3376_v17 = vld [vmem:[%s3325_s6 + $0x38] sm:$0xff]   ;;  %v3385_v18 = vld [vmem:[%s3325_s6 + $0x40] sm:$0xff]   ;;  %v3394_v19 = vld [vmem:[%s3325_s6 + $0x48] sm:$0xff]  }
  0x14   : > { %402 = vmatprep.mubr.bf16.mxu1 %v3258_v2  ;;  %1105 = vmatprep.mubr.bf16.mxu0 %v3258_v2  ;;  %v3403_v20 = vld [vmem:[%s3325_s6 + $0x50] sm:$0xff]   ;;  %v3430_v23 = vld [vmem:[%s3325_s6 + $0x58] sm:$0xff]   ;;  %v3439_v24 = vld [vmem:[%s3325_s6 + $0x60] sm:$0xff]  }
  0x15   : > { %1619 = vmatprep.subr.bf16.mxu0 %v3231_v9  ;;  %785 = vmatprep.subr.bf16.mxu1 %v3240_v15  ;;  %v3448_v25 = vld [vmem:[%s3325_s6 + $0x68] sm:$0xff]   ;;  %v3457_v26 = vld [vmem:[%s3325_s6 + $0x70] sm:$0xff]   ;;  %v3466_v27 = vld [vmem:[%s3325_s6 + $0x78] sm:$0xff]  }
  0x16   : > { %v3475_v28 = vld [vmem:[%s3325_s6 + $0x80] sm:$0xff]   ;;  %v3518_v31 = vld [vmem:[%s3325_s6 + $0x88] sm:$0xff]   ;;  %v3527_v32 = vld [vmem:[%s3325_s6 + $0x90] sm:$0xff]  }
  0x17   : > { %v3241_v29 = vld [vmem:[%s3325_s6] sm:$0xff]   ;;  %v3536_v33 = vld [vmem:[%s3325_s6 + $0x98] sm:$0xff]   ;;  %v3249_v36 = vld [vmem:[%s3325_s6 + $0xa8] sm:$0xff]  }
  0x18   : > { %v3248_v35 = vld [vmem:[%s3325_s6 + $0xa0] sm:$0xff]  }
  0x19   : > { %v2154_v8 = vld [vmem:[%s3997_s2] sm:$0x3] }
  0x1a   : > { %2605 = vmatmul.mubr.msk.bf16.gmra.mrb[4].mxu1 %vm311_vm0, %v3343_v12  ;;  %2666 = vmatmul.mubr.msk.bf16.gmra.mrb[4].mxu0 %vm311_vm0, %v3346_v13 }
  0x1b   : > { %412 = vmatprep.mubr.bf16.mxu1 %v3258_v2  ;;  %1115 = vmatprep.mubr.bf16.mxu0 %v3258_v2 }
  0x22   : > { %2606 = vmatmul.mubr.msk.bf16.gmra.mrb[8].mxu1 %vm311_vm0, %v3334_v11  ;;  %2667 = vmatmul.mubr.msk.bf16.gmra.mrb[8].mxu0 %vm311_vm0, %v3355_v14 }
  0x23   : > { %422 = vmatprep.mubr.bf16.mxu1 %v3258_v2  ;;  %1125 = vmatprep.mubr.bf16.mxu0 %v3258_v2 }
  0x2a   : > { %2607 = vmatmul.mubr.msk.bf16.gmra.mrb[12].mxu1 %vm311_vm0, %v3346_v13  ;;  %2668 = vmatmul.mubr.msk.bf16.gmra.mrb[12].mxu0 %vm311_vm0, %v3367_v16 }
  0x2b   : > { %432 = vmatprep.mubr.bf16.mxu1 %v3258_v2  ;;  %1135 = vmatprep.mubr.bf16.mxu0 %v3258_v2 }
  0x32   : > { %2608 = vmatmul.mubr.msk.bf16.gmra.mrb[16].mxu1 %vm311_vm0, %v3355_v14  ;;  %2669 = vmatmul.mubr.msk.bf16.gmra.mrb[16].mxu0 %vm311_vm0, %v3376_v17 }
  0x33   : > { %442 = vmatprep.mubr.bf16.mxu1 %v3258_v2  ;;  %1145 = vmatprep.mubr.bf16.mxu0 %v3258_v2 }
  0x3a   : > { %2609 = vmatmul.mubr.msk.bf16.gmra.mrb[20].mxu1 %vm311_vm0, %v3367_v16  ;;  %2670 = vmatmul.mubr.msk.bf16.gmra.mrb[20].mxu0 %vm311_vm0, %v3385_v18 }
  0x3b   : > { %452 = vmatprep.mubr.bf16.mxu1 %v3258_v2  ;;  %1155 = vmatprep.mubr.bf16.mxu0 %v3258_v2 }
  0x42   : > { %2610 = vmatmul.mubr.msk.bf16.gmra.mrb[24].mxu1 %vm311_vm0, %v3376_v17  ;;  %2671 = vmatmul.mubr.msk.bf16.gmra.mrb[24].mxu0 %vm311_vm0, %v3394_v19 }
  0x43   : > { %462 = vmatprep.mubr.bf16.mxu1 %v3258_v2  ;;  %1165 = vmatprep.mubr.bf16.mxu0 %v3258_v2 }
  0x4a   : > { %2611 = vmatmul.mubr.msk.bf16.gmra.mrb[28].mxu1 %vm311_vm0, %v3385_v18  ;;  %2672 = vmatmul.mubr.msk.bf16.gmra.mrb[28].mxu0 %vm311_vm0, %v3403_v20 }
  0x4b   : > { %472 = vmatprep.mubr.bf16.mxu1 %v3258_v2  ;;  %1373 = vmatprep.mubr.bf16.mxu0 %v3258_v2 }
  0x52   : > { %2612 = vmatmul.mubr.msk.bf16.gmra.mrb[32].mxu1 %vm311_vm0, %v3394_v19  ;;  %2686 = vmatmul.mubr.msk.bf16.vlgmr.msra.gmra.mrb[0].mxu0 %vm311_vm0, %v3346_v13 }
  0x53   : > { %482 = vmatprep.mubr.bf16.mxu1 %v3258_v2  ;;  %1620 = vmatpush1.bf16.msra.mxu0 %v3229_v21 }
  0x54   : > { %1383 = vmatprep.mubr.bf16.mxu0 %v3258_v2  ;;  %1897 = vmatprep.subr.bf16.mxu0 %v3247_v22 }
  0x5a   : > { %2613 = vmatmul.mubr.msk.bf16.gmra.mrb[36].mxu1 %vm311_vm0, %v3403_v20  ;;  %2687 = vmatmul.mubr.msk.bf16.gmra.mrb[4].mxu0 %vm311_vm0, %v3355_v14 }
  0x5b   : > { %492 = vmatprep.mubr.bf16.mxu1 %v3258_v2  ;;  %1393 = vmatprep.mubr.bf16.mxu0 %v3258_v2 }
  0x62   : > { %2614 = vmatmul.mubr.msk.bf16.gmra.mrb[40].mxu1 %vm311_vm0, %v3430_v23  ;;  %2688 = vmatmul.mubr.msk.bf16.gmra.mrb[8].mxu0 %vm311_vm0, %v3367_v16 }
  0x63   : > { %502 = vmatprep.mubr.bf16.mxu1 %v3258_v2  ;;  %1403 = vmatprep.mubr.bf16.mxu0 %v3258_v2 }
  0x6a   : > { %2615 = vmatmul.mubr.msk.bf16.gmra.mrb[44].mxu1 %vm311_vm0, %v3439_v24  ;;  %2689 = vmatmul.mubr.msk.bf16.gmra.mrb[12].mxu0 %vm311_vm0, %v3376_v17 }
  0x6b   : > { %512 = vmatprep.mubr.bf16.mxu1 %v3258_v2  ;;  %1413 = vmatprep.mubr.bf16.mxu0 %v3258_v2 }
  0x72   : > { %2616 = vmatmul.mubr.msk.bf16.gmra.mrb[48].mxu1 %vm311_vm0, %v3448_v25  ;;  %2690 = vmatmul.mubr.msk.bf16.gmra.mrb[16].mxu0 %vm311_vm0, %v3385_v18 }
  0x73   : > { %522 = vmatprep.mubr.bf16.mxu1 %v3258_v2  ;;  %1423 = vmatprep.mubr.bf16.mxu0 %v3258_v2 }
  0x7a   : > { %2617 = vmatmul.mubr.msk.bf16.gmra.mrb[52].mxu1 %vm311_vm0, %v3457_v26  ;;  %2691 = vmatmul.mubr.msk.bf16.gmra.mrb[20].mxu0 %vm311_vm0, %v3394_v19 }
  0x7b   : > { %532 = vmatprep.mubr.bf16.mxu1 %v3258_v2  ;;  %1433 = vmatprep.mubr.bf16.mxu0 %v3258_v2 }
  0x82   : > { %2618 = vmatmul.mubr.msk.bf16.gmra.mrb[56].mxu1 %vm311_vm0, %v3466_v27  ;;  %2692 = vmatmul.mubr.msk.bf16.gmra.mrb[24].mxu0 %vm311_vm0, %v3403_v20 }
  0x83   : > { %542 = vmatprep.mubr.bf16.mxu1 %v3258_v2  ;;  %1443 = vmatprep.mubr.bf16.mxu0 %v3258_v2 }
  0x8a   : > { %2619 = vmatmul.mubr.msk.bf16.gmra.mrb[60].mxu1 %vm311_vm0, %v3475_v28  ;;  %2693 = vmatmul.mubr.msk.bf16.gmra.mrb[28].mxu0 %vm311_vm0, %v3430_v23 }
  0x8b   : > { %603 = vmatprep.mubr.bf16.mxu1 %v3258_v2  ;;  %1453 = vmatprep.mubr.bf16.mxu0 %v3258_v2 }
  0x92   : > { %2623 = vmatmul.mubr.msk.bf16.vlgmr.msra.gmra.mrb[0].mxu1 %vm311_vm0, %v3241_v29  ;;  %2694 = vmatmul.mubr.msk.bf16.gmra.mrb[32].mxu0 %vm311_vm0, %v3439_v24 }
  0x93   : > { %786 = vmatpush1.bf16.msra.mxu1 %v3238_v30  ;;  %613 = vmatprep.mubr.bf16.mxu1 %v3258_v2 }
  0x94   : > { %1463 = vmatprep.mubr.bf16.mxu0 %v3258_v2  ;;  %2811 = vmatprep.subr.bf16.mxu1 %v3293_v1  ;;  %v2156_v1 = vlaneseq }
  0x96   : > { %v2157_v3 = vshrl.u32 %v2156_v1, 7 }
  0x98   : > { %v2158_v7 = vsub.s32 0, %v2157_v3  ;;  %v2162_v9 = vsub.s32 1, %v2157_v3 }
  0x9a   : > { %2624 = vmatmul.mubr.msk.bf16.gmra.mrb[4].mxu1 %vm311_vm0, %v3331_v10  ;;  %2695 = vmatmul.mubr.msk.bf16.gmra.mrb[36].mxu0 %vm311_vm0, %v3448_v25  ;;  %v3792_v10 = vrot.slane %v2154_v8, %v2158_v7 }
  0x9b   : > { %623 = vmatprep.mubr.bf16.mxu1 %v3258_v2  ;;  %1473 = vmatprep.mubr.bf16.mxu0 %v3258_v2 }
  0xa2   : > { %2625 = vmatmul.mubr.msk.bf16.gmra.mrb[8].mxu1 %vm311_vm0, %v3343_v12  ;;  %2696 = vmatmul.mubr.msk.bf16.gmra.mrb[40].mxu0 %vm311_vm0, %v3457_v26 }
  0xa3   : > { %633 = vmatprep.mubr.bf16.mxu1 %v3258_v2  ;;  %1483 = vmatprep.mubr.bf16.mxu0 %v3258_v2 }
  0xaa   : > { %2626 = vmatmul.mubr.msk.bf16.gmra.mrb[12].mxu1 %vm311_vm0, %v3334_v11  ;;  %2697 = vmatmul.mubr.msk.bf16.gmra.mrb[44].mxu0 %vm311_vm0, %v3466_v27 }
  0xab   : > { %643 = vmatprep.mubr.bf16.mxu1 %v3258_v2  ;;  %1493 = vmatprep.mubr.bf16.mxu0 %v3258_v2 }
  0xb2   : > { %2627 = vmatmul.mubr.msk.bf16.gmra.mrb[16].mxu1 %vm311_vm0, %v3346_v13  ;;  %2698 = vmatmul.mubr.msk.bf16.gmra.mrb[48].mxu0 %vm311_vm0, %v3475_v28 }
  0xb3   : > { %653 = vmatprep.mubr.bf16.mxu1 %v3258_v2  ;;  %1503 = vmatprep.mubr.bf16.mxu0 %v3258_v2 }
  0xba   : > { %2628 = vmatmul.mubr.msk.bf16.gmra.mrb[20].mxu1 %vm311_vm0, %v3355_v14  ;;  %2699 = vmatmul.mubr.msk.bf16.gmra.mrb[52].mxu0 %vm311_vm0, %v3518_v31 }
  0xbb   : > { %663 = vmatprep.mubr.bf16.mxu1 %v3258_v2  ;;  %1513 = vmatprep.mubr.bf16.mxu0 %v3258_v2 }
  0xc2   : > { %2629 = vmatmul.mubr.msk.bf16.gmra.mrb[24].mxu1 %vm311_vm0, %v3367_v16  ;;  %2700 = vmatmul.mubr.msk.bf16.gmra.mrb[56].mxu0 %vm311_vm0, %v3527_v32 }
  0xc3   : > { %673 = vmatprep.mubr.bf16.mxu1 %v3258_v2  ;;  %1523 = vmatprep.mubr.bf16.mxu0 %v3258_v2 }
  0xca   : > { %2630 = vmatmul.mubr.msk.bf16.gmra.mrb[28].mxu1 %vm311_vm0, %v3376_v17  ;;  %2701 = vmatmul.mubr.msk.bf16.gmra.mrb[60].mxu0 %vm311_vm0, %v3536_v33 }
  0xcb   : > { %683 = vmatprep.mubr.bf16.mxu1 %v3258_v2  ;;  %1651 = vmatprep.mubr.bf16.mxu0 %v3258_v2 }
  0xd2   : > { %2631 = vmatmul.mubr.msk.bf16.gmra.mrb[32].mxu1 %vm311_vm0, %v3385_v18  ;;  %2707 = vmatmul.mubr.msk.bf16.vlgmr.msra.gmra.mrb[0].mxu0 %vm311_vm0, %v3355_v14 }
  0xd3   : > { %693 = vmatprep.mubr.bf16.mxu1 %v3258_v2  ;;  %1898 = vmatpush1.bf16.msra.mxu0 %v3245_v34 }
  0xd4   : > { %1661 = vmatprep.mubr.bf16.mxu0 %v3258_v2 }
  0xda   : > { %2632 = vmatmul.mubr.msk.bf16.gmra.mrb[36].mxu1 %vm311_vm0, %v3394_v19  ;;  %2708 = vmatmul.mubr.msk.bf16.gmra.mrb[4].mxu0 %vm311_vm0, %v3367_v16 }
  0xdb   : > { %703 = vmatprep.mubr.bf16.mxu1 %v3258_v2  ;;  %1671 = vmatprep.mubr.bf16.mxu0 %v3258_v2 }
  0xe2   : > { %2633 = vmatmul.mubr.msk.bf16.gmra.mrb[40].mxu1 %vm311_vm0, %v3403_v20  ;;  %2709 = vmatmul.mubr.msk.bf16.gmra.mrb[8].mxu0 %vm311_vm0, %v3376_v17 }
  0xe3   : > { %713 = vmatprep.mubr.bf16.mxu1 %v3258_v2  ;;  %1681 = vmatprep.mubr.bf16.mxu0 %v3258_v2 }
  0xea   : > { %2634 = vmatmul.mubr.msk.bf16.gmra.mrb[44].mxu1 %vm311_vm0, %v3430_v23  ;;  %2710 = vmatmul.mubr.msk.bf16.gmra.mrb[12].mxu0 %vm311_vm0, %v3385_v18 }
  0xeb   : > { %723 = vmatprep.mubr.bf16.mxu1 %v3258_v2  ;;  %1691 = vmatprep.mubr.bf16.mxu0 %v3258_v2 }
  0xf2   : > { %2635 = vmatmul.mubr.msk.bf16.gmra.mrb[48].mxu1 %vm311_vm0, %v3439_v24  ;;  %2711 = vmatmul.mubr.msk.bf16.gmra.mrb[16].mxu0 %vm311_vm0, %v3394_v19 }
  0xf3   : > { %733 = vmatprep.mubr.bf16.mxu1 %v3258_v2  ;;  %1701 = vmatprep.mubr.bf16.mxu0 %v3258_v2 }
  0xfa   : > { %2636 = vmatmul.mubr.msk.bf16.gmra.mrb[52].mxu1 %vm311_vm0, %v3448_v25  ;;  %2712 = vmatmul.mubr.msk.bf16.gmra.mrb[20].mxu0 %vm311_vm0, %v3403_v20 }
  0xfb   : > { %743 = vmatprep.mubr.bf16.mxu1 %v3258_v2  ;;  %1711 = vmatprep.mubr.bf16.mxu0 %v3258_v2 }
 0x102   : > { %2637 = vmatmul.mubr.msk.bf16.gmra.mrb[56].mxu1 %vm311_vm0, %v3457_v26  ;;  %2713 = vmatmul.mubr.msk.bf16.gmra.mrb[24].mxu0 %vm311_vm0, %v3430_v23 }
 0x103   : > { %753 = vmatprep.mubr.bf16.mxu1 %v3258_v2  ;;  %1721 = vmatprep.mubr.bf16.mxu0 %v3258_v2 }
 0x10a   : > { %2638 = vmatmul.mubr.msk.bf16.gmra.mrb[60].mxu1 %vm311_vm0, %v3466_v27  ;;  %2714 = vmatmul.mubr.msk.bf16.gmra.mrb[28].mxu0 %vm311_vm0, %v3439_v24 }
 0x10b   : > { %817 = vmatprep.mubr.bf16.mxu1 %v3258_v2  ;;  %1731 = vmatprep.mubr.bf16.mxu0 %v3258_v2 }
 0x112   : > { %2644 = vmatmul.mubr.msk.bf16.vlgmr.msra.gmra.mrb[0].mxu1 %vm311_vm0, %v3343_v12  ;;  %2715 = vmatmul.mubr.msk.bf16.gmra.mrb[32].mxu0 %vm311_vm0, %v3448_v25  ;;  %v3794_v12 = vrot.slane %v2154_v8, %v2162_v9 }
 0x113   : > { %2812 = vmatpush1.bf16.msra.mxu1 %v3303_v4  ;;  %827 = vmatprep.mubr.bf16.mxu1 %v3258_v2 }
 0x114   : > { %1741 = vmatprep.mubr.bf16.mxu0 %v3258_v2 }
 0x11a   : > { %2645 = vmatmul.mubr.msk.bf16.gmra.mrb[4].mxu1 %vm311_vm0, %v3334_v11  ;;  %2716 = vmatmul.mubr.msk.bf16.gmra.mrb[36].mxu0 %vm311_vm0, %v3457_v26 }
 0x11b   : > { %837 = vmatprep.mubr.bf16.mxu1 %v3258_v2  ;;  %1751 = vmatprep.mubr.bf16.mxu0 %v3258_v2 }
 0x122   : > { %2646 = vmatmul.mubr.msk.bf16.gmra.mrb[8].mxu1 %vm311_vm0, %v3346_v13  ;;  %2717 = vmatmul.mubr.msk.bf16.gmra.mrb[40].mxu0 %vm311_vm0, %v3466_v27 }
 0x123   : > { %847 = vmatprep.mubr.bf16.mxu1 %v3258_v2  ;;  %1761 = vmatprep.mubr.bf16.mxu0 %v3258_v2 }
 0x12a   : > { %2647 = vmatmul.mubr.msk.bf16.gmra.mrb[12].mxu1 %vm311_vm0, %v3355_v14  ;;  %2718 = vmatmul.mubr.msk.bf16.gmra.mrb[44].mxu0 %vm311_vm0, %v3475_v28 }
 0x12b   : > { %857 = vmatprep.mubr.bf16.mxu1 %v3258_v2  ;;  %1771 = vmatprep.mubr.bf16.mxu0 %v3258_v2 }
 0x132   : > { %2648 = vmatmul.mubr.msk.bf16.gmra.mrb[16].mxu1 %vm311_vm0, %v3367_v16  ;;  %2719 = vmatmul.mubr.msk.bf16.gmra.mrb[48].mxu0 %vm311_vm0, %v3518_v31 }
 0x133   : > { %867 = vmatprep.mubr.bf16.mxu1 %v3258_v2  ;;  %1781 = vmatprep.mubr.bf16.mxu0 %v3258_v2 }
 0x13a   : > { %2649 = vmatmul.mubr.msk.bf16.gmra.mrb[20].mxu1 %vm311_vm0, %v3376_v17  ;;  %2720 = vmatmul.mubr.msk.bf16.gmra.mrb[52].mxu0 %vm311_vm0, %v3527_v32 }
 0x13b   : > { %877 = vmatprep.mubr.bf16.mxu1 %v3258_v2  ;;  %1791 = vmatprep.mubr.bf16.mxu0 %v3258_v2 }
 0x142   : > { %2650 = vmatmul.mubr.msk.bf16.gmra.mrb[24].mxu1 %vm311_vm0, %v3385_v18  ;;  %2721 = vmatmul.mubr.msk.bf16.gmra.mrb[56].mxu0 %vm311_vm0, %v3536_v33 }
 0x143   : > { %887 = vmatprep.mubr.bf16.mxu1 %v3258_v2  ;;  %1801 = vmatprep.mubr.bf16.mxu0 %v3258_v2 }
 0x14a   : > { %2651 = vmatmul.mubr.msk.bf16.gmra.mrb[28].mxu1 %vm311_vm0, %v3394_v19  ;;  %2722 = vmatmul.mubr.msk.bf16.gmra.mrb[60].mxu0 %vm311_vm0, %v3248_v35 }
 0x14b   : > { %897 = vmatprep.mubr.bf16.mxu1 %v3258_v2  ;;  %1929 = vmatprep.mubr.bf16.mxu0 %v3258_v2 }
 0x152   : > { %2652 = vmatmul.mubr.msk.bf16.gmra.mrb[32].mxu1 %vm311_vm0, %v3403_v20  ;;  %2728 = vmatmul.mubr.msk.bf16.vlgmr.msra.gmra.mrb[0].mxu0 %vm311_vm0, %v3367_v16 }
 0x153   : > { %907 = vmatprep.mubr.bf16.mxu1 %v3258_v2  ;;  %1939 = vmatprep.mubr.bf16.mxu0 %v3258_v2 }
 0x15a   : > { %2653 = vmatmul.mubr.msk.bf16.gmra.mrb[36].mxu1 %vm311_vm0, %v3430_v23  ;;  %2729 = vmatmul.mubr.msk.bf16.gmra.mrb[4].mxu0 %vm311_vm0, %v3376_v17 }
 0x15b   : > { %917 = vmatprep.mubr.bf16.mxu1 %v3258_v2  ;;  %1949 = vmatprep.mubr.bf16.mxu0 %v3258_v2 }
 0x162   : > { %2654 = vmatmul.mubr.msk.bf16.gmra.mrb[40].mxu1 %vm311_vm0, %v3439_v24  ;;  %2730 = vmatmul.mubr.msk.bf16.gmra.mrb[8].mxu0 %vm311_vm0, %v3385_v18 }
 0x163   : > { %927 = vmatprep.mubr.bf16.mxu1 %v3258_v2  ;;  %1959 = vmatprep.mubr.bf16.mxu0 %v3258_v2 }
 0x16a   : > { %2655 = vmatmul.mubr.msk.bf16.gmra.mrb[44].mxu1 %vm311_vm0, %v3448_v25  ;;  %2731 = vmatmul.mubr.msk.bf16.gmra.mrb[12].mxu0 %vm311_vm0, %v3394_v19 }
 0x16b   : > { %937 = vmatprep.mubr.bf16.mxu1 %v3258_v2  ;;  %1969 = vmatprep.mubr.bf16.mxu0 %v3258_v2 }
 0x172   : > { %2656 = vmatmul.mubr.msk.bf16.gmra.mrb[48].mxu1 %vm311_vm0, %v3457_v26  ;;  %2732 = vmatmul.mubr.msk.bf16.gmra.mrb[16].mxu0 %vm311_vm0, %v3403_v20 }
 0x173   : > { %947 = vmatprep.mubr.bf16.mxu1 %v3258_v2  ;;  %1979 = vmatprep.mubr.bf16.mxu0 %v3258_v2 }
 0x17a   : > { %2657 = vmatmul.mubr.msk.bf16.gmra.mrb[52].mxu1 %vm311_vm0, %v3466_v27  ;;  %2733 = vmatmul.mubr.msk.bf16.gmra.mrb[20].mxu0 %vm311_vm0, %v3430_v23 }
 0x17b   : > { %957 = vmatprep.mubr.bf16.mxu1 %v3258_v2  ;;  %1989 = vmatprep.mubr.bf16.mxu0 %v3258_v2 }
 0x182   : > { %2658 = vmatmul.mubr.msk.bf16.gmra.mrb[56].mxu1 %vm311_vm0, %v3475_v28  ;;  %2734 = vmatmul.mubr.msk.bf16.gmra.mrb[24].mxu0 %vm311_vm0, %v3439_v24 }
 0x183   : > { %967 = vmatprep.mubr.bf16.mxu1 %v3258_v2  ;;  %1999 = vmatprep.mubr.bf16.mxu0 %v3258_v2 }
 0x18a   : > { %2659 = vmatmul.mubr.msk.bf16.gmra.mrb[60].mxu1 %vm311_vm0, %v3518_v31  ;;  %2735 = vmatmul.mubr.msk.bf16.gmra.mrb[28].mxu0 %vm311_vm0, %v3448_v25 }
 0x18b   : > { %1175 = vmatprep.mubr.bf16.mxu1 %v3258_v2  ;;  %2009 = vmatprep.mubr.bf16.mxu0 %v3258_v2 }
 0x192   : > { %2673 = vmatmul.mubr.msk.bf16.vlgmr.msra.gmra.mrb[32].mxu1 %vm311_vm0, %v3430_v23  ;;  %2736 = vmatmul.mubr.msk.bf16.gmra.mrb[32].mxu0 %vm311_vm0, %v3457_v26 }
 0x193   : > { %1185 = vmatprep.mubr.bf16.mxu1 %v3258_v2  ;;  %2019 = vmatprep.mubr.bf16.mxu0 %v3258_v2 }
 0x19a   : > { %2674 = vmatmul.mubr.msk.bf16.gmra.mrb[36].mxu1 %vm311_vm0, %v3439_v24  ;;  %2737 = vmatmul.mubr.msk.bf16.gmra.mrb[36].mxu0 %vm311_vm0, %v3466_v27 }
 0x19b   : > { %1195 = vmatprep.mubr.bf16.mxu1 %v3258_v2  ;;  %2029 = vmatprep.mubr.bf16.mxu0 %v3258_v2 }
 0x1a2   : > { %2675 = vmatmul.mubr.msk.bf16.gmra.mrb[40].mxu1 %vm311_vm0, %v3448_v25  ;;  %2738 = vmatmul.mubr.msk.bf16.gmra.mrb[40].mxu0 %vm311_vm0, %v3475_v28 }
 0x1a3   : > { %1205 = vmatprep.mubr.bf16.mxu1 %v3258_v2  ;;  %2039 = vmatprep.mubr.bf16.mxu0 %v3258_v2 }
 0x1aa   : > { %2676 = vmatmul.mubr.msk.bf16.gmra.mrb[44].mxu1 %vm311_vm0, %v3457_v26  ;;  %2739 = vmatmul.mubr.msk.bf16.gmra.mrb[44].mxu0 %vm311_vm0, %v3518_v31 }
 0x1ab   : > { %1215 = vmatprep.mubr.bf16.mxu1 %v3258_v2  ;;  %2049 = vmatprep.mubr.bf16.mxu0 %v3258_v2 }
 0x1b2   : > { %2677 = vmatmul.mubr.msk.bf16.gmra.mrb[48].mxu1 %vm311_vm0, %v3466_v27  ;;  %2740 = vmatmul.mubr.msk.bf16.gmra.mrb[48].mxu0 %vm311_vm0, %v3527_v32 }
 0x1b3   : > { %1225 = vmatprep.mubr.bf16.mxu1 %v3258_v2  ;;  %2059 = vmatprep.mubr.bf16.mxu0 %v3258_v2 }
 0x1ba   : > { %2678 = vmatmul.mubr.msk.bf16.gmra.mrb[52].mxu1 %vm311_vm0, %v3475_v28  ;;  %2741 = vmatmul.mubr.msk.bf16.gmra.mrb[52].mxu0 %vm311_vm0, %v3536_v33 }
 0x1bb   : > { %1235 = vmatprep.mubr.bf16.mxu1 %v3258_v2  ;;  %2069 = vmatprep.mubr.bf16.mxu0 %v3258_v2 }
 0x1c2   : > { %2679 = vmatmul.mubr.msk.bf16.gmra.mrb[56].mxu1 %vm311_vm0, %v3518_v31  ;;  %2742 = vmatmul.mubr.msk.bf16.gmra.mrb[56].mxu0 %vm311_vm0, %v3248_v35 }
 0x1c3   : > { %1245 = vmatprep.mubr.bf16.mxu1 %v3258_v2  ;;  %2079 = vmatprep.mubr.bf16.mxu0 %v3258_v2 }
 0x1ca   : > { %2680 = vmatmul.mubr.msk.bf16.gmra.mrb[60].mxu1 %vm311_vm0, %v3527_v32  ;;  %2743 = vmatmul.mubr.msk.bf16.gmra.mrb[60].mxu0 %vm311_vm0, %v3249_v36 }
 0x1e5   : > { %v819_v37 = vpop.f32.mrb[0].mxu1 }
 0x1e6   : > { %v821_v38 = vpop.f32.mrb[1].mxu1 }
 0x1e7   : > { %v823_v39 = vpop.f32.mrb[2].mxu1 }
 0x1e8   : > { %v825_v40 = vpop.f32.mrb[3].mxu1 }
 0x1ed   : > { %v829_v41 = vpop.f32.mrb[4].mxu1 }
 0x1ee   : > { %v831_v42 = vpop.f32.mrb[5].mxu1 }
 0x1ef   : > { %v3737_v43 = vpop.f32.mrb[6].mxu1 }
 0x1f0   : > { %v3739_v44 = vpop.f32.mrb[7].mxu1 }
 0x1f5   : > { %v3741_v45 = vpop.f32.mrb[8].mxu1 }
 0x1f6   : > { %v3743_v46 = vpop.f32.mrb[9].mxu1 }
 0x1f7   : > { %v3745_v47 = vpop.f32.mrb[10].mxu1 }
 0x1f8   : > { %v3747_v48 = vpop.f32.mrb[11].mxu1 }
 0x1fd   : > { %v3749_v49 = vpop.f32.mrb[12].mxu1 }
 0x1fe   : > { %v3751_v50 = vpop.f32.mrb[13].mxu1 }
 0x1ff   : > { %v3753_v51 = vpop.f32.mrb[14].mxu1 }
 0x200   : > { %v3755_v52 = vpop.f32.mrb[15].mxu1 }
 0x205   : > { %v3757_v53 = vpop.f32.mrb[16].mxu1 }
 0x206   : > { %v3759_v54 = vpop.f32.mrb[17].mxu1 }
 0x207   : > { %v3761_v55 = vpop.f32.mrb[18].mxu1 }
 0x208   : > { %v3763_v56 = vpop.f32.mrb[19].mxu1 }
 0x20d   : > { %v3765_v57 = vpop.f32.mrb[20].mxu1 }
 0x20e   : > { %v3767_v58 = vpop.f32.mrb[21].mxu1 }
 0x20f   : > { %v3769_v59 = vpop.f32.mrb[22].mxu1 }
 0x210   : > { %v3771_v60 = vpop.f32.mrb[23].mxu1 }
 0x215   : > { %v3773_v61 = vpop.f32.mrb[24].mxu1 }
 0x216   : > { %v3775_v62 = vpop.f32.mrb[25].mxu1 }
 0x217   : > { %v3777_v63 = vpop.f32.mrb[26].mxu1 }
 0x218   : > { %v3779_v0 = vpop.f32.mrb[27].mxu1 }
 0x21d   : > { %v3781_v2 = vpop.f32.mrb[28].mxu1 }
 0x21e   : > { %v3783_v4 = vpop.f32.mrb[29].mxu1 }
 0x21f   : > { %v3785_v5 = vpop.f32.mrb[30].mxu1 }
 0x220   : > { %v3787_v6 = vpop.f32.mrb[31].mxu1 }
 0x225   : > { %v1931_v11 = vpop.f32.mrb[0].mxu0 }
 0x226   : > { %v2813_v13 = vadd.f32 %v1931_v11, %v819_v37  ;;  %v1933_v14 = vpop.f32.mrb[1].mxu0 }
 0x227   : > { %v2814_v15 = vadd.f32 %v1933_v14, %v821_v38  ;;  %v1935_v16 = vpop.f32.mrb[2].mxu0 }
 0x228   : > { %v2166_v17 = vadd.f32 %v2813_v13, %v3792_v10  ;;  %v2815_v18 = vadd.f32 %v1935_v16, %v823_v39  ;;  %v1937_v19 = vpop.f32.mrb[3].mxu0 }
 0x229   : > { %v2167_v20 = vadd.f32 %v2814_v15, %v3794_v12  ;;  %v2816_v21 = vadd.f32 %v1937_v19, %v825_v40 }
 0x22a   : > { %v2230_v22 = vmax.f32 %v2166_v17, 0.0  ;;  %v2168_v23 = vadd.f32 %v2815_v18, %v3792_v10 }
 0x22b   : > { %v2231_v24 = vmax.f32 %v2167_v20, 0.0  ;;  %v2169_v25 = vadd.f32 %v2816_v21, %v3794_v12 }
 0x22c   : > { %v2232_v27 = vmax.f32 %v2168_v23, 0.0 }
 0x22d   : > { %v2779_v28 = vpack.c.bf16 %v2231_v24, %v2230_v22  ;;  %v2233_v29 = vmax.f32 %v2169_v25, 0.0  ;;  %v1941_v30 = vpop.f32.mrb[4].mxu0 }
 0x22e   : > { %v2817_v31 = vadd.f32 %v1941_v30, %v829_v41  ;;  %v1943_v32 = vpop.f32.mrb[5].mxu0 }
 0x22f   : > { %2489 = vst.msk [vmem:[%s3804_s26] sm:$0xff] %vm3806_vm3, %v2779_v28  ;;  %v2780_v33 = vpack.c.bf16 %v2233_v29, %v2232_v27  ;;  %v2818_v34 = vadd.f32 %v1943_v32, %v831_v42  ;;  %v1945_v35 = vpop.f32.mrb[6].mxu0 }
 0x230   : > { %v2170_v36 = vadd.f32 %v2817_v31, %v3792_v10  ;;  %v2819_v37 = vadd.f32 %v1945_v35, %v3737_v43  ;;  %v1947_v38 = vpop.f32.mrb[7].mxu0 }
 0x231   : > { %2490 = vst.msk [vmem:[%s3804_s26 + $0x8] sm:$0xff] %vm3806_vm3, %v2780_v33  ;;  %v2171_v39 = vadd.f32 %v2818_v34, %v3794_v12  ;;  %v2820_v40 = vadd.f32 %v1947_v38, %v3739_v44 }
 0x232   : > { %v2234_v41 = vmax.f32 %v2170_v36, 0.0  ;;  %v2172_v1 = vadd.f32 %v2819_v37, %v3792_v10 }
 0x233   : > { %v2235_v3 = vmax.f32 %v2171_v39, 0.0  ;;  %v2173_v42 = vadd.f32 %v2820_v40, %v3794_v12 }
 0x234   : > { %v2236_v7 = vmax.f32 %v2172_v1, 0.0 }
 0x235   : > { %v2781_v8 = vpack.c.bf16 %v2235_v3, %v2234_v41  ;;  %v2237_v9 = vmax.f32 %v2173_v42, 0.0  ;;  %v1951_v11 = vpop.f32.mrb[8].mxu0 }
 0x236   : > { %v2821_v43 = vadd.f32 %v1951_v11, %v3741_v45  ;;  %v1953_v13 = vpop.f32.mrb[9].mxu0 }
 0x237   : > { %2491 = vst.msk [vmem:[%s3804_s26 + $0x10] sm:$0xff] %vm3806_vm3, %v2781_v8  ;;  %v2782_v14 = vpack.c.bf16 %v2237_v9, %v2236_v7  ;;  %v2822_v44 = vadd.f32 %v1953_v13, %v3743_v46  ;;  %v1955_v15 = vpop.f32.mrb[10].mxu0 }
 0x238   : > { %v2174_v16 = vadd.f32 %v2821_v43, %v3792_v10  ;;  %v2823_v17 = vadd.f32 %v1955_v15, %v3745_v47  ;;  %v1957_v18 = vpop.f32.mrb[11].mxu0 }
 0x239   : > { %2492 = vst.msk [vmem:[%s3804_s26 + $0x18] sm:$0xff] %vm3806_vm3, %v2782_v14  ;;  %v2175_v19 = vadd.f32 %v2822_v44, %v3794_v12  ;;  %v2824_v45 = vadd.f32 %v1957_v18, %v3747_v48 }
 0x23a   : > { %v2238_v20 = vmax.f32 %v2174_v16, 0.0  ;;  %v2176_v21 = vadd.f32 %v2823_v17, %v3792_v10 }
 0x23b   : > { %v2239_v22 = vmax.f32 %v2175_v19, 0.0  ;;  %v2177_v46 = vadd.f32 %v2824_v45, %v3794_v12 }
 0x23c   : > { %v2240_v23 = vmax.f32 %v2176_v21, 0.0 }
 0x23d   : > { %v2783_v24 = vpack.c.bf16 %v2239_v22, %v2238_v20  ;;  %v2241_v25 = vmax.f32 %v2177_v46, 0.0  ;;  %v1961_v27 = vpop.f32.mrb[12].mxu0 }
 0x23e   : > { %v2825_v47 = vadd.f32 %v1961_v27, %v3749_v49  ;;  %v1963_v28 = vpop.f32.mrb[13].mxu0 }
 0x23f   : > { %2493 = vst.msk [vmem:[%s3804_s26 + $0x20] sm:$0xff] %vm3806_vm3, %v2783_v24  ;;  %v2784_v29 = vpack.c.bf16 %v2241_v25, %v2240_v23  ;;  %v2826_v48 = vadd.f32 %v1963_v28, %v3751_v50  ;;  %v1965_v30 = vpop.f32.mrb[14].mxu0 }
 0x240   : > { %v2178_v31 = vadd.f32 %v2825_v47, %v3792_v10  ;;  %v2827_v32 = vadd.f32 %v1965_v30, %v3753_v51  ;;  %v1967_v33 = vpop.f32.mrb[15].mxu0 }
 0x241   : > { %2494 = vst.msk [vmem:[%s3804_s26 + $0x28] sm:$0xff] %vm3806_vm3, %v2784_v29  ;;  %v2179_v34 = vadd.f32 %v2826_v48, %v3794_v12  ;;  %v2828_v49 = vadd.f32 %v1967_v33, %v3755_v52 }
 0x242   : > { %v2242_v35 = vmax.f32 %v2178_v31, 0.0  ;;  %v2180_v36 = vadd.f32 %v2827_v32, %v3792_v10 }
 0x243   : > { %v2243_v37 = vmax.f32 %v2179_v34, 0.0  ;;  %v2181_v50 = vadd.f32 %v2828_v49, %v3794_v12 }
 0x244   : > { %v2244_v38 = vmax.f32 %v2180_v36, 0.0 }
 0x245   : > { %v2785_v39 = vpack.c.bf16 %v2243_v37, %v2242_v35  ;;  %v2245_v40 = vmax.f32 %v2181_v50, 0.0  ;;  %v1971_v41 = vpop.f32.mrb[16].mxu0 }
 0x246   : > { %v2829_v51 = vadd.f32 %v1971_v41, %v3757_v53  ;;  %v1973_v1 = vpop.f32.mrb[17].mxu0 }
 0x247   : > { %2495 = vst.msk [vmem:[%s3804_s26 + $0x30] sm:$0xff] %vm3806_vm3, %v2785_v39  ;;  %v2786_v3 = vpack.c.bf16 %v2245_v40, %v2244_v38  ;;  %v2830_v52 = vadd.f32 %v1973_v1, %v3759_v54  ;;  %v1975_v42 = vpop.f32.mrb[18].mxu0 }
 0x248   : > { %v2182_v7 = vadd.f32 %v2829_v51, %v3792_v10  ;;  %v2831_v8 = vadd.f32 %v1975_v42, %v3761_v55  ;;  %v1977_v9 = vpop.f32.mrb[19].mxu0 }
 0x249   : > { %2496 = vst.msk [vmem:[%s3804_s26 + $0x38] sm:$0xff] %vm3806_vm3, %v2786_v3  ;;  %v2183_v11 = vadd.f32 %v2830_v52, %v3794_v12  ;;  %v2832_v53 = vadd.f32 %v1977_v9, %v3763_v56 }
 0x24a   : > { %v2246_v43 = vmax.f32 %v2182_v7, 0.0  ;;  %v2184_v13 = vadd.f32 %v2831_v8, %v3792_v10 }
 0x24b   : > { %v2247_v14 = vmax.f32 %v2183_v11, 0.0  ;;  %v2185_v54 = vadd.f32 %v2832_v53, %v3794_v12 }
 0x24c   : > { %v2248_v44 = vmax.f32 %v2184_v13, 0.0 }
 0x24d   : > { %v2787_v15 = vpack.c.bf16 %v2247_v14, %v2246_v43  ;;  %v2249_v16 = vmax.f32 %v2185_v54, 0.0  ;;  %v1981_v17 = vpop.f32.mrb[20].mxu0 }
 0x24e   : > { %v2833_v55 = vadd.f32 %v1981_v17, %v3765_v57  ;;  %v1983_v18 = vpop.f32.mrb[21].mxu0 }
 0x24f   : > { %2497 = vst.msk [vmem:[%s3804_s26 + $0x40] sm:$0xff] %vm3806_vm3, %v2787_v15  ;;  %v2788_v19 = vpack.c.bf16 %v2249_v16, %v2248_v44  ;;  %v2834_v56 = vadd.f32 %v1983_v18, %v3767_v58  ;;  %v1985_v45 = vpop.f32.mrb[22].mxu0 }
 0x250   : > { %v2186_v20 = vadd.f32 %v2833_v55, %v3792_v10  ;;  %v2835_v21 = vadd.f32 %v1985_v45, %v3769_v59  ;;  %v1987_v22 = vpop.f32.mrb[23].mxu0 }
 0x251   : > { %2498 = vst.msk [vmem:[%s3804_s26 + $0x48] sm:$0xff] %vm3806_vm3, %v2788_v19  ;;  %v2187_v46 = vadd.f32 %v2834_v56, %v3794_v12  ;;  %v2836_v57 = vadd.f32 %v1987_v22, %v3771_v60 }
 0x252   : > { %v2250_v23 = vmax.f32 %v2186_v20, 0.0  ;;  %v2188_v24 = vadd.f32 %v2835_v21, %v3792_v10 }
 0x253   : > { %v2251_v25 = vmax.f32 %v2187_v46, 0.0  ;;  %v2189_v58 = vadd.f32 %v2836_v57, %v3794_v12 }
 0x254   : > { %v2252_v27 = vmax.f32 %v2188_v24, 0.0 }
 0x255   : > { %v2789_v47 = vpack.c.bf16 %v2251_v25, %v2250_v23  ;;  %v2253_v28 = vmax.f32 %v2189_v58, 0.0  ;;  %v1991_v29 = vpop.f32.mrb[24].mxu0 }
 0x256   : > { %v2837_v59 = vadd.f32 %v1991_v29, %v3773_v61  ;;  %v1993_v48 = vpop.f32.mrb[25].mxu0 }
 0x257   : > { %2499 = vst.msk [vmem:[%s3804_s26 + $0x50] sm:$0xff] %vm3806_vm3, %v2789_v47  ;;  %v2790_v30 = vpack.c.bf16 %v2253_v28, %v2252_v27  ;;  %v2838_v60 = vadd.f32 %v1993_v48, %v3775_v62  ;;  %v1995_v31 = vpop.f32.mrb[26].mxu0 }
 0x258   : > { %v2190_v32 = vadd.f32 %v2837_v59, %v3792_v10  ;;  %v2839_v33 = vadd.f32 %v1995_v31, %v3777_v63  ;;  %v1997_v34 = vpop.f32.mrb[27].mxu0 }
 0x259   : > { %2500 = vst.msk [vmem:[%s3804_s26 + $0x58] sm:$0xff] %vm3806_vm3, %v2790_v30  ;;  %v2191_v49 = vadd.f32 %v2838_v60, %v3794_v12  ;;  %v2840_v61 = vadd.f32 %v1997_v34, %v3779_v0 }
 0x25a   : > { %v2254_v35 = vmax.f32 %v2190_v32, 0.0  ;;  %v2192_v36 = vadd.f32 %v2839_v33, %v3792_v10 }
 0x25b   : > { %v2255_v37 = vmax.f32 %v2191_v49, 0.0  ;;  %v2193_v62 = vadd.f32 %v2840_v61, %v3794_v12 }
 0x25c   : > { %v2256_v50 = vmax.f32 %v2192_v36, 0.0 }
 0x25d   : > { %v2791_v38 = vpack.c.bf16 %v2255_v37, %v2254_v35  ;;  %v2257_v39 = vmax.f32 %v2193_v62, 0.0  ;;  %v2001_v40 = vpop.f32.mrb[28].mxu0 }
 0x25e   : > { %v2841_v63 = vadd.f32 %v2001_v40, %v3781_v2  ;;  %v2003_v41 = vpop.f32.mrb[29].mxu0 }
 0x25f   : > { %2501 = vst.msk [vmem:[%s3804_s26 + $0x60] sm:$0xff] %vm3806_vm3, %v2791_v38  ;;  %v2792_v51 = vpack.c.bf16 %v2257_v39, %v2256_v50  ;;  %v2842_v0 = vadd.f32 %v2003_v41, %v3783_v4  ;;  %v2005_v1 = vpop.f32.mrb[30].mxu0 }
 0x260   : > { %v2194_v3 = vadd.f32 %v2841_v63, %v3792_v10  ;;  %v2843_v52 = vadd.f32 %v2005_v1, %v3785_v5  ;;  %v2007_v42 = vpop.f32.mrb[31].mxu0 }
 0x261   : > { %2502 = vst.msk [vmem:[%s3804_s26 + $0x68] sm:$0xff] %vm3806_vm3, %v2792_v51  ;;  %v2195_v7 = vadd.f32 %v2842_v0, %v3794_v12  ;;  %v2844_v2 = vadd.f32 %v2007_v42, %v3787_v6 }
 0x262   : > { %v2258_v8 = vmax.f32 %v2194_v3, 0.0  ;;  %v2196_v9 = vadd.f32 %v2843_v52, %v3792_v10 }
 0x263   : > { %v2259_v11 = vmax.f32 %v2195_v7, 0.0  ;;  %v2197_v4 = vadd.f32 %v2844_v2, %v3794_v12 }
 0x264   : > { %v2260_v53 = vmax.f32 %v2196_v9, 0.0 }
 0x265   : > { %v1177_v43 = vpop.f32.mrb[32].mxu1  ;;  %v2793_v13 = vpack.c.bf16 %v2259_v11, %v2258_v8  ;;  %v2261_v5 = vmax.f32 %v2197_v4, 0.0  ;;  %v2011_v14 = vpop.f32.mrb[32].mxu0 }
 0x266   : > { %v1179_v54 = vpop.f32.mrb[33].mxu1  ;;  %v2845_v44 = vadd.f32 %v2011_v14, %v1177_v43  ;;  %v2013_v15 = vpop.f32.mrb[33].mxu0 }
 0x267   : > { %v1181_v16 = vpop.f32.mrb[34].mxu1  ;;  %2503 = vst.msk [vmem:[%s3804_s26 + $0x70] sm:$0xff] %vm3806_vm3, %v2793_v13  ;;  %v2794_v6 = vpack.c.bf16 %v2261_v5, %v2260_v53  ;;  %v2846_v17 = vadd.f32 %v2013_v15, %v1179_v54  ;;  %v2015_v55 = vpop.f32.mrb[34].mxu0 }
 0x268   : > { %v1183_v18 = vpop.f32.mrb[35].mxu1  ;;  %v2198_v19 = vadd.f32 %v2845_v44, %v3792_v10  ;;  %v2847_v56 = vadd.f32 %v2015_v55, %v1181_v16  ;;  %v2017_v45 = vpop.f32.mrb[35].mxu0 }
 0x269   : > { %2504 = vst.msk [vmem:[%s3804_s26 + $0x78] sm:$0xff] %vm3806_vm3, %v2794_v6  ;;  %v2199_v20 = vadd.f32 %v2846_v17, %v3794_v12  ;;  %v2848_v21 = vadd.f32 %v2017_v45, %v1183_v18 }
 0x26a   : > { %v2262_v22 = vmax.f32 %v2198_v19, 0.0  ;;  %v2200_v46 = vadd.f32 %v2847_v56, %v3792_v10 }
 0x26b   : > { %v2263_v57 = vmax.f32 %v2199_v20, 0.0  ;;  %v2201_v23 = vadd.f32 %v2848_v21, %v3794_v12 }
 0x26c   : > { %v2264_v24 = vmax.f32 %v2200_v46, 0.0 }
 0x26d   : > { %v1187_v25 = vpop.f32.mrb[36].mxu1  ;;  %v2795_v58 = vpack.c.bf16 %v2263_v57, %v2262_v22  ;;  %v2265_v27 = vmax.f32 %v2201_v23, 0.0  ;;  %v2021_v47 = vpop.f32.mrb[36].mxu0 }
 0x26e   : > { %v1189_v28 = vpop.f32.mrb[37].mxu1  ;;  %v2849_v29 = vadd.f32 %v2021_v47, %v1187_v25  ;;  %v2023_v59 = vpop.f32.mrb[37].mxu0 }
 0x26f   : > { %v1191_v48 = vpop.f32.mrb[38].mxu1  ;;  %2505 = vst.msk [vmem:[%s3804_s26 + $0x80] sm:$0xff] %vm3806_vm3, %v2795_v58  ;;  %v2796_v30 = vpack.c.bf16 %v2265_v27, %v2264_v24  ;;  %v2850_v60 = vadd.f32 %v2023_v59, %v1189_v28  ;;  %v2025_v31 = vpop.f32.mrb[38].mxu0 }
 0x270   : > { %v1193_v32 = vpop.f32.mrb[39].mxu1  ;;  %v2202_v33 = vadd.f32 %v2849_v29, %v3792_v10  ;;  %v2851_v34 = vadd.f32 %v2025_v31, %v1191_v48  ;;  %v2027_v49 = vpop.f32.mrb[39].mxu0 }
 0x271   : > { %2506 = vst.msk [vmem:[%s3804_s26 + $0x88] sm:$0xff] %vm3806_vm3, %v2796_v30  ;;  %v2203_v61 = vadd.f32 %v2850_v60, %v3794_v12  ;;  %v2852_v35 = vadd.f32 %v2027_v49, %v1193_v32 }
 0x272   : > { %v2266_v36 = vmax.f32 %v2202_v33, 0.0  ;;  %v2204_v37 = vadd.f32 %v2851_v34, %v3792_v10 }
 0x273   : > { %v2267_v62 = vmax.f32 %v2203_v61, 0.0  ;;  %v2205_v50 = vadd.f32 %v2852_v35, %v3794_v12 }
 0x274   : > { %v2268_v38 = vmax.f32 %v2204_v37, 0.0 }
 0x275   : > { %v1197_v39 = vpop.f32.mrb[40].mxu1  ;;  %v2797_v40 = vpack.c.bf16 %v2267_v62, %v2266_v36  ;;  %v2269_v63 = vmax.f32 %v2205_v50, 0.0  ;;  %v2031_v41 = vpop.f32.mrb[40].mxu0 }
 0x276   : > { %v1199_v51 = vpop.f32.mrb[41].mxu1  ;;  %v2853_v0 = vadd.f32 %v2031_v41, %v1197_v39  ;;  %v2033_v1 = vpop.f32.mrb[41].mxu0 }
 0x277   : > { %v1201_v3 = vpop.f32.mrb[42].mxu1  ;;  %2507 = vst.msk [vmem:[%s3804_s26 + $0x90] sm:$0xff] %vm3806_vm3, %v2797_v40  ;;  %v2798_v52 = vpack.c.bf16 %v2269_v63, %v2268_v38  ;;  %v2854_v42 = vadd.f32 %v2033_v1, %v1199_v51  ;;  %v2035_v7 = vpop.f32.mrb[42].mxu0 }
 0x278   : > { %v1203_v2 = vpop.f32.mrb[43].mxu1  ;;  %v2206_v8 = vadd.f32 %v2853_v0, %v3792_v10  ;;  %v2855_v9 = vadd.f32 %v2035_v7, %v1201_v3  ;;  %v2037_v11 = vpop.f32.mrb[43].mxu0 }
 0x279   : > { %2508 = vst.msk [vmem:[%s3804_s26 + $0x98] sm:$0xff] %vm3806_vm3, %v2798_v52  ;;  %v2207_v4 = vadd.f32 %v2854_v42, %v3794_v12  ;;  %v2856_v53 = vadd.f32 %v2037_v11, %v1203_v2 }
 0x27a   : > { %v2270_v43 = vmax.f32 %v2206_v8, 0.0  ;;  %v2208_v13 = vadd.f32 %v2855_v9, %v3792_v10 }
 0x27b   : > { %v2271_v5 = vmax.f32 %v2207_v4, 0.0  ;;  %v2209_v14 = vadd.f32 %v2856_v53, %v3794_v12 }
 0x27c   : > { %v2272_v54 = vmax.f32 %v2208_v13, 0.0 }
 0x27d   : > { %v1207_v44 = vpop.f32.mrb[44].mxu1  ;;  %v2799_v15 = vpack.c.bf16 %v2271_v5, %v2270_v43  ;;  %v2273_v16 = vmax.f32 %v2209_v14, 0.0  ;;  %v2041_v6 = vpop.f32.mrb[44].mxu0 }
 0x27e   : > { %v1209_v17 = vpop.f32.mrb[45].mxu1  ;;  %v2857_v55 = vadd.f32 %v2041_v6, %v1207_v44  ;;  %v2043_v18 = vpop.f32.mrb[45].mxu0 }
 0x27f   : > { %v1211_v19 = vpop.f32.mrb[46].mxu1  ;;  %2509 = vst.msk [vmem:[%s3804_s26 + $0xa0] sm:$0xff] %vm3806_vm3, %v2799_v15  ;;  %v2800_v56 = vpack.c.bf16 %v2273_v16, %v2272_v54  ;;  %v2858_v45 = vadd.f32 %v2043_v18, %v1209_v17  ;;  %v2045_v20 = vpop.f32.mrb[46].mxu0 }
 0x280   : > { %v1213_v21 = vpop.f32.mrb[47].mxu1  ;;  %v2210_v22 = vadd.f32 %v2857_v55, %v3792_v10  ;;  %v2859_v46 = vadd.f32 %v2045_v20, %v1211_v19  ;;  %v2047_v57 = vpop.f32.mrb[47].mxu0 }
 0x281   : > { %2510 = vst.msk [vmem:[%s3804_s26 + $0xa8] sm:$0xff] %vm3806_vm3, %v2800_v56  ;;  %v2211_v23 = vadd.f32 %v2858_v45, %v3794_v12  ;;  %v2860_v24 = vadd.f32 %v2047_v57, %v1213_v21 }
 0x282   : > { %v2274_v25 = vmax.f32 %v2210_v22, 0.0  ;;  %v2212_v58 = vadd.f32 %v2859_v46, %v3792_v10 }
 0x283   : > { %v2275_v27 = vmax.f32 %v2211_v23, 0.0  ;;  %v2213_v47 = vadd.f32 %v2860_v24, %v3794_v12 }
 0x284   : > { %v2276_v28 = vmax.f32 %v2212_v58, 0.0 }
 0x285   : > { %v1217_v29 = vpop.f32.mrb[48].mxu1  ;;  %v2801_v59 = vpack.c.bf16 %v2275_v27, %v2274_v25  ;;  %v2277_v48 = vmax.f32 %v2213_v47, 0.0  ;;  %v2051_v30 = vpop.f32.mrb[48].mxu0 }
 0x286   : > { %v1219_v60 = vpop.f32.mrb[49].mxu1  ;;  %v2861_v31 = vadd.f32 %v2051_v30, %v1217_v29  ;;  %v2053_v32 = vpop.f32.mrb[49].mxu0 }
 0x287   : > { %v1221_v33 = vpop.f32.mrb[50].mxu1  ;;  %2511 = vst.msk [vmem:[%s3804_s26 + $0xb0] sm:$0xff] %vm3806_vm3, %v2801_v59  ;;  %v2802_v34 = vpack.c.bf16 %v2277_v48, %v2276_v28  ;;  %v2862_v49 = vadd.f32 %v2053_v32, %v1219_v60  ;;  %v2055_v61 = vpop.f32.mrb[50].mxu0 }
 0x288   : > { %v1223_v35 = vpop.f32.mrb[51].mxu1  ;;  %v2214_v36 = vadd.f32 %v2861_v31, %v3792_v10  ;;  %v2863_v37 = vadd.f32 %v2055_v61, %v1221_v33  ;;  %v2057_v62 = vpop.f32.mrb[51].mxu0 }
 0x289   : > { %2512 = vst.msk [vmem:[%s3804_s26 + $0xb8] sm:$0xff] %vm3806_vm3, %v2802_v34  ;;  %v2215_v50 = vadd.f32 %v2862_v49, %v3794_v12  ;;  %v2864_v38 = vadd.f32 %v2057_v62, %v1223_v35 }
 0x28a   : > { %v2278_v39 = vmax.f32 %v2214_v36, 0.0  ;;  %v2216_v40 = vadd.f32 %v2863_v37, %v3792_v10 }
 0x28b   : > { %v2279_v63 = vmax.f32 %v2215_v50, 0.0  ;;  %v2217_v41 = vadd.f32 %v2864_v38, %v3794_v12 }
 0x28c   : > { %v2280_v51 = vmax.f32 %v2216_v40, 0.0 }
 0x28d   : > { %v1227_v0 = vpop.f32.mrb[52].mxu1  ;;  %v2803_v1 = vpack.c.bf16 %v2279_v63, %v2278_v39  ;;  %v2281_v3 = vmax.f32 %v2217_v41, 0.0  ;;  %v2061_v52 = vpop.f32.mrb[52].mxu0 }
 0x28e   : > { %v1229_v42 = vpop.f32.mrb[53].mxu1  ;;  %v2865_v7 = vadd.f32 %v2061_v52, %v1227_v0  ;;  %v2063_v2 = vpop.f32.mrb[53].mxu0 }
 0x28f   : > { %v1231_v8 = vpop.f32.mrb[54].mxu1  ;;  %2513 = vst.msk [vmem:[%s3804_s26 + $0xc0] sm:$0xff] %vm3806_vm3, %v2803_v1  ;;  %v2804_v9 = vpack.c.bf16 %v2281_v3, %v2280_v51  ;;  %v2866_v11 = vadd.f32 %v2063_v2, %v1229_v42  ;;  %v2065_v4 = vpop.f32.mrb[54].mxu0 }
 0x290   : > { %v1233_v53 = vpop.f32.mrb[55].mxu1  ;;  %v2218_v43 = vadd.f32 %v2865_v7, %v3792_v10  ;;  %v2867_v13 = vadd.f32 %v2065_v4, %v1231_v8  ;;  %v2067_v5 = vpop.f32.mrb[55].mxu0 }
 0x291   : > { %2514 = vst.msk [vmem:[%s3804_s26 + $0xc8] sm:$0xff] %vm3806_vm3, %v2804_v9  ;;  %v2219_v14 = vadd.f32 %v2866_v11, %v3794_v12  ;;  %v2868_v54 = vadd.f32 %v2067_v5, %v1233_v53 }
 0x292   : > { %v2282_v44 = vmax.f32 %v2218_v43, 0.0  ;;  %v2220_v15 = vadd.f32 %v2867_v13, %v3792_v10 }
 0x293   : > { %v2283_v16 = vmax.f32 %v2219_v14, 0.0  ;;  %v2221_v6 = vadd.f32 %v2868_v54, %v3794_v12 }
 0x294   : > { %v2284_v17 = vmax.f32 %v2220_v15, 0.0 }
 0x295   : > { %v1237_v55 = vpop.f32.mrb[56].mxu1  ;;  %v2805_v18 = vpack.c.bf16 %v2283_v16, %v2282_v44  ;;  %v2285_v19 = vmax.f32 %v2221_v6, 0.0  ;;  %v2071_v56 = vpop.f32.mrb[56].mxu0 }
 0x296   : > { %v1239_v45 = vpop.f32.mrb[57].mxu1  ;;  %v2869_v20 = vadd.f32 %v2071_v56, %v1237_v55  ;;  %v2073_v21 = vpop.f32.mrb[57].mxu0 }
 0x297   : > { %v1241_v22 = vpop.f32.mrb[58].mxu1  ;;  %2515 = vst.msk [vmem:[%s3804_s26 + $0xd0] sm:$0xff] %vm3806_vm3, %v2805_v18  ;;  %v2806_v46 = vpack.c.bf16 %v2285_v19, %v2284_v17  ;;  %v2870_v57 = vadd.f32 %v2073_v21, %v1239_v45  ;;  %v2075_v23 = vpop.f32.mrb[58].mxu0 }
 0x298   : > { %v1243_v24 = vpop.f32.mrb[59].mxu1  ;;  %v2222_v25 = vadd.f32 %v2869_v20, %v3792_v10  ;;  %v2871_v58 = vadd.f32 %v2075_v23, %v1241_v22  ;;  %v2077_v27 = vpop.f32.mrb[59].mxu0 }
 0x299   : > { %2516 = vst.msk [vmem:[%s3804_s26 + $0xd8] sm:$0xff] %vm3806_vm3, %v2806_v46  ;;  %v2223_v47 = vadd.f32 %v2870_v57, %v3794_v12  ;;  %v2872_v28 = vadd.f32 %v2077_v27, %v1243_v24 }
 0x29a   : > { %v2286_v29 = vmax.f32 %v2222_v25, 0.0  ;;  %v2224_v59 = vadd.f32 %v2871_v58, %v3792_v10 }
 0x29b   : > { %v2287_v48 = vmax.f32 %v2223_v47, 0.0  ;;  %v2225_v30 = vadd.f32 %v2872_v28, %v3794_v12 }
 0x29c   : > { %v2288_v60 = vmax.f32 %v2224_v59, 0.0 }
 0x29d   : > { %v1247_v31 = vpop.f32.mrb[60].mxu1  ;;  %v2807_v32 = vpack.c.bf16 %v2287_v48, %v2286_v29  ;;  %v2289_v33 = vmax.f32 %v2225_v30, 0.0  ;;  %v2081_v34 = vpop.f32.mrb[60].mxu0 }
 0x29e   : > { %v1249_v49 = vpop.f32.mrb[61].mxu1  ;;  %v2873_v61 = vadd.f32 %v2081_v34, %v1247_v31  ;;  %v2083_v35 = vpop.f32.mrb[61].mxu0 }
 0x29f   : > { %v1251_v36 = vpop.f32.mrb[62].mxu1  ;;  %2517 = vst.msk [vmem:[%s3804_s26 + $0xe0] sm:$0xff] %vm3806_vm3, %v2807_v32  ;;  %v2808_v37 = vpack.c.bf16 %v2289_v33, %v2288_v60  ;;  %v2874_v62 = vadd.f32 %v2083_v35, %v1249_v49  ;;  %v2085_v50 = vpop.f32.mrb[62].mxu0 }
 0x2a0   : > { %v1253_v38 = vpop.f32.mrb[63].mxu1  ;;  %v2226_v39 = vadd.f32 %v2873_v61, %v3792_v10  ;;  %v2875_v40 = vadd.f32 %v2085_v50, %v1251_v36  ;;  %v2087_v63 = vpop.f32.mrb[63].mxu0 }
 0x2a1   : > { %2518 = vst.msk [vmem:[%s3804_s26 + $0xe8] sm:$0xff] %vm3806_vm3, %v2808_v37  ;;  %v2227_v41 = vadd.f32 %v2874_v62, %v3794_v12  ;;  %v2876_v51 = vadd.f32 %v2087_v63, %v1253_v38 }
 0x2a2   : > { %v2290_v0 = vmax.f32 %v2226_v39, 0.0  ;;  %v2228_v1 = vadd.f32 %v2875_v40, %v3792_v10 }
 0x2a3   : > { %v2291_v3 = vmax.f32 %v2227_v41, 0.0  ;;  %v2229_v52 = vadd.f32 %v2876_v51, %v3794_v12 }
 0x2a4   : > { %v2292_v42 = vmax.f32 %v2228_v1, 0.0 }
 0x2a5   : > { %v2809_v7 = vpack.c.bf16 %v2291_v3, %v2290_v0  ;;  %v2293_v2 = vmax.f32 %v2229_v52, 0.0 }
 0x2a7   : > { %2519 = vst.msk [vmem:[%s3804_s26 + $0xf0] sm:$0xff] %vm3806_vm3, %v2809_v7  ;;  %v2810_v8 = vpack.c.bf16 %v2293_v2, %v2292_v42 }
 0x2a9   : > { %2520 = vst.msk [vmem:[%s3804_s26 + $0xf8] sm:$0xff] %vm3806_vm3, %v2810_v8 }
 0x2aa PF: > { %s13_s12 = sadd.s32 1, %s3256_s12  }
 0x2ab   : > { %p10_p4 = scmp.ge.s32.totalorder %s13_s12, 4  }
 0x2ad   :  { %12 = sbr.rel (!%p10_p4) target bundleno = 1 (0x1), region = 68 }

</bundles_post_ra>
